<compile_context>
chip_gen: v7x
topology: tpu7x:2x2x1
jax: 0.10.0
libtpu: 0.0.40
codegen_flags: <defaults>
</compile_context>

<pallas_src>
import jax
import jax.numpy as jnp
from jax.experimental import pallas as pl
from jax.experimental.pallas import tpu as pltpu

NEG_SLOPE = 0.01  # torch.nn.functional.leaky_relu default negative_slope

# ----- network constants (DQN.network_setup defaults: insize=(3,17,17), channels=4) -----
BATCH = 2
IN_C, IN_D, IN_H, IN_W = 4, 3, 17, 17
C1, C2, C3 = 32, 64, 64
D1, H1, W1 = 2, 16, 16            # conv1 out (k=2, s=1)
D2, H2, W2 = 2, 9, 9              # conv2 out (k=2, s=2, p=1)
D3, H3, W3 = 1, 8, 8              # conv3 out (k=2, s=1)
HB, WB = H1 // 2, W1 // 2         # parity-block grid of conv1 output
S3 = D3 * H3 * W3                 # 64 spatial positions after conv3
FLAT = C3 * S3                    # 4096 (true conv3 flatten size; see TODO in __main__)
FC4 = 512
N_ACTIONS = 6                     # len(agent.possibleact): UP/DOWN/LEFT/RIGHT/WAIT/BOMB
N_PAD = 128                       # lane-dense padded head width
K_STEPS = 4                       # grid steps streaming the fc4 weight
S_PER_STEP = S3 // K_STEPS        # 16 spatial rows of w4 per step
GROUP_ROWS = BATCH * HB * WB      # 128 rows per (d1, h-parity, w-parity) group


def _leaky(v):
    return jnp.where(v >= 0, v, NEG_SLOPE * v)


# --------------------------------- fused kernel ---------------------------------
def _dqn_kernel(col1_ref, w1_ref, b1_ref, w2_ref, b2_ref, w3_ref, b3_ref,
                w4_ref, b4_ref, w5_ref, b5_ref, q_ref,
                a2_ref, a3_ref, y4_ref):
    k = pl.program_id(0)

    # ---- step 0: full conv stack (all operands already resident in VMEM) ----
    @pl.when(k == 0)
    def _conv_stack():
        a2_ref[...] = jnp.zeros_like(a2_ref)
        # conv1 + conv2 fused per conv2 kernel tap (kd, kh, kw).  col1 rows were
        # pre-grouped by (d1, h1 % 2, w1 % 2), so each tap's stride-2 gather over
        # conv1's output is exactly one contiguous 128-row group.
        for kd in range(2):
            for kh in range(2):
                for kw in range(2):
                    t = (kd * 2 + kh) * 2 + kw
                    g = ((1 - kd) * 2 + (1 - kh)) * 2 + (1 - kw)
                    x_g = col1_ref[GROUP_ROWS * g:GROUP_ROWS * (g + 1), :]
                    a1_g = jnp.dot(x_g, w1_ref[...],
                                   preferred_element_type=jnp.float32)
                    a1_g = _leaky(a1_g + b1_ref[...])                  # (128, 32)
                    contrib = jnp.dot(a1_g, w2_ref[C1 * t:C1 * (t + 1), :],
                                      preferred_element_type=jnp.float32)
                    contrib = contrib.reshape(BATCH, HB, WB, C2)       # (2, 8, 8, 64)
                    d2 = 1 - kd
                    ho = 1 - kh
                    wo = 1 - kw
                    cur = a2_ref[BATCH * d2:BATCH * (d2 + 1),
                                 ho:ho + HB, wo:wo + WB, :]
                    a2_ref[BATCH * d2:BATCH * (d2 + 1),
                           ho:ho + HB, wo:wo + WB, :] = cur + contrib
        # conv2 bias + activation, in place (stays in VMEM)
        a2_ref[...] = _leaky(a2_ref[...] + b2_ref[...])

        # conv3 (k=2, s=1): static contiguous slices of the conv2 activation.
        acc3 = jnp.zeros((BATCH * H3 * W3, C3), jnp.float32)
        for kd in range(2):
            for kh in range(2):
                for kw in range(2):
                    t = (kd * 2 + kh) * 2 + kw
                    x_t = a2_ref[BATCH * kd:BATCH * (kd + 1),
                                 kh:kh + H3, kw:kw + W3, :]
                    x_t = x_t.reshape(BATCH * H3 * W3, C2)             # (128, 64)
                    acc3 = acc3 + jnp.dot(x_t, w3_ref[C2 * t:C2 * (t + 1), :],
                                          preferred_element_type=jnp.float32)
        a3 = _leaky(acc3 + b3_ref[...])                                # (128, 64)
        a3_ref[...] = a3.reshape(BATCH, S3, C3)                        # (2, 64, 64)
        y4_ref[...] = jnp.zeros_like(y4_ref)

    # ---- every step: fc4 partial product for spatial rows [k*16, k*16+16) ----
    s0 = pl.multiple_of(k * S_PER_STEP, S_PER_STEP)
    a3_chunk = a3_ref[:, pl.ds(s0, S_PER_STEP), :]                     # (2, 16, 64) f32
    part = jnp.zeros((BATCH, FC4), jnp.float32)
    for j in range(S_PER_STEP):
        lhs = a3_chunk[:, j, :].astype(jnp.bfloat16)                   # (2, 64)
        rhs = w4_ref[C3 * j:C3 * (j + 1), :]                           # (64, 512) bf16
        part = part + jnp.dot(lhs, rhs, preferred_element_type=jnp.float32)
    y4_ref[...] = y4_ref[...] + part

    # ---- last step: fc4 bias+act and fc5 head (lane-dense 128-wide output) ----
    @pl.when(k == pl.num_programs(0) - 1)
    def _head():
        h4 = _leaky(y4_ref[...] + b4_ref[...])                         # (2, 512)
        q = jnp.dot(h4, w5_ref[...], preferred_element_type=jnp.float32)
        q_ref[...] = q + b5_ref[...]                                   # (2, 128)


# --------------------------------- host-side glue ---------------------------------
def _build_col1(x):
    """im2col for conv1 (k=2, s=1) with rows grouped as
    (d1, h1%2, w1%2 | n, h1//2, w1//2) and columns ordered (kd, kh, kw, cin).
    The parity grouping makes conv2's stride-2/pad-1 gather contiguous in-kernel."""
    x_t = jnp.transpose(x, (0, 2, 3, 4, 1))                  # NDHWC (2, 3, 17, 17, 4)
    taps = []
    for kd in range(2):
        for kh in range(2):
            for kw in range(2):
                taps.append(x_t[:, kd:kd + D1, kh:kh + H1, kw:kw + W1, :])
    col = jnp.stack(taps, axis=-2)                           # (N, D1, H1, W1, 8, C)
    col = col.reshape(BATCH, D1, HB, 2, WB, 2, 8, IN_C)      # split H1,W1 -> (hb,hp),(wb,wp)
    col = jnp.transpose(col, (1, 3, 5, 0, 2, 4, 6, 7))       # (d1, hp, wp, n, hb, wb, tap, c)
    return col.reshape(8 * GROUP_ROWS, 8 * IN_C)             # (1024, 32)


def _prep_kernel_params(w1, b1, w2, b2, w3, b3, w4, b4, w5, b5):
    """Reorder PyTorch-layout weights into the kernel's matmul layouts (one-time)."""
    w1_mat = jnp.transpose(w1, (2, 3, 4, 1, 0)).reshape(8 * IN_C, C1)   # (tap,cin) x cout
    w2_mat = jnp.transpose(w2, (2, 3, 4, 1, 0)).reshape(8 * C1, C2)
    w3_mat = jnp.transpose(w3, (2, 3, 4, 1, 0)).reshape(8 * C2, C3)
    # fc4 torch weight is (512, 4096) with in-index = c*64 + s (NCDHW flatten).
    # Reorder rows to (s, c) so the kernel consumes conv3's (n, s, c) layout without
    # an in-kernel relayout, and cast to bf16 (halves the dominant HBM transfer).
    w4_r = jnp.transpose(w4.reshape(FC4, C3, S3), (2, 1, 0)).reshape(FLAT, FC4)
    w4_bf = w4_r.astype(jnp.bfloat16)
    # fc5 padded to 128 output lanes for a lane-dense store; sliced to 6 outside.
    w5_pad = jnp.zeros((FC4, N_PAD), jnp.float32).at[:, :N_ACTIONS].set(w5.T)
    b5_pad = jnp.zeros((1, N_PAD), jnp.float32).at[:, :N_ACTIONS].set(b5.reshape(1, -1))
    return (w1_mat, b1.reshape(1, -1), w2_mat, b2.reshape(1, -1),
            w3_mat, b3.reshape(1, -1), w4_bf, b4.reshape(1, -1), w5_pad, b5_pad)


def _dqn_pallas(col1, w1_mat, b1, w2_mat, b2, w3_mat, b3, w4_bf, b4, w5_pad, b5_pad):
    q_pad = pl.pallas_call(
        _dqn_kernel,
        out_shape=jax.ShapeDtypeStruct((BATCH, N_PAD), jnp.float32),
        grid_spec=pltpu.PrefetchScalarGridSpec(
            num_scalar_prefetch=0,
            grid=(K_STEPS,),
            in_specs=[
                pl.BlockSpec((8 * GROUP_ROWS, 8 * IN_C), lambda k: (0, 0)),  # col1
                pl.BlockSpec((8 * IN_C, C1), lambda k: (0, 0)),              # w1
                pl.BlockSpec((1, C1), lambda k: (0, 0)),                     # b1
                pl.BlockSpec((8 * C1, C2), lambda k: (0, 0)),                # w2
                pl.BlockSpec((1, C2), lambda k: (0, 0)),                     # b2
                pl.BlockSpec((8 * C2, C3), lambda k: (0, 0)),                # w3
                pl.BlockSpec((1, C3), lambda k: (0, 0)),                     # b3
                pl.BlockSpec((S_PER_STEP * C3, FC4), lambda k: (k, 0)),      # w4 (streamed bf16)
                pl.BlockSpec((1, FC4), lambda k: (0, 0)),                    # b4
                pl.BlockSpec((FC4, N_PAD), lambda k: (0, 0)),                # w5 (padded)
                pl.BlockSpec((1, N_PAD), lambda k: (0, 0)),                  # b5
            ],
            out_specs=pl.BlockSpec((BATCH, N_PAD), lambda k: (0, 0)),
            scratch_shapes=[
                pltpu.VMEM((BATCH * D2, H2, W2, C2), jnp.float32),  # conv2 accumulator
                pltpu.VMEM((BATCH, S3, C3), jnp.float32),           # conv3 output (n, s, c)
                pltpu.VMEM((BATCH, FC4), jnp.float32),              # fc4 accumulator
            ],
        ),
        compiler_params=pltpu.CompilerParams(
            dimension_semantics=("arbitrary",),
        ),
    )(col1, w1_mat, b1, w2_mat, b2, w3_mat, b3, w4_bf, b4, w5_pad, b5_pad)
    return q_pad[:, :N_ACTIONS]


# --------------------------- pure-JAX reference (for checking) ---------------------------
def _reference_forward(x, params):
    w1, b1, w2, b2, w3, b3, w4, b4, w5, b5 = params

    def conv(h, w, b, stride, pad):
        out = jax.lax.conv_general_dilated(
            h, w, window_strides=(stride,) * 3, padding=[(pad, pad)] * 3,
            dimension_numbers=('NCDHW', 'OIDHW', 'NCDHW'),
            precision=jax.lax.Precision.HIGHEST)
        return out + b.reshape(1, -1, 1, 1, 1)

    h = _leaky(conv(x, w1, b1, 1, 0))
    h = _leaky(conv(h, w2, b2, 2, 1))
    h = _leaky(conv(h, w3, b3, 1, 0))
    h = h.reshape(h.shape[0], -1)
    w4_q = w4.astype(jnp.bfloat16).astype(jnp.float32)   # kernel stores fc4 weight in bf16
    h = _leaky(jnp.dot(h, w4_q.T, precision=jax.lax.Precision.HIGHEST) + b4)
    return jnp.dot(h, w5.T, precision=jax.lax.Precision.HIGHEST) + b5


# ------------------------------------- main -------------------------------------
if __name__ == "__main__":
    key = jax.random.PRNGKey(0)
    ks = jax.random.split(key, 8)
    x = jax.random.normal(ks[0], (BATCH, IN_C, IN_D, IN_H, IN_W), jnp.float32)

    def kaiming(k, shape, fan_in):
        gain = (2.0 / (1.0 + NEG_SLOPE ** 2)) ** 0.5
        bound = gain * (3.0 / fan_in) ** 0.5
        return jax.random.uniform(k, shape, jnp.float32, -bound, bound)

    # conv1: Conv3d(4, 32, k=2, s=1); conv2: Conv3d(32, 64, k=2, s=2, p=1); conv3: Conv3d(64, 64, k=2, s=1)
    w1 = kaiming(ks[1], (C1, IN_C, 2, 2, 2), IN_C * 8)
    b1 = jnp.full((C1,), 0.01, jnp.float32)
    w2 = kaiming(ks[2], (C2, C1, 2, 2, 2), C1 * 8)
    b2 = jnp.full((C2,), 0.01, jnp.float32)
    w3 = kaiming(ks[3], (C3, C2, 2, 2, 2), C2 * 8)
    b3 = jnp.full((C3,), 0.01, jnp.float32)
    # TODO(synk): network_setup's fc4 size formula uses ks=1 for conv3 (10368 features),
    # contradicting the actual conv3 (ks=2) output of 4096; the true size is used so forward runs.
    w4 = kaiming(ks[4], (FC4, FLAT), FLAT)                 # torch Linear layout (out, in)
    b4 = jnp.full((FC4,), 0.01, jnp.float32)
    w5 = kaiming(ks[5], (N_ACTIONS, FC4), FC4)
    b5 = jnp.full((N_ACTIONS,), 0.01, jnp.float32)

    torch_params = (w1, b1, w2, b2, w3, b3, w4, b4, w5, b5)
    kernel_params = _prep_kernel_params(*torch_params)

    fwd = jax.jit(lambda xx, pp: _dqn_pallas(_build_col1(xx), *pp))
    q = fwd(x, kernel_params)
    jax.block_until_ready(q)
    assert q.shape == (BATCH, N_ACTIONS), q.shape
    assert q.dtype == jnp.float32

    # correctness check against a pure-JAX reference using the same bf16-rounded fc4 weight
    q_ref = jax.jit(_reference_forward)(x, torch_params)
    jax.block_until_ready(q_ref)
    max_err = float(jnp.max(jnp.abs(q - q_ref)))
    assert max_err < 1e-1, f"max abs error vs reference: {max_err}"

    print("KERNEL_OK")
</pallas_src>

<mosaic_0001>
module attributes {stable_mosaic.version = 11 : i64} {
  func.func @_dqn_kernel(%arg0: i32, %arg1: memref<1024x32xf32, #tpu.memory_space<vmem>>, %arg2: memref<32x32xf32, #tpu.memory_space<vmem>>, %arg3: memref<1x32xf32, #tpu.memory_space<vmem>>, %arg4: memref<256x64xf32, #tpu.memory_space<vmem>>, %arg5: memref<1x64xf32, #tpu.memory_space<vmem>>, %arg6: memref<512x64xf32, #tpu.memory_space<vmem>>, %arg7: memref<1x64xf32, #tpu.memory_space<vmem>>, %arg8: memref<1024x512xbf16, #tpu.memory_space<vmem>>, %arg9: memref<1x512xf32, #tpu.memory_space<vmem>>, %arg10: memref<512x128xf32, #tpu.memory_space<vmem>>, %arg11: memref<1x128xf32, #tpu.memory_space<vmem>>, %arg12: memref<2x128xf32, #tpu.memory_space<vmem>>, %arg13: memref<4x9x9x64xf32, #tpu.memory_space<vmem>>, %arg14: memref<2x64x64xf32, #tpu.memory_space<vmem>>, %arg15: memref<2x512xf32, #tpu.memory_space<vmem>>) attributes {dimension_semantics = [#tpu.dimension_semantics<arbitrary>], iteration_bounds = array<i64: 4>, scalar_prefetch = 0 : i64, scratch_operands = 3 : i64, tpu.core_type = #tpu.core_type<tc>, window_params = [{pipeline_mode = #tpu.pipeline_mode<synchronous>, transform_indices = @transform_0, window_bounds = array<i64: 1024, 32>}, {pipeline_mode = #tpu.pipeline_mode<synchronous>, transform_indices = @transform_1, window_bounds = array<i64: 32, 32>}, {pipeline_mode = #tpu.pipeline_mode<synchronous>, transform_indices = @transform_2, window_bounds = array<i64: 1, 32>}, {pipeline_mode = #tpu.pipeline_mode<synchronous>, transform_indices = @transform_3, window_bounds = array<i64: 256, 64>}, {pipeline_mode = #tpu.pipeline_mode<synchronous>, transform_indices = @transform_4, window_bounds = array<i64: 1, 64>}, {pipeline_mode = #tpu.pipeline_mode<synchronous>, transform_indices = @transform_5, window_bounds = array<i64: 512, 64>}, {pipeline_mode = #tpu.pipeline_mode<synchronous>, transform_indices = @transform_6, window_bounds = array<i64: 1, 64>}, {transform_indices = @transform_7, window_bounds = array<i64: 1024, 512>}, {pipeline_mode = #tpu.pipeline_mode<synchronous>, transform_indices = @transform_8, window_bounds = array<i64: 1, 512>}, {pipeline_mode = #tpu.pipeline_mode<synchronous>, transform_indices = @transform_9, window_bounds = array<i64: 512, 128>}, {pipeline_mode = #tpu.pipeline_mode<synchronous>, transform_indices = @transform_10, window_bounds = array<i64: 1, 128>}, {pipeline_mode = #tpu.pipeline_mode<synchronous>, transform_indices = @transform_11, window_bounds = array<i64: 2, 128>}]} {
    %c0_i32 = arith.constant 0 : i32
    %0 = arith.cmpi eq, %arg0, %c0_i32 : i32
    %1 = arith.extui %0 : i1 to i32
    %c0_i32_0 = arith.constant 0 : i32
    %2 = arith.cmpi ne, %1, %c0_i32_0 : i32
    scf.if %2 {
      %cst_40 = arith.constant 0.000000e+00 : f32
      %110 = vector.broadcast %cst_40 : f32 to vector<4x9x9x64xf32>
      %c0_41 = arith.constant 0 : index
      %c0_42 = arith.constant 0 : index
      %c0_43 = arith.constant 0 : index
      %c0_44 = arith.constant 0 : index
      %111 = vector.load %arg13[%c0_41, %c0_42, %c0_43, %c0_44] : memref<4x9x9x64xf32, #tpu.memory_space<vmem>>, vector<4x9x9x64xf32>
      tpu.vector_store %arg13[%c0_41, %c0_42, %c0_43, %c0_44], %110 {strides = array<i32>} : memref<4x9x9x64xf32, #tpu.memory_space<vmem>>, vector<4x9x9x64xf32>,
      %c896_45 = arith.constant 896 : index
      %c0_46 = arith.constant 0 : index
      %112 = vector.load %arg1[%c896_45, %c0_46] : memref<1024x32xf32, #tpu.memory_space<vmem>>, vector<128x32xf32>
      %c0_47 = arith.constant 0 : index
      %c0_48 = arith.constant 0 : index
      %113 = vector.load %arg2[%c0_47, %c0_48] : memref<32x32xf32, #tpu.memory_space<vmem>>, vector<32x32xf32>
      %cst_49 = arith.constant dense<0.000000e+00> : vector<128x32xf32>
      %114 = tpu.matmul %112, %113, %cst_49 {dimension_numbers = #tpu.dot_dimension_numbers<[1], [0], [0], [1], [0, 0, 1, 1], [], []>} : vector<128x32xf32>, vector<32x32xf32>, vector<128x32xf32> -> vector<128x32xf32>
      %c0_50 = arith.constant 0 : index
      %c0_51 = arith.constant 0 : index
      %115 = vector.load %arg3[%c0_50, %c0_51] : memref<1x32xf32, #tpu.memory_space<vmem>>, vector<1x32xf32>
      %116 = vector.broadcast %115 : vector<1x32xf32> to vector<128x32xf32>
      %117 = arith.addf %114, %116 : vector<128x32xf32>
      %cst_52 = arith.constant 0.000000e+00 : f32
      %118 = vector.broadcast %cst_52 : f32 to vector<128x32xf32>
      %119 = arith.cmpf oge, %117, %118 : vector<128x32xf32>
      %cst_53 = arith.constant 0.00999999977 : f32
      %120 = vector.broadcast %cst_53 : f32 to vector<128x32xf32>
      %121 = arith.mulf %120, %117 : vector<128x32xf32>
      %122 = arith.select %119, %117, %121 : vector<128x32xi1>, vector<128x32xf32>
      %c0_54 = arith.constant 0 : index
      %c0_55 = arith.constant 0 : index
      %123 = vector.load %arg4[%c0_54, %c0_55] : memref<256x64xf32, #tpu.memory_space<vmem>>, vector<32x64xf32>
      %cst_56 = arith.constant dense<0.000000e+00> : vector<128x64xf32>
      %124 = tpu.matmul %122, %123, %cst_56 {dimension_numbers = #tpu.dot_dimension_numbers<[1], [0], [0], [1], [0, 0, 1, 1], [], []>} : vector<128x32xf32>, vector<32x64xf32>, vector<128x64xf32> -> vector<128x64xf32>
      %125 = vector.shape_cast %124 : vector<128x64xf32> to vector<2x8x8x64xf32>
      %c2 = arith.constant 2 : index
      %c1 = arith.constant 1 : index
      %c1_57 = arith.constant 1 : index
      %c0_58 = arith.constant 0 : index
      %126 = vector.load %arg13[%c2, %c1, %c1_57, %c0_58] : memref<4x9x9x64xf32, #tpu.memory_space<vmem>>, vector<2x8x8x64xf32>
      %127 = arith.addf %126, %125 : vector<2x8x8x64xf32>
      %c2_59 = arith.constant 2 : index
      %c1_60 = arith.constant 1 : index
      %c1_61 = arith.constant 1 : index
      %c0_62 = arith.constant 0 : index
      %128 = vector.load %arg13[%c2_59, %c1_60, %c1_61, %c0_62] : memref<4x9x9x64xf32, #tpu.memory_space<vmem>>, vector<2x8x8x64xf32>
      tpu.vector_store %arg13[%c2_59, %c1_60, %c1_61, %c0_62], %127 {strides = array<i32>} : memref<4x9x9x64xf32, #tpu.memory_space<vmem>>, vector<2x8x8x64xf32>,
      %c768_63 = arith.constant 768 : index
      %c0_64 = arith.constant 0 : index
      %129 = vector.load %arg1[%c768_63, %c0_64] : memref<1024x32xf32, #tpu.memory_space<vmem>>, vector<128x32xf32>
      %c0_65 = arith.constant 0 : index
      %c0_66 = arith.constant 0 : index
      %130 = vector.load %arg2[%c0_65, %c0_66] : memref<32x32xf32, #tpu.memory_space<vmem>>, vector<32x32xf32>
      %cst_67 = arith.constant dense<0.000000e+00> : vector<128x32xf32>
      %131 = tpu.matmul %129, %130, %cst_67 {dimension_numbers = #tpu.dot_dimension_numbers<[1], [0], [0], [1], [0, 0, 1, 1], [], []>} : vector<128x32xf32>, vector<32x32xf32>, vector<128x32xf32> -> vector<128x32xf32>
      %c0_68 = arith.constant 0 : index
      %c0_69 = arith.constant 0 : index
      %132 = vector.load %arg3[%c0_68, %c0_69] : memref<1x32xf32, #tpu.memory_space<vmem>>, vector<1x32xf32>
      %133 = vector.broadcast %132 : vector<1x32xf32> to vector<128x32xf32>
      %134 = arith.addf %131, %133 : vector<128x32xf32>
      %cst_70 = arith.constant 0.000000e+00 : f32
      %135 = vector.broadcast %cst_70 : f32 to vector<128x32xf32>
      %136 = arith.cmpf oge, %134, %135 : vector<128x32xf32>
      %cst_71 = arith.constant 0.00999999977 : f32
      %137 = vector.broadcast %cst_71 : f32 to vector<128x32xf32>
      %138 = arith.mulf %137, %134 : vector<128x32xf32>
      %139 = arith.select %136, %134, %138 : vector<128x32xi1>, vector<128x32xf32>
      %c32 = arith.constant 32 : index
      %c0_72 = arith.constant 0 : index
      %140 = vector.load %arg4[%c32, %c0_72] : memref<256x64xf32, #tpu.memory_space<vmem>>, vector<32x64xf32>
      %cst_73 = arith.constant dense<0.000000e+00> : vector<128x64xf32>
      %141 = tpu.matmul %139, %140, %cst_73 {dimension_numbers = #tpu.dot_dimension_numbers<[1], [0], [0], [1], [0, 0, 1, 1], [], []>} : vector<128x32xf32>, vector<32x64xf32>, vector<128x64xf32> -> vector<128x64xf32>
      %142 = vector.shape_cast %141 : vector<128x64xf32> to vector<2x8x8x64xf32>
      %c2_74 = arith.constant 2 : index
      %c1_75 = arith.constant 1 : index
      %c0_76 = arith.constant 0 : index
      %c0_77 = arith.constant 0 : index
      %143 = vector.load %arg13[%c2_74, %c1_75, %c0_76, %c0_77] : memref<4x9x9x64xf32, #tpu.memory_space<vmem>>, vector<2x8x8x64xf32>
      %144 = arith.addf %143, %142 : vector<2x8x8x64xf32>
      %c2_78 = arith.constant 2 : index
      %c1_79 = arith.constant 1 : index
      %c0_80 = arith.constant 0 : index
      %c0_81 = arith.constant 0 : index
      %145 = vector.load %arg13[%c2_78, %c1_79, %c0_80, %c0_81] : memref<4x9x9x64xf32, #tpu.memory_space<vmem>>, vector<2x8x8x64xf32>
      tpu.vector_store %arg13[%c2_78, %c1_79, %c0_80, %c0_81], %144 {strides = array<i32>} : memref<4x9x9x64xf32, #tpu.memory_space<vmem>>, vector<2x8x8x64xf32>,
      %c640_82 = arith.constant 640 : index
      %c0_83 = arith.constant 0 : index
      %146 = vector.load %arg1[%c640_82, %c0_83] : memref<1024x32xf32, #tpu.memory_space<vmem>>, vector<128x32xf32>
      %c0_84 = arith.constant 0 : index
      %c0_85 = arith.constant 0 : index
      %147 = vector.load %arg2[%c0_84, %c0_85] : memref<32x32xf32, #tpu.memory_space<vmem>>, vector<32x32xf32>
      %cst_86 = arith.constant dense<0.000000e+00> : vector<128x32xf32>
      %148 = tpu.matmul %146, %147, %cst_86 {dimension_numbers = #tpu.dot_dimension_numbers<[1], [0], [0], [1], [0, 0, 1, 1], [], []>} : vector<128x32xf32>, vector<32x32xf32>, vector<128x32xf32> -> vector<128x32xf32>
      %c0_87 = arith.constant 0 : index
      %c0_88 = arith.constant 0 : index
      %149 = vector.load %arg3[%c0_87, %c0_88] : memref<1x32xf32, #tpu.memory_space<vmem>>, vector<1x32xf32>
      %150 = vector.broadcast %149 : vector<1x32xf32> to vector<128x32xf32>
      %151 = arith.addf %148, %150 : vector<128x32xf32>
      %cst_89 = arith.constant 0.000000e+00 : f32
      %152 = vector.broadcast %cst_89 : f32 to vector<128x32xf32>
      %153 = arith.cmpf oge, %151, %152 : vector<128x32xf32>
      %cst_90 = arith.constant 0.00999999977 : f32
      %154 = vector.broadcast %cst_90 : f32 to vector<128x32xf32>
      %155 = arith.mulf %154, %151 : vector<128x32xf32>
      %156 = arith.select %153, %151, %155 : vector<128x32xi1>, vector<128x32xf32>
      %c64_91 = arith.constant 64 : index
      %c0_92 = arith.constant 0 : index
      %157 = vector.load %arg4[%c64_91, %c0_92] : memref<256x64xf32, #tpu.memory_space<vmem>>, vector<32x64xf32>
      %cst_93 = arith.constant dense<0.000000e+00> : vector<128x64xf32>
      %158 = tpu.matmul %156, %157, %cst_93 {dimension_numbers = #tpu.dot_dimension_numbers<[1], [0], [0], [1], [0, 0, 1, 1], [], []>} : vector<128x32xf32>, vector<32x64xf32>, vector<128x64xf32> -> vector<128x64xf32>
      %159 = vector.shape_cast %158 : vector<128x64xf32> to vector<2x8x8x64xf32>
      %c2_94 = arith.constant 2 : index
      %c0_95 = arith.constant 0 : index
      %c1_96 = arith.constant 1 : index
      %c0_97 = arith.constant 0 : index
      %160 = vector.load %arg13[%c2_94, %c0_95, %c1_96, %c0_97] : memref<4x9x9x64xf32, #tpu.memory_space<vmem>>, vector<2x8x8x64xf32>
      %161 = arith.addf %160, %159 : vector<2x8x8x64xf32>
      %c2_98 = arith.constant 2 : index
      %c0_99 = arith.constant 0 : index
      %c1_100 = arith.constant 1 : index
      %c0_101 = arith.constant 0 : index
      %162 = vector.load %arg13[%c2_98, %c0_99, %c1_100, %c0_101] : memref<4x9x9x64xf32, #tpu.memory_space<vmem>>, vector<2x8x8x64xf32>
      tpu.vector_store %arg13[%c2_98, %c0_99, %c1_100, %c0_101], %161 {strides = array<i32>} : memref<4x9x9x64xf32, #tpu.memory_space<vmem>>, vector<2x8x8x64xf32>,
      %c512_102 = arith.constant 512 : index
      %c0_103 = arith.constant 0 : index
      %163 = vector.load %arg1[%c512_102, %c0_103] : memref<1024x32xf32, #tpu.memory_space<vmem>>, vector<128x32xf32>
      %c0_104 = arith.constant 0 : index
      %c0_105 = arith.constant 0 : index
      %164 = vector.load %arg2[%c0_104, %c0_105] : memref<32x32xf32, #tpu.memory_space<vmem>>, vector<32x32xf32>
      %cst_106 = arith.constant dense<0.000000e+00> : vector<128x32xf32>
      %165 = tpu.matmul %163, %164, %cst_106 {dimension_numbers = #tpu.dot_dimension_numbers<[1], [0], [0], [1], [0, 0, 1, 1], [], []>} : vector<128x32xf32>, vector<32x32xf32>, vector<128x32xf32> -> vector<128x32xf32>
      %c0_107 = arith.constant 0 : index
      %c0_108 = arith.constant 0 : index
      %166 = vector.load %arg3[%c0_107, %c0_108] : memref<1x32xf32, #tpu.memory_space<vmem>>, vector<1x32xf32>
      %167 = vector.broadcast %166 : vector<1x32xf32> to vector<128x32xf32>
      %168 = arith.addf %165, %167 : vector<128x32xf32>
      %cst_109 = arith.constant 0.000000e+00 : f32
      %169 = vector.broadcast %cst_109 : f32 to vector<128x32xf32>
      %170 = arith.cmpf oge, %168, %169 : vector<128x32xf32>
      %cst_110 = arith.constant 0.00999999977 : f32
      %171 = vector.broadcast %cst_110 : f32 to vector<128x32xf32>
      %172 = arith.mulf %171, %168 : vector<128x32xf32>
      %173 = arith.select %170, %168, %172 : vector<128x32xi1>, vector<128x32xf32>
      %c96 = arith.constant 96 : index
      %c0_111 = arith.constant 0 : index
      %174 = vector.load %arg4[%c96, %c0_111] : memref<256x64xf32, #tpu.memory_space<vmem>>, vector<32x64xf32>
      %cst_112 = arith.constant dense<0.000000e+00> : vector<128x64xf32>
      %175 = tpu.matmul %173, %174, %cst_112 {dimension_numbers = #tpu.dot_dimension_numbers<[1], [0], [0], [1], [0, 0, 1, 1], [], []>} : vector<128x32xf32>, vector<32x64xf32>, vector<128x64xf32> -> vector<128x64xf32>
      %176 = vector.shape_cast %175 : vector<128x64xf32> to vector<2x8x8x64xf32>
      %c2_113 = arith.constant 2 : index
      %c0_114 = arith.constant 0 : index
      %c0_115 = arith.constant 0 : index
      %c0_116 = arith.constant 0 : index
      %177 = vector.load %arg13[%c2_113, %c0_114, %c0_115, %c0_116] : memref<4x9x9x64xf32, #tpu.memory_space<vmem>>, vector<2x8x8x64xf32>
      %178 = arith.addf %177, %176 : vector<2x8x8x64xf32>
      %c2_117 = arith.constant 2 : index
      %c0_118 = arith.constant 0 : index
      %c0_119 = arith.constant 0 : index
      %c0_120 = arith.constant 0 : index
      %179 = vector.load %arg13[%c2_117, %c0_118, %c0_119, %c0_120] : memref<4x9x9x64xf32, #tpu.memory_space<vmem>>, vector<2x8x8x64xf32>
      tpu.vector_store %arg13[%c2_117, %c0_118, %c0_119, %c0_120], %178 {strides = array<i32>} : memref<4x9x9x64xf32, #tpu.memory_space<vmem>>, vector<2x8x8x64xf32>,
      %c384_121 = arith.constant 384 : index
      %c0_122 = arith.constant 0 : index
      %180 = vector.load %arg1[%c384_121, %c0_122] : memref<1024x32xf32, #tpu.memory_space<vmem>>, vector<128x32xf32>
      %c0_123 = arith.constant 0 : index
      %c0_124 = arith.constant 0 : index
      %181 = vector.load %arg2[%c0_123, %c0_124] : memref<32x32xf32, #tpu.memory_space<vmem>>, vector<32x32xf32>
      %cst_125 = arith.constant dense<0.000000e+00> : vector<128x32xf32>
      %182 = tpu.matmul %180, %181, %cst_125 {dimension_numbers = #tpu.dot_dimension_numbers<[1], [0], [0], [1], [0, 0, 1, 1], [], []>} : vector<128x32xf32>, vector<32x32xf32>, vector<128x32xf32> -> vector<128x32xf32>
      %c0_126 = arith.constant 0 : index
      %c0_127 = arith.constant 0 : index
      %183 = vector.load %arg3[%c0_126, %c0_127] : memref<1x32xf32, #tpu.memory_space<vmem>>, vector<1x32xf32>
      %184 = vector.broadcast %183 : vector<1x32xf32> to vector<128x32xf32>
      %185 = arith.addf %182, %184 : vector<128x32xf32>
      %cst_128 = arith.constant 0.000000e+00 : f32
      %186 = vector.broadcast %cst_128 : f32 to vector<128x32xf32>
      %187 = arith.cmpf oge, %185, %186 : vector<128x32xf32>
      %cst_129 = arith.constant 0.00999999977 : f32
      %188 = vector.broadcast %cst_129 : f32 to vector<128x32xf32>
      %189 = arith.mulf %188, %185 : vector<128x32xf32>
      %190 = arith.select %187, %185, %189 : vector<128x32xi1>, vector<128x32xf32>
      %c128_130 = arith.constant 128 : index
      %c0_131 = arith.constant 0 : index
      %191 = vector.load %arg4[%c128_130, %c0_131] : memref<256x64xf32, #tpu.memory_space<vmem>>, vector<32x64xf32>
      %cst_132 = arith.constant dense<0.000000e+00> : vector<128x64xf32>
      %192 = tpu.matmul %190, %191, %cst_132 {dimension_numbers = #tpu.dot_dimension_numbers<[1], [0], [0], [1], [0, 0, 1, 1], [], []>} : vector<128x32xf32>, vector<32x64xf32>, vector<128x64xf32> -> vector<128x64xf32>
      %193 = vector.shape_cast %192 : vector<128x64xf32> to vector<2x8x8x64xf32>
      %c0_133 = arith.constant 0 : index
      %c1_134 = arith.constant 1 : index
      %c1_135 = arith.constant 1 : index
      %c0_136 = arith.constant 0 : index
      %194 = vector.load %arg13[%c0_133, %c1_134, %c1_135, %c0_136] : memref<4x9x9x64xf32, #tpu.memory_space<vmem>>, vector<2x8x8x64xf32>
      %195 = arith.addf %194, %193 : vector<2x8x8x64xf32>
      %c0_137 = arith.constant 0 : index
      %c1_138 = arith.constant 1 : index
      %c1_139 = arith.constant 1 : index
      %c0_140 = arith.constant 0 : index
      %196 = vector.load %arg13[%c0_137, %c1_138, %c1_139, %c0_140] : memref<4x9x9x64xf32, #tpu.memory_space<vmem>>, vector<2x8x8x64xf32>
      tpu.vector_store %arg13[%c0_137, %c1_138, %c1_139, %c0_140], %195 {strides = array<i32>} : memref<4x9x9x64xf32, #tpu.memory_space<vmem>>, vector<2x8x8x64xf32>,
      %c256_141 = arith.constant 256 : index
      %c0_142 = arith.constant 0 : index
      %197 = vector.load %arg1[%c256_141, %c0_142] : memref<1024x32xf32, #tpu.memory_space<vmem>>, vector<128x32xf32>
      %c0_143 = arith.constant 0 : index
      %c0_144 = arith.constant 0 : index
      %198 = vector.load %arg2[%c0_143, %c0_144] : memref<32x32xf32, #tpu.memory_space<vmem>>, vector<32x32xf32>
      %cst_145 = arith.constant dense<0.000000e+00> : vector<128x32xf32>
      %199 = tpu.matmul %197, %198, %cst_145 {dimension_numbers = #tpu.dot_dimension_numbers<[1], [0], [0], [1], [0, 0, 1, 1], [], []>} : vector<128x32xf32>, vector<32x32xf32>, vector<128x32xf32> -> vector<128x32xf32>
      %c0_146 = arith.constant 0 : index
      %c0_147 = arith.constant 0 : index
      %200 = vector.load %arg3[%c0_146, %c0_147] : memref<1x32xf32, #tpu.memory_space<vmem>>, vector<1x32xf32>
      %201 = vector.broadcast %200 : vector<1x32xf32> to vector<128x32xf32>
      %202 = arith.addf %199, %201 : vector<128x32xf32>
      %cst_148 = arith.constant 0.000000e+00 : f32
      %203 = vector.broadcast %cst_148 : f32 to vector<128x32xf32>
      %204 = arith.cmpf oge, %202, %203 : vector<128x32xf32>
      %cst_149 = arith.constant 0.00999999977 : f32
      %205 = vector.broadcast %cst_149 : f32 to vector<128x32xf32>
      %206 = arith.mulf %205, %202 : vector<128x32xf32>
      %207 = arith.select %204, %202, %206 : vector<128x32xi1>, vector<128x32xf32>
      %c160 = arith.constant 160 : index
      %c0_150 = arith.constant 0 : index
      %208 = vector.load %arg4[%c160, %c0_150] : memref<256x64xf32, #tpu.memory_space<vmem>>, vector<32x64xf32>
      %cst_151 = arith.constant dense<0.000000e+00> : vector<128x64xf32>
      %209 = tpu.matmul %207, %208, %cst_151 {dimension_numbers = #tpu.dot_dimension_numbers<[1], [0], [0], [1], [0, 0, 1, 1], [], []>} : vector<128x32xf32>, vector<32x64xf32>, vector<128x64xf32> -> vector<128x64xf32>
      %210 = vector.shape_cast %209 : vector<128x64xf32> to vector<2x8x8x64xf32>
      %c0_152 = arith.constant 0 : index
      %c1_153 = arith.constant 1 : index
      %c0_154 = arith.constant 0 : index
      %c0_155 = arith.constant 0 : index
      %211 = vector.load %arg13[%c0_152, %c1_153, %c0_154, %c0_155] : memref<4x9x9x64xf32, #tpu.memory_space<vmem>>, vector<2x8x8x64xf32>
      %212 = arith.addf %211, %210 : vector<2x8x8x64xf32>
      %c0_156 = arith.constant 0 : index
      %c1_157 = arith.constant 1 : index
      %c0_158 = arith.constant 0 : index
      %c0_159 = arith.constant 0 : index
      %213 = vector.load %arg13[%c0_156, %c1_157, %c0_158, %c0_159] : memref<4x9x9x64xf32, #tpu.memory_space<vmem>>, vector<2x8x8x64xf32>
      tpu.vector_store %arg13[%c0_156, %c1_157, %c0_158, %c0_159], %212 {strides = array<i32>} : memref<4x9x9x64xf32, #tpu.memory_space<vmem>>, vector<2x8x8x64xf32>,
      %c128_160 = arith.constant 128 : index
      %c0_161 = arith.constant 0 : index
      %214 = vector.load %arg1[%c128_160, %c0_161] : memref<1024x32xf32, #tpu.memory_space<vmem>>, vector<128x32xf32>
      %c0_162 = arith.constant 0 : index
      %c0_163 = arith.constant 0 : index
      %215 = vector.load %arg2[%c0_162, %c0_163] : memref<32x32xf32, #tpu.memory_space<vmem>>, vector<32x32xf32>
      %cst_164 = arith.constant dense<0.000000e+00> : vector<128x32xf32>
      %216 = tpu.matmul %214, %215, %cst_164 {dimension_numbers = #tpu.dot_dimension_numbers<[1], [0], [0], [1], [0, 0, 1, 1], [], []>} : vector<128x32xf32>, vector<32x32xf32>, vector<128x32xf32> -> vector<128x32xf32>
      %c0_165 = arith.constant 0 : index
      %c0_166 = arith.constant 0 : index
      %217 = vector.load %arg3[%c0_165, %c0_166] : memref<1x32xf32, #tpu.memory_space<vmem>>, vector<1x32xf32>
      %218 = vector.broadcast %217 : vector<1x32xf32> to vector<128x32xf32>
      %219 = arith.addf %216, %218 : vector<128x32xf32>
      %cst_167 = arith.constant 0.000000e+00 : f32
      %220 = vector.broadcast %cst_167 : f32 to vector<128x32xf32>
      %221 = arith.cmpf oge, %219, %220 : vector<128x32xf32>
      %cst_168 = arith.constant 0.00999999977 : f32
      %222 = vector.broadcast %cst_168 : f32 to vector<128x32xf32>
      %223 = arith.mulf %222, %219 : vector<128x32xf32>
      %224 = arith.select %221, %219, %223 : vector<128x32xi1>, vector<128x32xf32>
      %c192_169 = arith.constant 192 : index
      %c0_170 = arith.constant 0 : index
      %225 = vector.load %arg4[%c192_169, %c0_170] : memref<256x64xf32, #tpu.memory_space<vmem>>, vector<32x64xf32>
      %cst_171 = arith.constant dense<0.000000e+00> : vector<128x64xf32>
      %226 = tpu.matmul %224, %225, %cst_171 {dimension_numbers = #tpu.dot_dimension_numbers<[1], [0], [0], [1], [0, 0, 1, 1], [], []>} : vector<128x32xf32>, vector<32x64xf32>, vector<128x64xf32> -> vector<128x64xf32>
      %227 = vector.shape_cast %226 : vector<128x64xf32> to vector<2x8x8x64xf32>
      %c0_172 = arith.constant 0 : index
      %c0_173 = arith.constant 0 : index
      %c1_174 = arith.constant 1 : index
      %c0_175 = arith.constant 0 : index
      %228 = vector.load %arg13[%c0_172, %c0_173, %c1_174, %c0_175] : memref<4x9x9x64xf32, #tpu.memory_space<vmem>>, vector<2x8x8x64xf32>
      %229 = arith.addf %228, %227 : vector<2x8x8x64xf32>
      %c0_176 = arith.constant 0 : index
      %c0_177 = arith.constant 0 : index
      %c1_178 = arith.constant 1 : index
      %c0_179 = arith.constant 0 : index
      %230 = vector.load %arg13[%c0_176, %c0_177, %c1_178, %c0_179] : memref<4x9x9x64xf32, #tpu.memory_space<vmem>>, vector<2x8x8x64xf32>
      tpu.vector_store %arg13[%c0_176, %c0_177, %c1_178, %c0_179], %229 {strides = array<i32>} : memref<4x9x9x64xf32, #tpu.memory_space<vmem>>, vector<2x8x8x64xf32>,
      %c0_180 = arith.constant 0 : index
      %c0_181 = arith.constant 0 : index
      %231 = vector.load %arg1[%c0_180, %c0_181] : memref<1024x32xf32, #tpu.memory_space<vmem>>, vector<128x32xf32>
      %c0_182 = arith.constant 0 : index
      %c0_183 = arith.constant 0 : index
      %232 = vector.load %arg2[%c0_182, %c0_183] : memref<32x32xf32, #tpu.memory_space<vmem>>, vector<32x32xf32>
      %cst_184 = arith.constant dense<0.000000e+00> : vector<128x32xf32>
      %233 = tpu.matmul %231, %232, %cst_184 {dimension_numbers = #tpu.dot_dimension_numbers<[1], [0], [0], [1], [0, 0, 1, 1], [], []>} : vector<128x32xf32>, vector<32x32xf32>, vector<128x32xf32> -> vector<128x32xf32>
      %c0_185 = arith.constant 0 : index
      %c0_186 = arith.constant 0 : index
      %234 = vector.load %arg3[%c0_185, %c0_186] : memref<1x32xf32, #tpu.memory_space<vmem>>, vector<1x32xf32>
      %235 = vector.broadcast %234 : vector<1x32xf32> to vector<128x32xf32>
      %236 = arith.addf %233, %235 : vector<128x32xf32>
      %cst_187 = arith.constant 0.000000e+00 : f32
      %237 = vector.broadcast %cst_187 : f32 to vector<128x32xf32>
      %238 = arith.cmpf oge, %236, %237 : vector<128x32xf32>
      %cst_188 = arith.constant 0.00999999977 : f32
      %239 = vector.broadcast %cst_188 : f32 to vector<128x32xf32>
      %240 = arith.mulf %239, %236 : vector<128x32xf32>
      %241 = arith.select %238, %236, %240 : vector<128x32xi1>, vector<128x32xf32>
      %c224 = arith.constant 224 : index
      %c0_189 = arith.constant 0 : index
      %242 = vector.load %arg4[%c224, %c0_189] : memref<256x64xf32, #tpu.memory_space<vmem>>, vector<32x64xf32>
      %cst_190 = arith.constant dense<0.000000e+00> : vector<128x64xf32>
      %243 = tpu.matmul %241, %242, %cst_190 {dimension_numbers = #tpu.dot_dimension_numbers<[1], [0], [0], [1], [0, 0, 1, 1], [], []>} : vector<128x32xf32>, vector<32x64xf32>, vector<128x64xf32> -> vector<128x64xf32>
      %244 = vector.shape_cast %243 : vector<128x64xf32> to vector<2x8x8x64xf32>
      %c0_191 = arith.constant 0 : index
      %c0_192 = arith.constant 0 : index
      %c0_193 = arith.constant 0 : index
      %c0_194 = arith.constant 0 : index
      %245 = vector.load %arg13[%c0_191, %c0_192, %c0_193, %c0_194] : memref<4x9x9x64xf32, #tpu.memory_space<vmem>>, vector<2x8x8x64xf32>
      %246 = arith.addf %245, %244 : vector<2x8x8x64xf32>
      %c0_195 = arith.constant 0 : index
      %c0_196 = arith.constant 0 : index
      %c0_197 = arith.constant 0 : index
      %c0_198 = arith.constant 0 : index
      %247 = vector.load %arg13[%c0_195, %c0_196, %c0_197, %c0_198] : memref<4x9x9x64xf32, #tpu.memory_space<vmem>>, vector<2x8x8x64xf32>
      tpu.vector_store %arg13[%c0_195, %c0_196, %c0_197, %c0_198], %246 {strides = array<i32>} : memref<4x9x9x64xf32, #tpu.memory_space<vmem>>, vector<2x8x8x64xf32>,
      %c0_199 = arith.constant 0 : index
      %c0_200 = arith.constant 0 : index
      %c0_201 = arith.constant 0 : index
      %c0_202 = arith.constant 0 : index
      %248 = vector.load %arg13[%c0_199, %c0_200, %c0_201, %c0_202] : memref<4x9x9x64xf32, #tpu.memory_space<vmem>>, vector<4x9x9x64xf32>
      %c0_203 = arith.constant 0 : index
      %c0_204 = arith.constant 0 : index
      %249 = vector.load %arg5[%c0_203, %c0_204] : memref<1x64xf32, #tpu.memory_space<vmem>>, vector<1x64xf32>
      %250 = vector.shape_cast %249 : vector<1x64xf32> to vector<1x1x1x64xf32>
      %251 = vector.broadcast %250 : vector<1x1x1x64xf32> to vector<4x9x9x64xf32>
      %252 = arith.addf %248, %251 : vector<4x9x9x64xf32>
      %cst_205 = arith.constant 0.000000e+00 : f32
      %253 = vector.broadcast %cst_205 : f32 to vector<4x9x9x64xf32>
      %254 = arith.cmpf oge, %252, %253 : vector<4x9x9x64xf32>
      %cst_206 = arith.constant 0.00999999977 : f32
      %255 = vector.broadcast %cst_206 : f32 to vector<4x9x9x64xf32>
      %256 = arith.mulf %255, %252 : vector<4x9x9x64xf32>
      %257 = arith.select %254, %252, %256 : vector<4x9x9x64xi1>, vector<4x9x9x64xf32>
      %c0_207 = arith.constant 0 : index
      %c0_208 = arith.constant 0 : index
      %c0_209 = arith.constant 0 : index
      %c0_210 = arith.constant 0 : index
      %258 = vector.load %arg13[%c0_207, %c0_208, %c0_209, %c0_210] : memref<4x9x9x64xf32, #tpu.memory_space<vmem>>, vector<4x9x9x64xf32>
      tpu.vector_store %arg13[%c0_207, %c0_208, %c0_209, %c0_210], %257 {strides = array<i32>} : memref<4x9x9x64xf32, #tpu.memory_space<vmem>>, vector<4x9x9x64xf32>,
      %cst_211 = arith.constant 0.000000e+00 : f32
      %259 = vector.broadcast %cst_211 : f32 to vector<128x64xf32>
      %c0_212 = arith.constant 0 : index
      %c0_213 = arith.constant 0 : index
      %c0_214 = arith.constant 0 : index
      %c0_215 = arith.constant 0 : index
      %260 = vector.load %arg13[%c0_212, %c0_213, %c0_214, %c0_215] : memref<4x9x9x64xf32, #tpu.memory_space<vmem>>, vector<2x8x8x64xf32>
      %261 = vector.shape_cast %260 : vector<2x8x8x64xf32> to vector<128x64xf32>
      %c0_216 = arith.constant 0 : index
      %c0_217 = arith.constant 0 : index
      %262 = vector.load %arg6[%c0_216, %c0_217] : memref<512x64xf32, #tpu.memory_space<vmem>>, vector<64x64xf32>
      %cst_218 = arith.constant dense<0.000000e+00> : vector<128x64xf32>
      %263 = tpu.matmul %261, %262, %cst_218 {dimension_numbers = #tpu.dot_dimension_numbers<[1], [0], [0], [1], [0, 0, 1, 1], [], []>} : vector<128x64xf32>, vector<64x64xf32>, vector<128x64xf32> -> vector<128x64xf32>
      %264 = arith.addf %259, %263 : vector<128x64xf32>
      %c0_219 = arith.constant 0 : index
      %c0_220 = arith.constant 0 : index
      %c1_221 = arith.constant 1 : index
      %c0_222 = arith.constant 0 : index
      %265 = vector.load %arg13[%c0_219, %c0_220, %c1_221, %c0_222] : memref<4x9x9x64xf32, #tpu.memory_space<vmem>>, vector<2x8x8x64xf32>
      %266 = vector.shape_cast %265 : vector<2x8x8x64xf32> to vector<128x64xf32>
      %c64_223 = arith.constant 64 : index
      %c0_224 = arith.constant 0 : index
      %267 = vector.load %arg6[%c64_223, %c0_224] : memref<512x64xf32, #tpu.memory_space<vmem>>, vector<64x64xf32>
      %cst_225 = arith.constant dense<0.000000e+00> : vector<128x64xf32>
      %268 = tpu.matmul %266, %267, %cst_225 {dimension_numbers = #tpu.dot_dimension_numbers<[1], [0], [0], [1], [0, 0, 1, 1], [], []>} : vector<128x64xf32>, vector<64x64xf32>, vector<128x64xf32> -> vector<128x64xf32>
      %269 = arith.addf %264, %268 : vector<128x64xf32>
      %c0_226 = arith.constant 0 : index
      %c1_227 = arith.constant 1 : index
      %c0_228 = arith.constant 0 : index
      %c0_229 = arith.constant 0 : index
      %270 = vector.load %arg13[%c0_226, %c1_227, %c0_228, %c0_229] : memref<4x9x9x64xf32, #tpu.memory_space<vmem>>, vector<2x8x8x64xf32>
      %271 = vector.shape_cast %270 : vector<2x8x8x64xf32> to vector<128x64xf32>
      %c128_230 = arith.constant 128 : index
      %c0_231 = arith.constant 0 : index
      %272 = vector.load %arg6[%c128_230, %c0_231] : memref<512x64xf32, #tpu.memory_space<vmem>>, vector<64x64xf32>
      %cst_232 = arith.constant dense<0.000000e+00> : vector<128x64xf32>
      %273 = tpu.matmul %271, %272, %cst_232 {dimension_numbers = #tpu.dot_dimension_numbers<[1], [0], [0], [1], [0, 0, 1, 1], [], []>} : vector<128x64xf32>, vector<64x64xf32>, vector<128x64xf32> -> vector<128x64xf32>
      %274 = arith.addf %269, %273 : vector<128x64xf32>
      %c0_233 = arith.constant 0 : index
      %c1_234 = arith.constant 1 : index
      %c1_235 = arith.constant 1 : index
      %c0_236 = arith.constant 0 : index
      %275 = vector.load %arg13[%c0_233, %c1_234, %c1_235, %c0_236] : memref<4x9x9x64xf32, #tpu.memory_space<vmem>>, vector<2x8x8x64xf32>
      %276 = vector.shape_cast %275 : vector<2x8x8x64xf32> to vector<128x64xf32>
      %c192_237 = arith.constant 192 : index
      %c0_238 = arith.constant 0 : index
      %277 = vector.load %arg6[%c192_237, %c0_238] : memref<512x64xf32, #tpu.memory_space<vmem>>, vector<64x64xf32>
      %cst_239 = arith.constant dense<0.000000e+00> : vector<128x64xf32>
      %278 = tpu.matmul %276, %277, %cst_239 {dimension_numbers = #tpu.dot_dimension_numbers<[1], [0], [0], [1], [0, 0, 1, 1], [], []>} : vector<128x64xf32>, vector<64x64xf32>, vector<128x64xf32> -> vector<128x64xf32>
      %279 = arith.addf %274, %278 : vector<128x64xf32>
      %c2_240 = arith.constant 2 : index
      %c0_241 = arith.constant 0 : index
      %c0_242 = arith.constant 0 : index
      %c0_243 = arith.constant 0 : index
      %280 = vector.load %arg13[%c2_240, %c0_241, %c0_242, %c0_243] : memref<4x9x9x64xf32, #tpu.memory_space<vmem>>, vector<2x8x8x64xf32>
      %281 = vector.shape_cast %280 : vector<2x8x8x64xf32> to vector<128x64xf32>
      %c256_244 = arith.constant 256 : index
      %c0_245 = arith.constant 0 : index
      %282 = vector.load %arg6[%c256_244, %c0_245] : memref<512x64xf32, #tpu.memory_space<vmem>>, vector<64x64xf32>
      %cst_246 = arith.constant dense<0.000000e+00> : vector<128x64xf32>
      %283 = tpu.matmul %281, %282, %cst_246 {dimension_numbers = #tpu.dot_dimension_numbers<[1], [0], [0], [1], [0, 0, 1, 1], [], []>} : vector<128x64xf32>, vector<64x64xf32>, vector<128x64xf32> -> vector<128x64xf32>
      %284 = arith.addf %279, %283 : vector<128x64xf32>
      %c2_247 = arith.constant 2 : index
      %c0_248 = arith.constant 0 : index
      %c1_249 = arith.constant 1 : index
      %c0_250 = arith.constant 0 : index
      %285 = vector.load %arg13[%c2_247, %c0_248, %c1_249, %c0_250] : memref<4x9x9x64xf32, #tpu.memory_space<vmem>>, vector<2x8x8x64xf32>
      %286 = vector.shape_cast %285 : vector<2x8x8x64xf32> to vector<128x64xf32>
      %c320_251 = arith.constant 320 : index
      %c0_252 = arith.constant 0 : index
      %287 = vector.load %arg6[%c320_251, %c0_252] : memref<512x64xf32, #tpu.memory_space<vmem>>, vector<64x64xf32>
      %cst_253 = arith.constant dense<0.000000e+00> : vector<128x64xf32>
      %288 = tpu.matmul %286, %287, %cst_253 {dimension_numbers = #tpu.dot_dimension_numbers<[1], [0], [0], [1], [0, 0, 1, 1], [], []>} : vector<128x64xf32>, vector<64x64xf32>, vector<128x64xf32> -> vector<128x64xf32>
      %289 = arith.addf %284, %288 : vector<128x64xf32>
      %c2_254 = arith.constant 2 : index
      %c1_255 = arith.constant 1 : index
      %c0_256 = arith.constant 0 : index
      %c0_257 = arith.constant 0 : index
      %290 = vector.load %arg13[%c2_254, %c1_255, %c0_256, %c0_257] : memref<4x9x9x64xf32, #tpu.memory_space<vmem>>, vector<2x8x8x64xf32>
      %291 = vector.shape_cast %290 : vector<2x8x8x64xf32> to vector<128x64xf32>
      %c384_258 = arith.constant 384 : index
      %c0_259 = arith.constant 0 : index
      %292 = vector.load %arg6[%c384_258, %c0_259] : memref<512x64xf32, #tpu.memory_space<vmem>>, vector<64x64xf32>
      %cst_260 = arith.constant dense<0.000000e+00> : vector<128x64xf32>
      %293 = tpu.matmul %291, %292, %cst_260 {dimension_numbers = #tpu.dot_dimension_numbers<[1], [0], [0], [1], [0, 0, 1, 1], [], []>} : vector<128x64xf32>, vector<64x64xf32>, vector<128x64xf32> -> vector<128x64xf32>
      %294 = arith.addf %289, %293 : vector<128x64xf32>
      %c2_261 = arith.constant 2 : index
      %c1_262 = arith.constant 1 : index
      %c1_263 = arith.constant 1 : index
      %c0_264 = arith.constant 0 : index
      %295 = vector.load %arg13[%c2_261, %c1_262, %c1_263, %c0_264] : memref<4x9x9x64xf32, #tpu.memory_space<vmem>>, vector<2x8x8x64xf32>
      %296 = vector.shape_cast %295 : vector<2x8x8x64xf32> to vector<128x64xf32>
      %c448_265 = arith.constant 448 : index
      %c0_266 = arith.constant 0 : index
      %297 = vector.load %arg6[%c448_265, %c0_266] : memref<512x64xf32, #tpu.memory_space<vmem>>, vector<64x64xf32>
      %cst_267 = arith.constant dense<0.000000e+00> : vector<128x64xf32>
      %298 = tpu.matmul %296, %297, %cst_267 {dimension_numbers = #tpu.dot_dimension_numbers<[1], [0], [0], [1], [0, 0, 1, 1], [], []>} : vector<128x64xf32>, vector<64x64xf32>, vector<128x64xf32> -> vector<128x64xf32>
      %299 = arith.addf %294, %298 : vector<128x64xf32>
      %c0_268 = arith.constant 0 : index
      %c0_269 = arith.constant 0 : index
      %300 = vector.load %arg7[%c0_268, %c0_269] : memref<1x64xf32, #tpu.memory_space<vmem>>, vector<1x64xf32>
      %301 = vector.broadcast %300 : vector<1x64xf32> to vector<128x64xf32>
      %302 = arith.addf %299, %301 : vector<128x64xf32>
      %cst_270 = arith.constant 0.000000e+00 : f32
      %303 = vector.broadcast %cst_270 : f32 to vector<128x64xf32>
      %304 = arith.cmpf oge, %302, %303 : vector<128x64xf32>
      %cst_271 = arith.constant 0.00999999977 : f32
      %305 = vector.broadcast %cst_271 : f32 to vector<128x64xf32>
      %306 = arith.mulf %305, %302 : vector<128x64xf32>
      %307 = arith.select %304, %302, %306 : vector<128x64xi1>, vector<128x64xf32>
      %308 = vector.shape_cast %307 : vector<128x64xf32> to vector<2x64x64xf32>
      %c0_272 = arith.constant 0 : index
      %c0_273 = arith.constant 0 : index
      %c0_274 = arith.constant 0 : index
      %309 = vector.load %arg14[%c0_272, %c0_273, %c0_274] : memref<2x64x64xf32, #tpu.memory_space<vmem>>, vector<2x64x64xf32>
      tpu.vector_store %arg14[%c0_272, %c0_273, %c0_274], %308 {strides = array<i32>} : memref<2x64x64xf32, #tpu.memory_space<vmem>>, vector<2x64x64xf32>,
      %cst_275 = arith.constant 0.000000e+00 : f32
      %310 = vector.broadcast %cst_275 : f32 to vector<2x512xf32>
      %c0_276 = arith.constant 0 : index
      %c0_277 = arith.constant 0 : index
      %311 = vector.load %arg15[%c0_276, %c0_277] : memref<2x512xf32, #tpu.memory_space<vmem>>, vector<2x512xf32>
      tpu.vector_store %arg15[%c0_276, %c0_277], %310 {strides = array<i32>} : memref<2x512xf32, #tpu.memory_space<vmem>>, vector<2x512xf32>,
    } else {
    }
    %c16_i32 = arith.constant 16 : i32
    %3 = arith.muli %arg0, %c16_i32 : i32
    %4 = tpu.assume_multiple %3, 16 : i32
    %c0 = arith.constant 0 : index
    %5 = arith.index_cast %4 : i32 to index
    %c0_1 = arith.constant 0 : index
    %6 = vector.load %arg14[%c0, %5, %c0_1] : memref<2x64x64xf32, #tpu.memory_space<vmem>>, vector<2x16x64xf32>
    %cst = arith.constant 0.000000e+00 : f32
    %7 = vector.broadcast %cst : f32 to vector<2x512xf32>
    %8 = vector.extract_strided_slice %6 {offsets = [0, 0, 0], sizes = [2, 1, 64], strides = [1, 1, 1]} : vector<2x16x64xf32> to vector<2x1x64xf32>
    %9 = vector.shape_cast %8 : vector<2x1x64xf32> to vector<2x64xf32>
    %10 = arith.truncf %9 : vector<2x64xf32> to vector<2x64xbf16>
    %c0_2 = arith.constant 0 : index
    %c0_3 = arith.constant 0 : index
    %11 = vector.load %arg8[%c0_2, %c0_3] : memref<1024x512xbf16, #tpu.memory_space<vmem>>, vector<64x512xbf16>
    %cst_4 = arith.constant dense<0.000000e+00> : vector<2x512xf32>
    %12 = tpu.matmul %10, %11, %cst_4 {dimension_numbers = #tpu.dot_dimension_numbers<[1], [0], [0], [1], [0, 0, 1, 1], [], []>} : vector<2x64xbf16>, vector<64x512xbf16>, vector<2x512xf32> -> vector<2x512xf32>
    %13 = arith.addf %7, %12 : vector<2x512xf32>
    %14 = vector.extract_strided_slice %6 {offsets = [0, 1, 0], sizes = [2, 1, 64], strides = [1, 1, 1]} : vector<2x16x64xf32> to vector<2x1x64xf32>
    %15 = vector.shape_cast %14 : vector<2x1x64xf32> to vector<2x64xf32>
    %16 = arith.truncf %15 : vector<2x64xf32> to vector<2x64xbf16>
    %c64 = arith.constant 64 : index
    %c0_5 = arith.constant 0 : index
    %17 = vector.load %arg8[%c64, %c0_5] : memref<1024x512xbf16, #tpu.memory_space<vmem>>, vector<64x512xbf16>
    %cst_6 = arith.constant dense<0.000000e+00> : vector<2x512xf32>
    %18 = tpu.matmul %16, %17, %cst_6 {dimension_numbers = #tpu.dot_dimension_numbers<[1], [0], [0], [1], [0, 0, 1, 1], [], []>} : vector<2x64xbf16>, vector<64x512xbf16>, vector<2x512xf32> -> vector<2x512xf32>
    %19 = arith.addf %13, %18 : vector<2x512xf32>
    %20 = vector.extract_strided_slice %6 {offsets = [0, 2, 0], sizes = [2, 1, 64], strides = [1, 1, 1]} : vector<2x16x64xf32> to vector<2x1x64xf32>
    %21 = vector.shape_cast %20 : vector<2x1x64xf32> to vector<2x64xf32>
    %22 = arith.truncf %21 : vector<2x64xf32> to vector<2x64xbf16>
    %c128 = arith.constant 128 : index
    %c0_7 = arith.constant 0 : index
    %23 = vector.load %arg8[%c128, %c0_7] : memref<1024x512xbf16, #tpu.memory_space<vmem>>, vector<64x512xbf16>
    %cst_8 = arith.constant dense<0.000000e+00> : vector<2x512xf32>
    %24 = tpu.matmul %22, %23, %cst_8 {dimension_numbers = #tpu.dot_dimension_numbers<[1], [0], [0], [1], [0, 0, 1, 1], [], []>} : vector<2x64xbf16>, vector<64x512xbf16>, vector<2x512xf32> -> vector<2x512xf32>
    %25 = arith.addf %19, %24 : vector<2x512xf32>
    %26 = vector.extract_strided_slice %6 {offsets = [0, 3, 0], sizes = [2, 1, 64], strides = [1, 1, 1]} : vector<2x16x64xf32> to vector<2x1x64xf32>
    %27 = vector.shape_cast %26 : vector<2x1x64xf32> to vector<2x64xf32>
    %28 = arith.truncf %27 : vector<2x64xf32> to vector<2x64xbf16>
    %c192 = arith.constant 192 : index
    %c0_9 = arith.constant 0 : index
    %29 = vector.load %arg8[%c192, %c0_9] : memref<1024x512xbf16, #tpu.memory_space<vmem>>, vector<64x512xbf16>
    %cst_10 = arith.constant dense<0.000000e+00> : vector<2x512xf32>
    %30 = tpu.matmul %28, %29, %cst_10 {dimension_numbers = #tpu.dot_dimension_numbers<[1], [0], [0], [1], [0, 0, 1, 1], [], []>} : vector<2x64xbf16>, vector<64x512xbf16>, vector<2x512xf32> -> vector<2x512xf32>
    %31 = arith.addf %25, %30 : vector<2x512xf32>
    %32 = vector.extract_strided_slice %6 {offsets = [0, 4, 0], sizes = [2, 1, 64], strides = [1, 1, 1]} : vector<2x16x64xf32> to vector<2x1x64xf32>
    %33 = vector.shape_cast %32 : vector<2x1x64xf32> to vector<2x64xf32>
    %34 = arith.truncf %33 : vector<2x64xf32> to vector<2x64xbf16>
    %c256 = arith.constant 256 : index
    %c0_11 = arith.constant 0 : index
    %35 = vector.load %arg8[%c256, %c0_11] : memref<1024x512xbf16, #tpu.memory_space<vmem>>, vector<64x512xbf16>
    %cst_12 = arith.constant dense<0.000000e+00> : vector<2x512xf32>
    %36 = tpu.matmul %34, %35, %cst_12 {dimension_numbers = #tpu.dot_dimension_numbers<[1], [0], [0], [1], [0, 0, 1, 1], [], []>} : vector<2x64xbf16>, vector<64x512xbf16>, vector<2x512xf32> -> vector<2x512xf32>
    %37 = arith.addf %31, %36 : vector<2x512xf32>
    %38 = vector.extract_strided_slice %6 {offsets = [0, 5, 0], sizes = [2, 1, 64], strides = [1, 1, 1]} : vector<2x16x64xf32> to vector<2x1x64xf32>
    %39 = vector.shape_cast %38 : vector<2x1x64xf32> to vector<2x64xf32>
    %40 = arith.truncf %39 : vector<2x64xf32> to vector<2x64xbf16>
    %c320 = arith.constant 320 : index
    %c0_13 = arith.constant 0 : index
    %41 = vector.load %arg8[%c320, %c0_13] : memref<1024x512xbf16, #tpu.memory_space<vmem>>, vector<64x512xbf16>
    %cst_14 = arith.constant dense<0.000000e+00> : vector<2x512xf32>
    %42 = tpu.matmul %40, %41, %cst_14 {dimension_numbers = #tpu.dot_dimension_numbers<[1], [0], [0], [1], [0, 0, 1, 1], [], []>} : vector<2x64xbf16>, vector<64x512xbf16>, vector<2x512xf32> -> vector<2x512xf32>
    %43 = arith.addf %37, %42 : vector<2x512xf32>
    %44 = vector.extract_strided_slice %6 {offsets = [0, 6, 0], sizes = [2, 1, 64], strides = [1, 1, 1]} : vector<2x16x64xf32> to vector<2x1x64xf32>
    %45 = vector.shape_cast %44 : vector<2x1x64xf32> to vector<2x64xf32>
    %46 = arith.truncf %45 : vector<2x64xf32> to vector<2x64xbf16>
    %c384 = arith.constant 384 : index
    %c0_15 = arith.constant 0 : index
    %47 = vector.load %arg8[%c384, %c0_15] : memref<1024x512xbf16, #tpu.memory_space<vmem>>, vector<64x512xbf16>
    %cst_16 = arith.constant dense<0.000000e+00> : vector<2x512xf32>
    %48 = tpu.matmul %46, %47, %cst_16 {dimension_numbers = #tpu.dot_dimension_numbers<[1], [0], [0], [1], [0, 0, 1, 1], [], []>} : vector<2x64xbf16>, vector<64x512xbf16>, vector<2x512xf32> -> vector<2x512xf32>
    %49 = arith.addf %43, %48 : vector<2x512xf32>
    %50 = vector.extract_strided_slice %6 {offsets = [0, 7, 0], sizes = [2, 1, 64], strides = [1, 1, 1]} : vector<2x16x64xf32> to vector<2x1x64xf32>
    %51 = vector.shape_cast %50 : vector<2x1x64xf32> to vector<2x64xf32>
    %52 = arith.truncf %51 : vector<2x64xf32> to vector<2x64xbf16>
    %c448 = arith.constant 448 : index
    %c0_17 = arith.constant 0 : index
    %53 = vector.load %arg8[%c448, %c0_17] : memref<1024x512xbf16, #tpu.memory_space<vmem>>, vector<64x512xbf16>
    %cst_18 = arith.constant dense<0.000000e+00> : vector<2x512xf32>
    %54 = tpu.matmul %52, %53, %cst_18 {dimension_numbers = #tpu.dot_dimension_numbers<[1], [0], [0], [1], [0, 0, 1, 1], [], []>} : vector<2x64xbf16>, vector<64x512xbf16>, vector<2x512xf32> -> vector<2x512xf32>
    %55 = arith.addf %49, %54 : vector<2x512xf32>
    %56 = vector.extract_strided_slice %6 {offsets = [0, 8, 0], sizes = [2, 1, 64], strides = [1, 1, 1]} : vector<2x16x64xf32> to vector<2x1x64xf32>
    %57 = vector.shape_cast %56 : vector<2x1x64xf32> to vector<2x64xf32>
    %58 = arith.truncf %57 : vector<2x64xf32> to vector<2x64xbf16>
    %c512 = arith.constant 512 : index
    %c0_19 = arith.constant 0 : index
    %59 = vector.load %arg8[%c512, %c0_19] : memref<1024x512xbf16, #tpu.memory_space<vmem>>, vector<64x512xbf16>
    %cst_20 = arith.constant dense<0.000000e+00> : vector<2x512xf32>
    %60 = tpu.matmul %58, %59, %cst_20 {dimension_numbers = #tpu.dot_dimension_numbers<[1], [0], [0], [1], [0, 0, 1, 1], [], []>} : vector<2x64xbf16>, vector<64x512xbf16>, vector<2x512xf32> -> vector<2x512xf32>
    %61 = arith.addf %55, %60 : vector<2x512xf32>
    %62 = vector.extract_strided_slice %6 {offsets = [0, 9, 0], sizes = [2, 1, 64], strides = [1, 1, 1]} : vector<2x16x64xf32> to vector<2x1x64xf32>
    %63 = vector.shape_cast %62 : vector<2x1x64xf32> to vector<2x64xf32>
    %64 = arith.truncf %63 : vector<2x64xf32> to vector<2x64xbf16>
    %c576 = arith.constant 576 : index
    %c0_21 = arith.constant 0 : index
    %65 = vector.load %arg8[%c576, %c0_21] : memref<1024x512xbf16, #tpu.memory_space<vmem>>, vector<64x512xbf16>
    %cst_22 = arith.constant dense<0.000000e+00> : vector<2x512xf32>
    %66 = tpu.matmul %64, %65, %cst_22 {dimension_numbers = #tpu.dot_dimension_numbers<[1], [0], [0], [1], [0, 0, 1, 1], [], []>} : vector<2x64xbf16>, vector<64x512xbf16>, vector<2x512xf32> -> vector<2x512xf32>
    %67 = arith.addf %61, %66 : vector<2x512xf32>
    %68 = vector.extract_strided_slice %6 {offsets = [0, 10, 0], sizes = [2, 1, 64], strides = [1, 1, 1]} : vector<2x16x64xf32> to vector<2x1x64xf32>
    %69 = vector.shape_cast %68 : vector<2x1x64xf32> to vector<2x64xf32>
    %70 = arith.truncf %69 : vector<2x64xf32> to vector<2x64xbf16>
    %c640 = arith.constant 640 : index
    %c0_23 = arith.constant 0 : index
    %71 = vector.load %arg8[%c640, %c0_23] : memref<1024x512xbf16, #tpu.memory_space<vmem>>, vector<64x512xbf16>
    %cst_24 = arith.constant dense<0.000000e+00> : vector<2x512xf32>
    %72 = tpu.matmul %70, %71, %cst_24 {dimension_numbers = #tpu.dot_dimension_numbers<[1], [0], [0], [1], [0, 0, 1, 1], [], []>} : vector<2x64xbf16>, vector<64x512xbf16>, vector<2x512xf32> -> vector<2x512xf32>
    %73 = arith.addf %67, %72 : vector<2x512xf32>
    %74 = vector.extract_strided_slice %6 {offsets = [0, 11, 0], sizes = [2, 1, 64], strides = [1, 1, 1]} : vector<2x16x64xf32> to vector<2x1x64xf32>
    %75 = vector.shape_cast %74 : vector<2x1x64xf32> to vector<2x64xf32>
    %76 = arith.truncf %75 : vector<2x64xf32> to vector<2x64xbf16>
    %c704 = arith.constant 704 : index
    %c0_25 = arith.constant 0 : index
    %77 = vector.load %arg8[%c704, %c0_25] : memref<1024x512xbf16, #tpu.memory_space<vmem>>, vector<64x512xbf16>
    %cst_26 = arith.constant dense<0.000000e+00> : vector<2x512xf32>
    %78 = tpu.matmul %76, %77, %cst_26 {dimension_numbers = #tpu.dot_dimension_numbers<[1], [0], [0], [1], [0, 0, 1, 1], [], []>} : vector<2x64xbf16>, vector<64x512xbf16>, vector<2x512xf32> -> vector<2x512xf32>
    %79 = arith.addf %73, %78 : vector<2x512xf32>
    %80 = vector.extract_strided_slice %6 {offsets = [0, 12, 0], sizes = [2, 1, 64], strides = [1, 1, 1]} : vector<2x16x64xf32> to vector<2x1x64xf32>
    %81 = vector.shape_cast %80 : vector<2x1x64xf32> to vector<2x64xf32>
    %82 = arith.truncf %81 : vector<2x64xf32> to vector<2x64xbf16>
    %c768 = arith.constant 768 : index
    %c0_27 = arith.constant 0 : index
    %83 = vector.load %arg8[%c768, %c0_27] : memref<1024x512xbf16, #tpu.memory_space<vmem>>, vector<64x512xbf16>
    %cst_28 = arith.constant dense<0.000000e+00> : vector<2x512xf32>
    %84 = tpu.matmul %82, %83, %cst_28 {dimension_numbers = #tpu.dot_dimension_numbers<[1], [0], [0], [1], [0, 0, 1, 1], [], []>} : vector<2x64xbf16>, vector<64x512xbf16>, vector<2x512xf32> -> vector<2x512xf32>
    %85 = arith.addf %79, %84 : vector<2x512xf32>
    %86 = vector.extract_strided_slice %6 {offsets = [0, 13, 0], sizes = [2, 1, 64], strides = [1, 1, 1]} : vector<2x16x64xf32> to vector<2x1x64xf32>
    %87 = vector.shape_cast %86 : vector<2x1x64xf32> to vector<2x64xf32>
    %88 = arith.truncf %87 : vector<2x64xf32> to vector<2x64xbf16>
    %c832 = arith.constant 832 : index
    %c0_29 = arith.constant 0 : index
    %89 = vector.load %arg8[%c832, %c0_29] : memref<1024x512xbf16, #tpu.memory_space<vmem>>, vector<64x512xbf16>
    %cst_30 = arith.constant dense<0.000000e+00> : vector<2x512xf32>
    %90 = tpu.matmul %88, %89, %cst_30 {dimension_numbers = #tpu.dot_dimension_numbers<[1], [0], [0], [1], [0, 0, 1, 1], [], []>} : vector<2x64xbf16>, vector<64x512xbf16>, vector<2x512xf32> -> vector<2x512xf32>
    %91 = arith.addf %85, %90 : vector<2x512xf32>
    %92 = vector.extract_strided_slice %6 {offsets = [0, 14, 0], sizes = [2, 1, 64], strides = [1, 1, 1]} : vector<2x16x64xf32> to vector<2x1x64xf32>
    %93 = vector.shape_cast %92 : vector<2x1x64xf32> to vector<2x64xf32>
    %94 = arith.truncf %93 : vector<2x64xf32> to vector<2x64xbf16>
    %c896 = arith.constant 896 : index
    %c0_31 = arith.constant 0 : index
    %95 = vector.load %arg8[%c896, %c0_31] : memref<1024x512xbf16, #tpu.memory_space<vmem>>, vector<64x512xbf16>
    %cst_32 = arith.constant dense<0.000000e+00> : vector<2x512xf32>
    %96 = tpu.matmul %94, %95, %cst_32 {dimension_numbers = #tpu.dot_dimension_numbers<[1], [0], [0], [1], [0, 0, 1, 1], [], []>} : vector<2x64xbf16>, vector<64x512xbf16>, vector<2x512xf32> -> vector<2x512xf32>
    %97 = arith.addf %91, %96 : vector<2x512xf32>
    %98 = vector.extract_strided_slice %6 {offsets = [0, 15, 0], sizes = [2, 1, 64], strides = [1, 1, 1]} : vector<2x16x64xf32> to vector<2x1x64xf32>
    %99 = vector.shape_cast %98 : vector<2x1x64xf32> to vector<2x64xf32>
    %100 = arith.truncf %99 : vector<2x64xf32> to vector<2x64xbf16>
    %c960 = arith.constant 960 : index
    %c0_33 = arith.constant 0 : index
    %101 = vector.load %arg8[%c960, %c0_33] : memref<1024x512xbf16, #tpu.memory_space<vmem>>, vector<64x512xbf16>
    %cst_34 = arith.constant dense<0.000000e+00> : vector<2x512xf32>
    %102 = tpu.matmul %100, %101, %cst_34 {dimension_numbers = #tpu.dot_dimension_numbers<[1], [0], [0], [1], [0, 0, 1, 1], [], []>} : vector<2x64xbf16>, vector<64x512xbf16>, vector<2x512xf32> -> vector<2x512xf32>
    %103 = arith.addf %97, %102 : vector<2x512xf32>
    %c0_35 = arith.constant 0 : index
    %c0_36 = arith.constant 0 : index
    %104 = vector.load %arg15[%c0_35, %c0_36] : memref<2x512xf32, #tpu.memory_space<vmem>>, vector<2x512xf32>
    %105 = arith.addf %104, %103 : vector<2x512xf32>
    %c0_37 = arith.constant 0 : index
    %c0_38 = arith.constant 0 : index
    %106 = vector.load %arg15[%c0_37, %c0_38] : memref<2x512xf32, #tpu.memory_space<vmem>>, vector<2x512xf32>
    tpu.vector_store %arg15[%c0_37, %c0_38], %105 {strides = array<i32>} : memref<2x512xf32, #tpu.memory_space<vmem>>, vector<2x512xf32>,
    %c3_i32 = arith.constant 3 : i32
    %107 = arith.cmpi eq, %arg0, %c3_i32 : i32
    %108 = arith.extui %107 : i1 to i32
    %c0_i32_39 = arith.constant 0 : i32
    %109 = arith.cmpi ne, %108, %c0_i32_39 : i32
    scf.if %109 {
      %c0_40 = arith.constant 0 : index
      %c0_41 = arith.constant 0 : index
      %110 = vector.load %arg15[%c0_40, %c0_41] : memref<2x512xf32, #tpu.memory_space<vmem>>, vector<2x512xf32>
      %c0_42 = arith.constant 0 : index
      %c0_43 = arith.constant 0 : index
      %111 = vector.load %arg9[%c0_42, %c0_43] : memref<1x512xf32, #tpu.memory_space<vmem>>, vector<1x512xf32>
      %112 = vector.broadcast %111 : vector<1x512xf32> to vector<2x512xf32>
      %113 = arith.addf %110, %112 : vector<2x512xf32>
      %cst_44 = arith.constant 0.000000e+00 : f32
      %114 = vector.broadcast %cst_44 : f32 to vector<2x512xf32>
      %115 = arith.cmpf oge, %113, %114 : vector<2x512xf32>
      %cst_45 = arith.constant 0.00999999977 : f32
      %116 = vector.broadcast %cst_45 : f32 to vector<2x512xf32>
      %117 = arith.mulf %116, %113 : vector<2x512xf32>
      %118 = arith.select %115, %113, %117 : vector<2x512xi1>, vector<2x512xf32>
      %c0_46 = arith.constant 0 : index
      %c0_47 = arith.constant 0 : index
      %119 = vector.load %arg10[%c0_46, %c0_47] : memref<512x128xf32, #tpu.memory_space<vmem>>, vector<512x128xf32>
      %cst_48 = arith.constant dense<0.000000e+00> : vector<2x128xf32>
      %120 = tpu.matmul %118, %119, %cst_48 {dimension_numbers = #tpu.dot_dimension_numbers<[1], [0], [0], [1], [0, 0, 1, 1], [], []>} : vector<2x512xf32>, vector<512x128xf32>, vector<2x128xf32> -> vector<2x128xf32>
      %c0_49 = arith.constant 0 : index
      %c0_50 = arith.constant 0 : index
      %121 = vector.load %arg11[%c0_49, %c0_50] : memref<1x128xf32, #tpu.memory_space<vmem>>, vector<1x128xf32>
      %122 = vector.broadcast %121 : vector<1x128xf32> to vector<2x128xf32>
      %123 = arith.addf %120, %122 : vector<2x128xf32>
      %c0_51 = arith.constant 0 : index
      %c0_52 = arith.constant 0 : index
      %124 = vector.load %arg12[%c0_51, %c0_52] : memref<2x128xf32, #tpu.memory_space<vmem>>, vector<2x128xf32>
      tpu.vector_store %arg12[%c0_51, %c0_52], %123 {strides = array<i32>} : memref<2x128xf32, #tpu.memory_space<vmem>>, vector<2x128xf32>,
    } else {
    }
    return
  }
  func.func @transform_0(%arg0: i32) -> (i32, i32) {
    %c0_i32 = arith.constant 0 : i32
    %c0_i32_0 = arith.constant 0 : i32
    %c0_i32_1 = arith.constant 0 : i32
    return %c0_i32, %c0_i32_0 : i32, i32
  }
  func.func @transform_1(%arg0: i32) -> (i32, i32) {
    %c0_i32 = arith.constant 0 : i32
    %c0_i32_0 = arith.constant 0 : i32
    %c0_i32_1 = arith.constant 0 : i32
    return %c0_i32, %c0_i32_0 : i32, i32
  }
  func.func @transform_2(%arg0: i32) -> (i32, i32) {
    %c0_i32 = arith.constant 0 : i32
    %c0_i32_0 = arith.constant 0 : i32
    %c0_i32_1 = arith.constant 0 : i32
    return %c0_i32, %c0_i32_0 : i32, i32
  }
  func.func @transform_3(%arg0: i32) -> (i32, i32) {
    %c0_i32 = arith.constant 0 : i32
    %c0_i32_0 = arith.constant 0 : i32
    %c0_i32_1 = arith.constant 0 : i32
    return %c0_i32, %c0_i32_0 : i32, i32
  }
  func.func @transform_4(%arg0: i32) -> (i32, i32) {
    %c0_i32 = arith.constant 0 : i32
    %c0_i32_0 = arith.constant 0 : i32
    %c0_i32_1 = arith.constant 0 : i32
    return %c0_i32, %c0_i32_0 : i32, i32
  }
  func.func @transform_5(%arg0: i32) -> (i32, i32) {
    %c0_i32 = arith.constant 0 : i32
    %c0_i32_0 = arith.constant 0 : i32
    %c0_i32_1 = arith.constant 0 : i32
    return %c0_i32, %c0_i32_0 : i32, i32
  }
  func.func @transform_6(%arg0: i32) -> (i32, i32) {
    %c0_i32 = arith.constant 0 : i32
    %c0_i32_0 = arith.constant 0 : i32
    %c0_i32_1 = arith.constant 0 : i32
    return %c0_i32, %c0_i32_0 : i32, i32
  }
  func.func @transform_7(%arg0: i32) -> (i32, i32) {
    %c0_i32 = arith.constant 0 : i32
    %c0_i32_0 = arith.constant 0 : i32
    return %arg0, %c0_i32 : i32, i32
  }
  func.func @transform_8(%arg0: i32) -> (i32, i32) {
    %c0_i32 = arith.constant 0 : i32
    %c0_i32_0 = arith.constant 0 : i32
    %c0_i32_1 = arith.constant 0 : i32
    return %c0_i32, %c0_i32_0 : i32, i32
  }
  func.func @transform_9(%arg0: i32) -> (i32, i32) {
    %c0_i32 = arith.constant 0 : i32
    %c0_i32_0 = arith.constant 0 : i32
    %c0_i32_1 = arith.constant 0 : i32
    return %c0_i32, %c0_i32_0 : i32, i32
  }
  func.func @transform_10(%arg0: i32) -> (i32, i32) {
    %c0_i32 = arith.constant 0 : i32
    %c0_i32_0 = arith.constant 0 : i32
    %c0_i32_1 = arith.constant 0 : i32
    return %c0_i32, %c0_i32_0 : i32, i32
  }
  func.func @transform_11(%arg0: i32) -> (i32, i32) {
    %c0_i32 = arith.constant 0 : i32
    %c0_i32_0 = arith.constant 0 : i32
    %c0_i32_1 = arith.constant 0 : i32
    return %c0_i32, %c0_i32_0 : i32, i32
  }
}

</mosaic_0001>

<bundles_post_ra>
// kernel: _lambda_.1
= control target key start
LH: loop header
LB: loop body
LE: loop exit
PB: predicated region body
PF: predicated region fallthrough
CT: control target
= control target key end

     0   :  { %16 = vsyncpa [#allocation6], 0  ;;  %s13480_s17 = smov 0   ;;  %s16224_s0 = inlined_call_operand.vmem [shape: f32[1024,32], index: 0, kind: input, shape index: {}]   ;;  %s16225_s1 = inlined_call_operand.vmem [shape: f32[32,32], index: 1, kind: input, shape index: {}]   ;;  %s16226_s2 = inlined_call_operand.vmem [shape: f32[1,32], index: 2, kind: input, shape index: {}]   ;;  %s16227_s3 = inlined_call_operand.vmem [shape: f32[256,64], index: 3, kind: input, shape index: {}]   ;;  %s16228_s4 = inlined_call_operand.vmem [shape: f32[1,64], index: 4, kind: input, shape index: {}]   ;;  %s16229_s5 = inlined_call_operand.vmem [shape: f32[512,64], index: 5, kind: input, shape index: {}]   ;;  %s16230_s6 = inlined_call_operand.vmem [shape: f32[1,64], index: 6, kind: input, shape index: {}]   ;;  %s16231_s7 = inlined_call_operand.vmem [shape: bf16[4096,512], index: 7, kind: input, shape index: {}]   ;;  %s16232_s8 = inlined_call_operand.vmem [shape: f32[1,512], index: 8, kind: input, shape index: {}]   ;;  %s16233_s9 = inlined_call_operand.vmem [shape: f32[512,128], index: 9, kind: input, shape index: {}]   ;;  %s16234_s10 = inlined_call_operand.vmem [shape: f32[1,128], index: 10, kind: input, shape index: {}]   ;;  %s16235_s11 = inlined_call_operand.hbm [shape: f32[2,128], index: 11, kind: output, shape index: {}]  }
   0x1 LB: > { %s13486_s18 = sadd.s32 4294967295, %s13414_s17   ;;  %p10311_p0 = scmp.ge.s32.totalorder %s13414_s17, 1  ;;  %s13414_s17 = sphi %s13480_s17, %s22_s17  }
   0x2   : > { %p335_p1 = scmp.lt.s32.totalorder %s13414_s17, 5 }
   0x4   : > { %p336_p2 = pnand %p10311_p0, %p335_p1 }
   0x5   : > { %s10312_s19 = sshll.u32 (!%p336_p2), %s13486_s18, 7  ;;  %p10315_p4 = scmp.ne.s32.totalorder (!%p336_p2), %s13486_s18, 0 }
   0x6   : > { %339 = sbr.rel (%p336_p2) target bundleno = 2583 (0xa17), region = 64  ;;  %p372_p3 = scmp.lt.s32.totalorder (!%p336_p2), %s10312_s19, 511 }
   0xd   : > { %s16277_s19 = smov (!%p372_p3, %s10312_s19), 511  ;;  %382 = sbr.rel (%p10315_p4) target bundleno = 1841 (0x731), region = 68 }
   0xe   : > { %s11005_s20 = sshll.u32 %s16277_s19, 4 }
   0xf   : > { %s13494_s23 = scalar_lea.vmem %s16231_s7, %s11005_s20 }
  0x14   : > { %v473_v0 = vld [vmem:[%s16225_s1] sm:$0xff]  ;;  %v474_v1 = vld [vmem:[%s16225_s1 + $0x8] sm:$0xff]  ;;  %v475_v2 = vld [vmem:[%s16225_s1 + $0x10] sm:$0xff]  ;;  %vm484_vm0 = vcmask 261120   ;;  %vm383_vm1 = vcmask 523264   ;;  %vm385_vm2 = vcmask 516096  }
  0x15   : > { %v13506_v3 = vpack.c.bf16 %v474_v1, %v473_v0  ;;  %v476_v4 = vld [vmem:[%s16225_s1 + $0x18] sm:$0xff]  ;;  %v457_v5 = vld [vmem:[%s16224_s0 + $0x380] sm:$0xff]  ;;  %v727_v8 = vld [vmem:[%s16227_s3 + $0x8] sm:$0xff]  ;;  %v13416_v28 = vmov 0.0  }
  0x16   : > { %v13514_v6 = vpack.c.bf16 %v476_v4, %v475_v2  ;;  %11596 = vmatprep.mubr.msk.f32.mxu1 %vm484_vm0, %v457_v5  ;;  %v726_v7 = vld [vmem:[%s16227_s3] sm:$0xff]  ;;  %v728_v9 = vld [vmem:[%s16227_s3 + $0x10] sm:$0xff]  ;;  %v729_v10 = vld [vmem:[%s16227_s3 + $0x18] sm:$0xff]  ;;  %425 = vst.msk [vmem:[#allocation2 + $0x140] sm:$0xff] %vm383_vm1, %v13416_v28 }
  0x17   : > { %12421 = vmatprep.subr.bf16.mxu1 %v13506_v3  ;;  %v458_v11 = vld [vmem:[%s16224_s0 + $0x388] sm:$0xff]  ;;  %v12428_v12 = vpack.c.bf16 %v727_v8, %v726_v7  ;;  %v459_v13 = vld [vmem:[%s16224_s0 + $0x390] sm:$0xff]  ;;  %v12432_v14 = vpack.c.bf16 %v729_v10, %v728_v9  ;;  %v460_v15 = vld [vmem:[%s16224_s0 + $0x398] sm:$0xff]  ;;  %426 = vst.msk [vmem:[#allocation2 + $0x148] sm:$0x1] %vm385_vm2, %v13416_v28 }
  0x18   : > { %12423 = vmatpush3.bf16.msra.mxu1 %v13506_v3  ;;  %v461_v16 = vld [vmem:[%s16224_s0 + $0x3a0] sm:$0xff]  ;;  %v462_v17 = vld [vmem:[%s16224_s0 + $0x3a8] sm:$0xff]  ;;  %v463_v18 = vld [vmem:[%s16224_s0 + $0x3b0] sm:$0xff]  ;;  %384 = vst.msk [vmem:[#allocation2] sm:$0xff] %vm383_vm1, %v13416_v28 }
  0x19   : > { %12425 = vmatprep.subr.bf16.mxu1 %v13514_v6  ;;  %v464_v19 = vld [vmem:[%s16224_s0 + $0x3b8] sm:$0xff]  ;;  %v465_v20 = vld [vmem:[%s16224_s0 + $0x3c0] sm:$0xff]  ;;  %v466_v21 = vld [vmem:[%s16224_s0 + $0x3c8] sm:$0xff]  ;;  %386 = vst.msk [vmem:[#allocation2 + $0x8] sm:$0x1] %vm385_vm2, %v13416_v28 }
  0x1a   : > { %v467_v22 = vld [vmem:[%s16224_s0 + $0x3d0] sm:$0xff]  ;;  %v468_v23 = vld [vmem:[%s16224_s0 + $0x3d8] sm:$0xff]  ;;  %v469_v24 = vld [vmem:[%s16224_s0 + $0x3e0] sm:$0xff]  ;;  %387 = vst.msk [vmem:[#allocation2 + $0x10] sm:$0xff] %vm383_vm1, %v13416_v28 }
  0x1b   : > { %v470_v25 = vld [vmem:[%s16224_s0 + $0x3e8] sm:$0xff]  ;;  %v471_v26 = vld [vmem:[%s16224_s0 + $0x3f0] sm:$0xff]  ;;  %v472_v27 = vld [vmem:[%s16224_s0 + $0x3f8] sm:$0xff]  ;;  %388 = vst.msk [vmem:[#allocation2 + $0x18] sm:$0x1] %vm385_vm2, %v13416_v28 }
  0x1c   : > { %12427 = vmatpush3.bf16.msra.mxu1 %v13514_v6  ;;  %389 = vst.msk [vmem:[#allocation2 + $0x20] sm:$0xff] %vm383_vm1, %v13416_v28  ;;  %391 = vst.msk [vmem:[#allocation2 + $0x30] sm:$0xff] %vm383_vm1, %v13416_v28  ;;  %v13742_v29 = vld [vmem:[%s16226_s2] ss:$0 sm:$0xff] }
  0x1d   : > { %12429 = vmatprep.subr.bf16.mxu1 %v12428_v12  ;;  %390 = vst.msk [vmem:[#allocation2 + $0x28] sm:$0x1] %vm385_vm2, %v13416_v28  ;;  %392 = vst.msk [vmem:[#allocation2 + $0x38] sm:$0x1] %vm385_vm2, %v13416_v28 }
  0x1e   : > { %393 = vst.msk [vmem:[#allocation2 + $0x40] sm:$0xff] %vm383_vm1, %v13416_v28  ;;  %395 = vst.msk [vmem:[#allocation2 + $0x50] sm:$0xff] %vm383_vm1, %v13416_v28 }
  0x1f   : > { %11597 = vmatmul.mubr.msk.f32.vlgmr.msra.gmra.mrb[0].mxu1 %vm484_vm0, %v458_v11  ;;  %394 = vst.msk [vmem:[#allocation2 + $0x48] sm:$0x1] %vm385_vm2, %v13416_v28  ;;  %396 = vst.msk [vmem:[#allocation2 + $0x58] sm:$0x1] %vm385_vm2, %v13416_v28 }
  0x20   : > { %11599 = vmatprep.mubr.msk.f32.mxu1 %vm484_vm0, %v459_v13  ;;  %12431 = vmatpush3.bf16.msra.mxu1 %v12428_v12  ;;  %397 = vst.msk [vmem:[#allocation2 + $0x60] sm:$0xff] %vm383_vm1, %v13416_v28  ;;  %399 = vst.msk [vmem:[#allocation2 + $0x70] sm:$0xff] %vm383_vm1, %v13416_v28 }
  0x21   : > { %12433 = vmatprep.subr.bf16.mxu1 %v12432_v14  ;;  %398 = vst.msk [vmem:[#allocation2 + $0x68] sm:$0x1] %vm385_vm2, %v13416_v28  ;;  %400 = vst.msk [vmem:[#allocation2 + $0x78] sm:$0x1] %vm385_vm2, %v13416_v28 }
  0x22   : > { %401 = vst.msk [vmem:[#allocation2 + $0x80] sm:$0xff] %vm383_vm1, %v13416_v28  ;;  %403 = vst.msk [vmem:[#allocation2 + $0x90] sm:$0xff] %vm383_vm1, %v13416_v28 }
  0x23   : > { %11600 = vmatmul.mubr.msk.f32.gmra.mrb[2].mxu1 %vm484_vm0, %v460_v15  ;;  %402 = vst.msk [vmem:[#allocation2 + $0x88] sm:$0x1] %vm385_vm2, %v13416_v28  ;;  %404 = vst.msk [vmem:[#allocation2 + $0x98] sm:$0x1] %vm385_vm2, %v13416_v28 }
  0x24   : > { %11602 = vmatprep.mubr.msk.f32.mxu1 %vm484_vm0, %v461_v16  ;;  %12435 = vmatpush3.bf16.msra.mxu1 %v12432_v14  ;;  %405 = vst.msk [vmem:[#allocation2 + $0xa0] sm:$0xff] %vm383_vm1, %v13416_v28  ;;  %407 = vst.msk [vmem:[#allocation2 + $0xb0] sm:$0xff] %vm383_vm1, %v13416_v28 }
  0x25   : > { %12437 = vmatprep.subr.bf16.mxu1 %v13506_v3  ;;  %406 = vst.msk [vmem:[#allocation2 + $0xa8] sm:$0x1] %vm385_vm2, %v13416_v28  ;;  %408 = vst.msk [vmem:[#allocation2 + $0xb8] sm:$0x1] %vm385_vm2, %v13416_v28 }
  0x26   : > { %409 = vst.msk [vmem:[#allocation2 + $0xc0] sm:$0xff] %vm383_vm1, %v13416_v28  ;;  %411 = vst.msk [vmem:[#allocation2 + $0xd0] sm:$0xff] %vm383_vm1, %v13416_v28 }
  0x27   : > { %11603 = vmatmul.mubr.msk.f32.gmra.mrb[4].mxu1 %vm484_vm0, %v462_v17  ;;  %410 = vst.msk [vmem:[#allocation2 + $0xc8] sm:$0x1] %vm385_vm2, %v13416_v28  ;;  %412 = vst.msk [vmem:[#allocation2 + $0xd8] sm:$0x1] %vm385_vm2, %v13416_v28 }
  0x28   : > { %11605 = vmatprep.mubr.msk.f32.mxu1 %vm484_vm0, %v463_v18  ;;  %413 = vst.msk [vmem:[#allocation2 + $0xe0] sm:$0xff] %vm383_vm1, %v13416_v28  ;;  %415 = vst.msk [vmem:[#allocation2 + $0xf0] sm:$0xff] %vm383_vm1, %v13416_v28 }
  0x29   : > { %414 = vst.msk [vmem:[#allocation2 + $0xe8] sm:$0x1] %vm385_vm2, %v13416_v28  ;;  %416 = vst.msk [vmem:[#allocation2 + $0xf8] sm:$0x1] %vm385_vm2, %v13416_v28 }
  0x2a   : > { %417 = vst.msk [vmem:[#allocation2 + $0x100] sm:$0xff] %vm383_vm1, %v13416_v28  ;;  %419 = vst.msk [vmem:[#allocation2 + $0x110] sm:$0xff] %vm383_vm1, %v13416_v28 }
  0x2b   : > { %11606 = vmatmul.mubr.msk.f32.gmra.mrb[6].mxu1 %vm484_vm0, %v464_v19  ;;  %418 = vst.msk [vmem:[#allocation2 + $0x108] sm:$0x1] %vm385_vm2, %v13416_v28  ;;  %420 = vst.msk [vmem:[#allocation2 + $0x118] sm:$0x1] %vm385_vm2, %v13416_v28 }
  0x2c   : > { %11608 = vmatprep.mubr.msk.f32.mxu1 %vm484_vm0, %v465_v20  ;;  %421 = vst.msk [vmem:[#allocation2 + $0x120] sm:$0xff] %vm383_vm1, %v13416_v28  ;;  %423 = vst.msk [vmem:[#allocation2 + $0x130] sm:$0xff] %vm383_vm1, %v13416_v28 }
  0x2d   : > { %422 = vst.msk [vmem:[#allocation2 + $0x128] sm:$0x1] %vm385_vm2, %v13416_v28  ;;  %424 = vst.msk [vmem:[#allocation2 + $0x138] sm:$0x1] %vm385_vm2, %v13416_v28 }
  0x2e   : > { %427 = vst.msk [vmem:[#allocation2 + $0x150] sm:$0xff] %vm383_vm1, %v13416_v28  ;;  %429 = vst.msk [vmem:[#allocation2 + $0x160] sm:$0xff] %vm383_vm1, %v13416_v28 }
  0x2f   : > { %11609 = vmatmul.mubr.msk.f32.gmra.mrb[8].mxu1 %vm484_vm0, %v466_v21  ;;  %428 = vst.msk [vmem:[#allocation2 + $0x158] sm:$0x1] %vm385_vm2, %v13416_v28  ;;  %430 = vst.msk [vmem:[#allocation2 + $0x168] sm:$0x1] %vm385_vm2, %v13416_v28 }
  0x30   : > { %11611 = vmatprep.mubr.msk.f32.mxu1 %vm484_vm0, %v467_v22  ;;  %431 = vst.msk [vmem:[#allocation2 + $0x170] sm:$0xff] %vm383_vm1, %v13416_v28  ;;  %433 = vst.msk [vmem:[#allocation2 + $0x180] sm:$0xff] %vm383_vm1, %v13416_v28 }
  0x31   : > { %432 = vst.msk [vmem:[#allocation2 + $0x178] sm:$0x1] %vm385_vm2, %v13416_v28  ;;  %434 = vst.msk [vmem:[#allocation2 + $0x188] sm:$0x1] %vm385_vm2, %v13416_v28 }
  0x32   : > { %435 = vst.msk [vmem:[#allocation2 + $0x190] sm:$0xff] %vm383_vm1, %v13416_v28  ;;  %437 = vst.msk [vmem:[#allocation2 + $0x1a0] sm:$0xff] %vm383_vm1, %v13416_v28 }
  0x33   : > { %11612 = vmatmul.mubr.msk.f32.gmra.mrb[10].mxu1 %vm484_vm0, %v468_v23  ;;  %436 = vst.msk [vmem:[#allocation2 + $0x198] sm:$0x1] %vm385_vm2, %v13416_v28  ;;  %438 = vst.msk [vmem:[#allocation2 + $0x1a8] sm:$0x1] %vm385_vm2, %v13416_v28 }
  0x34   : > { %11614 = vmatprep.mubr.msk.f32.mxu1 %vm484_vm0, %v469_v24  ;;  %439 = vst.msk [vmem:[#allocation2 + $0x1b0] sm:$0xff] %vm383_vm1, %v13416_v28  ;;  %441 = vst.msk [vmem:[#allocation2 + $0x1c0] sm:$0xff] %vm383_vm1, %v13416_v28 }
  0x35   : > { %440 = vst.msk [vmem:[#allocation2 + $0x1b8] sm:$0x1] %vm385_vm2, %v13416_v28  ;;  %442 = vst.msk [vmem:[#allocation2 + $0x1c8] sm:$0x1] %vm385_vm2, %v13416_v28 }
  0x36   : > { %443 = vst.msk [vmem:[#allocation2 + $0x1d0] sm:$0xff] %vm383_vm1, %v13416_v28  ;;  %445 = vst.msk [vmem:[#allocation2 + $0x1e0] sm:$0xff] %vm383_vm1, %v13416_v28 }
  0x37   : > { %11615 = vmatmul.mubr.msk.f32.gmra.mrb[12].mxu1 %vm484_vm0, %v470_v25  ;;  %444 = vst.msk [vmem:[#allocation2 + $0x1d8] sm:$0x1] %vm385_vm2, %v13416_v28  ;;  %446 = vst.msk [vmem:[#allocation2 + $0x1e8] sm:$0x1] %vm385_vm2, %v13416_v28 }
  0x38   : > { %11617 = vmatprep.mubr.msk.f32.mxu1 %vm484_vm0, %v471_v26  ;;  %447 = vst.msk [vmem:[#allocation2 + $0x1f0] sm:$0xff] %vm383_vm1, %v13416_v28  ;;  %449 = vst.msk [vmem:[#allocation2 + $0x200] sm:$0xff] %vm383_vm1, %v13416_v28 }
  0x39   : > { %448 = vst.msk [vmem:[#allocation2 + $0x1f8] sm:$0x1] %vm385_vm2, %v13416_v28  ;;  %450 = vst.msk [vmem:[#allocation2 + $0x208] sm:$0x1] %vm385_vm2, %v13416_v28 }
  0x3a   : > { %451 = vst.msk [vmem:[#allocation2 + $0x210] sm:$0xff] %vm383_vm1, %v13416_v28  ;;  %453 = vst.msk [vmem:[#allocation2 + $0x220] sm:$0xff] %vm383_vm1, %v13416_v28 }
  0x3b   : > { %11618 = vmatmul.mubr.msk.f32.gmra.mrb[14].mxu1 %vm484_vm0, %v472_v27  ;;  %452 = vst.msk [vmem:[#allocation2 + $0x218] sm:$0x1] %vm385_vm2, %v13416_v28  ;;  %454 = vst.msk [vmem:[#allocation2 + $0x228] sm:$0x1] %vm385_vm2, %v13416_v28 }
  0x3c   : > { %455 = vst.msk [vmem:[#allocation2 + $0x230] sm:$0xff] %vm383_vm1, %v13416_v28  ;;  %6923 = vst [vmem:[#allocation4] sm:$0xff] %v13416_v28 }
  0x3d   : > { %456 = vst.msk [vmem:[#allocation2 + $0x238] sm:$0x1] %vm385_vm2, %v13416_v28 }
  0xf2   : > { %v11598_v30 = vpop.f32.mrb[0].mxu1 }
  0xf3   : > { %v605_v31 = vadd.f32 %v11598_v30, %v13742_v29  ;;  %v599_v32 = vpop.f32.mrb[1].mxu1 }
  0xf4   : > { %v600_v33 = vadd.f32 %v13742_v29, %v599_v32  ;;  %v972_v32 = vld [vmem:[%s16224_s0 + $0x300] sm:$0xff] }
  0xf5   : > { %v695_v34 = vmul.f32 0.01, %v605_v31  ;;  %vm679_vm3 = vcmp.ge.f32.partialorder %v605_v31, 0.0 }
  0xf6   : > { %vm678_vm4 = vcmp.ge.f32.partialorder %v600_v33, 0.0  ;;  %v694_v35 = vmul.f32 0.01, %v600_v33  ;;  %v11601_v36 = vpop.f32.mrb[2].mxu1 }
  0xf7   : > { %v615_v37 = vadd.f32 %v11601_v36, %v13742_v29  ;;  %v609_v38 = vpop.f32.mrb[3].mxu1  ;;  %v711_v41 = vsel %vm679_vm3, %v605_v31, %v695_v34  ;;  %v973_v34 = vld [vmem:[%s16224_s0 + $0x308] sm:$0xff]  ;;  %v975_v36 = vld [vmem:[%s16224_s0 + $0x318] sm:$0xff] }
  0xf8   : > { %v610_v39 = vadd.f32 %v13742_v29, %v609_v38  ;;  %v710_v40 = vsel %vm678_vm4, %v600_v33, %v694_v35  ;;  %v974_v35 = vld [vmem:[%s16224_s0 + $0x310] sm:$0xff]  ;;  %v977_v38 = vld [vmem:[%s16224_s0 + $0x328] sm:$0xff] }
  0xf9   : > { %v697_v42 = vmul.f32 0.01, %v615_v37  ;;  %11628 = vmatprep.mubr.msk.f32.mxu1 %vm484_vm0, %v710_v40  ;;  %vm681_vm5 = vcmp.ge.f32.partialorder %v615_v37, 0.0  ;;  %v979_v40 = vld [vmem:[%s16224_s0 + $0x338] sm:$0xff] }
  0xfa   : > { %vm680_vm6 = vcmp.ge.f32.partialorder %v610_v39, 0.0  ;;  %v696_v43 = vmul.f32 0.01, %v610_v39  ;;  %v11604_v44 = vpop.f32.mrb[4].mxu1  ;;  %11629 = vmatmul.mubr.msk.f32.vlgmr.msra.gmra.mrb[16].mxu1 %vm484_vm0, %v711_v41  ;;  %v980_v41 = vld [vmem:[%s16224_s0 + $0x340] sm:$0xff] }
  0xfb   : > { %v625_v45 = vadd.f32 %v11604_v44, %v13742_v29  ;;  %12439 = vmatpush3.bf16.msra.mxu1 %v13506_v3  ;;  %v619_v46 = vpop.f32.mrb[5].mxu1  ;;  %v713_v50 = vsel %vm681_vm5, %v615_v37, %v697_v42  ;;  %v976_v37 = vld [vmem:[%s16224_s0 + $0x320] sm:$0xff]  ;;  %v981_v42 = vld [vmem:[%s16224_s0 + $0x348] sm:$0xff]  ;;  %v983_v44 = vld [vmem:[%s16224_s0 + $0x358] sm:$0xff] }
  0xfc   : > { %v620_v47 = vadd.f32 %v13742_v29, %v619_v46  ;;  %v712_v48 = vsel %vm680_vm6, %v610_v39, %v696_v43  ;;  %12441 = vmatprep.subr.bf16.mxu1 %v13514_v6  ;;  %v978_v39 = vld [vmem:[%s16224_s0 + $0x330] sm:$0xff]  ;;  %v985_v46 = vld [vmem:[%s16224_s0 + $0x368] sm:$0xff] }
  0xfd   : > { %v699_v49 = vmul.f32 0.01, %v625_v45  ;;  %11631 = vmatprep.mubr.msk.f32.mxu1 %vm484_vm0, %v712_v48  ;;  %vm683_vm7 = vcmp.ge.f32.partialorder %v625_v45, 0.0  ;;  %v982_v43 = vld [vmem:[%s16224_s0 + $0x350] sm:$0xff]  ;;  %v987_v48 = vld [vmem:[%s16224_s0 + $0x378] sm:$0xff] }
  0xfe   : > { %vm682_vm8 = vcmp.ge.f32.partialorder %v620_v47, 0.0  ;;  %v698_v51 = vmul.f32 0.01, %v620_v47  ;;  %v11607_v52 = vpop.f32.mrb[6].mxu1  ;;  %11632 = vmatmul.mubr.msk.f32.gmra.mrb[18].mxu1 %vm484_vm0, %v713_v50  ;;  %v1241_v50 = vld [vmem:[%s16227_s3 + $0x28] sm:$0xff] }
  0xff   : > { %v635_v53 = vadd.f32 %v11607_v52, %v13742_v29  ;;  %v629_v54 = vpop.f32.mrb[7].mxu1  ;;  %12443 = vmatpush3.bf16.msra.mxu1 %v13514_v6  ;;  %v715_v58 = vsel %vm683_vm7, %v625_v45, %v699_v49  ;;  %v984_v45 = vld [vmem:[%s16224_s0 + $0x360] sm:$0xff]  ;;  %v1242_v52 = vld [vmem:[%s16227_s3 + $0x30] sm:$0xff] }
 0x100   : > { %v630_v55 = vadd.f32 %v13742_v29, %v629_v54  ;;  %v714_v56 = vsel %vm682_vm8, %v620_v47, %v698_v51  ;;  %v986_v47 = vld [vmem:[%s16224_s0 + $0x370] sm:$0xff]  ;;  %v1240_v49 = vld [vmem:[%s16227_s3 + $0x20] sm:$0xff] }
 0x101   : > { %v701_v57 = vmul.f32 0.01, %v635_v53  ;;  %11634 = vmatprep.mubr.msk.f32.mxu1 %vm484_vm0, %v714_v56  ;;  %vm685_vm9 = vcmp.ge.f32.partialorder %v635_v53, 0.0  ;;  %v12444_v51 = vpack.c.bf16 %v1241_v50, %v1240_v49  ;;  %v924_v56 = vld [vmem:[#allocation2 + $0x131] sm:$0xff] }
 0x102   : > { %vm684_vm10 = vcmp.ge.f32.partialorder %v630_v55, 0.0  ;;  %v700_v59 = vmul.f32 0.01, %v630_v55  ;;  %v11610_v60 = vpop.f32.mrb[8].mxu1  ;;  %11635 = vmatmul.mubr.msk.f32.gmra.mrb[20].mxu1 %vm484_vm0, %v715_v58 }
 0x103   : > { %v645_v61 = vadd.f32 %v11610_v60, %v13742_v29  ;;  %v639_v62 = vpop.f32.mrb[9].mxu1  ;;  %v717_v2 = vsel %vm685_vm9, %v635_v53, %v701_v57  ;;  %12445 = vmatprep.subr.bf16.mxu1 %v12444_v51  ;;  %v1243_v53 = vld [vmem:[%s16227_s3 + $0x38] sm:$0xff] }
 0x104   : > { %v640_v63 = vadd.f32 %v13742_v29, %v639_v62  ;;  %v716_v0 = vsel %vm684_vm10, %v630_v55, %v700_v59  ;;  %v12448_v54 = vpack.c.bf16 %v1243_v53, %v1242_v52  ;;  %v925_v55 = vld [vmem:[#allocation2 + $0x141] sm:$0xff]  ;;  %v926_v62 = vld [vmem:[#allocation2 + $0x151] sm:$0xff] }
 0x105   : > { %v703_v1 = vmul.f32 0.01, %v645_v61  ;;  %11637 = vmatprep.mubr.msk.f32.mxu1 %vm484_vm0, %v716_v0  ;;  %vm687_vm11 = vcmp.ge.f32.partialorder %v645_v61, 0.0 }
 0x106   : > { %vm686_vm12 = vcmp.ge.f32.partialorder %v640_v63, 0.0  ;;  %v702_v4 = vmul.f32 0.01, %v640_v63  ;;  %v11613_v5 = vpop.f32.mrb[10].mxu1  ;;  %11638 = vmatmul.mubr.msk.f32.gmra.mrb[22].mxu1 %vm484_vm0, %v717_v2 }
 0x107   : > { %v655_v7 = vadd.f32 %v11613_v5, %v13742_v29  ;;  %v649_v8 = vpop.f32.mrb[11].mxu1  ;;  %v719_v12 = vsel %vm687_vm11, %v645_v61, %v703_v1  ;;  %v927_v61 = vld [vmem:[#allocation2 + $0x161] sm:$0xff]  ;;  %v928_v5 = vld [vmem:[#allocation2 + $0x171] sm:$0xff] }
 0x108   : > { %v650_v9 = vadd.f32 %v13742_v29, %v649_v8  ;;  %v718_v10 = vsel %vm686_vm12, %v640_v63, %v702_v4  ;;  %v929_v4 = vld [vmem:[#allocation2 + $0x181] sm:$0xff] }
 0x109   : > { %v705_v11 = vmul.f32 0.01, %v655_v7  ;;  %11640 = vmatprep.mubr.msk.f32.mxu1 %vm484_vm0, %v718_v10  ;;  %vm689_vm13 = vcmp.ge.f32.partialorder %v655_v7, 0.0 }
 0x10a   : > { %vm688_vm14 = vcmp.ge.f32.partialorder %v650_v9, 0.0  ;;  %v704_v13 = vmul.f32 0.01, %v650_v9  ;;  %v11616_v14 = vpop.f32.mrb[12].mxu1  ;;  %11641 = vmatmul.mubr.msk.f32.gmra.mrb[24].mxu1 %vm484_vm0, %v719_v12  ;;  %v930_v12 = vld [vmem:[#allocation2 + $0x191] sm:$0xff] }
 0x10b   : > { %v665_v15 = vadd.f32 %v11616_v14, %v13742_v29  ;;  %v659_v16 = vpop.f32.mrb[13].mxu1  ;;  %v721_v20 = vsel %vm689_vm13, %v655_v7, %v705_v11  ;;  %v931_v11 = vld [vmem:[#allocation2 + $0x1a1] sm:$0xff] }
 0x10c   : > { %v660_v17 = vadd.f32 %v13742_v29, %v659_v16  ;;  %v720_v18 = vsel %vm688_vm14, %v650_v9, %v704_v13 }
 0x10d   : > { %v707_v19 = vmul.f32 0.01, %v665_v15  ;;  %11643 = vmatprep.mubr.msk.f32.mxu1 %vm484_vm0, %v720_v18  ;;  %vm691_vm15 = vcmp.ge.f32.partialorder %v665_v15, 0.0  ;;  %v932_v18 = vld [vmem:[#allocation2 + $0x1c1] sm:$0xff] }
 0x10e   : > { %vm690_vm3 = vcmp.ge.f32.partialorder %v660_v17, 0.0  ;;  %v706_v21 = vmul.f32 0.01, %v660_v17  ;;  %v11619_v22 = vpop.f32.mrb[14].mxu1  ;;  %11644 = vmatmul.mubr.msk.f32.gmra.mrb[26].mxu1 %vm484_vm0, %v721_v20 }
 0x10f   : > { %v675_v23 = vadd.f32 %v11619_v22, %v13742_v29  ;;  %v669_v24 = vpop.f32.mrb[15].mxu1  ;;  %v723_v28 = vsel %vm691_vm15, %v665_v15, %v707_v19 }
 0x110   : > { %v670_v25 = vadd.f32 %v13742_v29, %v669_v24  ;;  %v722_v26 = vsel %vm690_vm3, %v660_v17, %v706_v21  ;;  %v933_v17 = vld [vmem:[#allocation2 + $0x1d1] sm:$0xff]  ;;  %v934_v24 = vld [vmem:[#allocation2 + $0x1e1] sm:$0xff] }
 0x111   : > { %v709_v27 = vmul.f32 0.01, %v675_v23  ;;  %11646 = vmatprep.mubr.msk.f32.mxu1 %vm484_vm0, %v722_v26  ;;  %vm693_vm4 = vcmp.ge.f32.partialorder %v675_v23, 0.0 }
 0x112   : > { %vm692_vm5 = vcmp.ge.f32.partialorder %v670_v25, 0.0  ;;  %v708_v30 = vmul.f32 0.01, %v670_v25  ;;  %11647 = vmatmul.mubr.msk.f32.gmra.mrb[28].mxu1 %vm484_vm0, %v723_v28 }
 0x113   : > { %v725_v33 = vsel %vm693_vm4, %v675_v23, %v709_v27  ;;  %v935_v23 = vld [vmem:[#allocation2 + $0x1f1] sm:$0xff] }
 0x114   : > { %v724_v31 = vsel %vm692_vm5, %v670_v25, %v708_v30  ;;  %v13868_v25 = vld [vmem:[%s16228_s4] ss:$0 sm:$0xff] }
 0x115   : > { %11649 = vmatprep.mubr.msk.f32.mxu1 %vm484_vm0, %v724_v31 }
 0x116   : > { %11650 = vmatmul.mubr.msk.f32.gmra.mrb[30].mxu1 %vm484_vm0, %v725_v33 }
 0x117   : > { %11660 = vmatprep.mubr.msk.f32.mxu1 %vm484_vm0, %v972_v32  ;;  %v937_v32 = vld [vmem:[#allocation2 + $0x211] sm:$0xff] }
 0x11a   : > { %11661 = vmatmul.mubr.msk.f32.vlgmr.msra.gmra.mrb[32].mxu1 %vm484_vm0, %v973_v34  ;;  %v936_v34 = vld [vmem:[#allocation2 + $0x201] sm:$0xff] }
 0x11b   : > { %11663 = vmatprep.mubr.msk.f32.mxu1 %vm484_vm0, %v974_v35  ;;  %12447 = vmatpush3.bf16.msra.mxu1 %v12444_v51 }
 0x11c   : > { %12449 = vmatprep.subr.bf16.mxu1 %v12448_v54 }
 0x11e   : > { %11664 = vmatmul.mubr.msk.f32.gmra.mrb[34].mxu1 %vm484_vm0, %v975_v36 }
 0x11f   : > { %11666 = vmatprep.mubr.msk.f32.mxu1 %vm484_vm0, %v976_v37  ;;  %12451 = vmatpush3.bf16.msra.mxu1 %v12448_v54 }
 0x120   : > { %12453 = vmatprep.subr.bf16.mxu1 %v13506_v3 }
 0x122   : > { %11667 = vmatmul.mubr.msk.f32.gmra.mrb[36].mxu1 %vm484_vm0, %v977_v38 }
 0x123   : > { %11669 = vmatprep.mubr.msk.f32.mxu1 %vm484_vm0, %v978_v39 }
 0x126   : > { %11670 = vmatmul.mubr.msk.f32.gmra.mrb[38].mxu1 %vm484_vm0, %v979_v40  ;;  %v939_v40 = vld [vmem:[#allocation2 + $0x231] sm:$0xff] }
 0x127   : > { %11672 = vmatprep.mubr.msk.f32.mxu1 %vm484_vm0, %v980_v41 }
 0x12a   : > { %11673 = vmatmul.mubr.msk.f32.gmra.mrb[40].mxu1 %vm484_vm0, %v981_v42  ;;  %v938_v42 = vld [vmem:[#allocation2 + $0x221] sm:$0xff] }
 0x12b   : > { %11675 = vmatprep.mubr.msk.f32.mxu1 %vm484_vm0, %v982_v43 }
 0x12e   : > { %11676 = vmatmul.mubr.msk.f32.gmra.mrb[42].mxu1 %vm484_vm0, %v983_v44 }
 0x12f   : > { %11678 = vmatprep.mubr.msk.f32.mxu1 %vm484_vm0, %v984_v45 }
 0x132   : > { %11679 = vmatmul.mubr.msk.f32.gmra.mrb[44].mxu1 %vm484_vm0, %v985_v46 }
 0x133   : > { %11681 = vmatprep.mubr.msk.f32.mxu1 %vm484_vm0, %v986_v47 }
 0x136   : > { %11682 = vmatmul.mubr.msk.f32.gmra.mrb[46].mxu1 %vm484_vm0, %v987_v48 }
 0x1cd   : > { %v11630_v57 = vpop.f32.mrb[16].mxu1 }
 0x1ce   : > { %v941_v58 = vadd.f32 %v11630_v57, %v925_v55  ;;  %v844_v59 = vpop.f32.mrb[17].mxu1 }
 0x1cf   : > { %v940_v60 = vadd.f32 %v924_v56, %v844_v59 }
 0x1d0   : > { %957 = vst.msk [vmem:[#allocation2 + $0x141] sm:$0xff] %vm383_vm1, %v941_v58 }
 0x1d1   : > { %956 = vst.msk [vmem:[#allocation2 + $0x131] sm:$0xff] %vm383_vm1, %v940_v60  ;;  %v11633_v63 = vpop.f32.mrb[18].mxu1 }
 0x1d2   : > { %v943_v0 = vadd.f32 %v11633_v63, %v927_v61  ;;  %v854_v1 = vpop.f32.mrb[19].mxu1 }
 0x1d3   : > { %v942_v2 = vadd.f32 %v926_v62, %v854_v1 }
 0x1d4   : > { %959 = vst.msk [vmem:[#allocation2 + $0x161] sm:$0xff] %vm383_vm1, %v943_v0 }
 0x1d5   : > { %958 = vst.msk [vmem:[#allocation2 + $0x151] sm:$0xff] %vm383_vm1, %v942_v2  ;;  %v11636_v7 = vpop.f32.mrb[20].mxu1 }
 0x1d6   : > { %v945_v8 = vadd.f32 %v11636_v7, %v929_v4  ;;  %v864_v9 = vpop.f32.mrb[21].mxu1 }
 0x1d7   : > { %v944_v10 = vadd.f32 %v928_v5, %v864_v9 }
 0x1d8   : > { %961 = vst.msk [vmem:[#allocation2 + $0x181] sm:$0xff] %vm383_vm1, %v945_v8 }
 0x1d9   : > { %960 = vst.msk [vmem:[#allocation2 + $0x171] sm:$0xff] %vm383_vm1, %v944_v10  ;;  %v11639_v13 = vpop.f32.mrb[22].mxu1 }
 0x1da   : > { %v947_v14 = vadd.f32 %v11639_v13, %v931_v11  ;;  %v874_v15 = vpop.f32.mrb[23].mxu1 }
 0x1db   : > { %v946_v16 = vadd.f32 %v930_v12, %v874_v15 }
 0x1dc   : > { %963 = vst.msk [vmem:[#allocation2 + $0x1a1] sm:$0xff] %vm383_vm1, %v947_v14 }
 0x1dd   : > { %962 = vst.msk [vmem:[#allocation2 + $0x191] sm:$0xff] %vm383_vm1, %v946_v16  ;;  %v11642_v19 = vpop.f32.mrb[24].mxu1 }
 0x1de   : > { %v949_v20 = vadd.f32 %v11642_v19, %v933_v17  ;;  %v884_v21 = vpop.f32.mrb[25].mxu1 }
 0x1df   : > { %v948_v22 = vadd.f32 %v932_v18, %v884_v21 }
 0x1e0   : > { %965 = vst.msk [vmem:[#allocation2 + $0x1d1] sm:$0xff] %vm383_vm1, %v949_v20 }
 0x1e1   : > { %964 = vst.msk [vmem:[#allocation2 + $0x1c1] sm:$0xff] %vm383_vm1, %v948_v22  ;;  %v11645_v26 = vpop.f32.mrb[26].mxu1 }
 0x1e2   : > { %v951_v27 = vadd.f32 %v11645_v26, %v935_v23  ;;  %v894_v28 = vpop.f32.mrb[27].mxu1 }
 0x1e3   : > { %v4618_v30 = vld [vmem:[#allocation2 + $0x1a8] sm:$0x1]  ;;  %v950_v31 = vadd.f32 %v934_v24, %v894_v28 }
 0x1e4   : > { %v4697_v33 = vadd.f32 %v13868_v25, %v4618_v30  ;;  %967 = vst.msk [vmem:[#allocation2 + $0x1f1] sm:$0xff] %vm383_vm1, %v951_v27 }
 0x1e5   : > { %966 = vst.msk [vmem:[#allocation2 + $0x1e1] sm:$0xff] %vm383_vm1, %v950_v31  ;;  %v11648_v35 = vpop.f32.mrb[28].mxu1 }
 0x1e6   : > { %vm4769_vm6 = vcmp.ge.f32.partialorder %v4697_v33, 0.0  ;;  %v4841_v36 = vmul.f32 0.01, %v4697_v33  ;;  %v953_v37 = vadd.f32 %v11648_v35, %v937_v32  ;;  %v904_v38 = vpop.f32.mrb[29].mxu1 }
 0x1e7   : > { %v952_v39 = vadd.f32 %v936_v34, %v904_v38 }
 0x1e8   : > { %v4913_v41 = vsel %vm4769_vm6, %v4697_v33, %v4841_v36  ;;  %969 = vst.msk [vmem:[#allocation2 + $0x211] sm:$0xff] %vm383_vm1, %v953_v37 }
 0x1e9   : > { %4985 = vst.msk [vmem:[#allocation2 + $0x1a8] sm:$0x1] %vm385_vm2, %v4913_v41  ;;  %v11651_v43 = vpop.f32.mrb[30].mxu1 }
 0x1ea   : > { %968 = vst.msk [vmem:[#allocation2 + $0x201] sm:$0xff] %vm383_vm1, %v952_v39  ;;  %v955_v44 = vadd.f32 %v11651_v43, %v939_v40  ;;  %v914_v45 = vpop.f32.mrb[31].mxu1 }
 0x1eb   : > { %v954_v46 = vadd.f32 %v938_v42, %v914_v45 }
 0x1ec   : > { %971 = vst.msk [vmem:[#allocation2 + $0x231] sm:$0xff] %vm383_vm1, %v955_v44 }
 0x1ed   : > { %970 = vst.msk [vmem:[#allocation2 + $0x221] sm:$0xff] %vm383_vm1, %v954_v46  ;;  %v11662_v47 = vpop.f32.mrb[32].mxu1 }
 0x1ee   : > { %v1119_v48 = vadd.f32 %v11662_v47, %v13742_v29  ;;  %v1113_v49 = vpop.f32.mrb[33].mxu1 }
 0x1ef   : > { %v1114_v50 = vadd.f32 %v13742_v29, %v1113_v49 }
 0x1f0   : > { %v1209_v51 = vmul.f32 0.01, %v1119_v48  ;;  %vm1193_vm7 = vcmp.ge.f32.partialorder %v1119_v48, 0.0 }
 0x1f1   : > { %vm1192_vm8 = vcmp.ge.f32.partialorder %v1114_v50, 0.0  ;;  %v1208_v52 = vmul.f32 0.01, %v1114_v50  ;;  %v11665_v53 = vpop.f32.mrb[34].mxu1 }
 0x1f2   : > { %v1129_v54 = vadd.f32 %v11665_v53, %v13742_v29  ;;  %v1123_v55 = vpop.f32.mrb[35].mxu1  ;;  %v1225_v60 = vsel %vm1193_vm7, %v1119_v48, %v1209_v51 }
 0x1f3   : > { %v4636_v56 = vld [vmem:[#allocation2 + $0x238] sm:$0x1]  ;;  %v1124_v57 = vadd.f32 %v13742_v29, %v1123_v55  ;;  %v1224_v58 = vsel %vm1192_vm8, %v1114_v50, %v1208_v52  ;;  %v1485_v52 = vld [vmem:[%s16224_s0 + $0x280] sm:$0xff] }
 0x1f4   : > { %v4715_v59 = vadd.f32 %v13868_v25, %v4636_v56  ;;  %v1211_v61 = vmul.f32 0.01, %v1129_v54  ;;  %11692 = vmatprep.mubr.msk.f32.mxu1 %vm484_vm0, %v1224_v58  ;;  %vm1195_vm9 = vcmp.ge.f32.partialorder %v1129_v54, 0.0  ;;  %v1488_v55 = vld [vmem:[%s16224_s0 + $0x298] sm:$0xff]  ;;  %v1489_v56 = vld [vmem:[%s16224_s0 + $0x2a0] sm:$0xff]  ;;  %v1491_v58 = vld [vmem:[%s16224_s0 + $0x2b0] sm:$0xff] }
 0x1f5   : > { %vm1194_vm10 = vcmp.ge.f32.partialorder %v1124_v57, 0.0  ;;  %v1210_v62 = vmul.f32 0.01, %v1124_v57  ;;  %v11668_v63 = vpop.f32.mrb[36].mxu1  ;;  %11693 = vmatmul.mubr.msk.f32.vlgmr.msra.gmra.mrb[48].mxu1 %vm484_vm0, %v1225_v60  ;;  %v1493_v60 = vld [vmem:[%s16224_s0 + $0x2c0] sm:$0xff] }
 0x1f6   : > { %vm4787_vm11 = vcmp.ge.f32.partialorder %v4715_v59, 0.0  ;;  %v4859_v0 = vmul.f32 0.01, %v4715_v59  ;;  %v1139_v1 = vadd.f32 %v11668_v63, %v13742_v29  ;;  %12455 = vmatpush3.bf16.msra.mxu1 %v13506_v3  ;;  %v1133_v2 = vpop.f32.mrb[37].mxu1  ;;  %v1227_v9 = vsel %vm1195_vm9, %v1129_v54, %v1211_v61  ;;  %v1487_v54 = vld [vmem:[%s16224_s0 + $0x290] sm:$0xff]  ;;  %v1494_v61 = vld [vmem:[%s16224_s0 + $0x2c8] sm:$0xff] }
 0x1f7   : > { %v1134_v4 = vadd.f32 %v13742_v29, %v1133_v2  ;;  %v1226_v5 = vsel %vm1194_vm10, %v1124_v57, %v1210_v62  ;;  %12457 = vmatprep.subr.bf16.mxu1 %v13514_v6  ;;  %v1490_v57 = vld [vmem:[%s16224_s0 + $0x2a8] sm:$0xff]  ;;  %v1495_v62 = vld [vmem:[%s16224_s0 + $0x2d0] sm:$0xff]  ;;  %v1496_v63 = vld [vmem:[%s16224_s0 + $0x2d8] sm:$0xff] }
 0x1f8   : > { %v4931_v7 = vsel %vm4787_vm11, %v4715_v59, %v4859_v0  ;;  %v1213_v8 = vmul.f32 0.01, %v1139_v1  ;;  %11695 = vmatprep.mubr.msk.f32.mxu1 %vm484_vm0, %v1226_v5  ;;  %vm1197_vm12 = vcmp.ge.f32.partialorder %v1139_v1, 0.0  ;;  %v1492_v59 = vld [vmem:[%s16224_s0 + $0x2b8] sm:$0xff]  ;;  %v1497_v0 = vld [vmem:[%s16224_s0 + $0x2e0] sm:$0xff]  ;;  %v1499_v2 = vld [vmem:[%s16224_s0 + $0x2f0] sm:$0xff] }
 0x1f9   : > { %5003 = vst.msk [vmem:[#allocation2 + $0x238] sm:$0x1] %vm385_vm2, %v4931_v7  ;;  %vm1196_vm13 = vcmp.ge.f32.partialorder %v1134_v4, 0.0  ;;  %v1212_v10 = vmul.f32 0.01, %v1134_v4  ;;  %v11671_v11 = vpop.f32.mrb[38].mxu1  ;;  %11696 = vmatmul.mubr.msk.f32.gmra.mrb[50].mxu1 %vm484_vm0, %v1227_v9 }
 0x1fa   : > { %v1149_v3 = vadd.f32 %v11671_v11, %v13742_v29  ;;  %v1143_v12 = vpop.f32.mrb[39].mxu1  ;;  %12459 = vmatpush3.bf16.msra.mxu1 %v13514_v6  ;;  %v1229_v16 = vsel %vm1197_vm12, %v1139_v1, %v1213_v8  ;;  %v1498_v1 = vld [vmem:[%s16224_s0 + $0x2e8] sm:$0xff]  ;;  %v1753_v5 = vld [vmem:[%s16227_s3 + $0x40] sm:$0xff]  ;;  %v1755_v9 = vld [vmem:[%s16227_s3 + $0x50] sm:$0xff] }
 0x1fb   : > { %v1144_v13 = vadd.f32 %v13742_v29, %v1143_v12  ;;  %v1228_v14 = vsel %vm1196_vm13, %v1134_v4, %v1212_v10  ;;  %v1500_v4 = vld [vmem:[%s16224_s0 + $0x2f8] sm:$0xff]  ;;  %v1754_v7 = vld [vmem:[%s16227_s3 + $0x48] sm:$0xff] }
 0x1fc   : > { %v1215_v15 = vmul.f32 0.01, %v1149_v3  ;;  %11698 = vmatprep.mubr.msk.f32.mxu1 %vm484_vm0, %v1228_v14  ;;  %vm1199_vm14 = vcmp.ge.f32.partialorder %v1149_v3, 0.0  ;;  %v12460_v8 = vpack.c.bf16 %v1754_v7, %v1753_v5  ;;  %v1756_v10 = vld [vmem:[%s16227_s3 + $0x58] sm:$0xff]  ;;  %v2016_v12 = vld [vmem:[%s16225_s1 + $0x8] sm:$0xff]  ;;  %v2017_v14 = vld [vmem:[%s16225_s1 + $0x10] sm:$0xff] }
 0x1fd   : > { %vm1198_vm15 = vcmp.ge.f32.partialorder %v1144_v13, 0.0  ;;  %v1214_v17 = vmul.f32 0.01, %v1144_v13  ;;  %v11674_v18 = vpop.f32.mrb[40].mxu1  ;;  %11699 = vmatmul.mubr.msk.f32.gmra.mrb[52].mxu1 %vm484_vm0, %v1229_v16  ;;  %v12464_v11 = vpack.c.bf16 %v1756_v10, %v1755_v9  ;;  %v3035_v10 = vld [vmem:[%s16224_s0 + $0x148] sm:$0xff] }
 0x1fe   : > { %v1159_v19 = vadd.f32 %v11674_v18, %v13742_v29  ;;  %v1153_v20 = vpop.f32.mrb[41].mxu1  ;;  %v1231_v23 = vsel %vm1199_vm14, %v1149_v3, %v1215_v15  ;;  %12461 = vmatprep.subr.bf16.mxu1 %v12460_v8  ;;  %v2015_v3 = vld [vmem:[%s16225_s1] sm:$0xff]  ;;  %v2018_v15 = vld [vmem:[%s16225_s1 + $0x18] sm:$0xff]  ;;  %v2513_v18 = vld [vmem:[%s16224_s0 + $0x188] sm:$0xff] }
 0x1ff   : > { %v1154_v21 = vadd.f32 %v13742_v29, %v1153_v20  ;;  %v1230_v22 = vsel %vm1198_vm15, %v1144_v13, %v1214_v17  ;;  %v13999_v13 = vpack.c.bf16 %v2016_v12, %v2015_v3  ;;  %v14010_v16 = vpack.c.bf16 %v2018_v15, %v2017_v14  ;;  %v2512_v17 = vld [vmem:[%s16224_s0 + $0x180] sm:$0xff]  ;;  %v2515_v20 = vld [vmem:[%s16224_s0 + $0x198] sm:$0xff]  ;;  %v1448_v12 = vld [vmem:[#allocation2 + $0x1f0] sm:$0xff] }
 0x200   : > { %v1217_v6 = vmul.f32 0.01, %v1159_v19  ;;  %11701 = vmatprep.mubr.msk.f32.mxu1 %vm484_vm0, %v1230_v22  ;;  %vm1201_vm3 = vcmp.ge.f32.partialorder %v1159_v19, 0.0  ;;  %11852 = vmatprep.mubr.msk.f32.mxu0 %vm484_vm0, %v2512_v17  ;;  %v2517_v22 = vld [vmem:[%s16224_s0 + $0x1a8] sm:$0xff]  ;;  %v1447_v17 = vld [vmem:[#allocation2 + $0x1e0] sm:$0xff] }
 0x201   : > { %vm1200_vm4 = vcmp.ge.f32.partialorder %v1154_v21, 0.0  ;;  %v1216_v24 = vmul.f32 0.01, %v1154_v21  ;;  %v11677_v26 = vpop.f32.mrb[42].mxu1  ;;  %11702 = vmatmul.mubr.msk.f32.gmra.mrb[54].mxu1 %vm484_vm0, %v1231_v23  ;;  %12485 = vmatprep.subr.bf16.mxu0 %v13999_v13  ;;  %v2519_v23 = vld [vmem:[%s16224_s0 + $0x1b8] sm:$0xff] }
 0x202   : > { %v1169_v27 = vadd.f32 %v11677_v26, %v13742_v29  ;;  %v1163_v28 = vpop.f32.mrb[43].mxu1  ;;  %v1233_v33 = vsel %vm1201_vm3, %v1159_v19, %v1217_v6  ;;  %12487 = vmatpush3.bf16.msra.mxu0 %v13999_v13  ;;  %v2514_v19 = vld [vmem:[%s16224_s0 + $0x190] sm:$0xff]  ;;  %v2521_v26 = vld [vmem:[%s16224_s0 + $0x1c8] sm:$0xff] }
 0x203   : > { %v1164_v30 = vadd.f32 %v13742_v29, %v1163_v28  ;;  %v1232_v31 = vsel %vm1200_vm4, %v1154_v21, %v1216_v24  ;;  %12489 = vmatprep.subr.bf16.mxu0 %v14010_v16  ;;  %v2516_v21 = vld [vmem:[%s16224_s0 + $0x1a0] sm:$0xff]  ;;  %v2518_v6 = vld [vmem:[%s16224_s0 + $0x1b0] sm:$0xff]  ;;  %v2523_v28 = vld [vmem:[%s16224_s0 + $0x1d8] sm:$0xff] }
 0x204   : > { %v1219_v32 = vmul.f32 0.01, %v1169_v27  ;;  %11704 = vmatprep.mubr.msk.f32.mxu1 %vm484_vm0, %v1232_v31  ;;  %vm1203_vm5 = vcmp.ge.f32.partialorder %v1169_v27, 0.0  ;;  %v2520_v24 = vld [vmem:[%s16224_s0 + $0x1c0] sm:$0xff]  ;;  %v2525_v31 = vld [vmem:[%s16224_s0 + $0x1e8] sm:$0xff] }
 0x205   : > { %vm1202_vm6 = vcmp.ge.f32.partialorder %v1164_v30, 0.0  ;;  %v1218_v34 = vmul.f32 0.01, %v1164_v30  ;;  %v11680_v35 = vpop.f32.mrb[44].mxu1  ;;  %11705 = vmatmul.mubr.msk.f32.gmra.mrb[56].mxu1 %vm484_vm0, %v1233_v33  ;;  %v2527_v33 = vld [vmem:[%s16224_s0 + $0x1f8] sm:$0xff] }
 0x206   : > { %v1179_v36 = vadd.f32 %v11680_v35, %v13742_v29  ;;  %v1173_v37 = vpop.f32.mrb[45].mxu1  ;;  %v1235_v41 = vsel %vm1203_vm5, %v1169_v27, %v1219_v32  ;;  %12491 = vmatpush3.bf16.msra.mxu0 %v14010_v16  ;;  %v2522_v27 = vld [vmem:[%s16224_s0 + $0x1d0] sm:$0xff] }
 0x207   : > { %v1174_v38 = vadd.f32 %v13742_v29, %v1173_v37  ;;  %v1234_v39 = vsel %vm1202_vm6, %v1164_v30, %v1218_v34  ;;  %12501 = vmatprep.subr.bf16.mxu0 %v13999_v13  ;;  %v2524_v30 = vld [vmem:[%s16224_s0 + $0x1e0] sm:$0xff]  ;;  %v2526_v32 = vld [vmem:[%s16224_s0 + $0x1f0] sm:$0xff] }
 0x208   : > { %v1221_v40 = vmul.f32 0.01, %v1179_v36  ;;  %11707 = vmatprep.mubr.msk.f32.mxu1 %vm484_vm0, %v1234_v39  ;;  %vm1205_vm7 = vcmp.ge.f32.partialorder %v1179_v36, 0.0  ;;  %v3026_v34 = vld [vmem:[%s16224_s0 + $0x100] sm:$0xff]  ;;  %v1437_v39 = vld [vmem:[#allocation2 + $0x130] sm:$0xff] }
 0x209   : > { %vm1204_vm8 = vcmp.ge.f32.partialorder %v1174_v38, 0.0  ;;  %v1220_v42 = vmul.f32 0.01, %v1174_v38  ;;  %v11683_v43 = vpop.f32.mrb[46].mxu1  ;;  %11708 = vmatmul.mubr.msk.f32.gmra.mrb[58].mxu1 %vm484_vm0, %v1235_v41  ;;  %11853 = vmatmul.mubr.msk.f32.vlgmr.msra.gmra.mrb[0].mxu0 %vm484_vm0, %v2513_v18  ;;  %v3027_v41 = vld [vmem:[%s16224_s0 + $0x108] sm:$0xff] }
 0x20a   : > { %v1189_v44 = vadd.f32 %v11683_v43, %v13742_v29  ;;  %v1183_v45 = vpop.f32.mrb[47].mxu1  ;;  %v1237_v49 = vsel %vm1205_vm7, %v1179_v36, %v1221_v40  ;;  %11855 = vmatprep.mubr.msk.f32.mxu0 %vm484_vm0, %v2514_v19  ;;  %12503 = vmatpush3.bf16.msra.mxu0 %v13999_v13  ;;  %v1438_v36 = vld [vmem:[#allocation2 + $0x140] sm:$0xff] }
 0x20b   : > { %v1184_v46 = vadd.f32 %v13742_v29, %v1183_v45  ;;  %v1236_v47 = vsel %vm1204_vm8, %v1174_v38, %v1220_v42  ;;  %v1486_v29 = vld [vmem:[%s16224_s0 + $0x288] sm:$0xff]  ;;  %12505 = vmatprep.subr.bf16.mxu0 %v14010_v16  ;;  %v3028_v42 = vld [vmem:[%s16224_s0 + $0x110] sm:$0xff] }
 0x20c   : > { %v1223_v48 = vmul.f32 0.01, %v1189_v44  ;;  %11710 = vmatprep.mubr.msk.f32.mxu1 %vm484_vm0, %v1236_v47  ;;  %vm1207_vm9 = vcmp.ge.f32.partialorder %v1189_v44, 0.0  ;;  %v1439_v47 = vld [vmem:[#allocation2 + $0x150] sm:$0xff] }
 0x20d   : > { %vm1206_vm10 = vcmp.ge.f32.partialorder %v1184_v46, 0.0  ;;  %v1222_v50 = vmul.f32 0.01, %v1184_v46  ;;  %11711 = vmatmul.mubr.msk.f32.gmra.mrb[60].mxu1 %vm484_vm0, %v1237_v49  ;;  %11856 = vmatmul.mubr.msk.f32.gmra.mrb[2].mxu0 %vm484_vm0, %v2515_v20  ;;  %v3029_v49 = vld [vmem:[%s16224_s0 + $0x118] sm:$0xff] }
 0x20e   : > { %v1239_v53 = vsel %vm1207_vm9, %v1189_v44, %v1223_v48  ;;  %11858 = vmatprep.mubr.msk.f32.mxu0 %vm484_vm0, %v2516_v21  ;;  %12507 = vmatpush3.bf16.msra.mxu0 %v14010_v16  ;;  %v1440_v44 = vld [vmem:[#allocation2 + $0x160] sm:$0xff]  ;;  %v3037_v20 = vld [vmem:[%s16224_s0 + $0x158] sm:$0xff] }
 0x20f   : > { %v1238_v51 = vsel %vm1206_vm10, %v1184_v46, %v1222_v50  ;;  %12517 = vmatprep.subr.bf16.mxu0 %v13999_v13  ;;  %v3030_v50 = vld [vmem:[%s16224_s0 + $0x120] sm:$0xff] }
 0x210   : > { %11713 = vmatprep.mubr.msk.f32.mxu1 %vm484_vm0, %v1238_v51 }
 0x211   : > { %11714 = vmatmul.mubr.msk.f32.gmra.mrb[62].mxu1 %vm484_vm0, %v1239_v53  ;;  %11859 = vmatmul.mubr.msk.f32.gmra.mrb[4].mxu0 %vm484_vm0, %v2517_v22  ;;  %v3038_v22 = vld [vmem:[%s16224_s0 + $0x160] sm:$0xff] }
 0x212   : > { %11724 = vmatprep.mubr.msk.f32.mxu1 %vm484_vm0, %v1485_v52  ;;  %11861 = vmatprep.mubr.msk.f32.mxu0 %vm484_vm0, %v2518_v6  ;;  %v1442_v52 = vld [vmem:[#allocation2 + $0x180] sm:$0xff] }
 0x215   : > { %11725 = vmatmul.mubr.msk.f32.vlgmr.msra.gmra.mrb[64].mxu1 %vm484_vm0, %v1486_v29  ;;  %11862 = vmatmul.mubr.msk.f32.gmra.mrb[6].mxu0 %vm484_vm0, %v2519_v23  ;;  %v1450_v23 = vld [vmem:[#allocation2 + $0x210] sm:$0xff] }
 0x216   : > { %11727 = vmatprep.mubr.msk.f32.mxu1 %vm484_vm0, %v1487_v54  ;;  %12463 = vmatpush3.bf16.msra.mxu1 %v12460_v8  ;;  %v1441_v54 = vld [vmem:[#allocation2 + $0x170] sm:$0xff]  ;;  %v1445_v8 = vld [vmem:[#allocation2 + $0x1c0] sm:$0xff] }
 0x217   : > { %12465 = vmatprep.subr.bf16.mxu1 %v12464_v11  ;;  %11864 = vmatprep.mubr.msk.f32.mxu0 %vm484_vm0, %v2520_v24 }
 0x219   : > { %11728 = vmatmul.mubr.msk.f32.gmra.mrb[66].mxu1 %vm484_vm0, %v1488_v55  ;;  %11865 = vmatmul.mubr.msk.f32.gmra.mrb[8].mxu0 %vm484_vm0, %v2521_v26 }
 0x21a   : > { %11730 = vmatprep.mubr.msk.f32.mxu1 %vm484_vm0, %v1489_v56  ;;  %12467 = vmatpush3.bf16.msra.mxu1 %v12464_v11  ;;  %v3031_v56 = vld [vmem:[%s16224_s0 + $0x128] sm:$0xff]  ;;  %v3036_v11 = vld [vmem:[%s16224_s0 + $0x150] sm:$0xff] }
 0x21b   : > { %12469 = vmatprep.subr.bf16.mxu1 %v13999_v13  ;;  %11867 = vmatprep.mubr.msk.f32.mxu0 %vm484_vm0, %v2522_v27 }
 0x21d   : > { %11731 = vmatmul.mubr.msk.f32.gmra.mrb[68].mxu1 %vm484_vm0, %v1490_v57  ;;  %11868 = vmatmul.mubr.msk.f32.gmra.mrb[10].mxu0 %vm484_vm0, %v2523_v28  ;;  %v3032_v57 = vld [vmem:[%s16224_s0 + $0x130] sm:$0xff]  ;;  %v1449_v28 = vld [vmem:[#allocation2 + $0x200] sm:$0xff] }
 0x21e   : > { %11733 = vmatprep.mubr.msk.f32.mxu1 %vm484_vm0, %v1491_v58  ;;  %11870 = vmatprep.mubr.msk.f32.mxu0 %vm484_vm0, %v2524_v30 }
 0x221   : > { %11734 = vmatmul.mubr.msk.f32.gmra.mrb[70].mxu1 %vm484_vm0, %v1492_v59  ;;  %11871 = vmatmul.mubr.msk.f32.gmra.mrb[12].mxu0 %vm484_vm0, %v2525_v31  ;;  %v1444_v59 = vld [vmem:[#allocation2 + $0x1a0] sm:$0xff]  ;;  %v3039_v31 = vld [vmem:[%s16224_s0 + $0x168] sm:$0xff] }
 0x222   : > { %11736 = vmatprep.mubr.msk.f32.mxu1 %vm484_vm0, %v1493_v60  ;;  %11873 = vmatprep.mubr.msk.f32.mxu0 %vm484_vm0, %v2526_v32 }
 0x225   : > { %11737 = vmatmul.mubr.msk.f32.gmra.mrb[72].mxu1 %vm484_vm0, %v1494_v61  ;;  %11874 = vmatmul.mubr.msk.f32.gmra.mrb[14].mxu0 %vm484_vm0, %v2527_v33  ;;  %v3040_v33 = vld [vmem:[%s16224_s0 + $0x170] sm:$0xff] }
 0x226   : > { %11739 = vmatprep.mubr.msk.f32.mxu1 %vm484_vm0, %v1495_v62  ;;  %11916 = vmatprep.mubr.msk.f32.mxu0 %vm484_vm0, %v3026_v34  ;;  %v1443_v62 = vld [vmem:[#allocation2 + $0x190] sm:$0xff] }
 0x229   : > { %11740 = vmatmul.mubr.msk.f32.gmra.mrb[74].mxu1 %vm484_vm0, %v1496_v63  ;;  %11917 = vmatmul.mubr.msk.f32.vlgmr.msra.gmra.mrb[16].mxu0 %vm484_vm0, %v3027_v41  ;;  %v3041_v41 = vld [vmem:[%s16224_s0 + $0x178] sm:$0xff] }
 0x22a   : > { %11742 = vmatprep.mubr.msk.f32.mxu1 %vm484_vm0, %v1497_v0  ;;  %11919 = vmatprep.mubr.msk.f32.mxu0 %vm484_vm0, %v3028_v42  ;;  %v3033_v0 = vld [vmem:[%s16224_s0 + $0x138] sm:$0xff]  ;;  %v3539_v42 = vld [vmem:[%s16224_s0 + $0x80] sm:$0xff] }
 0x22b   : > { %12519 = vmatpush3.bf16.msra.mxu0 %v13999_v13 }
 0x22c   : > { %12521 = vmatprep.subr.bf16.mxu0 %v14010_v16 }
 0x22d   : > { %11743 = vmatmul.mubr.msk.f32.gmra.mrb[76].mxu1 %vm484_vm0, %v1498_v1  ;;  %11920 = vmatmul.mubr.msk.f32.gmra.mrb[18].mxu0 %vm484_vm0, %v3029_v49  ;;  %v3034_v1 = vld [vmem:[%s16224_s0 + $0x140] sm:$0xff]  ;;  %v3541_v49 = vld [vmem:[%s16224_s0 + $0x90] sm:$0xff] }
 0x22e   : > { %11745 = vmatprep.mubr.msk.f32.mxu1 %vm484_vm0, %v1499_v2  ;;  %11922 = vmatprep.mubr.msk.f32.mxu0 %vm484_vm0, %v3030_v50 }
 0x22f   : > { %12523 = vmatpush3.bf16.msra.mxu0 %v14010_v16 }
 0x230   : > { %12533 = vmatprep.subr.bf16.mxu0 %v13999_v13 }
 0x231   : > { %11746 = vmatmul.mubr.msk.f32.gmra.mrb[78].mxu1 %vm484_vm0, %v1500_v4  ;;  %11923 = vmatmul.mubr.msk.f32.gmra.mrb[20].mxu0 %vm484_vm0, %v3031_v56  ;;  %v1446_v4 = vld [vmem:[#allocation2 + $0x1d0] sm:$0xff]  ;;  %v3542_v56 = vld [vmem:[%s16224_s0 + $0x98] sm:$0xff] }
 0x232   : > { %11925 = vmatprep.mubr.msk.f32.mxu0 %vm484_vm0, %v3032_v57 }
 0x235   : > { %11926 = vmatmul.mubr.msk.f32.gmra.mrb[22].mxu0 %vm484_vm0, %v3033_v0 }
 0x236   : > { %11928 = vmatprep.mubr.msk.f32.mxu0 %vm484_vm0, %v3034_v1 }
 0x239   : > { %11929 = vmatmul.mubr.msk.f32.gmra.mrb[24].mxu0 %vm484_vm0, %v3035_v10 }
 0x23a   : > { %11931 = vmatprep.mubr.msk.f32.mxu0 %vm484_vm0, %v3036_v11 }
 0x23d   : > { %11932 = vmatmul.mubr.msk.f32.gmra.mrb[26].mxu0 %vm484_vm0, %v3037_v20 }
 0x23e   : > { %11934 = vmatprep.mubr.msk.f32.mxu0 %vm484_vm0, %v3038_v22 }
 0x241   : > { %11935 = vmatmul.mubr.msk.f32.gmra.mrb[28].mxu0 %vm484_vm0, %v3039_v31 }
 0x242   : > { %11937 = vmatprep.mubr.msk.f32.mxu0 %vm484_vm0, %v3040_v33 }
 0x245   : > { %11938 = vmatmul.mubr.msk.f32.gmra.mrb[30].mxu0 %vm484_vm0, %v3041_v41 }
 0x246   : > { %11980 = vmatprep.mubr.msk.f32.mxu0 %vm484_vm0, %v3539_v42 }
 0x2c8   : > { %v11694_v35 = vpop.f32.mrb[48].mxu1 }
 0x2c9   : > { %v1454_v37 = vadd.f32 %v11694_v35, %v1438_v36  ;;  %v1358_v38 = vpop.f32.mrb[49].mxu1  ;;  %v1452_v35 = vld [vmem:[#allocation2 + $0x230] sm:$0xff] }
 0x2ca   : > { %v1453_v40 = vadd.f32 %v1437_v39, %v1358_v38  ;;  %v1451_v38 = vld [vmem:[#allocation2 + $0x220] sm:$0xff] }
 0x2cb   : > { %1470 = vst.msk [vmem:[#allocation2 + $0x140] sm:$0xff] %vm383_vm1, %v1454_v37 }
 0x2cc   : > { %1469 = vst.msk [vmem:[#allocation2 + $0x130] sm:$0xff] %vm383_vm1, %v1453_v40  ;;  %v11697_v43 = vpop.f32.mrb[50].mxu1  ;;  %v14165_v40 = vld [vmem:[%s16226_s2] ss:$0 sm:$0xff] }
 0x2cd   : > { %v1456_v45 = vadd.f32 %v11697_v43, %v1440_v44  ;;  %v1368_v46 = vpop.f32.mrb[51].mxu1 }
 0x2ce   : > { %v1455_v48 = vadd.f32 %v1439_v47, %v1368_v46  ;;  %v3540_v47 = vld [vmem:[%s16224_s0 + $0x88] sm:$0xff] }
 0x2cf   : > { %1472 = vst.msk [vmem:[#allocation2 + $0x160] sm:$0xff] %vm383_vm1, %v1456_v45  ;;  %11981 = vmatmul.mubr.msk.f32.vlgmr.msra.gmra.mrb[32].mxu0 %vm484_vm0, %v3540_v47  ;;  %v3552_v47 = vld [vmem:[%s16224_s0 + $0xe8] sm:$0xff] }
 0x2d0   : > { %1471 = vst.msk [vmem:[#allocation2 + $0x150] sm:$0xff] %vm383_vm1, %v1455_v48  ;;  %v11700_v51 = vpop.f32.mrb[52].mxu1  ;;  %11983 = vmatprep.mubr.msk.f32.mxu0 %vm484_vm0, %v3541_v49  ;;  %12535 = vmatpush3.bf16.msra.mxu0 %v13999_v13 }
 0x2d1   : > { %v1458_v53 = vadd.f32 %v11700_v51, %v1442_v52  ;;  %v1378_v29 = vpop.f32.mrb[53].mxu1  ;;  %12537 = vmatprep.subr.bf16.mxu0 %v14010_v16 }
 0x2d2   : > { %v1457_v55 = vadd.f32 %v1441_v54, %v1378_v29 }
 0x2d3   : > { %1474 = vst.msk [vmem:[#allocation2 + $0x180] sm:$0xff] %vm383_vm1, %v1458_v53  ;;  %11984 = vmatmul.mubr.msk.f32.gmra.mrb[34].mxu0 %vm484_vm0, %v3542_v56  ;;  %v3554_v56 = vld [vmem:[%s16224_s0 + $0xf8] sm:$0xff] }
 0x2d4   : > { %1473 = vst.msk [vmem:[#allocation2 + $0x170] sm:$0xff] %vm383_vm1, %v1457_v55  ;;  %v11703_v58 = vpop.f32.mrb[54].mxu1  ;;  %12539 = vmatpush3.bf16.msra.mxu0 %v14010_v16 }
 0x2d5   : > { %v1460_v60 = vadd.f32 %v11703_v58, %v1444_v59  ;;  %v1388_v61 = vpop.f32.mrb[55].mxu1 }
 0x2d6   : > { %v1459_v63 = vadd.f32 %v1443_v62, %v1388_v61 }
 0x2d7   : > { %1476 = vst.msk [vmem:[#allocation2 + $0x1a0] sm:$0xff] %vm383_vm1, %v1460_v60  ;;  %v3543_v60 = vld [vmem:[%s16224_s0 + $0xa0] sm:$0xff] }
 0x2d8   : > { %1475 = vst.msk [vmem:[#allocation2 + $0x190] sm:$0xff] %vm383_vm1, %v1459_v63  ;;  %v11706_v2 = vpop.f32.mrb[56].mxu1  ;;  %11986 = vmatprep.mubr.msk.f32.mxu0 %vm484_vm0, %v3543_v60 }
 0x2d9   : > { %v1462_v5 = vadd.f32 %v11706_v2, %v1446_v4  ;;  %v1398_v7 = vpop.f32.mrb[57].mxu1  ;;  %v3544_v4 = vld [vmem:[%s16224_s0 + $0xa8] sm:$0xff] }
 0x2da   : > { %v1461_v9 = vadd.f32 %v1445_v8, %v1398_v7  ;;  %v3545_v8 = vld [vmem:[%s16224_s0 + $0xb0] sm:$0xff]  ;;  %11987 = vmatmul.mubr.msk.f32.gmra.mrb[36].mxu0 %vm484_vm0, %v3544_v4  ;;  %v4055_v4 = vld [vmem:[%s16224_s0 + $0x18] sm:$0xff] }
 0x2db   : > { %1478 = vst.msk [vmem:[#allocation2 + $0x1d0] sm:$0xff] %vm383_vm1, %v1462_v5  ;;  %11989 = vmatprep.mubr.msk.f32.mxu0 %vm484_vm0, %v3545_v8  ;;  %v4057_v8 = vld [vmem:[%s16224_s0 + $0x28] sm:$0xff] }
 0x2dc   : > { %1477 = vst.msk [vmem:[#allocation2 + $0x1c0] sm:$0xff] %vm383_vm1, %v1461_v9  ;;  %v11709_v3 = vpop.f32.mrb[58].mxu1 }
 0x2dd   : > { %v1464_v14 = vadd.f32 %v11709_v3, %v1448_v12  ;;  %v1408_v15 = vpop.f32.mrb[59].mxu1 }
 0x2de   : > { %v4617_v18 = vld [vmem:[#allocation2 + $0x1a0] sm:$0xff]  ;;  %v1463_v19 = vadd.f32 %v1447_v17, %v1408_v15  ;;  %v3546_v15 = vld [vmem:[%s16224_s0 + $0xb8] sm:$0xff] }
 0x2df   : > { %v4696_v21 = vadd.f32 %v13868_v25, %v4617_v18  ;;  %1480 = vst.msk [vmem:[#allocation2 + $0x1f0] sm:$0xff] %vm383_vm1, %v1464_v14  ;;  %11990 = vmatmul.mubr.msk.f32.gmra.mrb[38].mxu0 %vm484_vm0, %v3546_v15  ;;  %v2007_v15 = vld [vmem:[%s16224_s0 + $0x240] sm:$0xff] }
 0x2e0   : > { %1479 = vst.msk [vmem:[#allocation2 + $0x1e0] sm:$0xff] %vm383_vm1, %v1463_v19  ;;  %v11712_v6 = vpop.f32.mrb[60].mxu1  ;;  %v3547_v19 = vld [vmem:[%s16224_s0 + $0xc0] sm:$0xff] }
 0x2e1   : > { %vm4768_vm11 = vcmp.ge.f32.partialorder %v4696_v21, 0.0  ;;  %v4840_v24 = vmul.f32 0.01, %v4696_v21  ;;  %v1466_v26 = vadd.f32 %v11712_v6, %v1450_v23  ;;  %v1418_v27 = vpop.f32.mrb[61].mxu1  ;;  %11992 = vmatprep.mubr.msk.f32.mxu0 %vm484_vm0, %v3547_v19  ;;  %v2008_v19 = vld [vmem:[%s16224_s0 + $0x248] sm:$0xff] }
 0x2e2   : > { %v1465_v30 = vadd.f32 %v1449_v28, %v1418_v27  ;;  %v3549_v28 = vld [vmem:[%s16224_s0 + $0xd0] sm:$0xff] }
 0x2e3   : > { %v4912_v32 = vsel %vm4768_vm11, %v4696_v21, %v4840_v24  ;;  %1482 = vst.msk [vmem:[#allocation2 + $0x210] sm:$0xff] %vm383_vm1, %v1466_v26  ;;  %v3548_v24 = vld [vmem:[%s16224_s0 + $0xc8] sm:$0xff] }
 0x2e4   : > { %4984 = vst.msk [vmem:[#allocation2 + $0x1a0] sm:$0xff] %vm383_vm1, %v4912_v32  ;;  %1481 = vst.msk [vmem:[#allocation2 + $0x200] sm:$0xff] %vm383_vm1, %v1465_v30  ;;  %v11715_v34 = vpop.f32.mrb[62].mxu1  ;;  %11993 = vmatmul.mubr.msk.f32.gmra.mrb[40].mxu0 %vm484_vm0, %v3548_v24  ;;  %v4066_v24 = vld [vmem:[%s16224_s0 + $0x70] sm:$0xff] }
 0x2e5   : > { %v1468_v36 = vadd.f32 %v11715_v34, %v1452_v35  ;;  %v1428_v37 = vpop.f32.mrb[63].mxu1  ;;  %11995 = vmatprep.mubr.msk.f32.mxu0 %vm484_vm0, %v3549_v28  ;;  %v4067_v28 = vld [vmem:[%s16224_s0 + $0x78] sm:$0xff] }
 0x2e6   : > { %v1467_v39 = vadd.f32 %v1451_v38, %v1428_v37 }
 0x2e7   : > { %1484 = vst.msk [vmem:[#allocation2 + $0x230] sm:$0xff] %vm383_vm1, %v1468_v36  ;;  %v3550_v36 = vld [vmem:[%s16224_s0 + $0xd8] sm:$0xff] }
 0x2e8   : > { %1483 = vst.msk [vmem:[#allocation2 + $0x220] sm:$0xff] %vm383_vm1, %v1467_v39  ;;  %v11726_v43 = vpop.f32.mrb[64].mxu1  ;;  %v3551_v39 = vld [vmem:[%s16224_s0 + $0xe0] sm:$0xff]  ;;  %11996 = vmatmul.mubr.msk.f32.gmra.mrb[42].mxu0 %vm484_vm0, %v3550_v36 }
 0x2e9   : > { %v1632_v44 = vadd.f32 %v11726_v43, %v14165_v40  ;;  %v1626_v45 = vpop.f32.mrb[65].mxu1  ;;  %11998 = vmatprep.mubr.msk.f32.mxu0 %vm484_vm0, %v3551_v39 }
 0x2ea   : > { %v1627_v46 = vadd.f32 %v14165_v40, %v1626_v45 }
 0x2eb   : > { %v1722_v48 = vmul.f32 0.01, %v1632_v44  ;;  %vm1706_vm12 = vcmp.ge.f32.partialorder %v1632_v44, 0.0 }
 0x2ec   : > { %vm1705_vm13 = vcmp.ge.f32.partialorder %v1627_v46, 0.0  ;;  %v1721_v50 = vmul.f32 0.01, %v1627_v46  ;;  %v11729_v51 = vpop.f32.mrb[66].mxu1  ;;  %11999 = vmatmul.mubr.msk.f32.gmra.mrb[44].mxu0 %vm484_vm0, %v3552_v47 }
 0x2ed   : > { %v1642_v52 = vadd.f32 %v11729_v51, %v14165_v40  ;;  %v1636_v53 = vpop.f32.mrb[67].mxu1  ;;  %v1738_v58 = vsel %vm1706_vm12, %v1632_v44, %v1722_v48 }
 0x2ee   : > { %v4635_v29 = vld [vmem:[#allocation2 + $0x230] sm:$0xff]  ;;  %v1637_v54 = vadd.f32 %v14165_v40, %v1636_v53  ;;  %v1737_v55 = vsel %vm1705_vm13, %v1627_v46, %v1721_v50 }
 0x2ef   : > { %v4714_v57 = vadd.f32 %v13868_v25, %v4635_v29  ;;  %v1724_v59 = vmul.f32 0.01, %v1642_v52  ;;  %11756 = vmatprep.mubr.msk.f32.mxu1 %vm484_vm0, %v1737_v55  ;;  %vm1708_vm14 = vcmp.ge.f32.partialorder %v1642_v52, 0.0  ;;  %v3553_v50 = vld [vmem:[%s16224_s0 + $0xf0] sm:$0xff] }
 0x2f0   : > { %vm1707_vm15 = vcmp.ge.f32.partialorder %v1637_v54, 0.0  ;;  %v1723_v61 = vmul.f32 0.01, %v1637_v54  ;;  %v11732_v62 = vpop.f32.mrb[68].mxu1  ;;  %11757 = vmatmul.mubr.msk.f32.vlgmr.msra.gmra.mrb[80].mxu1 %vm484_vm0, %v1738_v58  ;;  %12001 = vmatprep.mubr.msk.f32.mxu0 %vm484_vm0, %v3553_v50 }
 0x2f1   : > { %vm4786_vm3 = vcmp.ge.f32.partialorder %v4714_v57, 0.0  ;;  %v4858_v63 = vmul.f32 0.01, %v4714_v57  ;;  %v1652_v25 = vadd.f32 %v11732_v62, %v14165_v40  ;;  %12471 = vmatpush3.bf16.msra.mxu1 %v13999_v13  ;;  %v1646_v0 = vpop.f32.mrb[69].mxu1  ;;  %v1740_v13 = vsel %vm1708_vm14, %v1642_v52, %v1724_v59  ;;  %v4052_v59 = vld [vmem:[%s16224_s0] sm:$0xff]  ;;  %12002 = vmatmul.mubr.msk.f32.gmra.mrb[46].mxu0 %vm484_vm0, %v3554_v56 }
 0x2f2   : > { %v1647_v1 = vadd.f32 %v14165_v40, %v1646_v0  ;;  %v1739_v2 = vsel %vm1707_vm15, %v1637_v54, %v1723_v61  ;;  %12473 = vmatprep.subr.bf16.mxu1 %v14010_v16  ;;  %v1999_v62 = vld [vmem:[%s16224_s0 + $0x200] sm:$0xff]  ;;  %12044 = vmatprep.mubr.msk.f32.mxu0 %vm484_vm0, %v4052_v59  ;;  %v4054_v0 = vld [vmem:[%s16224_s0 + $0x10] sm:$0xff] }
 0x2f3   : > { %v4930_v5 = vsel %vm4786_vm3, %v4714_v57, %v4858_v63  ;;  %v1726_v7 = vmul.f32 0.01, %v1652_v25  ;;  %11759 = vmatprep.mubr.msk.f32.mxu1 %vm484_vm0, %v1739_v2  ;;  %vm1710_vm4 = vcmp.ge.f32.partialorder %v1652_v25, 0.0  ;;  %v4053_v63 = vld [vmem:[%s16224_s0 + $0x8] sm:$0xff]  ;;  %v2001_v2 = vld [vmem:[%s16224_s0 + $0x210] sm:$0xff] }
 0x2f4   : > { %5002 = vst.msk [vmem:[#allocation2 + $0x230] sm:$0xff] %vm383_vm1, %v4930_v5  ;;  %vm1709_vm5 = vcmp.ge.f32.partialorder %v1647_v1, 0.0  ;;  %v1725_v9 = vmul.f32 0.01, %v1647_v1  ;;  %v11735_v10 = vpop.f32.mrb[70].mxu1  ;;  %11760 = vmatmul.mubr.msk.f32.gmra.mrb[82].mxu1 %vm484_vm0, %v1740_v13  ;;  %v4056_v5 = vld [vmem:[%s16224_s0 + $0x20] sm:$0xff] }
 0x2f5   : > { %v1662_v11 = vadd.f32 %v11735_v10, %v14165_v40  ;;  %v1656_v3 = vpop.f32.mrb[71].mxu1  ;;  %12475 = vmatpush3.bf16.msra.mxu1 %v14010_v16  ;;  %v1742_v18 = vsel %vm1710_vm4, %v1652_v25, %v1726_v7  ;;  %12045 = vmatmul.mubr.msk.f32.vlgmr.msra.gmra.mrb[48].mxu0 %vm484_vm0, %v4053_v63  ;;  %v2002_v7 = vld [vmem:[%s16224_s0 + $0x218] sm:$0xff]  ;;  %v2003_v13 = vld [vmem:[%s16224_s0 + $0x220] sm:$0xff]  ;;  %v2004_v10 = vld [vmem:[%s16224_s0 + $0x228] sm:$0xff] }
 0x2f6   : > { %v1657_v12 = vadd.f32 %v14165_v40, %v1656_v3  ;;  %v1741_v14 = vsel %vm1709_vm5, %v1647_v1, %v1725_v9  ;;  %v2000_v1 = vld [vmem:[%s16224_s0 + $0x208] sm:$0xff]  ;;  %12047 = vmatprep.mubr.msk.f32.mxu0 %vm484_vm0, %v4054_v0  ;;  %v4058_v9 = vld [vmem:[%s16224_s0 + $0x30] sm:$0xff]  ;;  %v4059_v3 = vld [vmem:[%s16224_s0 + $0x38] sm:$0xff] }
 0x2f7   : > { %v1728_v17 = vmul.f32 0.01, %v1662_v11  ;;  %11762 = vmatprep.mubr.msk.f32.mxu1 %vm484_vm0, %v1741_v14  ;;  %vm1712_vm6 = vcmp.ge.f32.partialorder %v1662_v11, 0.0  ;;  %v2006_v14 = vld [vmem:[%s16224_s0 + $0x238] sm:$0xff] }
 0x2f8   : > { %vm1711_vm7 = vcmp.ge.f32.partialorder %v1657_v12, 0.0  ;;  %v1727_v16 = vmul.f32 0.01, %v1657_v12  ;;  %v11738_v20 = vpop.f32.mrb[72].mxu1  ;;  %11763 = vmatmul.mubr.msk.f32.gmra.mrb[84].mxu1 %vm484_vm0, %v1742_v18  ;;  %v4062_v18 = vld [vmem:[%s16224_s0 + $0x50] sm:$0xff] }
 0x2f9   : > { %v1672_v21 = vadd.f32 %v11738_v20, %v14165_v40  ;;  %v1666_v22 = vpop.f32.mrb[73].mxu1  ;;  %v1744_v27 = vsel %vm1712_vm6, %v1662_v11, %v1728_v17  ;;  %12048 = vmatmul.mubr.msk.f32.gmra.mrb[50].mxu0 %vm484_vm0, %v4055_v4  ;;  %v2005_v11 = vld [vmem:[%s16224_s0 + $0x230] sm:$0xff]  ;;  %v4061_v17 = vld [vmem:[%s16224_s0 + $0x48] sm:$0xff]  ;;  %v4063_v20 = vld [vmem:[%s16224_s0 + $0x58] sm:$0xff] }
 0x2fa   : > { %v1667_v6 = vadd.f32 %v14165_v40, %v1666_v22  ;;  %v1743_v23 = vsel %vm1711_vm7, %v1657_v12, %v1727_v16  ;;  %12050 = vmatprep.mubr.msk.f32.mxu0 %vm484_vm0, %v4056_v5  ;;  %v4060_v12 = vld [vmem:[%s16224_s0 + $0x40] sm:$0xff]  ;;  %v2009_v16 = vld [vmem:[%s16224_s0 + $0x250] sm:$0xff]  ;;  %v2010_v22 = vld [vmem:[%s16224_s0 + $0x258] sm:$0xff] }
 0x2fb   : > { %v1730_v26 = vmul.f32 0.01, %v1672_v21  ;;  %11765 = vmatprep.mubr.msk.f32.mxu1 %vm484_vm0, %v1743_v23  ;;  %vm1714_vm8 = vcmp.ge.f32.partialorder %v1672_v21, 0.0  ;;  %v4065_v23 = vld [vmem:[%s16224_s0 + $0x68] sm:$0xff] }
 0x2fc   : > { %vm1713_vm9 = vcmp.ge.f32.partialorder %v1667_v6, 0.0  ;;  %v1729_v30 = vmul.f32 0.01, %v1667_v6  ;;  %v11741_v31 = vpop.f32.mrb[74].mxu1  ;;  %11766 = vmatmul.mubr.msk.f32.gmra.mrb[86].mxu1 %vm484_vm0, %v1744_v27  ;;  %v2013_v27 = vld [vmem:[%s16224_s0 + $0x270] sm:$0xff] }
 0x2fd   : > { %v1682_v32 = vadd.f32 %v11741_v31, %v14165_v40  ;;  %v1676_v33 = vpop.f32.mrb[75].mxu1  ;;  %v1746_v38 = vsel %vm1714_vm8, %v1672_v21, %v1730_v26  ;;  %12051 = vmatmul.mubr.msk.f32.gmra.mrb[52].mxu0 %vm484_vm0, %v4057_v8  ;;  %v4064_v21 = vld [vmem:[%s16224_s0 + $0x60] sm:$0xff]  ;;  %v2012_v26 = vld [vmem:[%s16224_s0 + $0x268] sm:$0xff] }
 0x2fe   : > { %v1677_v34 = vadd.f32 %v14165_v40, %v1676_v33  ;;  %v1745_v35 = vsel %vm1713_vm9, %v1667_v6, %v1729_v30  ;;  %12053 = vmatprep.mubr.msk.f32.mxu0 %vm484_vm0, %v4058_v9  ;;  %v2011_v6 = vld [vmem:[%s16224_s0 + $0x260] sm:$0xff]  ;;  %v2014_v30 = vld [vmem:[%s16224_s0 + $0x278] sm:$0xff] }
 0x2ff   : > { %v1732_v37 = vmul.f32 0.01, %v1682_v32  ;;  %11768 = vmatprep.mubr.msk.f32.mxu1 %vm484_vm0, %v1745_v35  ;;  %vm1716_vm10 = vcmp.ge.f32.partialorder %v1682_v32, 0.0  ;;  %v2267_v31 = vld [vmem:[%s16227_s3 + $0x60] sm:$0xff]  ;;  %v2270_v35 = vld [vmem:[%s16227_s3 + $0x78] sm:$0xff] }
 0x300   : > { %vm1715_vm11 = vcmp.ge.f32.partialorder %v1677_v34, 0.0  ;;  %v1731_v41 = vmul.f32 0.01, %v1677_v34  ;;  %v11744_v42 = vpop.f32.mrb[76].mxu1  ;;  %11769 = vmatmul.mubr.msk.f32.gmra.mrb[88].mxu1 %vm484_vm0, %v1746_v38  ;;  %v2781_v38 = vld [vmem:[%s16227_s3 + $0x88] sm:$0xff] }
 0x301   : > { %v1692_v43 = vadd.f32 %v11744_v42, %v14165_v40  ;;  %v1686_v44 = vpop.f32.mrb[77].mxu1  ;;  %v1748_v49 = vsel %vm1716_vm10, %v1682_v32, %v1732_v37  ;;  %12054 = vmatmul.mubr.msk.f32.gmra.mrb[54].mxu0 %vm484_vm0, %v4059_v3  ;;  %v2268_v32 = vld [vmem:[%s16227_s3 + $0x68] sm:$0xff]  ;;  %v2780_v37 = vld [vmem:[%s16227_s3 + $0x80] sm:$0xff]  ;;  %v1952_v3 = vld [vmem:[#allocation2 + $0x131] sm:$0xff] }
 0x302   : > { %v1687_v45 = vadd.f32 %v14165_v40, %v1686_v44  ;;  %v1747_v46 = vsel %vm1715_vm11, %v1677_v34, %v1731_v41  ;;  %12056 = vmatprep.mubr.msk.f32.mxu0 %vm484_vm0, %v4060_v12  ;;  %v12476_v33 = vpack.c.bf16 %v2268_v32, %v2267_v31  ;;  %v2269_v34 = vld [vmem:[%s16227_s3 + $0x70] sm:$0xff]  ;;  %v14425_v39 = vpack.c.bf16 %v2781_v38, %v2780_v37  ;;  %v14428_v41 = vpop.f32.mrb[0].mxu0  ;;  %v1955_v31 = vld [vmem:[#allocation2 + $0x161] sm:$0xff] }
 0x303   : > { %v1734_v48 = vmul.f32 0.01, %v1692_v43  ;;  %11771 = vmatprep.mubr.msk.f32.mxu1 %vm484_vm0, %v1747_v46  ;;  %vm1718_vm12 = vcmp.ge.f32.partialorder %v1692_v43, 0.0  ;;  %v12480_v36 = vpack.c.bf16 %v2270_v35, %v2269_v34  ;;  %v14430_v42 = vpop.f32.mrb[1].mxu0 }
 0x304   : > { %vm1717_vm13 = vcmp.ge.f32.partialorder %v1687_v45, 0.0  ;;  %v1733_v51 = vmul.f32 0.01, %v1687_v45  ;;  %v11747_v52 = vpop.f32.mrb[78].mxu1  ;;  %11772 = vmatmul.mubr.msk.f32.gmra.mrb[90].mxu1 %vm484_vm0, %v1748_v49  ;;  %12477 = vmatprep.subr.bf16.mxu1 %v12476_v33 }
 0x305   : > { %v1702_v53 = vadd.f32 %v11747_v52, %v14165_v40  ;;  %v1696_v29 = vpop.f32.mrb[79].mxu1  ;;  %v1750_v58 = vsel %vm1718_vm12, %v1692_v43, %v1734_v48  ;;  %12057 = vmatmul.mubr.msk.f32.gmra.mrb[56].mxu0 %vm484_vm0, %v4061_v17  ;;  %v14432_v43 = vpop.f32.mrb[2].mxu0 }
 0x306   : > { %v1697_v54 = vadd.f32 %v14165_v40, %v1696_v29  ;;  %v1749_v55 = vsel %vm1717_vm13, %v1687_v45, %v1733_v51  ;;  %12059 = vmatprep.mubr.msk.f32.mxu0 %vm484_vm0, %v4062_v18  ;;  %v14434_v44 = vpop.f32.mrb[3].mxu0 }
 0x307   : > { %v1736_v57 = vmul.f32 0.01, %v1702_v53  ;;  %11774 = vmatprep.mubr.msk.f32.mxu1 %vm484_vm0, %v1749_v55  ;;  %vm1720_vm14 = vcmp.ge.f32.partialorder %v1702_v53, 0.0  ;;  %v14436_v45 = vpop.f32.mrb[4].mxu0 }
 0x308   : > { %vm1719_vm15 = vcmp.ge.f32.partialorder %v1697_v54, 0.0  ;;  %v1735_v60 = vmul.f32 0.01, %v1697_v54  ;;  %11775 = vmatmul.mubr.msk.f32.gmra.mrb[92].mxu1 %vm484_vm0, %v1750_v58  ;;  %v14438_v46 = vpop.f32.mrb[5].mxu0 }
 0x309   : > { %v1752_v25 = vsel %vm1720_vm14, %v1702_v53, %v1736_v57  ;;  %12060 = vmatmul.mubr.msk.f32.gmra.mrb[58].mxu0 %vm484_vm0, %v4063_v20  ;;  %v14440_v47 = vpop.f32.mrb[6].mxu0 }
 0x30a   : > { %v1751_v61 = vsel %vm1719_vm15, %v1697_v54, %v1735_v60  ;;  %12062 = vmatprep.mubr.msk.f32.mxu0 %vm484_vm0, %v4064_v21  ;;  %v14442_v48 = vpop.f32.mrb[7].mxu0 }
 0x30b   : > { %11777 = vmatprep.mubr.msk.f32.mxu1 %vm484_vm0, %v1751_v61  ;;  %v14444_v49 = vpop.f32.mrb[8].mxu0 }
 0x30c   : > { %11778 = vmatmul.mubr.msk.f32.gmra.mrb[94].mxu1 %vm484_vm0, %v1752_v25  ;;  %v14446_v50 = vpop.f32.mrb[9].mxu0 }
 0x30d   : > { %11788 = vmatprep.mubr.msk.f32.mxu1 %vm484_vm0, %v1999_v62  ;;  %12063 = vmatmul.mubr.msk.f32.gmra.mrb[60].mxu0 %vm484_vm0, %v4065_v23  ;;  %v14448_v51 = vpop.f32.mrb[10].mxu0 }
 0x30e   : > { %12065 = vmatprep.mubr.msk.f32.mxu0 %vm484_vm0, %v4066_v24  ;;  %v14450_v52 = vpop.f32.mrb[11].mxu0 }
 0x30f   : > { %v14452_v53 = vpop.f32.mrb[12].mxu0 }
 0x310   : > { %11789 = vmatmul.mubr.msk.f32.vlgmr.msra.gmra.mrb[96].mxu1 %vm484_vm0, %v2000_v1  ;;  %v14454_v29 = vpop.f32.mrb[13].mxu0 }
 0x311   : > { %11791 = vmatprep.mubr.msk.f32.mxu1 %vm484_vm0, %v2001_v2  ;;  %12066 = vmatmul.mubr.msk.f32.gmra.mrb[62].mxu0 %vm484_vm0, %v4067_v28  ;;  %v14456_v54 = vpop.f32.mrb[14].mxu0 }
 0x312   : > { %12479 = vmatpush3.bf16.msra.mxu1 %v12476_v33  ;;  %v14458_v55 = vpop.f32.mrb[15].mxu0 }
 0x313   : > { %12481 = vmatprep.subr.bf16.mxu1 %v12480_v36  ;;  %v14460_v56 = vpop.f32.mrb[16].mxu0 }
 0x314   : > { %11792 = vmatmul.mubr.msk.f32.gmra.mrb[98].mxu1 %vm484_vm0, %v2002_v7  ;;  %v14462_v57 = vpop.f32.mrb[17].mxu0 }
 0x315   : > { %11794 = vmatprep.mubr.msk.f32.mxu1 %vm484_vm0, %v2003_v13  ;;  %v14464_v58 = vpop.f32.mrb[18].mxu0 }
 0x316   : > { %12483 = vmatpush3.bf16.msra.mxu1 %v12480_v36  ;;  %v14466_v59 = vpop.f32.mrb[19].mxu0  ;;  %v14515_v36 = vld [vmem:[%s16228_s4] ss:$0 sm:$0xff] }
 0x317   : > { %12493 = vmatprep.subr.bf16.mxu1 %v14425_v39  ;;  %v14468_v60 = vpop.f32.mrb[20].mxu0 }
 0x318   : > { %11795 = vmatmul.mubr.msk.f32.gmra.mrb[100].mxu1 %vm484_vm0, %v2004_v10  ;;  %v14470_v61 = vpop.f32.mrb[21].mxu0  ;;  %v1951_v10 = vld [vmem:[#allocation2 + $0x121] sm:$0xff] }
 0x319   : > { %11797 = vmatprep.mubr.msk.f32.mxu1 %vm484_vm0, %v2005_v11  ;;  %v14472_v62 = vpop.f32.mrb[22].mxu0 }
 0x31a   : > { %v14474_v63 = vpop.f32.mrb[23].mxu0 }
 0x31b   : > { %v14476_v25 = vpop.f32.mrb[24].mxu0 }
 0x31c   : > { %11798 = vmatmul.mubr.msk.f32.gmra.mrb[102].mxu1 %vm484_vm0, %v2006_v14  ;;  %v14478_v0 = vpop.f32.mrb[25].mxu0 }
 0x31d   : > { %11800 = vmatprep.mubr.msk.f32.mxu1 %vm484_vm0, %v2007_v15  ;;  %v14480_v1 = vpop.f32.mrb[26].mxu0 }
 0x31e   : > { %v14482_v2 = vpop.f32.mrb[27].mxu0 }
 0x31f   : > { %v14484_v4 = vpop.f32.mrb[28].mxu0 }
 0x320   : > { %11801 = vmatmul.mubr.msk.f32.gmra.mrb[104].mxu1 %vm484_vm0, %v2008_v19  ;;  %v14486_v5 = vpop.f32.mrb[29].mxu0 }
 0x321   : > { %11803 = vmatprep.mubr.msk.f32.mxu1 %vm484_vm0, %v2009_v16  ;;  %v14488_v7 = vpop.f32.mrb[30].mxu0  ;;  %v1954_v16 = vld [vmem:[#allocation2 + $0x151] sm:$0xff] }
 0x322   : > { %v14490_v13 = vpop.f32.mrb[31].mxu0 }
 0x324   : > { %11804 = vmatmul.mubr.msk.f32.gmra.mrb[106].mxu1 %vm484_vm0, %v2010_v22  ;;  %v1953_v22 = vld [vmem:[#allocation2 + $0x141] sm:$0xff] }
 0x325   : > { %11806 = vmatprep.mubr.msk.f32.mxu1 %vm484_vm0, %v2011_v6 }
 0x328   : > { %11807 = vmatmul.mubr.msk.f32.gmra.mrb[108].mxu1 %vm484_vm0, %v2012_v26 }
 0x329   : > { %11809 = vmatprep.mubr.msk.f32.mxu1 %vm484_vm0, %v2013_v27  ;;  %v1956_v27 = vld [vmem:[#allocation2 + $0x171] sm:$0xff] }
 0x32c   : > { %11810 = vmatmul.mubr.msk.f32.gmra.mrb[110].mxu1 %vm484_vm0, %v2014_v30 }
 0x3a2   : > { %v14492_v8 = vpop.f32.mrb[32].mxu0 }
 0x3a3   : > { %v14494_v9 = vpop.f32.mrb[33].mxu0 }
 0x3a6   : > { %v14496_v15 = vpop.f32.mrb[34].mxu0 }
 0x3a7   : > { %v14498_v18 = vpop.f32.mrb[35].mxu0 }
 0x3ad   : > { %v14502_v6 = vpop.f32.mrb[36].mxu0 }
 0x3ae   : > { %16236 = vst [vmem:[#allocation8_spill] sm:$0xff] %v14502_v6  ;;  %v14504_v24 = vpop.f32.mrb[37].mxu0 }
 0x3b2   : > { %v14508_v32 = vpop.f32.mrb[38].mxu0 }
 0x3b3   : > { %16237 = vst [vmem:[#allocation9_spill] sm:$0xff] %v14508_v32  ;;  %v14510_v35 = vpop.f32.mrb[39].mxu0 }
 0x3c3   : > { %v11758_v11 = vpop.f32.mrb[80].mxu1 }
 0x3c4   : > { %v1968_v12 = vadd.f32 %v11758_v11, %v1952_v3  ;;  %v1871_v14 = vpop.f32.mrb[81].mxu1  ;;  %v1958_v3 = vld [vmem:[#allocation2 + $0x191] sm:$0xff] }
 0x3c5   : > { %v1967_v17 = vadd.f32 %v1951_v10, %v1871_v14 }
 0x3c6   : > { %1984 = vst.msk [vmem:[#allocation2 + $0x131] sm:$0xff] %vm383_vm1, %v1968_v12 }
 0x3c7   : > { %1983 = vst.msk [vmem:[#allocation2 + $0x121] sm:$0xff] %vm383_vm1, %v1967_v17  ;;  %v11761_v19 = vpop.f32.mrb[82].mxu1 }
 0x3c8   : > { %v1970_v20 = vadd.f32 %v11761_v19, %v1954_v16  ;;  %v1881_v21 = vpop.f32.mrb[83].mxu1  ;;  %v1957_v19 = vld [vmem:[#allocation2 + $0x181] sm:$0xff]  ;;  %v14521_v16 = vpop.f32.mrb[40].mxu0 }
 0x3c9   : > { %v1969_v23 = vadd.f32 %v1953_v22, %v1881_v21  ;;  %16238 = vst [vmem:[#allocation10_spill] sm:$0xff] %v14521_v16 }
 0x3ca   : > { %1986 = vst.msk [vmem:[#allocation2 + $0x151] sm:$0xff] %vm383_vm1, %v1970_v20 }
 0x3cb   : > { %1985 = vst.msk [vmem:[#allocation2 + $0x141] sm:$0xff] %vm383_vm1, %v1969_v23  ;;  %v11764_v26 = vpop.f32.mrb[84].mxu1  ;;  %v14523_v23 = vpop.f32.mrb[41].mxu0 }
 0x3cc   : > { %v1972_v28 = vadd.f32 %v11764_v26, %v1956_v27  ;;  %v1891_v30 = vpop.f32.mrb[85].mxu1  ;;  %16239 = vst [vmem:[#allocation11_spill] sm:$0xff] %v14523_v23 }
 0x3cd   : > { %v4604_v33 = vld [vmem:[#allocation2 + $0x138] sm:$0x1]  ;;  %v1971_v34 = vadd.f32 %v1955_v31, %v1891_v30 }
 0x3ce   : > { %v4683_v37 = vadd.f32 %v14515_v36, %v4604_v33  ;;  %v4602_v38 = vld [vmem:[#allocation2 + $0x128] sm:$0x1]  ;;  %1988 = vst.msk [vmem:[#allocation2 + $0x171] sm:$0xff] %vm383_vm1, %v1972_v28  ;;  %v1959_v30 = vld [vmem:[#allocation2 + $0x1b1] sm:$0xff] }
 0x3cf   : > { %v4681_v10 = vadd.f32 %v14515_v36, %v4602_v38  ;;  %1987 = vst.msk [vmem:[#allocation2 + $0x161] sm:$0xff] %vm383_vm1, %v1971_v34  ;;  %v11767_v11 = vpop.f32.mrb[86].mxu1  ;;  %v1960_v38 = vld [vmem:[#allocation2 + $0x1c1] sm:$0xff] }
 0x3d0   : > { %vm4755_vm3 = vcmp.ge.f32.partialorder %v4683_v37, 0.0  ;;  %v4827_v12 = vmul.f32 0.01, %v4683_v37  ;;  %v1974_v14 = vadd.f32 %v11767_v11, %v1958_v3  ;;  %v1901_v17 = vpop.f32.mrb[87].mxu1 }
 0x3d1   : > { %vm4753_vm4 = vcmp.ge.f32.partialorder %v4681_v10, 0.0  ;;  %v4825_v20 = vmul.f32 0.01, %v4681_v10  ;;  %v4608_v21 = vld [vmem:[#allocation2 + $0x158] sm:$0x1]  ;;  %v1973_v22 = vadd.f32 %v1957_v19, %v1901_v17 }
 0x3d2   : > { %v4899_v26 = vsel %vm4755_vm3, %v4683_v37, %v4827_v12  ;;  %v4687_v27 = vadd.f32 %v14515_v36, %v4608_v21  ;;  %v4606_v28 = vld [vmem:[#allocation2 + $0x148] sm:$0x1]  ;;  %1990 = vst.msk [vmem:[#allocation2 + $0x191] sm:$0xff] %vm383_vm1, %v1974_v14  ;;  %v14531_v12 = vpop.f32.mrb[42].mxu0 }
 0x3d3   : > { %4971 = vst.msk [vmem:[#allocation2 + $0x138] sm:$0x1] %vm385_vm2, %v4899_v26  ;;  %v4897_v31 = vsel %vm4753_vm4, %v4681_v10, %v4825_v20  ;;  %v4685_v33 = vadd.f32 %v14515_v36, %v4606_v28  ;;  %v11770_v34 = vpop.f32.mrb[88].mxu1  ;;  %16240 = vst [vmem:[#allocation12_spill] sm:$0xff] %v14531_v12  ;;  %v14533_v21 = vpop.f32.mrb[43].mxu0 }
 0x3d4   : > { %1989 = vst.msk [vmem:[#allocation2 + $0x181] sm:$0xff] %vm383_vm1, %v1973_v22  ;;  %vm4759_vm5 = vcmp.ge.f32.partialorder %v4687_v27, 0.0  ;;  %v4831_v11 = vmul.f32 0.01, %v4687_v27  ;;  %v1976_v37 = vadd.f32 %v11770_v34, %v1960_v38  ;;  %v1911_v3 = vpop.f32.mrb[89].mxu1  ;;  %16241 = vst [vmem:[#allocation13_spill] sm:$0xff] %v14533_v21 }
 0x3d5   : > { %4969 = vst.msk [vmem:[#allocation2 + $0x128] sm:$0x1] %vm385_vm2, %v4897_v31  ;;  %vm4757_vm6 = vcmp.ge.f32.partialorder %v4685_v33, 0.0  ;;  %v4829_v14 = vmul.f32 0.01, %v4685_v33  ;;  %v1975_v19 = vadd.f32 %v1959_v30, %v1911_v3  ;;  %v1962_v34 = vld [vmem:[#allocation2 + $0x1e1] sm:$0xff] }
 0x3d6   : > { %v4612_v17 = vld [vmem:[#allocation2 + $0x178] sm:$0x1]  ;;  %v4903_v10 = vsel %vm4759_vm5, %v4687_v27, %v4831_v11  ;;  %v4610_v22 = vld [vmem:[#allocation2 + $0x168] sm:$0x1]  ;;  %1992 = vst.msk [vmem:[#allocation2 + $0x1c1] sm:$0xff] %vm383_vm1, %v1976_v37  ;;  %v14541_v3 = vpop.f32.mrb[44].mxu0 }
 0x3d7   : > { %v4691_v20 = vadd.f32 %v14515_v36, %v4612_v17  ;;  %4975 = vst.msk [vmem:[#allocation2 + $0x158] sm:$0x1] %vm385_vm2, %v4903_v10  ;;  %v4901_v26 = vsel %vm4757_vm6, %v4685_v33, %v4829_v14  ;;  %v4689_v28 = vadd.f32 %v14515_v36, %v4610_v22  ;;  %v11773_v31 = vpop.f32.mrb[90].mxu1  ;;  %v1961_v11 = vld [vmem:[#allocation2 + $0x1d1] sm:$0xff]  ;;  %16242 = vst [vmem:[#allocation14_spill] sm:$0xff] %v14541_v3  ;;  %v14543_v33 = vpop.f32.mrb[45].mxu0 }
 0x3d8   : > { %1991 = vst.msk [vmem:[#allocation2 + $0x1b1] sm:$0xff] %vm383_vm1, %v1975_v19  ;;  %v1978_v38 = vadd.f32 %v11773_v31, %v1962_v34  ;;  %v1921_v27 = vpop.f32.mrb[91].mxu1  ;;  %16243 = vst [vmem:[#allocation15_spill] sm:$0xff] %v14543_v33  ;;  %v1964_v3 = vld [vmem:[#allocation2 + $0x201] sm:$0xff] }
 0x3d9   : > { %4973 = vst.msk [vmem:[#allocation2 + $0x148] sm:$0x1] %vm385_vm2, %v4901_v26  ;;  %vm4763_vm7 = vcmp.ge.f32.partialorder %v4691_v20, 0.0  ;;  %v4835_v30 = vmul.f32 0.01, %v4691_v20  ;;  %vm4761_vm8 = vcmp.ge.f32.partialorder %v4689_v28, 0.0  ;;  %v1977_v10 = vadd.f32 %v1961_v11, %v1921_v27 }
 0x3da   : > { %v4833_v37 = vmul.f32 0.01, %v4689_v28  ;;  %v4616_v17 = vld [vmem:[#allocation2 + $0x198] sm:$0x1]  ;;  %1994 = vst.msk [vmem:[#allocation2 + $0x1e1] sm:$0xff] %vm383_vm1, %v1978_v38 }
 0x3db   : > { %v4907_v14 = vsel %vm4763_vm7, %v4691_v20, %v4835_v30  ;;  %v4695_v19 = vadd.f32 %v14515_v36, %v4616_v17  ;;  %v4614_v22 = vld [vmem:[#allocation2 + $0x188] sm:$0x1]  ;;  %1993 = vst.msk [vmem:[#allocation2 + $0x1d1] sm:$0xff] %vm383_vm1, %v1977_v10  ;;  %v11776_v34 = vpop.f32.mrb[92].mxu1  ;;  %v1963_v30 = vld [vmem:[#allocation2 + $0x1f1] sm:$0xff]  ;;  %v14551_v17 = vpop.f32.mrb[46].mxu0 }
 0x3dc   : > { %4979 = vst.msk [vmem:[#allocation2 + $0x178] sm:$0x1] %vm385_vm2, %v4907_v14  ;;  %v4905_v26 = vsel %vm4761_vm8, %v4689_v28, %v4833_v37  ;;  %v4693_v31 = vadd.f32 %v14515_v36, %v4614_v22  ;;  %v1980_v11 = vadd.f32 %v11776_v34, %v1964_v3  ;;  %v1931_v20 = vpop.f32.mrb[93].mxu1  ;;  %16244 = vst [vmem:[#allocation16_spill] sm:$0xff] %v14551_v17  ;;  %v14555_v10 = vpop.f32.mrb[47].mxu0  ;;  %v1966_v17 = vld [vmem:[#allocation2 + $0x221] sm:$0xff] }
 0x3dd   : > { %4977 = vst.msk [vmem:[#allocation2 + $0x168] sm:$0x1] %vm385_vm2, %v4905_v26  ;;  %vm4767_vm9 = vcmp.ge.f32.partialorder %v4695_v19, 0.0  ;;  %v4839_v27 = vmul.f32 0.01, %v4695_v19  ;;  %v1979_v14 = vadd.f32 %v1963_v30, %v1931_v20  ;;  %16245 = vst [vmem:[#allocation17_spill] sm:$0xff] %v14555_v10 }
 0x3de   : > { %vm4765_vm10 = vcmp.ge.f32.partialorder %v4693_v31, 0.0  ;;  %v4837_v38 = vmul.f32 0.01, %v4693_v31  ;;  %v4622_v12 = vld [vmem:[#allocation2 + $0x1c8] sm:$0x1]  ;;  %1996 = vst.msk [vmem:[#allocation2 + $0x201] sm:$0xff] %vm383_vm1, %v1980_v11 }
 0x3df   : > { %v4911_v28 = vsel %vm4767_vm9, %v4695_v19, %v4839_v27  ;;  %v4701_v37 = vadd.f32 %v14515_v36, %v4622_v12  ;;  %v4620_v22 = vld [vmem:[#allocation2 + $0x1b8] sm:$0x1]  ;;  %1995 = vst.msk [vmem:[#allocation2 + $0x1f1] sm:$0xff] %vm383_vm1, %v1979_v14  ;;  %v11779_v34 = vpop.f32.mrb[94].mxu1  ;;  %v14561_v30 = vpop.f32.mrb[48].mxu0 }
 0x3e0   : > { %4983 = vst.msk [vmem:[#allocation2 + $0x198] sm:$0x1] %vm385_vm2, %v4911_v28  ;;  %v4909_v26 = vsel %vm4765_vm10, %v4693_v31, %v4837_v38  ;;  %v4699_v3 = vadd.f32 %v14515_v36, %v4620_v22  ;;  %v1982_v27 = vadd.f32 %v11779_v34, %v1966_v17  ;;  %v1941_v12 = vpop.f32.mrb[95].mxu1  ;;  %v1965_v20 = vld [vmem:[#allocation2 + $0x211] sm:$0xff]  ;;  %16246 = vst [vmem:[#allocation18_spill] sm:$0xff] %v14561_v30  ;;  %v14563_v31 = vpop.f32.mrb[49].mxu0 }
 0x3e1   : > { %4981 = vst.msk [vmem:[#allocation2 + $0x188] sm:$0x1] %vm385_vm2, %v4909_v26  ;;  %vm4773_vm11 = vcmp.ge.f32.partialorder %v4701_v37, 0.0  ;;  %v4845_v19 = vmul.f32 0.01, %v4701_v37  ;;  %v1981_v28 = vadd.f32 %v1965_v20, %v1941_v12  ;;  %16247 = vst [vmem:[#allocation19_spill] sm:$0xff] %v14563_v31 }
 0x3e2   : > { %vm4771_vm12 = vcmp.ge.f32.partialorder %v4699_v3, 0.0  ;;  %v4843_v11 = vmul.f32 0.01, %v4699_v3  ;;  %v4626_v10 = vld [vmem:[#allocation2 + $0x1e8] sm:$0x1]  ;;  %1998 = vst.msk [vmem:[#allocation2 + $0x221] sm:$0xff] %vm383_vm1, %v1982_v27 }
 0x3e3   : > { %v4917_v38 = vsel %vm4773_vm11, %v4701_v37, %v4845_v19  ;;  %v4705_v14 = vadd.f32 %v14515_v36, %v4626_v10  ;;  %v4624_v22 = vld [vmem:[#allocation2 + $0x1d8] sm:$0x1]  ;;  %v2782_v17 = vld [vmem:[%s16227_s3 + $0x90] sm:$0xff]  ;;  %1997 = vst.msk [vmem:[#allocation2 + $0x211] sm:$0xff] %vm383_vm1, %v1981_v28  ;;  %v11790_v37 = vpop.f32.mrb[96].mxu1  ;;  %v14578_v20 = vpop.f32.mrb[50].mxu0 }
 0x3e4   : > { %v2783_v26 = vld [vmem:[%s16227_s3 + $0x98] sm:$0xff]  ;;  %4989 = vst.msk [vmem:[#allocation2 + $0x1c8] sm:$0x1] %vm385_vm2, %v4917_v38  ;;  %v4915_v34 = vsel %vm4771_vm12, %v4699_v3, %v4843_v11  ;;  %v4703_v12 = vadd.f32 %v14515_v36, %v4624_v22  ;;  %v2146_v19 = vadd.f32 %v11790_v37, %v14165_v40  ;;  %v2140_v27 = vpop.f32.mrb[97].mxu1  ;;  %16248 = vst [vmem:[#allocation20_spill] sm:$0xff] %v14578_v20  ;;  %v14583_v11 = vpop.f32.mrb[51].mxu0 }
 0x3e5   : > { %4987 = vst.msk [vmem:[#allocation2 + $0x1b8] sm:$0x1] %vm385_vm2, %v4915_v34  ;;  %vm4777_vm13 = vcmp.ge.f32.partialorder %v4705_v14, 0.0  ;;  %v4849_v10 = vmul.f32 0.01, %v4705_v14  ;;  %v2141_v38 = vadd.f32 %v14165_v40, %v2140_v27  ;;  %v14581_v3 = vpack.c.bf16 %v2783_v26, %v2782_v17  ;;  %16249 = vst [vmem:[#allocation21_spill] sm:$0xff] %v14583_v11 }
 0x3e6   : > { %vm4775_vm14 = vcmp.ge.f32.partialorder %v4703_v12, 0.0  ;;  %v4847_v30 = vmul.f32 0.01, %v4703_v12  ;;  %v4630_v31 = vld [vmem:[#allocation2 + $0x208] sm:$0x1]  ;;  %vm2220_vm15 = vcmp.ge.f32.partialorder %v2146_v19, 0.0 }
 0x3e7   : > { %v4921_v28 = vsel %vm4777_vm13, %v4705_v14, %v4849_v10  ;;  %v4709_v22 = vadd.f32 %v14515_v36, %v4630_v31  ;;  %v4628_v34 = vld [vmem:[#allocation2 + $0x1f8] sm:$0x1]  ;;  %v2236_v33 = vmul.f32 0.01, %v2146_v19  ;;  %vm2219_vm3 = vcmp.ge.f32.partialorder %v2141_v38, 0.0  ;;  %v11793_v21 = vpop.f32.mrb[98].mxu1 }
 0x3e8   : > { %4993 = vst.msk [vmem:[#allocation2 + $0x1e8] sm:$0x1] %vm385_vm2, %v4921_v28  ;;  %v4919_v37 = vsel %vm4775_vm14, %v4703_v12, %v4847_v30  ;;  %v4707_v20 = vadd.f32 %v14515_v36, %v4628_v34  ;;  %v2235_v16 = vmul.f32 0.01, %v2141_v38  ;;  %v3294_v17 = vld [vmem:[%s16227_s3 + $0xa0] sm:$0xff]  ;;  %v2156_v26 = vadd.f32 %v11793_v21, %v14165_v40  ;;  %v2150_v10 = vpop.f32.mrb[99].mxu1 }
 0x3e9   : > { %4991 = vst.msk [vmem:[#allocation2 + $0x1d8] sm:$0x1] %vm385_vm2, %v4919_v37  ;;  %vm4781_vm4 = vcmp.ge.f32.partialorder %v4709_v22, 0.0  ;;  %v4853_v14 = vmul.f32 0.01, %v4709_v22  ;;  %v2252_v31 = vsel %vm2220_vm15, %v2146_v19, %v2236_v33  ;;  %v3295_v30 = vld [vmem:[%s16227_s3 + $0xa8] sm:$0xff]  ;;  %v2151_v34 = vadd.f32 %v14165_v40, %v2150_v10 }
 0x3ea   : > { %v14596_v12 = vpop.f32.mrb[52].mxu0  ;;  %vm4779_vm5 = vcmp.ge.f32.partialorder %v4707_v20, 0.0  ;;  %v4851_v27 = vmul.f32 0.01, %v4707_v20  ;;  %v4634_v28 = vld [vmem:[#allocation2 + $0x228] sm:$0x1]  ;;  %v2251_v11 = vsel %vm2219_vm3, %v2141_v38, %v2235_v16 }
 0x3eb   : > { %16250 = vst [vmem:[#allocation22_spill] sm:$0xff] %v14596_v12  ;;  %v14600_v37 = vpop.f32.mrb[53].mxu0  ;;  %v4925_v32 = vsel %vm4781_vm4, %v4709_v22, %v4853_v14  ;;  %v4713_v33 = vadd.f32 %v14515_v36, %v4634_v28  ;;  %v4632_v21 = vld [vmem:[#allocation2 + $0x218] sm:$0x1]  ;;  %vm2222_vm6 = vcmp.ge.f32.partialorder %v2156_v26, 0.0  ;;  %11820 = vmatprep.mubr.msk.f32.mxu1 %vm484_vm0, %v2251_v11  ;;  %vm2221_vm7 = vcmp.ge.f32.partialorder %v2151_v34, 0.0 }
 0x3ec   : > { %v2238_v19 = vmul.f32 0.01, %v2156_v26  ;;  %4997 = vst.msk [vmem:[#allocation2 + $0x208] sm:$0x1] %vm385_vm2, %v4925_v32  ;;  %v4923_v12 = vsel %vm4779_vm5, %v4707_v20, %v4851_v27  ;;  %v4711_v23 = vadd.f32 %v14515_v36, %v4632_v21  ;;  %v2237_v6 = vmul.f32 0.01, %v2151_v34  ;;  %11821 = vmatmul.mubr.msk.f32.vlgmr.msra.gmra.mrb[112].mxu1 %vm484_vm0, %v2252_v31 }
 0x3ed   : > { %v11796_v10 = vpop.f32.mrb[100].mxu1  ;;  %4995 = vst.msk [vmem:[#allocation2 + $0x1f8] sm:$0x1] %vm385_vm2, %v4923_v12  ;;  %vm4785_vm8 = vcmp.ge.f32.partialorder %v4713_v33, 0.0  ;;  %v4857_v16 = vmul.f32 0.01, %v4713_v33  ;;  %12495 = vmatpush3.bf16.msra.mxu1 %v14425_v39  ;;  %v14610_v11 = vpack.c.bf16 %v3295_v30, %v3294_v17 }
 0x3ee   : > { %v2166_v38 = vadd.f32 %v11796_v10, %v14165_v40  ;;  %v2160_v22 = vpop.f32.mrb[101].mxu1  ;;  %v14612_v32 = vpop.f32.mrb[54].mxu0  ;;  %vm4783_vm9 = vcmp.ge.f32.partialorder %v4711_v23, 0.0  ;;  %v4855_v36 = vmul.f32 0.01, %v4711_v23  ;;  %v2253_v14 = vsel %vm2221_vm7, %v2151_v34, %v2237_v6  ;;  %12497 = vmatprep.subr.bf16.mxu1 %v14581_v3 }
 0x3ef   : > { %v2161_v20 = vadd.f32 %v14165_v40, %v2160_v22  ;;  %v14616_v31 = vpop.f32.mrb[55].mxu0  ;;  %v4929_v12 = vsel %vm4785_vm8, %v4713_v33, %v4857_v16  ;;  %11823 = vmatprep.mubr.msk.f32.mxu1 %vm484_vm0, %v2253_v14  ;;  %v2254_v39 = vsel %vm2222_vm6, %v2156_v26, %v2238_v19  ;;  %v11799_v28 = vpop.f32.mrb[102].mxu1 }
 0x3f0   : > { %v2240_v27 = vmul.f32 0.01, %v2166_v38  ;;  %5001 = vst.msk [vmem:[#allocation2 + $0x228] sm:$0x1] %vm385_vm2, %v4929_v12  ;;  %v4927_v17 = vsel %vm4783_vm9, %v4711_v23, %v4855_v36  ;;  %vm2224_vm10 = vcmp.ge.f32.partialorder %v2166_v38, 0.0  ;;  %11824 = vmatmul.mubr.msk.f32.gmra.mrb[114].mxu1 %vm484_vm0, %v2254_v39  ;;  %v2176_v6 = vadd.f32 %v11799_v28, %v14165_v40  ;;  %v2170_v34 = vpop.f32.mrb[103].mxu1 }
 0x3f1   : > { %vm2223_vm11 = vcmp.ge.f32.partialorder %v2161_v20, 0.0  ;;  %v2239_v30 = vmul.f32 0.01, %v2161_v20  ;;  %4999 = vst.msk [vmem:[#allocation2 + $0x218] sm:$0x1] %vm385_vm2, %v4927_v17  ;;  %12499 = vmatpush3.bf16.msra.mxu1 %v14581_v3  ;;  %v14625_v33 = vpop.f32.mrb[56].mxu0  ;;  %v2171_v26 = vadd.f32 %v14165_v40, %v2170_v34 }
 0x3f2   : > { %12509 = vmatprep.subr.bf16.mxu1 %v14610_v11  ;;  %v14629_v23 = vpop.f32.mrb[57].mxu0  ;;  %v2242_v19 = vmul.f32 0.01, %v2176_v6  ;;  %v2256_v10 = vsel %vm2224_vm10, %v2166_v38, %v2240_v27  ;;  %vm2226_vm12 = vcmp.ge.f32.partialorder %v2176_v6, 0.0 }
 0x3f3   : > { %v2255_v21 = vsel %vm2223_vm11, %v2161_v20, %v2239_v30  ;;  %vm2225_vm13 = vcmp.ge.f32.partialorder %v2171_v26, 0.0  ;;  %v2241_v16 = vmul.f32 0.01, %v2171_v26  ;;  %v11802_v22 = vpop.f32.mrb[104].mxu1  ;;  %v14635_v14 = vpop.f32.mrb[58].mxu0 }
 0x3f4   : > { %11826 = vmatprep.mubr.msk.f32.mxu1 %vm484_vm0, %v2255_v21  ;;  %v2186_v3 = vadd.f32 %v11802_v22, %v14165_v40  ;;  %v2180_v36 = vpop.f32.mrb[105].mxu1  ;;  %16251 = vst [vmem:[#allocation23_spill] sm:$0xff] %v14635_v14  ;;  %v14638_v39 = vpop.f32.mrb[59].mxu0  ;;  %v2258_v38 = vsel %vm2226_vm12, %v2176_v6, %v2242_v19 }
 0x3f5   : > { %11827 = vmatmul.mubr.msk.f32.gmra.mrb[116].mxu1 %vm484_vm0, %v2256_v10  ;;  %v2181_v20 = vadd.f32 %v14165_v40, %v2180_v36  ;;  %v2257_v12 = vsel %vm2225_vm13, %v2171_v26, %v2241_v16  ;;  %v14643_v21 = vpop.f32.mrb[60].mxu0  ;;  %v12991_v26 = vld [vmem:[%s16226_s2] ss:$0 sm:$0xff] }
 0x3f6   : > { %v2244_v17 = vmul.f32 0.01, %v2186_v3  ;;  %11829 = vmatprep.mubr.msk.f32.mxu1 %vm484_vm0, %v2257_v12  ;;  %vm2228_vm14 = vcmp.ge.f32.partialorder %v2186_v3, 0.0  ;;  %16252 = vst [vmem:[#allocation24_spill] sm:$0xff] %v14643_v21  ;;  %v14648_v22 = vpop.f32.mrb[61].mxu0 }
 0x3f7   : > { %vm2227_vm15 = vcmp.ge.f32.partialorder %v2181_v20, 0.0  ;;  %v2243_v27 = vmul.f32 0.01, %v2181_v20  ;;  %v11805_v30 = vpop.f32.mrb[106].mxu1  ;;  %16253 = vst [vmem:[#allocation25_spill] sm:$0xff] %v14648_v22 }
 0x3f8   : > { %v2196_v28 = vadd.f32 %v11805_v30, %v14165_v40  ;;  %v2190_v34 = vpop.f32.mrb[107].mxu1  ;;  %v2260_v19 = vsel %vm2228_vm14, %v2186_v3, %v2244_v17  ;;  %v14654_v36 = vld [vmem:[%s16226_s2] ss:$0 sm:$0xff] }
 0x3f9   : > { %11830 = vmatmul.mubr.msk.f32.gmra.mrb[118].mxu1 %vm484_vm0, %v2258_v38  ;;  %v2191_v10 = vadd.f32 %v12991_v26, %v2190_v34  ;;  %v2259_v16 = vsel %vm2227_vm15, %v2181_v20, %v2243_v27  ;;  %v14657_v20 = vpop.f32.mrb[62].mxu0  ;;  %v2654_v3 = vadd.f32 %v14654_v36, %v14430_v42  ;;  %v2664_v42 = vadd.f32 %v14654_v36, %v14434_v44 }
 0x3fa   : > { %v2246_v6 = vmul.f32 0.01, %v2196_v28  ;;  %11832 = vmatprep.mubr.msk.f32.mxu1 %vm484_vm0, %v2259_v16  ;;  %vm2230_vm3 = vcmp.ge.f32.partialorder %v2196_v28, 0.0  ;;  %16254 = vst [vmem:[#allocation26_spill] sm:$0xff] %v14657_v20  ;;  %v14661_v17 = vpop.f32.mrb[63].mxu0 }
 0x3fb   : > { %vm2229_vm4 = vcmp.ge.f32.partialorder %v2191_v10, 0.0  ;;  %v2245_v40 = vmul.f32 0.01, %v2191_v10  ;;  %v11808_v12 = vpop.f32.mrb[108].mxu1  ;;  %16255 = vst [vmem:[#allocation27_spill] sm:$0xff] %v14661_v17  ;;  %v2659_v17 = vadd.f32 %v14428_v41, %v14654_v36  ;;  %vm2732_vm7 = vcmp.ge.f32.partialorder %v2654_v3, 0.0 }
 0x3fc   : > { %v2206_v38 = vadd.f32 %v12991_v26, %v11808_v12  ;;  %v2200_v30 = vpop.f32.mrb[109].mxu1  ;;  %v2262_v21 = vsel %vm2230_vm3, %v2196_v28, %v2246_v6  ;;  %vm2734_vm10 = vcmp.ge.f32.partialorder %v2664_v42, 0.0 }
 0x3fd   : > { %11833 = vmatmul.mubr.msk.f32.gmra.mrb[120].mxu1 %vm484_vm0, %v2260_v19  ;;  %v2201_v27 = vadd.f32 %v12991_v26, %v2200_v30  ;;  %v2261_v34 = vsel %vm2229_vm4, %v2191_v10, %v2245_v40  ;;  %v2748_v30 = vmul.f32 0.01, %v2654_v3  ;;  %v2749_v44 = vmul.f32 0.01, %v2659_v17 }
 0x3fe   : > { %v2248_v16 = vmul.f32 0.01, %v2206_v38  ;;  %11835 = vmatprep.mubr.msk.f32.mxu1 %vm484_vm0, %v2261_v34  ;;  %vm2232_vm5 = vcmp.ge.f32.partialorder %v2206_v38, 0.0  ;;  %vm2733_vm11 = vcmp.ge.f32.partialorder %v2659_v17, 0.0 }
 0x3ff   : > { %vm2231_vm6 = vcmp.ge.f32.partialorder %v2201_v27, 0.0  ;;  %v2247_v14 = vmul.f32 0.01, %v2201_v27  ;;  %v11811_v22 = vpop.f32.mrb[110].mxu1 }
 0x400   : > { %v2216_v19 = vadd.f32 %v12991_v26, %v11811_v22  ;;  %v2210_v12 = vpop.f32.mrb[111].mxu1  ;;  %v2264_v28 = vsel %vm2232_vm5, %v2206_v38, %v2248_v16  ;;  %v2764_v22 = vsel %vm2732_vm7, %v2654_v3, %v2748_v30  ;;  %v3296_v38 = vld [vmem:[%s16227_s3 + $0xb0] sm:$0xff]  ;;  %v2765_v16 = vsel %vm2733_vm11, %v2659_v17, %v2749_v44  ;;  %v3807_v30 = vld [vmem:[%s16227_s3 + $0xc0] sm:$0xff] }
 0x401   : > { %11836 = vmatmul.mubr.msk.f32.gmra.mrb[122].mxu1 %vm484_vm0, %v2262_v21  ;;  %v2211_v20 = vadd.f32 %v12991_v26, %v2210_v12  ;;  %v2263_v10 = vsel %vm2231_vm6, %v2201_v27, %v2247_v14  ;;  %v2750_v21 = vmul.f32 0.01, %v2664_v42  ;;  %v2674_v14 = vadd.f32 %v14654_v36, %v14438_v46 }
 0x402   : > { %v2250_v40 = vmul.f32 0.01, %v2216_v19  ;;  %11838 = vmatprep.mubr.msk.f32.mxu1 %vm484_vm0, %v2263_v10  ;;  %vm2234_vm8 = vcmp.ge.f32.partialorder %v2216_v19, 0.0  ;;  %v2669_v27 = vadd.f32 %v14432_v43, %v14654_v36  ;;  %v2684_v43 = vadd.f32 %v14654_v36, %v14442_v48  ;;  %v3808_v10 = vld [vmem:[%s16227_s3 + $0xc8] sm:$0xff] }
 0x403   : > { %vm2233_vm9 = vcmp.ge.f32.partialorder %v2211_v20, 0.0  ;;  %v2249_v6 = vmul.f32 0.01, %v2211_v20  ;;  %v2752_v46 = vmul.f32 0.01, %v2674_v14  ;;  %v2766_v34 = vsel %vm2734_vm10, %v2664_v42, %v2750_v21 }
 0x404   : > { %v2266_v41 = vsel %vm2234_vm8, %v2216_v19, %v2250_v40  ;;  %v2751_v19 = vmul.f32 0.01, %v2669_v27  ;;  %v2679_v12 = vadd.f32 %v14436_v45, %v14654_v36  ;;  %vm2736_vm12 = vcmp.ge.f32.partialorder %v2674_v14, 0.0 }
 0x405   : > { %11839 = vmatmul.mubr.msk.f32.gmra.mrb[124].mxu1 %vm484_vm0, %v2264_v28  ;;  %v2265_v26 = vsel %vm2233_vm9, %v2211_v20, %v2249_v6  ;;  %v3297_v20 = vld [vmem:[%s16227_s3 + $0xb8] sm:$0xff]  ;;  %vm2735_vm13 = vcmp.ge.f32.partialorder %v2669_v27, 0.0  ;;  %v2754_v48 = vmul.f32 0.01, %v2684_v43  ;;  %v2768_v17 = vsel %vm2736_vm12, %v2674_v14, %v2752_v46 }
 0x406   : > { %11841 = vmatprep.mubr.msk.f32.mxu1 %vm484_vm0, %v2265_v26  ;;  %v12512_v3 = vpack.c.bf16 %v3297_v20, %v3296_v38  ;;  %v2694_v45 = vadd.f32 %v14654_v36, %v14446_v50  ;;  %v14699_v42 = vpack.c.bf16 %v3808_v10, %v3807_v30  ;;  %v2753_v40 = vmul.f32 0.01, %v2679_v12 }
 0x407   : > { %v2689_v28 = vadd.f32 %v14440_v47, %v14654_v36  ;;  %vm2738_vm14 = vcmp.ge.f32.partialorder %v2684_v43, 0.0  ;;  %v2767_v6 = vsel %vm2735_vm13, %v2669_v27, %v2751_v19  ;;  %vm2737_vm15 = vcmp.ge.f32.partialorder %v2679_v12, 0.0 }
 0x408   : > { %v2770_v21 = vsel %vm2738_vm14, %v2684_v43, %v2754_v48  ;;  %v2704_v50 = vadd.f32 %v14654_v36, %v14450_v52  ;;  %vm2740_vm3 = vcmp.ge.f32.partialorder %v2694_v45, 0.0  ;;  %v2769_v47 = vsel %vm2737_vm15, %v2679_v12, %v2753_v40 }
 0x409   : > { %11842 = vmatmul.mubr.msk.f32.gmra.mrb[126].mxu1 %vm484_vm0, %v2266_v41  ;;  %v2755_v26 = vmul.f32 0.01, %v2689_v28  ;;  %vm2739_vm4 = vcmp.ge.f32.partialorder %v2689_v28, 0.0  ;;  %v2714_v27 = vadd.f32 %v14654_v36, %v14454_v29  ;;  %v2709_v52 = vadd.f32 %v14448_v51, %v14654_v36 }
 0x40a   : > { %11884 = vmatprep.mubr.msk.f32.mxu1 %vm484_vm0, %v2764_v22  ;;  %v2699_v22 = vadd.f32 %v14444_v49, %v14654_v36  ;;  %v2758_v14 = vmul.f32 0.01, %v2704_v50  ;;  %vm2742_vm5 = vcmp.ge.f32.partialorder %v2704_v50, 0.0  ;;  %v2724_v46 = vadd.f32 %v14654_v36, %v14458_v55 }
 0x40b   : > { %v2771_v38 = vsel %vm2739_vm4, %v2689_v28, %v2755_v26  ;;  %v2760_v49 = vmul.f32 0.01, %v2714_v27  ;;  %v2719_v29 = vadd.f32 %v14452_v53, %v14654_v36  ;;  %vm2744_vm7 = vcmp.ge.f32.partialorder %v2714_v27, 0.0 }
 0x40c   : > { %v2757_v41 = vmul.f32 0.01, %v2699_v22  ;;  %vm2741_vm6 = vcmp.ge.f32.partialorder %v2699_v22, 0.0  ;;  %v2774_v20 = vsel %vm2742_vm5, %v2704_v50, %v2758_v14  ;;  %vm2743_vm8 = vcmp.ge.f32.partialorder %v2709_v52, 0.0  ;;  %v4320_v14 = vld [vmem:[%s16227_s3 + $0xe0] sm:$0xff] }
 0x40d   : > { %11885 = vmatmul.mubr.msk.f32.vlgmr.msra.gmra.mrb[128].mxu1 %vm484_vm0, %v2765_v16  ;;  %v2762_v51 = vmul.f32 0.01, %v2724_v46  ;;  %v3168_v16 = vadd.f32 %v14654_v36, %v14462_v57  ;;  %v2761_v19 = vmul.f32 0.01, %v2719_v29  ;;  %v2729_v55 = vadd.f32 %v14456_v54, %v14654_v36 }
 0x40e   : > { %12511 = vmatpush3.bf16.msra.mxu1 %v14610_v11  ;;  %11887 = vmatprep.mubr.msk.f32.mxu1 %vm484_vm0, %v2766_v34  ;;  %v2756_v11 = vmul.f32 0.01, %v2694_v45  ;;  %v2759_v34 = vmul.f32 0.01, %v2709_v52  ;;  %v2773_v43 = vsel %vm2741_vm6, %v2699_v22, %v2757_v41  ;;  %vm2746_vm9 = vcmp.ge.f32.partialorder %v2724_v46, 0.0 }
 0x40f   : > { %12513 = vmatprep.subr.bf16.mxu1 %v12512_v3  ;;  %vm2745_vm10 = vcmp.ge.f32.partialorder %v2719_v29, 0.0  ;;  %v3262_v53 = vmul.f32 0.01, %v3168_v16  ;;  %v2778_v30 = vsel %vm2746_vm9, %v2724_v46, %v2762_v51  ;;  %v3178_v10 = vadd.f32 %v14654_v36, %v14466_v59 }
 0x410   : > { %v2772_v44 = vsel %vm2740_vm3, %v2694_v45, %v2756_v11  ;;  %v2775_v12 = vsel %vm2743_vm8, %v2709_v52, %v2759_v34  ;;  %v2763_v48 = vmul.f32 0.01, %v2729_v55  ;;  %v3173_v57 = vadd.f32 %v14460_v56, %v14654_v36  ;;  %v3809_v56 = vld [vmem:[%s16227_s3 + $0xd0] sm:$0xff]  ;;  %v3810_v11 = vld [vmem:[%s16227_s3 + $0xd8] sm:$0xff] }
 0x411   : > { %11888 = vmatmul.mubr.msk.f32.gmra.mrb[130].mxu1 %vm484_vm0, %v2767_v6  ;;  %vm3246_vm11 = vcmp.ge.f32.partialorder %v3168_v16, 0.0  ;;  %vm2747_vm12 = vcmp.ge.f32.partialorder %v2729_v55, 0.0  ;;  %v3264_v54 = vmul.f32 0.01, %v3178_v10  ;;  %v3188_v40 = vadd.f32 %v14654_v36, %v14470_v61 }
 0x412   : > { %11890 = vmatprep.mubr.msk.f32.mxu1 %vm484_vm0, %v2768_v17  ;;  %12515 = vmatpush3.bf16.msra.mxu1 %v12512_v3  ;;  %v2776_v3 = vsel %vm2744_vm7, %v2714_v27, %v2760_v49  ;;  %v2777_v17 = vsel %vm2745_vm10, %v2719_v29, %v2761_v19  ;;  %v3278_v45 = vsel %vm3246_vm11, %v3168_v16, %v3262_v53  ;;  %v3263_v28 = vmul.f32 0.01, %v3173_v57 }
 0x413   : > { %12525 = vmatprep.subr.bf16.mxu1 %v14699_v42  ;;  %v3183_v59 = vadd.f32 %v14464_v58, %v14654_v36  ;;  %vm3248_vm13 = vcmp.ge.f32.partialorder %v3178_v10, 0.0  ;;  %v2779_v6 = vsel %vm2747_vm12, %v2729_v55, %v2763_v48  ;;  %vm3247_vm14 = vcmp.ge.f32.partialorder %v3173_v57, 0.0 }
 0x414   : > { %v3266_v61 = vmul.f32 0.01, %v3188_v40  ;;  %v3198_v58 = vadd.f32 %v14654_v36, %v14474_v63  ;;  %v12528_v50 = vpack.c.bf16 %v3810_v11, %v3809_v56  ;;  %v3279_v26 = vsel %vm3247_vm14, %v3173_v57, %v3263_v28  ;;  %v4323_v11 = vld [vmem:[%s16227_s3 + $0xf8] sm:$0xff] }
 0x415   : > { %11891 = vmatmul.mubr.msk.f32.gmra.mrb[132].mxu1 %vm484_vm0, %v2769_v47  ;;  %v3265_v22 = vmul.f32 0.01, %v3183_v59  ;;  %v3193_v47 = vadd.f32 %v14468_v60, %v14654_v36  ;;  %vm3250_vm15 = vcmp.ge.f32.partialorder %v3188_v40, 0.0  ;;  %vm3249_vm3 = vcmp.ge.f32.partialorder %v3183_v59, 0.0 }
 0x416   : > { %11893 = vmatprep.mubr.msk.f32.mxu1 %vm484_vm0, %v2770_v21  ;;  %v3280_v21 = vsel %vm3248_vm13, %v3178_v10, %v3264_v54  ;;  %v3268_v63 = vmul.f32 0.01, %v3198_v58  ;;  %v3282_v27 = vsel %vm3250_vm15, %v3188_v40, %v3266_v61  ;;  %v3208_v60 = vadd.f32 %v14654_v36, %v14478_v0 }
 0x417   : > { %v3267_v52 = vmul.f32 0.01, %v3193_v47  ;;  %vm3252_vm4 = vcmp.ge.f32.partialorder %v3198_v58, 0.0  ;;  %v3281_v49 = vsel %vm3249_vm3, %v3183_v59, %v3265_v22  ;;  %vm3251_vm5 = vcmp.ge.f32.partialorder %v3193_v47, 0.0 }
 0x418   : > { %v3218_v0 = vadd.f32 %v14654_v36, %v14482_v2  ;;  %v3213_v34 = vadd.f32 %v14476_v25, %v14654_v36  ;;  %vm3254_vm6 = vcmp.ge.f32.partialorder %v3208_v60, 0.0  ;;  %v3228_v51 = vadd.f32 %v14654_v36, %v14486_v5 }
 0x419   : > { %11894 = vmatmul.mubr.msk.f32.gmra.mrb[134].mxu1 %vm484_vm0, %v2771_v38  ;;  %v3203_v38 = vadd.f32 %v14472_v62, %v14654_v36  ;;  %v3283_v62 = vsel %vm3251_vm5, %v3193_v47, %v3267_v52  ;;  %v3223_v2 = vadd.f32 %v14480_v1, %v14654_v36  ;;  %v3238_v55 = vadd.f32 %v14654_v36, %v14490_v13 }
 0x41a   : > { %11896 = vmatprep.mubr.msk.f32.mxu1 %vm484_vm0, %v2772_v44  ;;  %v4321_v44 = vld [vmem:[%s16227_s3 + $0xe8] sm:$0xff]  ;;  %v3272_v29 = vmul.f32 0.01, %v3218_v0  ;;  %vm3256_vm8 = vcmp.ge.f32.partialorder %v3218_v0, 0.0  ;;  %vm3255_vm9 = vcmp.ge.f32.partialorder %v3213_v34, 0.0  ;;  %v3233_v5 = vadd.f32 %v14484_v4, %v14654_v36 }
 0x41b   : > { %v14763_v41 = vpack.c.bf16 %v4321_v44, %v4320_v14  ;;  %v3269_v46 = vmul.f32 0.01, %v3203_v38  ;;  %vm3253_vm7 = vcmp.ge.f32.partialorder %v3203_v38, 0.0  ;;  %v3274_v25 = vmul.f32 0.01, %v3228_v51  ;;  %v16257_v44 = vld [vmem:[#allocation11_spill] sm:$0xff] }
 0x41c   : > { %v3288_v19 = vsel %vm3256_vm8, %v3218_v0, %v3272_v29  ;;  %vm3258_vm10 = vcmp.ge.f32.partialorder %v3228_v51, 0.0  ;;  %vm3257_vm11 = vcmp.ge.f32.partialorder %v3223_v2, 0.0  ;;  %v3276_v1 = vmul.f32 0.01, %v3238_v55  ;;  %v16260_v0 = vld [vmem:[#allocation10_spill] sm:$0xff] }
 0x41d   : > { %11897 = vmatmul.mubr.msk.f32.gmra.mrb[136].mxu1 %vm484_vm0, %v2773_v43  ;;  %v3285_v16 = vsel %vm3253_vm7, %v3203_v38, %v3269_v46  ;;  %v3681_v10 = vadd.f32 %v14654_v36, %v14494_v9  ;;  %v3275_v48 = vmul.f32 0.01, %v3233_v5  ;;  %v3243_v13 = vadd.f32 %v14488_v7, %v14654_v36 }
 0x41e   : > { %11899 = vmatprep.mubr.msk.f32.mxu1 %vm484_vm0, %v2774_v20  ;;  %v3284_v20 = vsel %vm3252_vm4, %v3198_v58, %v3268_v63  ;;  %vm3260_vm12 = vcmp.ge.f32.partialorder %v3238_v55, 0.0  ;;  %vm3259_vm13 = vcmp.ge.f32.partialorder %v3233_v5, 0.0  ;;  %v3691_v54 = vadd.f32 %v14654_v36, %v14498_v18 }
 0x41f   : > { %v3775_v4 = vmul.f32 0.01, %v3681_v10  ;;  %v3686_v9 = vadd.f32 %v14492_v8, %v14654_v36  ;;  %vm3759_vm14 = vcmp.ge.f32.partialorder %v3681_v10, 0.0  ;;  %v3291_v40 = vsel %vm3259_vm13, %v3233_v5, %v3275_v48  ;;  %v4322_v8 = vld [vmem:[%s16227_s3 + $0xf0] sm:$0xff] }
 0x420   : > { %vm3261_vm15 = vcmp.ge.f32.partialorder %v3243_v13, 0.0  ;;  %v3777_v7 = vmul.f32 0.01, %v3691_v54  ;;  %v3701_v59 = vadd.f32 %v14654_v36, %v14504_v24  ;;  %v3696_v18 = vadd.f32 %v14496_v15, %v14654_v36 }
 0x421   : > { %11900 = vmatmul.mubr.msk.f32.gmra.mrb[138].mxu1 %vm484_vm0, %v2775_v12  ;;  %v3273_v12 = vmul.f32 0.01, %v3223_v2  ;;  %v3791_v28 = vsel %vm3759_vm14, %v3681_v10, %v3775_v4  ;;  %vm3761_vm3 = vcmp.ge.f32.partialorder %v3691_v54, 0.0  ;;  %vm3760_vm4 = vcmp.ge.f32.partialorder %v3686_v9, 0.0 }
 0x422   : > { %11902 = vmatprep.mubr.msk.f32.mxu1 %vm484_vm0, %v2776_v3  ;;  %v3271_v3 = vmul.f32 0.01, %v3213_v34  ;;  %v3779_v24 = vmul.f32 0.01, %v3701_v59  ;;  %v3793_v61 = vsel %vm3761_vm3, %v3691_v54, %v3777_v7  ;;  %v3711_v15 = vadd.f32 %v14654_v36, %v14510_v35  ;;  %v16266_v54 = vld [vmem:[#allocation16_spill] sm:$0xff] }
 0x423   : > { %v3289_v57 = vsel %vm3257_vm11, %v3223_v2, %v3273_v12  ;;  %vm3763_vm5 = vcmp.ge.f32.partialorder %v3701_v59, 0.0  ;;  %v3721_v63 = vadd.f32 %v14654_v36, %v16257_v44  ;;  %v3726_v46 = vadd.f32 %v16260_v0, %v14654_v36  ;;  %v16262_v2 = vld [vmem:[#allocation12_spill] sm:$0xff]  ;;  %v16263_v12 = vld [vmem:[#allocation17_spill] sm:$0xff] }
 0x424   : > { %v3287_v53 = vsel %vm3255_vm9, %v3213_v34, %v3271_v3  ;;  %v3781_v47 = vmul.f32 0.01, %v3711_v15  ;;  %v3795_v14 = vsel %vm3763_vm5, %v3701_v59, %v3779_v24  ;;  %vm3765_vm7 = vcmp.ge.f32.partialorder %v3711_v15, 0.0 }
 0x425   : > { %11903 = vmatmul.mubr.msk.f32.gmra.mrb[140].mxu1 %vm484_vm0, %v2777_v17  ;;  %v3292_v17 = vsel %vm3260_vm12, %v3238_v55, %v3276_v1  ;;  %vm3767_vm9 = vcmp.ge.f32.partialorder %v3721_v63, 0.0  ;;  %v3784_v3 = vmul.f32 0.01, %v3726_v46  ;;  %vm3768_vm12 = vcmp.ge.f32.partialorder %v3726_v46, 0.0  ;;  %v16264_v1 = vld [vmem:[#allocation14_spill] sm:$0xff] }
 0x426   : > { %11905 = vmatprep.mubr.msk.f32.mxu1 %vm484_vm0, %v2778_v30  ;;  %v3290_v30 = vsel %vm3258_vm10, %v3228_v51, %v3274_v25  ;;  %v3797_v38 = vsel %vm3765_vm7, %v3711_v15, %v3781_v47  ;;  %v3751_v5 = vadd.f32 %v14654_v36, %v16263_v12  ;;  %v4224_v47 = vadd.f32 %v14654_v36, %v14616_v31 }
 0x427   : > { %v3800_v10 = vsel %vm3768_vm12, %v3726_v46, %v3784_v3  ;;  %v4229_v31 = vadd.f32 %v14612_v32, %v14654_v36 }
 0x428   : > { %v3789_v48 = vmul.f32 0.01, %v3751_v5 }
 0x429   : > { %11906 = vmatmul.mubr.msk.f32.gmra.mrb[142].mxu1 %vm484_vm0, %v2779_v6  ;;  %v3776_v6 = vmul.f32 0.01, %v3686_v9 }
 0x42a   : > { %11948 = vmatprep.mubr.msk.f32.mxu1 %vm484_vm0, %v3278_v45  ;;  %v3277_v45 = vmul.f32 0.01, %v3243_v13 }
 0x42b   : > { %v3792_v58 = vsel %vm3760_vm4, %v3686_v9, %v3776_v6 }
 0x42c   : > { %v3293_v56 = vsel %vm3261_vm15, %v3243_v13, %v3277_v45  ;;  %v3756_v45 = vadd.f32 %v16266_v54, %v14654_v36  ;;  %vm3773_vm15 = vcmp.ge.f32.partialorder %v3751_v5, 0.0 }
 0x42d   : > { %11949 = vmatmul.mubr.msk.f32.vlgmr.msra.gmra.mrb[144].mxu1 %vm484_vm0, %v3279_v26  ;;  %v16256_v26 = vld [vmem:[#allocation8_spill] sm:$0xff]  ;;  %v3805_v7 = vsel %vm3773_vm15, %v3751_v5, %v3789_v48 }
 0x42e   : > { %12527 = vmatpush3.bf16.msra.mxu1 %v14699_v42  ;;  %11951 = vmatprep.mubr.msk.f32.mxu1 %vm484_vm0, %v3280_v21  ;;  %v3270_v42 = vmul.f32 0.01, %v3208_v60  ;;  %v12544_v21 = vpack.c.bf16 %v4323_v11, %v4322_v8  ;;  %v3706_v22 = vadd.f32 %v16256_v26, %v14654_v36  ;;  %v3790_v6 = vmul.f32 0.01, %v3756_v45 }
 0x42f   : > { %12529 = vmatprep.subr.bf16.mxu1 %v12528_v50  ;;  %vm3774_vm5 = vcmp.ge.f32.partialorder %v3756_v45, 0.0 }
 0x430   : > { %v3286_v43 = vsel %vm3254_vm6, %v3208_v60, %v3270_v42  ;;  %vm3762_vm6 = vcmp.ge.f32.partialorder %v3696_v18, 0.0  ;;  %v3780_v35 = vmul.f32 0.01, %v3706_v22  ;;  %vm3764_vm8 = vcmp.ge.f32.partialorder %v3706_v22, 0.0 }
 0x431   : > { %11952 = vmatmul.mubr.msk.f32.gmra.mrb[146].mxu1 %vm484_vm0, %v3281_v49  ;;  %v16259_v49 = vld [vmem:[#allocation13_spill] sm:$0xff] }
 0x432   : > { %11954 = vmatprep.mubr.msk.f32.mxu1 %vm484_vm0, %v3282_v27  ;;  %12531 = vmatpush3.bf16.msra.mxu1 %v12528_v50  ;;  %v3778_v50 = vmul.f32 0.01, %v3696_v18  ;;  %v16258_v27 = vld [vmem:[#allocation9_spill] sm:$0xff]  ;;  %v3731_v42 = vadd.f32 %v14654_v36, %v16259_v49  ;;  %v3796_v34 = vsel %vm3764_vm8, %v3706_v22, %v3780_v35  ;;  %v4294_v35 = vmul.f32 0.01, %v4224_v47 }
 0x433   : > { %12541 = vmatprep.subr.bf16.mxu1 %v14763_v41  ;;  %v3716_v60 = vadd.f32 %v16258_v27, %v14654_v36 }
 0x434   : > { %v3794_v52 = vsel %vm3762_vm6, %v3696_v18, %v3778_v50  ;;  %vm3769_vm11 = vcmp.ge.f32.partialorder %v3731_v42, 0.0  ;;  %v16268_v18 = vld [vmem:[#allocation18_spill] sm:$0xff]  ;;  %v3806_v50 = vsel %vm3774_vm5, %v3756_v45, %v3790_v6 }
 0x435   : > { %11955 = vmatmul.mubr.msk.f32.gmra.mrb[148].mxu1 %vm484_vm0, %v3283_v62  ;;  %vm3766_vm10 = vcmp.ge.f32.partialorder %v3716_v60, 0.0  ;;  %v3785_v62 = vmul.f32 0.01, %v3731_v42 }
 0x436   : > { %11957 = vmatprep.mubr.msk.f32.mxu1 %vm484_vm0, %v3284_v20  ;;  %v3782_v20 = vmul.f32 0.01, %v3716_v60 }
 0x437   : > { %v3801_v55 = vsel %vm3769_vm11, %v3731_v42, %v3785_v62  ;;  %v4244_v42 = vadd.f32 %v14654_v36, %v14638_v39 }
 0x438   : > { %v3798_v25 = vsel %vm3766_vm10, %v3716_v60, %v3782_v20  ;;  %v4234_v60 = vadd.f32 %v14654_v36, %v14629_v23  ;;  %vm4278_vm10 = vcmp.ge.f32.partialorder %v4224_v47, 0.0  ;;  %v4295_v20 = vmul.f32 0.01, %v4229_v31 }
 0x439   : > { %11958 = vmatmul.mubr.msk.f32.gmra.mrb[150].mxu1 %vm484_vm0, %v3285_v16  ;;  %v3736_v16 = vadd.f32 %v16262_v2, %v14654_v36  ;;  %v4310_v49 = vsel %vm4278_vm10, %v4224_v47, %v4294_v35  ;;  %v4239_v23 = vadd.f32 %v14625_v33, %v14654_v36  ;;  %v4298_v32 = vmul.f32 0.01, %v4244_v42  ;;  %v16273_v2 = vld [vmem:[#allocation27_spill] sm:$0xff] }
 0x43a   : > { %11960 = vmatprep.mubr.msk.f32.mxu1 %vm484_vm0, %v3286_v43  ;;  %v16261_v43 = vld [vmem:[#allocation15_spill] sm:$0xff]  ;;  %vm4280_vm12 = vcmp.ge.f32.partialorder %v4234_v60, 0.0 }
 0x43b   : > { %v3741_v51 = vadd.f32 %v14654_v36, %v16261_v43  ;;  %vm3770_vm14 = vcmp.ge.f32.partialorder %v3736_v16, 0.0  ;;  %v16272_v43 = vld [vmem:[#allocation23_spill] sm:$0xff]  ;;  %vm4281_vm15 = vcmp.ge.f32.partialorder %v4239_v23, 0.0 }
 0x43c   : > { %v4249_v39 = vadd.f32 %v16272_v43, %v14654_v36 }
 0x43d   : > { %11961 = vmatmul.mubr.msk.f32.gmra.mrb[152].mxu1 %vm484_vm0, %v3287_v53  ;;  %v3786_v53 = vmul.f32 0.01, %v3736_v16  ;;  %vm3771_vm13 = vcmp.ge.f32.partialorder %v3741_v51, 0.0 }
 0x43e   : > { %11963 = vmatprep.mubr.msk.f32.mxu1 %vm484_vm0, %v3288_v19  ;;  %v3787_v19 = vmul.f32 0.01, %v3741_v51 }
 0x43f   : > { %v3802_v9 = vsel %vm3770_vm14, %v3736_v16, %v3786_v53  ;;  %vm4282_vm14 = vcmp.ge.f32.partialorder %v4244_v42, 0.0  ;;  %v4264_v16 = vadd.f32 %v14654_v36, %v16273_v2 }
 0x440   : > { %v3803_v13 = vsel %vm3771_vm13, %v3741_v51, %v3787_v19  ;;  %vm4279_vm13 = vcmp.ge.f32.partialorder %v4229_v31, 0.0  ;;  %v4314_v3 = vsel %vm4282_vm14, %v4244_v42, %v4298_v32  ;;  %v16274_v19 = vld [vmem:[#allocation24_spill] sm:$0xff] }
 0x441   : > { %11964 = vmatmul.mubr.msk.f32.gmra.mrb[154].mxu1 %vm484_vm0, %v3289_v57  ;;  %v16265_v57 = vld [vmem:[#allocation19_spill] sm:$0xff]  ;;  %v4311_v51 = vsel %vm4279_vm13, %v4229_v31, %v4295_v20  ;;  %v4302_v5 = vmul.f32 0.01, %v4264_v16  ;;  %vm4286_vm5 = vcmp.ge.f32.partialorder %v4264_v16, 0.0 }
 0x442   : > { %11966 = vmatprep.mubr.msk.f32.mxu1 %vm484_vm0, %v3290_v30  ;;  %v3746_v30 = vadd.f32 %v16264_v1, %v14654_v36  ;;  %v4194_v4 = vadd.f32 %v14654_v36, %v16265_v57 }
 0x444   : > { %vm3772_vm3 = vcmp.ge.f32.partialorder %v3746_v30, 0.0  ;;  %vm4272_vm4 = vcmp.ge.f32.partialorder %v4194_v4, 0.0 }
 0x445   : > { %11967 = vmatmul.mubr.msk.f32.gmra.mrb[156].mxu1 %vm484_vm0, %v3291_v40  ;;  %v4288_v40 = vmul.f32 0.01, %v4194_v4 }
 0x446   : > { %11969 = vmatprep.mubr.msk.f32.mxu1 %vm484_vm0, %v3292_v17  ;;  %v3788_v17 = vmul.f32 0.01, %v3746_v30 }
 0x447   : > { %v4304_v24 = vsel %vm4272_vm4, %v4194_v4, %v4288_v40  ;;  %vm4283_vm4 = vcmp.ge.f32.partialorder %v4249_v39, 0.0  ;;  %v2464_v40 = vld [vmem:[#allocation2 + $0x120] sm:$0xff] }
 0x448   : > { %v3804_v8 = vsel %vm3772_vm3, %v3746_v30, %v3788_v17  ;;  %v16275_v30 = vld [vmem:[#allocation26_spill] sm:$0xff] }
 0x449   : > { %11970 = vmatmul.mubr.msk.f32.gmra.mrb[158].mxu1 %vm484_vm0, %v3293_v56  ;;  %v4199_v56 = vadd.f32 %v16268_v18, %v14654_v36 }
 0x44a   : > { %12012 = vmatprep.mubr.msk.f32.mxu1 %vm484_vm0, %v3791_v28  ;;  %v16267_v28 = vld [vmem:[#allocation21_spill] sm:$0xff] }
 0x44b   : > { %v4204_v59 = vadd.f32 %v14654_v36, %v16267_v28  ;;  %v4289_v15 = vmul.f32 0.01, %v4199_v56  ;;  %vm4273_vm7 = vcmp.ge.f32.partialorder %v4199_v56, 0.0 }
 0x44d   : > { %12013 = vmatmul.mubr.msk.f32.vlgmr.msra.gmra.mrb[160].mxu1 %vm484_vm0, %v3792_v58  ;;  %v4290_v11 = vmul.f32 0.01, %v4204_v59  ;;  %vm4274_vm6 = vcmp.ge.f32.partialorder %v4204_v59, 0.0 }
 0x44e   : > { %12543 = vmatpush3.bf16.msra.mxu1 %v14763_v41  ;;  %12015 = vmatprep.mubr.msk.f32.mxu1 %vm484_vm0, %v3793_v61  ;;  %v3783_v41 = vmul.f32 0.01, %v3721_v63  ;;  %v4214_v61 = vadd.f32 %v14654_v36, %v14600_v37  ;;  %v16270_v37 = vld [vmem:[#allocation22_spill] sm:$0xff] }
 0x44f   : > { %12545 = vmatprep.subr.bf16.mxu1 %v12544_v21  ;;  %v4306_v22 = vsel %vm4274_vm6, %v4204_v59, %v4290_v11  ;;  %v2467_v59 = vld [vmem:[#allocation2 + $0x150] sm:$0xff] }
 0x450   : > { %v3799_v29 = vsel %vm3767_vm9, %v3721_v63, %v3783_v41  ;;  %v4292_v26 = vmul.f32 0.01, %v4214_v61  ;;  %v4219_v63 = vadd.f32 %v16270_v37, %v14654_v36  ;;  %vm4276_vm8 = vcmp.ge.f32.partialorder %v4214_v61, 0.0 }
 0x451   : > { %12016 = vmatmul.mubr.msk.f32.gmra.mrb[162].mxu1 %vm484_vm0, %v3794_v52 }
 0x452   : > { %12018 = vmatprep.mubr.msk.f32.mxu1 %vm484_vm0, %v3795_v14  ;;  %12547 = vmatpush3.bf16.msra.mxu1 %v12544_v21  ;;  %v16269_v21 = vld [vmem:[#allocation20_spill] sm:$0xff]  ;;  %v4305_v14 = vsel %vm4273_vm7, %v4199_v56, %v4289_v15  ;;  %v4308_v27 = vsel %vm4276_vm8, %v4214_v61, %v4292_v26  ;;  %v4293_v52 = vmul.f32 0.01, %v4219_v63  ;;  %vm4277_vm11 = vcmp.ge.f32.partialorder %v4219_v63, 0.0  ;;  %v2466_v56 = vld [vmem:[#allocation2 + $0x140] sm:$0xff] }
 0x453   : > { %v4209_v58 = vadd.f32 %v16269_v21, %v14654_v36  ;;  %v2468_v21 = vld [vmem:[#allocation2 + $0x160] sm:$0xff] }
 0x454   : > { %v4309_v0 = vsel %vm4277_vm11, %v4219_v63, %v4293_v52 }
 0x455   : > { %12019 = vmatmul.mubr.msk.f32.gmra.mrb[164].mxu1 %vm484_vm0, %v3796_v34  ;;  %v4291_v44 = vmul.f32 0.01, %v4209_v58  ;;  %vm4275_vm9 = vcmp.ge.f32.partialorder %v4209_v58, 0.0  ;;  %v16271_v34 = vld [vmem:[#allocation25_spill] sm:$0xff] }
 0x456   : > { %12021 = vmatprep.mubr.msk.f32.mxu1 %vm484_vm0, %v3797_v38  ;;  %v4296_v38 = vmul.f32 0.01, %v4234_v60  ;;  %v4254_v62 = vadd.f32 %v14654_v36, %v16271_v34 }
 0x457   : > { %v4307_v41 = vsel %vm4275_vm9, %v4209_v58, %v4291_v44  ;;  %v5044_v58 = vld [vmem:[%s16229_s5 + $0x40] sm:$0xff] }
 0x458   : > { %v4312_v46 = vsel %vm4280_vm12, %v4234_v60, %v4296_v38  ;;  %v4300_v33 = vmul.f32 0.01, %v4254_v62  ;;  %vm4284_vm3 = vcmp.ge.f32.partialorder %v4254_v62, 0.0  ;;  %v2470_v60 = vld [vmem:[#allocation2 + $0x180] sm:$0xff]  ;;  %v5046_v38 = vld [vmem:[%s16229_s5 + $0x50] sm:$0xff] }
 0x459   : > { %12022 = vmatmul.mubr.msk.f32.gmra.mrb[166].mxu1 %vm484_vm0, %v3798_v25  ;;  %v4299_v25 = vmul.f32 0.01, %v4249_v39 }
 0x45a   : > { %12024 = vmatprep.mubr.msk.f32.mxu1 %vm484_vm0, %v3799_v29  ;;  %v4297_v29 = vmul.f32 0.01, %v4239_v23  ;;  %v4316_v53 = vsel %vm4284_vm3, %v4254_v62, %v4300_v33 }
 0x45b   : > { %v4315_v48 = vsel %vm4283_vm4, %v4249_v39, %v4299_v25  ;;  %v2473_v39 = vld [vmem:[#allocation2 + $0x1c0] sm:$0xff]  ;;  %v5049_v25 = vld [vmem:[%s16229_s5 + $0x68] sm:$0xff] }
 0x45c   : > { %v4313_v12 = vsel %vm4281_vm15, %v4239_v23, %v4297_v29 }
 0x45d   : > { %12025 = vmatmul.mubr.msk.f32.gmra.mrb[168].mxu1 %vm484_vm0, %v3800_v10  ;;  %v4269_v10 = vadd.f32 %v16275_v30, %v14654_v36 }
 0x45e   : > { %12027 = vmatprep.mubr.msk.f32.mxu1 %vm484_vm0, %v3801_v55  ;;  %v4259_v55 = vadd.f32 %v16274_v19, %v14654_v36  ;;  %v2465_v36 = vld [vmem:[#allocation2 + $0x130] sm:$0xff] }
 0x45f   : > { %v4303_v57 = vmul.f32 0.01, %v4269_v10  ;;  %vm4287_vm7 = vcmp.ge.f32.partialorder %v4269_v10, 0.0 }
 0x460   : > { %v4301_v1 = vmul.f32 0.01, %v4259_v55  ;;  %vm4285_vm6 = vcmp.ge.f32.partialorder %v4259_v55, 0.0 }
 0x461   : > { %12028 = vmatmul.mubr.msk.f32.gmra.mrb[170].mxu1 %vm484_vm0, %v3802_v9  ;;  %v4319_v17 = vsel %vm4287_vm7, %v4269_v10, %v4303_v57  ;;  %v2475_v57 = vld [vmem:[#allocation2 + $0x1e0] sm:$0xff] }
 0x462   : > { %12030 = vmatprep.mubr.msk.f32.mxu1 %vm484_vm0, %v3803_v13  ;;  %v4318_v13 = vsel %vm4286_vm5, %v4264_v16, %v4302_v5  ;;  %v4317_v4 = vsel %vm4285_vm6, %v4259_v55, %v4301_v1  ;;  %v5048_v16 = vld [vmem:[%s16229_s5 + $0x60] sm:$0xff] }
 0x463   : > { %v12556_v5 = vpack.c.bf16 %v5049_v25, %v5048_v16 }
 0x465   : > { %12031 = vmatmul.mubr.msk.f32.gmra.mrb[172].mxu1 %vm484_vm0, %v3804_v8 }
 0x466   : > { %12033 = vmatprep.mubr.msk.f32.mxu1 %vm484_vm0, %v3805_v7 }
 0x469   : > { %12034 = vmatmul.mubr.msk.f32.gmra.mrb[174].mxu1 %vm484_vm0, %v3806_v50  ;;  %v5045_v50 = vld [vmem:[%s16229_s5 + $0x48] sm:$0xff] }
 0x46a   : > { %12076 = vmatprep.mubr.msk.f32.mxu1 %vm484_vm0, %v4304_v24  ;;  %v2469_v24 = vld [vmem:[#allocation2 + $0x170] sm:$0xff]  ;;  %v12548_v47 = vpack.c.bf16 %v5045_v50, %v5044_v58 }
 0x46b   : > { %v2476_v50 = vld [vmem:[#allocation2 + $0x1f0] sm:$0xff] }
 0x46c   : > { %12549 = vmatprep.subr.bf16.mxu0 %v12548_v47 }
 0x46d   : > { %12077 = vmatmul.mubr.msk.f32.vlgmr.msra.gmra.mrb[176].mxu1 %vm484_vm0, %v4305_v14  ;;  %v14911_v14 = vld [vmem:[%s16228_s4] ss:$0 sm:$0xff]  ;;  %12551 = vmatpush3.bf16.msra.mxu0 %v12548_v47 }
 0x46e   : > { %12079 = vmatprep.mubr.msk.f32.mxu1 %vm484_vm0, %v4306_v22 }
 0x471   : > { %12080 = vmatmul.mubr.msk.f32.gmra.mrb[178].mxu1 %vm484_vm0, %v4307_v41 }
 0x472   : > { %12082 = vmatprep.mubr.msk.f32.mxu1 %vm484_vm0, %v4308_v27  ;;  %v2471_v27 = vld [vmem:[#allocation2 + $0x190] sm:$0xff] }
 0x475   : > { %12083 = vmatmul.mubr.msk.f32.gmra.mrb[180].mxu1 %vm484_vm0, %v4309_v0 }
 0x476   : > { %12085 = vmatprep.mubr.msk.f32.mxu1 %vm484_vm0, %v4310_v49  ;;  %v5047_v49 = vld [vmem:[%s16229_s5 + $0x58] sm:$0xff] }
 0x477   : > { %v12552_v0 = vpack.c.bf16 %v5047_v49, %v5046_v38  ;;  %v2478_v49 = vld [vmem:[#allocation2 + $0x210] sm:$0xff] }
 0x479   : > { %12086 = vmatmul.mubr.msk.f32.gmra.mrb[182].mxu1 %vm484_vm0, %v4311_v51  ;;  %v2472_v51 = vld [vmem:[#allocation2 + $0x1b0] sm:$0xff]  ;;  %12553 = vmatprep.subr.bf16.mxu0 %v12552_v0 }
 0x47a   : > { %12088 = vmatprep.mubr.msk.f32.mxu1 %vm484_vm0, %v4312_v46  ;;  %12555 = vmatpush3.bf16.msra.mxu0 %v12552_v0  ;;  %v2979_v0 = vld [vmem:[#allocation2 + $0x21] sm:$0xff] }
 0x47b   : > { %12557 = vmatprep.subr.bf16.mxu0 %v12556_v5 }
 0x47d   : > { %12089 = vmatmul.mubr.msk.f32.gmra.mrb[184].mxu1 %vm484_vm0, %v4313_v12 }
 0x47e   : > { %12091 = vmatprep.mubr.msk.f32.mxu1 %vm484_vm0, %v4314_v3  ;;  %12559 = vmatpush3.bf16.msra.mxu0 %v12556_v5 }
 0x481   : > { %12092 = vmatmul.mubr.msk.f32.gmra.mrb[186].mxu1 %vm484_vm0, %v4315_v48 }
 0x482   : > { %12094 = vmatprep.mubr.msk.f32.mxu1 %vm484_vm0, %v4316_v53 }
 0x485   : > { %12095 = vmatmul.mubr.msk.f32.gmra.mrb[188].mxu1 %vm484_vm0, %v4317_v4  ;;  %v2474_v4 = vld [vmem:[#allocation2 + $0x1d0] sm:$0xff] }
 0x486   : > { %12097 = vmatprep.mubr.msk.f32.mxu1 %vm484_vm0, %v4318_v13 }
 0x489   : > { %12098 = vmatmul.mubr.msk.f32.gmra.mrb[190].mxu1 %vm484_vm0, %v4319_v17 }
 0x4bf   : > { %v11822_v54 = vpop.f32.mrb[112].mxu1 }
 0x4c0   : > { %v2481_v45 = vadd.f32 %v11822_v54, %v2465_v36  ;;  %v2385_v9 = vpop.f32.mrb[113].mxu1 }
 0x4c1   : > { %v2480_v7 = vadd.f32 %v2464_v40, %v2385_v9  ;;  %v5051_v9 = vld [vmem:[%s16229_s5 + $0x78] sm:$0xff] }
 0x4c2   : > { %2497 = vst.msk [vmem:[#allocation2 + $0x130] sm:$0xff] %vm383_vm1, %v2481_v45  ;;  %v5050_v45 = vld [vmem:[%s16229_s5 + $0x70] sm:$0xff] }
 0x4c3   : > { %2496 = vst.msk [vmem:[#allocation2 + $0x120] sm:$0xff] %vm383_vm1, %v2480_v7  ;;  %v11825_v28 = vpop.f32.mrb[114].mxu1 }
 0x4c4   : > { %v2483_v6 = vadd.f32 %v11825_v28, %v2467_v59  ;;  %v2395_v18 = vpop.f32.mrb[115].mxu1  ;;  %v12560_v59 = vpack.c.bf16 %v5051_v9, %v5050_v45 }
 0x4c5   : > { %v2482_v8 = vadd.f32 %v2466_v56, %v2395_v18 }
 0x4c6   : > { %2499 = vst.msk [vmem:[#allocation2 + $0x150] sm:$0xff] %vm383_vm1, %v2483_v6  ;;  %12561 = vmatprep.subr.bf16.mxu0 %v12560_v59 }
 0x4c7   : > { %2498 = vst.msk [vmem:[#allocation2 + $0x140] sm:$0xff] %vm383_vm1, %v2482_v8  ;;  %12563 = vmatpush3.bf16.msra.mxu0 %v12560_v59 }
 0x4c8   : > { %v11828_v11 = vpop.f32.mrb[116].mxu1 }
 0x4c9   : > { %v2485_v61 = vadd.f32 %v11828_v11, %v2469_v24  ;;  %v2405_v15 = vpop.f32.mrb[117].mxu1  ;;  %v4603_v26 = vld [vmem:[#allocation2 + $0x130] sm:$0xff] }
 0x4ca   : > { %v2484_v22 = vadd.f32 %v2468_v21, %v2405_v15  ;;  %v4682_v44 = vadd.f32 %v14911_v14, %v4603_v26  ;;  %v4601_v37 = vld [vmem:[#allocation2 + $0x120] sm:$0xff] }
 0x4cb   : > { %2501 = vst.msk [vmem:[#allocation2 + $0x170] sm:$0xff] %vm383_vm1, %v2485_v61  ;;  %v4680_v63 = vadd.f32 %v14911_v14, %v4601_v37  ;;  %v2477_v61 = vld [vmem:[#allocation2 + $0x200] sm:$0xff] }
 0x4cc   : > { %2500 = vst.msk [vmem:[#allocation2 + $0x160] sm:$0xff] %vm383_vm1, %v2484_v22  ;;  %v11831_v35 = vpop.f32.mrb[118].mxu1  ;;  %vm4754_vm0 = vcmp.ge.f32.partialorder %v4682_v44, 0.0  ;;  %v4826_v52 = vmul.f32 0.01, %v4682_v44 }
 0x4cd   : > { %v2487_v31 = vadd.f32 %v11831_v35, %v2471_v27  ;;  %v2415_v41 = vpop.f32.mrb[119].mxu1  ;;  %vm4752_vm8 = vcmp.ge.f32.partialorder %v4680_v63, 0.0  ;;  %v4824_v42 = vmul.f32 0.01, %v4680_v63  ;;  %v4607_v20 = vld [vmem:[#allocation2 + $0x150] sm:$0xff] }
 0x4ce   : > { %v2486_v23 = vadd.f32 %v2470_v60, %v2415_v41  ;;  %v4898_v32 = vsel %vm4754_vm0, %v4682_v44, %v4826_v52  ;;  %v4686_v46 = vadd.f32 %v14911_v14, %v4607_v20  ;;  %v4605_v34 = vld [vmem:[#allocation2 + $0x140] sm:$0xff] }
 0x4cf   : > { %2503 = vst.msk [vmem:[#allocation2 + $0x190] sm:$0xff] %vm383_vm1, %v2487_v31  ;;  %4970 = vst.msk [vmem:[#allocation2 + $0x130] sm:$0xff] %vm383_vm1, %v4898_v32  ;;  %v4896_v62 = vsel %vm4752_vm8, %v4680_v63, %v4824_v42  ;;  %v4684_v29 = vadd.f32 %v14911_v14, %v4605_v34  ;;  %v2479_v52 = vld [vmem:[#allocation2 + $0x220] sm:$0xff] }
 0x4d0   : > { %2502 = vst.msk [vmem:[#allocation2 + $0x180] sm:$0xff] %vm383_vm1, %v2486_v23  ;;  %v11834_v43 = vpop.f32.mrb[120].mxu1  ;;  %4968 = vst.msk [vmem:[#allocation2 + $0x120] sm:$0xff] %vm383_vm1, %v4896_v62  ;;  %vm4758_vm9 = vcmp.ge.f32.partialorder %v4686_v46, 0.0  ;;  %v4830_v33 = vmul.f32 0.01, %v4686_v46 }
 0x4d1   : > { %v2489_v3 = vadd.f32 %v11834_v43, %v2473_v39  ;;  %v2425_v2 = vpop.f32.mrb[121].mxu1  ;;  %vm4756_vm10 = vcmp.ge.f32.partialorder %v4684_v29, 0.0  ;;  %v4828_v19 = vmul.f32 0.01, %v4684_v29  ;;  %v2978_v62 = vld [vmem:[#allocation2 + $0x11] sm:$0xff] }
 0x4d2   : > { %v4611_v55 = vld [vmem:[#allocation2 + $0x170] sm:$0xff]  ;;  %v2488_v12 = vadd.f32 %v2472_v51, %v2425_v2  ;;  %v4902_v53 = vsel %vm4758_vm9, %v4686_v46, %v4830_v33 }
 0x4d3   : > { %v4690_v1 = vadd.f32 %v14911_v14, %v4611_v55  ;;  %v4609_v30 = vld [vmem:[#allocation2 + $0x160] sm:$0xff]  ;;  %2505 = vst.msk [vmem:[#allocation2 + $0x1c0] sm:$0xff] %vm383_vm1, %v2489_v3  ;;  %4974 = vst.msk [vmem:[#allocation2 + $0x150] sm:$0xff] %vm383_vm1, %v4902_v53  ;;  %v4900_v10 = vsel %vm4756_vm10, %v4684_v29, %v4828_v19  ;;  %v2980_v53 = vld [vmem:[#allocation2 + $0x31] sm:$0xff] }
 0x4d4   : > { %v4688_v48 = vadd.f32 %v14911_v14, %v4609_v30  ;;  %2504 = vst.msk [vmem:[#allocation2 + $0x1b0] sm:$0xff] %vm383_vm1, %v2488_v12  ;;  %v11837_v13 = vpop.f32.mrb[122].mxu1  ;;  %4972 = vst.msk [vmem:[#allocation2 + $0x140] sm:$0xff] %vm383_vm1, %v4900_v10  ;;  %v2981_v19 = vld [vmem:[#allocation2 + $0x41] sm:$0xff] }
 0x4d5   : > { %vm4762_vm11 = vcmp.ge.f32.partialorder %v4690_v1, 0.0  ;;  %v4834_v17 = vmul.f32 0.01, %v4690_v1  ;;  %v2491_v54 = vadd.f32 %v11837_v13, %v2475_v57  ;;  %v2435_v36 = vpop.f32.mrb[123].mxu1 }
 0x4d6   : > { %vm4760_vm12 = vcmp.ge.f32.partialorder %v4688_v48, 0.0  ;;  %v4832_v40 = vmul.f32 0.01, %v4688_v48  ;;  %v4615_v7 = vld [vmem:[#allocation2 + $0x190] sm:$0xff]  ;;  %v2490_v28 = vadd.f32 %v2474_v4, %v2435_v36  ;;  %v2983_v36 = vld [vmem:[#allocation2 + $0x61] sm:$0xff] }
 0x4d7   : > { %v4906_v6 = vsel %vm4762_vm11, %v4690_v1, %v4834_v17  ;;  %v4694_v18 = vadd.f32 %v14911_v14, %v4615_v7  ;;  %v4613_v56 = vld [vmem:[#allocation2 + $0x180] sm:$0xff]  ;;  %2507 = vst.msk [vmem:[#allocation2 + $0x1e0] sm:$0xff] %vm383_vm1, %v2491_v54  ;;  %v2982_v7 = vld [vmem:[#allocation2 + $0x51] sm:$0xff] }
 0x4d8   : > { %4978 = vst.msk [vmem:[#allocation2 + $0x170] sm:$0xff] %vm383_vm1, %v4906_v6  ;;  %v4904_v8 = vsel %vm4760_vm12, %v4688_v48, %v4832_v40  ;;  %v4692_v11 = vadd.f32 %v14911_v14, %v4613_v56  ;;  %2506 = vst.msk [vmem:[#allocation2 + $0x1d0] sm:$0xff] %vm383_vm1, %v2490_v28  ;;  %v11840_v24 = vpop.f32.mrb[124].mxu1 }
 0x4d9   : > { %4976 = vst.msk [vmem:[#allocation2 + $0x160] sm:$0xff] %vm383_vm1, %v4904_v8  ;;  %vm4766_vm13 = vcmp.ge.f32.partialorder %v4694_v18, 0.0  ;;  %v4838_v15 = vmul.f32 0.01, %v4694_v18  ;;  %v2493_v21 = vadd.f32 %v11840_v24, %v2477_v61  ;;  %v2445_v58 = vpop.f32.mrb[125].mxu1  ;;  %v5021_v24 = vld [vmem:[%s16229_s5 + $0x8] sm:$0xff] }
 0x4da   : > { %vm4764_vm14 = vcmp.ge.f32.partialorder %v4692_v11, 0.0  ;;  %v4836_v26 = vmul.f32 0.01, %v4692_v11  ;;  %v4621_v22 = vld [vmem:[#allocation2 + $0x1c0] sm:$0xff]  ;;  %v2492_v47 = vadd.f32 %v2476_v50, %v2445_v58 }
 0x4db   : > { %v4910_v44 = vsel %vm4766_vm13, %v4694_v18, %v4838_v15  ;;  %v4700_v37 = vadd.f32 %v14911_v14, %v4621_v22  ;;  %v4619_v63 = vld [vmem:[#allocation2 + $0x1b0] sm:$0xff]  ;;  %2509 = vst.msk [vmem:[#allocation2 + $0x200] sm:$0xff] %vm383_vm1, %v2493_v21  ;;  %v2985_v21 = vld [vmem:[#allocation2 + $0x81] sm:$0xff] }
 0x4dc   : > { %4982 = vst.msk [vmem:[#allocation2 + $0x190] sm:$0xff] %vm383_vm1, %v4910_v44  ;;  %v4908_v35 = vsel %vm4764_vm14, %v4692_v11, %v4836_v26  ;;  %v4698_v27 = vadd.f32 %v14911_v14, %v4619_v63  ;;  %2508 = vst.msk [vmem:[#allocation2 + $0x1f0] sm:$0xff] %vm383_vm1, %v2492_v47  ;;  %v11843_v60 = vpop.f32.mrb[126].mxu1  ;;  %v5020_v11 = vld [vmem:[%s16229_s5] sm:$0xff]  ;;  %v2984_v26 = vld [vmem:[#allocation2 + $0x71] sm:$0xff] }
 0x4dd   : > { %4980 = vst.msk [vmem:[#allocation2 + $0x180] sm:$0xff] %vm383_vm1, %v4908_v35  ;;  %vm4772_vm15 = vcmp.ge.f32.partialorder %v4700_v37, 0.0  ;;  %v4844_v31 = vmul.f32 0.01, %v4700_v37  ;;  %v2495_v41 = vadd.f32 %v11843_v60, %v2479_v52  ;;  %v2455_v38 = vpop.f32.mrb[127].mxu1  ;;  %v14983_v58 = vpack.c.bf16 %v5021_v24, %v5020_v11  ;;  %v2987_v35 = vld [vmem:[#allocation2 + $0xb1] sm:$0xff] }
 0x4de   : > { %vm4770_vm3 = vcmp.ge.f32.partialorder %v4698_v27, 0.0  ;;  %v4842_v42 = vmul.f32 0.01, %v4698_v27  ;;  %v4625_v20 = vld [vmem:[#allocation2 + $0x1e0] sm:$0xff]  ;;  %v2494_v23 = vadd.f32 %v2478_v49, %v2455_v38  ;;  %v2989_v38 = vld [vmem:[#allocation2 + $0xd1] sm:$0xff] }
 0x4df   : > { %v4916_v32 = vsel %vm4772_vm15, %v4700_v37, %v4844_v31  ;;  %v4704_v46 = vadd.f32 %v14911_v14, %v4625_v20  ;;  %v4623_v34 = vld [vmem:[#allocation2 + $0x1d0] sm:$0xff]  ;;  %2511 = vst.msk [vmem:[#allocation2 + $0x220] sm:$0xff] %vm383_vm1, %v2495_v41  ;;  %12565 = vmatprep.subr.bf16.mxu0 %v14983_v58  ;;  %v2988_v49 = vld [vmem:[#allocation2 + $0xc1] sm:$0xff] }
 0x4e0   : > { %4988 = vst.msk [vmem:[#allocation2 + $0x1c0] sm:$0xff] %vm383_vm1, %v4916_v32  ;;  %v4914_v29 = vsel %vm4770_vm3, %v4698_v27, %v4842_v42  ;;  %v4702_v43 = vadd.f32 %v14911_v14, %v4623_v34  ;;  %2510 = vst.msk [vmem:[#allocation2 + $0x210] sm:$0xff] %vm383_vm1, %v2494_v23  ;;  %v11886_v39 = vpop.f32.mrb[128].mxu1  ;;  %v2986_v27 = vld [vmem:[#allocation2 + $0xa1] sm:$0xff] }
 0x4e1   : > { %4986 = vst.msk [vmem:[#allocation2 + $0x1b0] sm:$0xff] %vm383_vm1, %v4914_v29  ;;  %vm4776_vm4 = vcmp.ge.f32.partialorder %v4704_v46, 0.0  ;;  %v4848_v51 = vmul.f32 0.01, %v4704_v46  ;;  %v2995_v33 = vadd.f32 %v11886_v39, %v2979_v0  ;;  %v2898_v3 = vpop.f32.mrb[129].mxu1 }
 0x4e2   : > { %vm4774_vm5 = vcmp.ge.f32.partialorder %v4702_v43, 0.0  ;;  %v4846_v2 = vmul.f32 0.01, %v4702_v43  ;;  %v4629_v16 = vld [vmem:[#allocation2 + $0x200] sm:$0xff]  ;;  %v2994_v25 = vadd.f32 %v2978_v62, %v2898_v3  ;;  %v2993_v3 = vld [vmem:[#allocation2 + $0x111] sm:$0xff] }
 0x4e3   : > { %v4920_v55 = vsel %vm4776_vm4, %v4704_v46, %v4848_v51  ;;  %v4708_v12 = vadd.f32 %v14911_v14, %v4629_v16  ;;  %v4627_v5 = vld [vmem:[#allocation2 + $0x1f0] sm:$0xff]  ;;  %3011 = vst.msk [vmem:[#allocation2 + $0x21] sm:$0xff] %vm383_vm1, %v2995_v33  ;;  %v2990_v62 = vld [vmem:[#allocation2 + $0xe1] sm:$0xff] }
 0x4e4   : > { %4992 = vst.msk [vmem:[#allocation2 + $0x1e0] sm:$0xff] %vm383_vm1, %v4920_v55  ;;  %v4918_v1 = vsel %vm4774_vm5, %v4702_v43, %v4846_v2  ;;  %v4706_v30 = vadd.f32 %v14911_v14, %v4627_v5  ;;  %3010 = vst.msk [vmem:[#allocation2 + $0x11] sm:$0xff] %vm383_vm1, %v2994_v25  ;;  %v11889_v10 = vpop.f32.mrb[130].mxu1  ;;  %v2991_v46 = vld [vmem:[#allocation2 + $0xf1] sm:$0xff]  ;;  %v2992_v16 = vld [vmem:[#allocation2 + $0x101] sm:$0xff] }
 0x4e5   : > { %4990 = vst.msk [vmem:[#allocation2 + $0x1d0] sm:$0xff] %vm383_vm1, %v4918_v1  ;;  %vm4780_vm6 = vcmp.ge.f32.partialorder %v4708_v12, 0.0  ;;  %v4852_v48 = vmul.f32 0.01, %v4708_v12  ;;  %v2997_v13 = vadd.f32 %v11889_v10, %v2981_v19  ;;  %v2908_v57 = vpop.f32.mrb[131].mxu1 }
 0x4e6   : > { %vm4778_vm7 = vcmp.ge.f32.partialorder %v4706_v30, 0.0  ;;  %v4850_v4 = vmul.f32 0.01, %v4706_v30  ;;  %v4633_v17 = vld [vmem:[#allocation2 + $0x220] sm:$0xff]  ;;  %v2996_v54 = vadd.f32 %v2980_v53, %v2908_v57 }
 0x4e7   : > { %v4924_v45 = vsel %vm4780_vm6, %v4708_v12, %v4852_v48  ;;  %v4712_v9 = vadd.f32 %v14911_v14, %v4633_v17  ;;  %v4631_v40 = vld [vmem:[#allocation2 + $0x210] sm:$0xff]  ;;  %3013 = vst.msk [vmem:[#allocation2 + $0x41] sm:$0xff] %vm383_vm1, %v2997_v13 }
 0x4e8   : > { %4996 = vst.msk [vmem:[#allocation2 + $0x200] sm:$0xff] %vm383_vm1, %v4924_v45  ;;  %v4922_v28 = vsel %vm4778_vm7, %v4706_v30, %v4850_v4  ;;  %v4710_v59 = vadd.f32 %v14911_v14, %v4631_v40  ;;  %3012 = vst.msk [vmem:[#allocation2 + $0x31] sm:$0xff] %vm383_vm1, %v2996_v54  ;;  %v11892_v6 = vpop.f32.mrb[132].mxu1 }
 0x4e9   : > { %4994 = vst.msk [vmem:[#allocation2 + $0x1f0] sm:$0xff] %vm383_vm1, %v4922_v28  ;;  %vm4784_vm0 = vcmp.ge.f32.partialorder %v4712_v9, 0.0  ;;  %v4856_v18 = vmul.f32 0.01, %v4712_v9  ;;  %v2999_v56 = vadd.f32 %v11892_v6, %v2983_v36  ;;  %v2918_v8 = vpop.f32.mrb[133].mxu1 }
 0x4ea   : > { %vm4782_vm8 = vcmp.ge.f32.partialorder %v4710_v59, 0.0  ;;  %v4854_v61 = vmul.f32 0.01, %v4710_v59  ;;  %v2998_v15 = vadd.f32 %v2982_v7, %v2918_v8  ;;  %v3492_v53 = vld [vmem:[#allocation2 + $0x20] sm:$0xff] }
 0x4eb   : > { %v4928_v50 = vsel %vm4784_vm0, %v4712_v9, %v4856_v18  ;;  %3015 = vst.msk [vmem:[#allocation2 + $0x61] sm:$0xff] %vm383_vm1, %v2999_v56  ;;  %v3491_v10 = vld [vmem:[#allocation2 + $0x10] sm:$0xff] }
 0x4ec   : > { %5000 = vst.msk [vmem:[#allocation2 + $0x220] sm:$0xff] %vm383_vm1, %v4928_v50  ;;  %v4926_v22 = vsel %vm4782_vm8, %v4710_v59, %v4854_v61  ;;  %3014 = vst.msk [vmem:[#allocation2 + $0x51] sm:$0xff] %vm383_vm1, %v2998_v15  ;;  %v11895_v47 = vpop.f32.mrb[134].mxu1 }
 0x4ed   : > { %4998 = vst.msk [vmem:[#allocation2 + $0x210] sm:$0xff] %vm383_vm1, %v4926_v22  ;;  %v3001_v44 = vadd.f32 %v11895_v47, %v2985_v21  ;;  %v2928_v37 = vpop.f32.mrb[135].mxu1 }
 0x4ee   : > { %v3000_v63 = vadd.f32 %v2984_v26, %v2928_v37  ;;  %v3494_v57 = vld [vmem:[#allocation2 + $0x40] sm:$0xff] }
 0x4ef   : > { %3017 = vst.msk [vmem:[#allocation2 + $0x81] sm:$0xff] %vm383_vm1, %v3001_v44  ;;  %v3493_v54 = vld [vmem:[#allocation2 + $0x30] sm:$0xff] }
 0x4f0   : > { %3016 = vst.msk [vmem:[#allocation2 + $0x71] sm:$0xff] %vm383_vm1, %v3000_v63  ;;  %v11898_v60 = vpop.f32.mrb[136].mxu1 }
 0x4f1   : > { %v3003_v52 = vadd.f32 %v11898_v60, %v2987_v35  ;;  %v2938_v31 = vpop.f32.mrb[137].mxu1 }
 0x4f2   : > { %v3002_v41 = vadd.f32 %v2986_v27, %v2938_v31  ;;  %v3496_v7 = vld [vmem:[#allocation2 + $0x60] sm:$0xff] }
 0x4f3   : > { %3019 = vst.msk [vmem:[#allocation2 + $0xb1] sm:$0xff] %vm383_vm1, %v3003_v52  ;;  %v3495_v18 = vld [vmem:[#allocation2 + $0x50] sm:$0xff] }
 0x4f4   : > { %3018 = vst.msk [vmem:[#allocation2 + $0xa1] sm:$0xff] %vm383_vm1, %v3002_v41  ;;  %v11901_v42 = vpop.f32.mrb[138].mxu1 }
 0x4f5   : > { %v3005_v20 = vadd.f32 %v11901_v42, %v2989_v38  ;;  %v2948_v23 = vpop.f32.mrb[139].mxu1 }
 0x4f6   : > { %v4582_v0 = vld [vmem:[#allocation2 + $0x88] sm:$0x1]  ;;  %v3004_v32 = vadd.f32 %v2988_v49, %v2948_v23  ;;  %v3498_v24 = vld [vmem:[#allocation2 + $0x80] sm:$0xff] }
 0x4f7   : > { %v4661_v34 = vadd.f32 %v14911_v14, %v4582_v0  ;;  %3021 = vst.msk [vmem:[#allocation2 + $0xd1] sm:$0xff] %vm383_vm1, %v3005_v20  ;;  %v3497_v21 = vld [vmem:[#allocation2 + $0x70] sm:$0xff] }
 0x4f8   : > { %3020 = vst.msk [vmem:[#allocation2 + $0xc1] sm:$0xff] %vm383_vm1, %v3004_v32  ;;  %v11904_v29 = vpop.f32.mrb[140].mxu1 }
 0x4f9   : > { %vm4733_vm9 = vcmp.ge.f32.partialorder %v4661_v34, 0.0  ;;  %v4805_v43 = vmul.f32 0.01, %v4661_v34  ;;  %v3007_v39 = vadd.f32 %v11904_v29, %v2991_v46  ;;  %v2958_v51 = vpop.f32.mrb[141].mxu1 }
 0x4fa   : > { %v3006_v33 = vadd.f32 %v2990_v62, %v2958_v51  ;;  %v3500_v22 = vld [vmem:[#allocation2 + $0xb0] sm:$0xff] }
 0x4fb   : > { %v4877_v2 = vsel %vm4733_vm9, %v4661_v34, %v4805_v43  ;;  %3023 = vst.msk [vmem:[#allocation2 + $0xf1] sm:$0xff] %vm383_vm1, %v3007_v39  ;;  %v3499_v37 = vld [vmem:[#allocation2 + $0xa0] sm:$0xff] }
 0x4fc   : > { %4949 = vst.msk [vmem:[#allocation2 + $0x88] sm:$0x1] %vm385_vm2, %v4877_v2  ;;  %v11907_v25 = vpop.f32.mrb[142].mxu1  ;;  %v4004_v2 = vld [vmem:[#allocation2 + $0x1] sm:$0xff] }
 0x4fd   : > { %3022 = vst.msk [vmem:[#allocation2 + $0xe1] sm:$0xff] %vm383_vm1, %v3006_v33  ;;  %v3009_v19 = vadd.f32 %v11907_v25, %v2993_v3  ;;  %v2968_v55 = vpop.f32.mrb[143].mxu1 }
 0x4fe   : > { %v3008_v12 = vadd.f32 %v2992_v16, %v2968_v55  ;;  %v3502_v27 = vld [vmem:[#allocation2 + $0xd0] sm:$0xff] }
 0x4ff   : > { %3025 = vst.msk [vmem:[#allocation2 + $0x111] sm:$0xff] %vm383_vm1, %v3009_v19  ;;  %v3501_v31 = vld [vmem:[#allocation2 + $0xc0] sm:$0xff] }
 0x500   : > { %3024 = vst.msk [vmem:[#allocation2 + $0x101] sm:$0xff] %vm383_vm1, %v3008_v12  ;;  %v11950_v5 = vpop.f32.mrb[144].mxu1 }
 0x501   : > { %v3508_v1 = vadd.f32 %v11950_v5, %v3492_v53  ;;  %v3412_v30 = vpop.f32.mrb[145].mxu1 }
 0x502   : > { %v3507_v48 = vadd.f32 %v3491_v10, %v3412_v30  ;;  %v3504_v20 = vld [vmem:[#allocation2 + $0xf0] sm:$0xff] }
 0x503   : > { %3524 = vst.msk [vmem:[#allocation2 + $0x20] sm:$0xff] %vm383_vm1, %v3508_v1 }
 0x504   : > { %3523 = vst.msk [vmem:[#allocation2 + $0x10] sm:$0xff] %vm383_vm1, %v3507_v48  ;;  %v11953_v13 = vpop.f32.mrb[146].mxu1  ;;  %v3503_v46 = vld [vmem:[#allocation2 + $0xe0] sm:$0xff] }
 0x505   : > { %v3510_v4 = vadd.f32 %v11953_v13, %v3494_v57  ;;  %v3422_v17 = vpop.f32.mrb[147].mxu1 }
 0x506   : > { %v4600_v36 = vld [vmem:[#allocation2 + $0x118] sm:$0x1]  ;;  %v3509_v45 = vadd.f32 %v3493_v54, %v3422_v17  ;;  %v3506_v43 = vld [vmem:[#allocation2 + $0x110] sm:$0xff] }
 0x507   : > { %v4679_v9 = vadd.f32 %v14911_v14, %v4600_v36  ;;  %3526 = vst.msk [vmem:[#allocation2 + $0x40] sm:$0xff] %vm383_vm1, %v3510_v4  ;;  %v3505_v33 = vld [vmem:[#allocation2 + $0x100] sm:$0xff] }
 0x508   : > { %3525 = vst.msk [vmem:[#allocation2 + $0x30] sm:$0xff] %vm383_vm1, %v3509_v45  ;;  %v11956_v40 = vpop.f32.mrb[148].mxu1 }
 0x509   : > { %vm4751_vm10 = vcmp.ge.f32.partialorder %v4679_v9, 0.0  ;;  %v4823_v28 = vmul.f32 0.01, %v4679_v9  ;;  %v3512_v59 = vadd.f32 %v11956_v40, %v3496_v7  ;;  %v3432_v6 = vpop.f32.mrb[149].mxu1 }
 0x50a   : > { %v3511_v56 = vadd.f32 %v3495_v18, %v3432_v6  ;;  %v4006_v10 = vld [vmem:[#allocation2 + $0x21] sm:$0xff] }
 0x50b   : > { %v4895_v8 = vsel %vm4751_vm10, %v4679_v9, %v4823_v28  ;;  %3528 = vst.msk [vmem:[#allocation2 + $0x60] sm:$0xff] %vm383_vm1, %v3512_v59  ;;  %v4005_v25 = vld [vmem:[#allocation2 + $0x11] sm:$0xff] }
 0x50c   : > { %4967 = vst.msk [vmem:[#allocation2 + $0x118] sm:$0x1] %vm385_vm2, %v4895_v8  ;;  %v11959_v11 = vpop.f32.mrb[150].mxu1 }
 0x50d   : > { %3527 = vst.msk [vmem:[#allocation2 + $0x50] sm:$0xff] %vm383_vm1, %v3511_v56  ;;  %v3514_v61 = vadd.f32 %v11959_v11, %v3498_v24  ;;  %v3442_v15 = vpop.f32.mrb[151].mxu1 }
 0x50e   : > { %v3513_v50 = vadd.f32 %v3497_v21, %v3442_v15  ;;  %v4008_v9 = vld [vmem:[#allocation2 + $0x41] sm:$0xff] }
 0x50f   : > { %3530 = vst.msk [vmem:[#allocation2 + $0x80] sm:$0xff] %vm383_vm1, %v3514_v61  ;;  %v4007_v53 = vld [vmem:[#allocation2 + $0x31] sm:$0xff] }
 0x510   : > { %3529 = vst.msk [vmem:[#allocation2 + $0x70] sm:$0xff] %vm383_vm1, %v3513_v50  ;;  %v11962_v26 = vpop.f32.mrb[152].mxu1 }
 0x511   : > { %v3516_v47 = vadd.f32 %v11962_v26, %v3500_v22  ;;  %v3452_v44 = vpop.f32.mrb[153].mxu1 }
 0x512   : > { %v3515_v63 = vadd.f32 %v3499_v37, %v3452_v44  ;;  %v4010_v15 = vld [vmem:[#allocation2 + $0x61] sm:$0xff]  ;;  %v4012_v37 = vld [vmem:[#allocation2 + $0x91] sm:$0xff] }
 0x513   : > { %3532 = vst.msk [vmem:[#allocation2 + $0xb0] sm:$0xff] %vm383_vm1, %v3516_v47 }
 0x514   : > { %3531 = vst.msk [vmem:[#allocation2 + $0xa0] sm:$0xff] %vm383_vm1, %v3515_v63  ;;  %v11965_v35 = vpop.f32.mrb[154].mxu1  ;;  %v4009_v17 = vld [vmem:[#allocation2 + $0x51] sm:$0xff] }
 0x515   : > { %v3518_v60 = vadd.f32 %v11965_v35, %v3502_v27  ;;  %v3462_v52 = vpop.f32.mrb[155].mxu1 }
 0x516   : > { %v4581_v41 = vld [vmem:[#allocation2 + $0x80] sm:$0xff]  ;;  %v3517_v38 = vadd.f32 %v3501_v31, %v3462_v52 }
 0x517   : > { %v4660_v49 = vadd.f32 %v14911_v14, %v4581_v41  ;;  %3534 = vst.msk [vmem:[#allocation2 + $0xd0] sm:$0xff] %vm383_vm1, %v3518_v60  ;;  %v4011_v8 = vld [vmem:[#allocation2 + $0x71] sm:$0xff] }
 0x518   : > { %3533 = vst.msk [vmem:[#allocation2 + $0xc0] sm:$0xff] %vm383_vm1, %v3517_v38  ;;  %v11968_v42 = vpop.f32.mrb[156].mxu1 }
 0x519   : > { %vm4732_vm11 = vcmp.ge.f32.partialorder %v4660_v49, 0.0  ;;  %v4804_v23 = vmul.f32 0.01, %v4660_v49  ;;  %v3520_v0 = vadd.f32 %v11968_v42, %v3504_v20  ;;  %v3472_v32 = vpop.f32.mrb[157].mxu1 }
 0x51a   : > { %v3519_v34 = vadd.f32 %v3503_v46, %v3472_v32 }
 0x51b   : > { %v4876_v62 = vsel %vm4732_vm11, %v4660_v49, %v4804_v23  ;;  %3536 = vst.msk [vmem:[#allocation2 + $0xf0] sm:$0xff] %vm383_vm1, %v3520_v0  ;;  %v4013_v60 = vld [vmem:[#allocation2 + $0xa1] sm:$0xff] }
 0x51c   : > { %4948 = vst.msk [vmem:[#allocation2 + $0x80] sm:$0xff] %vm383_vm1, %v4876_v62  ;;  %3535 = vst.msk [vmem:[#allocation2 + $0xe0] sm:$0xff] %vm383_vm1, %v3519_v34  ;;  %v11971_v29 = vpop.f32.mrb[158].mxu1 }
 0x51d   : > { %v3522_v39 = vadd.f32 %v11971_v29, %v3506_v43  ;;  %v3482_v51 = vpop.f32.mrb[159].mxu1 }
 0x51e   : > { %v3521_v3 = vadd.f32 %v3505_v33, %v3482_v51  ;;  %v4014_v51 = vld [vmem:[#allocation2 + $0xb1] sm:$0xff] }
 0x51f   : > { %3538 = vst.msk [vmem:[#allocation2 + $0x110] sm:$0xff] %vm383_vm1, %v3522_v39  ;;  %v4015_v62 = vld [vmem:[#allocation2 + $0xc1] sm:$0xff] }
 0x520   : > { %3537 = vst.msk [vmem:[#allocation2 + $0x100] sm:$0xff] %vm383_vm1, %v3521_v3  ;;  %v12014_v16 = vpop.f32.mrb[160].mxu1 }
 0x521   : > { %v4021_v19 = vadd.f32 %v12014_v16, %v4005_v25  ;;  %v3925_v55 = vpop.f32.mrb[161].mxu1 }
 0x522   : > { %v4020_v12 = vadd.f32 %v4004_v2, %v3925_v55 }
 0x523   : > { %4037 = vst.msk [vmem:[#allocation2 + $0x11] sm:$0xff] %vm383_vm1, %v4021_v19 }
 0x524   : > { %4036 = vst.msk [vmem:[#allocation2 + $0x1] sm:$0xff] %vm383_vm1, %v4020_v12  ;;  %v12017_v5 = vpop.f32.mrb[162].mxu1 }
 0x525   : > { %v4023_v1 = vadd.f32 %v12017_v5, %v4007_v53  ;;  %v3935_v30 = vpop.f32.mrb[163].mxu1  ;;  %v4017_v53 = vld [vmem:[#allocation2 + $0xe1] sm:$0xff] }
 0x526   : > { %v4599_v48 = vld [vmem:[#allocation2 + $0x110] sm:$0xff]  ;;  %v4022_v13 = vadd.f32 %v4006_v10, %v3935_v30 }
 0x527   : > { %v4678_v57 = vadd.f32 %v14911_v14, %v4599_v48  ;;  %4039 = vst.msk [vmem:[#allocation2 + $0x31] sm:$0xff] %vm383_vm1, %v4023_v1  ;;  %v4016_v48 = vld [vmem:[#allocation2 + $0xd1] sm:$0xff] }
 0x528   : > { %4038 = vst.msk [vmem:[#allocation2 + $0x21] sm:$0xff] %vm383_vm1, %v4022_v13  ;;  %v12020_v4 = vpop.f32.mrb[164].mxu1 }
 0x529   : > { %vm4750_vm12 = vcmp.ge.f32.partialorder %v4678_v57, 0.0  ;;  %v4822_v54 = vmul.f32 0.01, %v4678_v57  ;;  %v4025_v36 = vadd.f32 %v12020_v4, %v4009_v17  ;;  %v3945_v45 = vpop.f32.mrb[165].mxu1 }
 0x52a   : > { %v4568_v40 = vld [vmem:[#allocation2 + $0x18] sm:$0x1]  ;;  %v4024_v7 = vadd.f32 %v4008_v9, %v3945_v45 }
 0x52b   : > { %v4894_v28 = vsel %vm4750_vm12, %v4678_v57, %v4822_v54  ;;  %v4647_v59 = vadd.f32 %v14911_v14, %v4568_v40  ;;  %v4566_v6 = vld [vmem:[#allocation2 + $0x8] sm:$0x1]  ;;  %4041 = vst.msk [vmem:[#allocation2 + $0x51] sm:$0xff] %vm383_vm1, %v4025_v36 }
 0x52c   : > { %4966 = vst.msk [vmem:[#allocation2 + $0x110] sm:$0xff] %vm383_vm1, %v4894_v28  ;;  %v4645_v18 = vadd.f32 %v14911_v14, %v4566_v6  ;;  %4040 = vst.msk [vmem:[#allocation2 + $0x41] sm:$0xff] %vm383_vm1, %v4024_v7  ;;  %v12023_v56 = vpop.f32.mrb[166].mxu1  ;;  %v4019_v7 = vld [vmem:[#allocation2 + $0x101] sm:$0xff] }
 0x52d   : > { %vm4719_vm13 = vcmp.ge.f32.partialorder %v4647_v59, 0.0  ;;  %v4791_v11 = vmul.f32 0.01, %v4647_v59  ;;  %v4027_v24 = vadd.f32 %v12023_v56, %v4011_v8  ;;  %v3955_v61 = vpop.f32.mrb[167].mxu1 }
 0x52e   : > { %vm4717_vm14 = vcmp.ge.f32.partialorder %v4645_v18, 0.0  ;;  %v4789_v21 = vmul.f32 0.01, %v4645_v18  ;;  %v4572_v50 = vld [vmem:[#allocation2 + $0x38] sm:$0x1]  ;;  %v4026_v26 = vadd.f32 %v4010_v15, %v3955_v61 }
 0x52f   : > { %v4863_v22 = vsel %vm4719_vm13, %v4647_v59, %v4791_v11  ;;  %v4651_v47 = vadd.f32 %v14911_v14, %v4572_v50  ;;  %v4570_v44 = vld [vmem:[#allocation2 + $0x28] sm:$0x1]  ;;  %4043 = vst.msk [vmem:[#allocation2 + $0x71] sm:$0xff] %vm383_vm1, %v4027_v24 }
 0x530   : > { %4935 = vst.msk [vmem:[#allocation2 + $0x18] sm:$0x1] %vm385_vm2, %v4863_v22  ;;  %v4861_v63 = vsel %vm4717_vm14, %v4645_v18, %v4789_v21  ;;  %v4649_v35 = vadd.f32 %v14911_v14, %v4570_v44  ;;  %v12026_v27 = vpop.f32.mrb[168].mxu1  ;;  %v4018_v18 = vld [vmem:[#allocation2 + $0xf1] sm:$0xff] }
 0x531   : > { %4042 = vst.msk [vmem:[#allocation2 + $0x61] sm:$0xff] %vm383_vm1, %v4026_v26  ;;  %vm4723_vm15 = vcmp.ge.f32.partialorder %v4651_v47, 0.0  ;;  %v4795_v52 = vmul.f32 0.01, %v4651_v47  ;;  %v4029_v31 = vadd.f32 %v12026_v27, %v4013_v60  ;;  %v3965_v41 = vpop.f32.mrb[169].mxu1  ;;  %v4518_v22 = vld [vmem:[#allocation2 + $0x10] sm:$0xff] }
 0x532   : > { %4933 = vst.msk [vmem:[#allocation2 + $0x8] sm:$0x1] %vm385_vm2, %v4861_v63  ;;  %vm4721_vm3 = vcmp.ge.f32.partialorder %v4649_v35, 0.0  ;;  %v4793_v38 = vmul.f32 0.01, %v4649_v35  ;;  %v4028_v42 = vadd.f32 %v4012_v37, %v3965_v41  ;;  %v4517_v63 = vld [vmem:[#allocation2] sm:$0xff] }
 0x533   : > { %v4576_v49 = vld [vmem:[#allocation2 + $0x58] sm:$0x1]  ;;  %v4867_v20 = vsel %vm4723_vm15, %v4651_v47, %v4795_v52  ;;  %v4574_v0 = vld [vmem:[#allocation2 + $0x48] sm:$0x1]  ;;  %4045 = vst.msk [vmem:[#allocation2 + $0xa1] sm:$0xff] %vm383_vm1, %v4029_v31 }
 0x534   : > { %v4655_v23 = vadd.f32 %v14911_v14, %v4576_v49  ;;  %4939 = vst.msk [vmem:[#allocation2 + $0x38] sm:$0x1] %vm385_vm2, %v4867_v20  ;;  %v4865_v32 = vsel %vm4721_vm3, %v4649_v35, %v4793_v38  ;;  %v4653_v46 = vadd.f32 %v14911_v14, %v4574_v0  ;;  %v12029_v34 = vpop.f32.mrb[170].mxu1  ;;  %v4520_v20 = vld [vmem:[#allocation2 + $0x30] sm:$0xff] }
 0x535   : > { %4044 = vst.msk [vmem:[#allocation2 + $0x91] sm:$0xff] %vm383_vm1, %v4028_v42  ;;  %v4031_v43 = vadd.f32 %v12029_v34, %v4015_v62  ;;  %v3975_v39 = vpop.f32.mrb[171].mxu1 }
 0x536   : > { %4937 = vst.msk [vmem:[#allocation2 + $0x28] sm:$0x1] %vm385_vm2, %v4865_v32  ;;  %vm4727_vm4 = vcmp.ge.f32.partialorder %v4655_v23, 0.0  ;;  %v4799_v29 = vmul.f32 0.01, %v4655_v23  ;;  %vm4725_vm5 = vcmp.ge.f32.partialorder %v4653_v46, 0.0  ;;  %v4030_v2 = vadd.f32 %v4014_v51, %v3975_v39 }
 0x537   : > { %v4797_v33 = vmul.f32 0.01, %v4653_v46  ;;  %v4580_v3 = vld [vmem:[#allocation2 + $0x78] sm:$0x1]  ;;  %4047 = vst.msk [vmem:[#allocation2 + $0xc1] sm:$0xff] %vm383_vm1, %v4031_v43 }
 0x538   : > { %v4871_v16 = vsel %vm4727_vm4, %v4655_v23, %v4799_v29  ;;  %v4659_v25 = vadd.f32 %v14911_v14, %v4580_v3  ;;  %v4578_v19 = vld [vmem:[#allocation2 + $0x68] sm:$0x1]  ;;  %4046 = vst.msk [vmem:[#allocation2 + $0xb1] sm:$0xff] %vm383_vm1, %v4030_v2  ;;  %v12032_v5 = vpop.f32.mrb[172].mxu1 }
 0x539   : > { %4943 = vst.msk [vmem:[#allocation2 + $0x58] sm:$0x1] %vm385_vm2, %v4871_v16  ;;  %v4869_v55 = vsel %vm4725_vm5, %v4653_v46, %v4797_v33  ;;  %v4657_v12 = vadd.f32 %v14911_v14, %v4578_v19  ;;  %v4033_v30 = vadd.f32 %v12032_v5, %v4017_v53  ;;  %v3985_v10 = vpop.f32.mrb[173].mxu1  ;;  %v4519_v46 = vld [vmem:[#allocation2 + $0x20] sm:$0xff]  ;;  %v4522_v16 = vld [vmem:[#allocation2 + $0x50] sm:$0xff] }
 0x53a   : > { %4941 = vst.msk [vmem:[#allocation2 + $0x48] sm:$0x1] %vm385_vm2, %v4869_v55  ;;  %vm4731_vm6 = vcmp.ge.f32.partialorder %v4659_v25, 0.0  ;;  %v4803_v1 = vmul.f32 0.01, %v4659_v25  ;;  %v4032_v4 = vadd.f32 %v4016_v48, %v3985_v10 }
 0x53b   : > { %vm4729_vm7 = vcmp.ge.f32.partialorder %v4657_v12, 0.0  ;;  %v4801_v13 = vmul.f32 0.01, %v4657_v12  ;;  %v4586_v57 = vld [vmem:[#allocation2 + $0xa8] sm:$0x1]  ;;  %4049 = vst.msk [vmem:[#allocation2 + $0xe1] sm:$0xff] %vm383_vm1, %v4033_v30 }
 0x53c   : > { %v4875_v17 = vsel %vm4731_vm6, %v4659_v25, %v4803_v1  ;;  %v4665_v54 = vadd.f32 %v14911_v14, %v4586_v57  ;;  %v4584_v36 = vld [vmem:[#allocation2 + $0x98] sm:$0x1]  ;;  %4048 = vst.msk [vmem:[#allocation2 + $0xd1] sm:$0xff] %vm383_vm1, %v4032_v4  ;;  %v12035_v40 = vpop.f32.mrb[174].mxu1 }
 0x53d   : > { %4947 = vst.msk [vmem:[#allocation2 + $0x78] sm:$0x1] %vm385_vm2, %v4875_v17  ;;  %v4873_v45 = vsel %vm4729_vm7, %v4657_v12, %v4801_v13  ;;  %v4663_v9 = vadd.f32 %v14911_v14, %v4584_v36  ;;  %v4035_v59 = vadd.f32 %v12035_v40, %v4019_v7  ;;  %v3995_v6 = vpop.f32.mrb[175].mxu1  ;;  %v4521_v12 = vld [vmem:[#allocation2 + $0x40] sm:$0xff]  ;;  %v4524_v17 = vld [vmem:[#allocation2 + $0x70] sm:$0xff] }
 0x53e   : > { %4945 = vst.msk [vmem:[#allocation2 + $0x68] sm:$0x1] %vm385_vm2, %v4873_v45  ;;  %vm4737_vm0 = vcmp.ge.f32.partialorder %v4665_v54, 0.0  ;;  %v4809_v28 = vmul.f32 0.01, %v4665_v54  ;;  %v4034_v11 = vadd.f32 %v4018_v18, %v3995_v6 }
 0x53f   : > { %vm4735_vm8 = vcmp.ge.f32.partialorder %v4663_v9, 0.0  ;;  %v4807_v56 = vmul.f32 0.01, %v4663_v9  ;;  %v4590_v8 = vld [vmem:[#allocation2 + $0xc8] sm:$0x1]  ;;  %4051 = vst.msk [vmem:[#allocation2 + $0x101] sm:$0xff] %vm383_vm1, %v4035_v59 }
 0x540   : > { %v4881_v24 = vsel %vm4737_vm0, %v4665_v54, %v4809_v28  ;;  %v4669_v61 = vadd.f32 %v14911_v14, %v4590_v8  ;;  %v4588_v15 = vld [vmem:[#allocation2 + $0xb8] sm:$0x1]  ;;  %4050 = vst.msk [vmem:[#allocation2 + $0xf1] sm:$0xff] %vm383_vm1, %v4034_v11  ;;  %v12078_v26 = vpop.f32.mrb[176].mxu1  ;;  %v15086_v8 = vld [vmem:[%s16228_s4] ss:$0 sm:$0xff] }
 0x541   : > { %4953 = vst.msk [vmem:[#allocation2 + $0xa8] sm:$0x1] %vm385_vm2, %v4881_v24  ;;  %v4879_v21 = vsel %vm4735_vm8, %v4663_v9, %v4807_v56  ;;  %v4667_v50 = vadd.f32 %v14911_v14, %v4588_v15  ;;  %v4534_v44 = vadd.f32 %v12078_v26, %v4518_v22  ;;  %v4438_v37 = vpop.f32.mrb[177].mxu1  ;;  %v4523_v9 = vld [vmem:[#allocation2 + $0x60] sm:$0xff] }
 0x542   : > { %4951 = vst.msk [vmem:[#allocation2 + $0x98] sm:$0x1] %vm385_vm2, %v4879_v21  ;;  %vm4741_vm9 = vcmp.ge.f32.partialorder %v4669_v61, 0.0  ;;  %v4813_v47 = vmul.f32 0.01, %v4669_v61  ;;  %v4533_v60 = vadd.f32 %v4517_v63, %v4438_v37 }
 0x543   : > { %vm4739_vm10 = vcmp.ge.f32.partialorder %v4667_v50, 0.0  ;;  %v4811_v35 = vmul.f32 0.01, %v4667_v50  ;;  %v4594_v27 = vld [vmem:[#allocation2 + $0xe8] sm:$0x1]  ;;  %4550 = vst.msk [vmem:[#allocation2 + $0x10] sm:$0xff] %vm383_vm1, %v4534_v44 }
 0x544   : > { %v4885_v52 = vsel %vm4741_vm9, %v4669_v61, %v4813_v47  ;;  %v4673_v31 = vadd.f32 %v14911_v14, %v4594_v27  ;;  %v4592_v41 = vld [vmem:[#allocation2 + $0xd8] sm:$0x1]  ;;  %4549 = vst.msk [vmem:[#allocation2] sm:$0xff] %vm383_vm1, %v4533_v60  ;;  %v12081_v42 = vpop.f32.mrb[178].mxu1  ;;  %v4526_v61 = vld [vmem:[#allocation2 + $0xa0] sm:$0xff] }
 0x545   : > { %4957 = vst.msk [vmem:[#allocation2 + $0xc8] sm:$0x1] %vm385_vm2, %v4885_v52  ;;  %v4883_v38 = vsel %vm4739_vm10, %v4667_v50, %v4811_v35  ;;  %v4671_v49 = vadd.f32 %v14911_v14, %v4592_v41  ;;  %v4536_v0 = vadd.f32 %v12081_v42, %v4520_v20  ;;  %v4448_v32 = vpop.f32.mrb[179].mxu1  ;;  %v4525_v50 = vld [vmem:[#allocation2 + $0x90] sm:$0xff]  ;;  %v4528_v52 = vld [vmem:[#allocation2 + $0xc0] sm:$0xff]  ;;  %v5023_v20 = vld [vmem:[%s16229_s5 + $0x18] sm:$0xff] }
 0x546   : > { %4955 = vst.msk [vmem:[#allocation2 + $0xb8] sm:$0x1] %vm385_vm2, %v4883_v38  ;;  %vm4745_vm11 = vcmp.ge.f32.partialorder %v4673_v31, 0.0  ;;  %v4817_v23 = vmul.f32 0.01, %v4673_v31  ;;  %v4535_v29 = vadd.f32 %v4519_v46, %v4448_v32  ;;  %v4527_v42 = vld [vmem:[#allocation2 + $0xb0] sm:$0xff] }
 0x547   : > { %vm4743_vm12 = vcmp.ge.f32.partialorder %v4671_v49, 0.0  ;;  %v4815_v34 = vmul.f32 0.01, %v4671_v49  ;;  %v4598_v62 = vld [vmem:[#allocation2 + $0x108] sm:$0x1]  ;;  %4552 = vst.msk [vmem:[#allocation2 + $0x30] sm:$0xff] %vm383_vm1, %v4536_v0 }
 0x548   : > { %v4889_v43 = vsel %vm4745_vm11, %v4673_v31, %v4817_v23  ;;  %v4677_v39 = vadd.f32 %v14911_v14, %v4598_v62  ;;  %v4596_v51 = vld [vmem:[#allocation2 + $0xf8] sm:$0x1]  ;;  %4551 = vst.msk [vmem:[#allocation2 + $0x20] sm:$0xff] %vm383_vm1, %v4535_v29  ;;  %v12084_v2 = vpop.f32.mrb[180].mxu1  ;;  %v5022_v31 = vld [vmem:[%s16229_s5 + $0x10] sm:$0xff]  ;;  %v5024_v29 = vld [vmem:[%s16229_s5 + $0x20] sm:$0xff] }
 0x549   : > { %4961 = vst.msk [vmem:[#allocation2 + $0xe8] sm:$0x1] %vm385_vm2, %v4889_v43  ;;  %v4887_v33 = vsel %vm4743_vm12, %v4671_v49, %v4815_v34  ;;  %v4675_v3 = vadd.f32 %v14911_v14, %v4596_v51  ;;  %v4538_v19 = vadd.f32 %v12084_v2, %v4522_v16  ;;  %v4458_v55 = vpop.f32.mrb[181].mxu1  ;;  %v12568_v2 = vpack.c.bf16 %v5023_v20, %v5022_v31  ;;  %v5025_v16 = vld [vmem:[%s16229_s5 + $0x28] sm:$0xff] }
 0x54a   : > { %4959 = vst.msk [vmem:[#allocation2 + $0xd8] sm:$0x1] %vm385_vm2, %v4887_v33  ;;  %vm4749_vm13 = vcmp.ge.f32.partialorder %v4677_v39, 0.0  ;;  %v4821_v25 = vmul.f32 0.01, %v4677_v39  ;;  %v4567_v53 = vld [vmem:[#allocation2 + $0x10] sm:$0xff]  ;;  %v4537_v1 = vadd.f32 %v4521_v12, %v4458_v55 }
 0x54b   : > { %vm4747_vm14 = vcmp.ge.f32.partialorder %v4675_v3, 0.0  ;;  %v4819_v5 = vmul.f32 0.01, %v4675_v3  ;;  %v4646_v10 = vadd.f32 %v14911_v14, %v4567_v53  ;;  %v4565_v48 = vld [vmem:[#allocation2] sm:$0xff]  ;;  %4554 = vst.msk [vmem:[#allocation2 + $0x50] sm:$0xff] %vm383_vm1, %v4538_v19  ;;  %v4529_v12 = vld [vmem:[#allocation2 + $0xd0] sm:$0xff] }
 0x54c   : > { %v4893_v30 = vsel %vm4749_vm13, %v4677_v39, %v4821_v25  ;;  %v4644_v57 = vadd.f32 %v14911_v14, %v4565_v48  ;;  %4553 = vst.msk [vmem:[#allocation2 + $0x40] sm:$0xff] %vm383_vm1, %v4537_v1  ;;  %v12087_v4 = vpop.f32.mrb[182].mxu1  ;;  %v4530_v33 = vld [vmem:[#allocation2 + $0xe0] sm:$0xff] }
 0x54d   : > { %4965 = vst.msk [vmem:[#allocation2 + $0x108] sm:$0x1] %vm385_vm2, %v4893_v30  ;;  %v4891_v13 = vsel %vm4747_vm14, %v4675_v3, %v4819_v5  ;;  %vm4718_vm15 = vcmp.ge.f32.partialorder %v4646_v10, 0.0  ;;  %v4790_v54 = vmul.f32 0.01, %v4646_v10  ;;  %v4540_v36 = vadd.f32 %v12087_v4, %v4524_v17  ;;  %v4468_v45 = vpop.f32.mrb[183].mxu1 }
 0x54e   : > { %4963 = vst.msk [vmem:[#allocation2 + $0xf8] sm:$0x1] %vm385_vm2, %v4891_v13  ;;  %vm4716_vm3 = vcmp.ge.f32.partialorder %v4644_v57, 0.0  ;;  %v4788_v40 = vmul.f32 0.01, %v4644_v57  ;;  %v4571_v7 = vld [vmem:[#allocation2 + $0x30] sm:$0xff]  ;;  %v4539_v28 = vadd.f32 %v4523_v9, %v4468_v45  ;;  %v12572_v9 = vpack.c.bf16 %v5025_v16, %v5024_v29 }
 0x54f   : > { %v4862_v59 = vsel %vm4718_vm15, %v4646_v10, %v4790_v54  ;;  %v4650_v6 = vadd.f32 %v14911_v14, %v4571_v7  ;;  %v4569_v18 = vld [vmem:[#allocation2 + $0x20] sm:$0xff]  ;;  %4556 = vst.msk [vmem:[#allocation2 + $0x70] sm:$0xff] %vm383_vm1, %v4540_v36 }
 0x550   : > { %4934 = vst.msk [vmem:[#allocation2 + $0x10] sm:$0xff] %vm383_vm1, %v4862_v59  ;;  %v4860_v56 = vsel %vm4716_vm3, %v4644_v57, %v4788_v40  ;;  %v4648_v11 = vadd.f32 %v15086_v8, %v4569_v18  ;;  %4555 = vst.msk [vmem:[#allocation2 + $0x60] sm:$0xff] %vm383_vm1, %v4539_v28  ;;  %v12090_v24 = vpop.f32.mrb[184].mxu1  ;;  %v5026_v57 = vld [vmem:[%s16229_s5 + $0x30] sm:$0xff]  ;;  %v4532_v36 = vld [vmem:[#allocation2 + $0x100] sm:$0xff] }
 0x551   : > { %4932 = vst.msk [vmem:[#allocation2] sm:$0xff] %vm383_vm1, %v4860_v56  ;;  %vm4722_vm2 = vcmp.ge.f32.partialorder %v4650_v6, 0.0  ;;  %v4794_v14 = vmul.f32 0.01, %v4650_v6  ;;  %v4542_v15 = vadd.f32 %v12090_v24, %v4526_v61  ;;  %v4478_v21 = vpop.f32.mrb[185].mxu1  ;;  %v4531_v59 = vld [vmem:[#allocation2 + $0xf0] sm:$0xff] }
 0x552   : > { %vm4720_vm4 = vcmp.ge.f32.partialorder %v4648_v11, 0.0  ;;  %v4792_v26 = vmul.f32 0.01, %v4648_v11  ;;  %v4575_v22 = vld [vmem:[#allocation2 + $0x50] sm:$0xff]  ;;  %v4541_v47 = vadd.f32 %v4525_v50, %v4478_v21 }
 0x553   : > { %v4866_v44 = vsel %vm4722_vm2, %v4650_v6, %v4794_v14  ;;  %v4654_v37 = vadd.f32 %v15086_v8, %v4575_v22  ;;  %v4573_v63 = vld [vmem:[#allocation2 + $0x40] sm:$0xff]  ;;  %4558 = vst.msk [vmem:[#allocation2 + $0xa0] sm:$0xff] %vm383_vm1, %v4542_v15 }
 0x554   : > { %4938 = vst.msk [vmem:[#allocation2 + $0x30] sm:$0xff] %vm383_vm1, %v4866_v44  ;;  %v4864_v35 = vsel %vm4720_vm4, %v4648_v11, %v4792_v26  ;;  %v4652_v27 = vadd.f32 %v15086_v8, %v4573_v63  ;;  %4557 = vst.msk [vmem:[#allocation2 + $0x90] sm:$0xff] %vm383_vm1, %v4541_v47  ;;  %v12093_v60 = vpop.f32.mrb[186].mxu1  ;;  %v5454_v44 = vld [vmem:[%s16229_s5 + $0x80] sm:$0xff] }
 0x555   : > { %4936 = vst.msk [vmem:[#allocation2 + $0x20] sm:$0xff] %vm383_vm1, %v4864_v35  ;;  %vm4726_vm5 = vcmp.ge.f32.partialorder %v4654_v37, 0.0  ;;  %v4798_v41 = vmul.f32 0.01, %v4654_v37  ;;  %v4544_v38 = vadd.f32 %v12093_v60, %v4528_v52  ;;  %v4488_v49 = vpop.f32.mrb[187].mxu1 }
 0x556   : > { %vm4724_vm6 = vcmp.ge.f32.partialorder %v4652_v27, 0.0  ;;  %v4796_v23 = vmul.f32 0.01, %v4652_v27  ;;  %v4579_v0 = vld [vmem:[#allocation2 + $0x70] sm:$0xff]  ;;  %v4543_v32 = vadd.f32 %v4527_v42, %v4488_v49 }
 0x557   : > { %v4870_v46 = vsel %vm4726_vm5, %v4654_v37, %v4798_v41  ;;  %v4658_v34 = vadd.f32 %v15086_v8, %v4579_v0  ;;  %v4577_v62 = vld [vmem:[#allocation2 + $0x60] sm:$0xff]  ;;  %4560 = vst.msk [vmem:[#allocation2 + $0xc0] sm:$0xff] %vm383_vm1, %v4544_v38  ;;  %v15116_v5 = vld [vmem:[#allocation2 + $0x11] sm:$0xff]  ;;  %v5455_v37 = vld [vmem:[%s16229_s5 + $0x88] sm:$0xff] }
 0x558   : > { %4942 = vst.msk [vmem:[#allocation2 + $0x50] sm:$0xff] %vm383_vm1, %v4870_v46  ;;  %v4868_v43 = vsel %vm4724_vm6, %v4652_v27, %v4796_v23  ;;  %v4656_v39 = vadd.f32 %v15086_v8, %v4577_v62  ;;  %4559 = vst.msk [vmem:[#allocation2 + $0xb0] sm:$0xff] %vm383_vm1, %v4543_v32  ;;  %v12096_v51 = vpop.f32.mrb[188].mxu1  ;;  %v5028_v3 = vld [vmem:[#allocation2 + $0x1] sm:$0xff]  ;;  %v12580_v49 = vpack.c.bf16 %v5455_v37, %v5454_v44  ;;  %v5689_v37 = vld [vmem:[%s16229_s5 + $0xd0] sm:$0xff] }
 0x559   : > { %4940 = vst.msk [vmem:[#allocation2 + $0x40] sm:$0xff] %vm383_vm1, %v4868_v43  ;;  %vm4730_vm7 = vcmp.ge.f32.partialorder %v4658_v34, 0.0  ;;  %v4802_v25 = vmul.f32 0.01, %v4658_v34  ;;  %v4546_v19 = vadd.f32 %v12096_v51, %v4530_v33  ;;  %v4498_v55 = vpop.f32.mrb[189].mxu1  ;;  %12116 = vmatprep.mubr.msk.f32.mxu0 %vm383_vm1, %v5028_v3 }
 0x55a   : > { %vm4728_vm0 = vcmp.ge.f32.partialorder %v4656_v39, 0.0  ;;  %v4800_v53 = vmul.f32 0.01, %v4656_v39  ;;  %v4585_v1 = vld [vmem:[#allocation2 + $0xa0] sm:$0xff]  ;;  %v4545_v30 = vadd.f32 %v4529_v12, %v4498_v55  ;;  %12117 = vmatmul.mubr.msk.f32.vlgmr.msra.gmra.mrb[64].mxu0 %vm383_vm1, %v15116_v5 }
 0x55b   : > { %v4874_v10 = vsel %vm4730_vm7, %v4658_v34, %v4802_v25  ;;  %v4664_v48 = vadd.f32 %v15086_v8, %v4585_v1  ;;  %v4583_v13 = vld [vmem:[#allocation2 + $0x90] sm:$0xff]  ;;  %4562 = vst.msk [vmem:[#allocation2 + $0xe0] sm:$0xff] %vm383_vm1, %v4546_v19  ;;  %12567 = vmatpush3.bf16.msra.mxu0 %v14983_v58  ;;  %v5027_v58 = vld [vmem:[%s16229_s5 + $0x38] sm:$0xff] }
 0x55c   : > { %4946 = vst.msk [vmem:[#allocation2 + $0x70] sm:$0xff] %vm383_vm1, %v4874_v10  ;;  %v4872_v4 = vsel %vm4728_vm0, %v4656_v39, %v4800_v53  ;;  %v4662_v17 = vadd.f32 %v15086_v8, %v4583_v13  ;;  %4561 = vst.msk [vmem:[#allocation2 + $0xd0] sm:$0xff] %vm383_vm1, %v4545_v30  ;;  %v12099_v54 = vpop.f32.mrb[190].mxu1  ;;  %v15129_v45 = vld [vmem:[#allocation2 + $0x21] sm:$0xff]  ;;  %12569 = vmatprep.subr.bf16.mxu0 %v12568_v2  ;;  %v15137_v6 = vld [vmem:[#allocation2 + $0x31] sm:$0xff]  ;;  %v12576_v26 = vpack.c.bf16 %v5027_v58, %v5026_v57 }
 0x55d   : > { %4944 = vst.msk [vmem:[#allocation2 + $0x60] sm:$0xff] %vm383_vm1, %v4872_v4  ;;  %vm4736_vm8 = vcmp.ge.f32.partialorder %v4664_v48, 0.0  ;;  %v4808_v40 = vmul.f32 0.01, %v4664_v48  ;;  %v4548_v7 = vadd.f32 %v12099_v54, %v4532_v36  ;;  %v4508_v28 = vpop.f32.mrb[191].mxu1  ;;  %12119 = vmatprep.mubr.msk.f32.mxu0 %vm383_vm1, %v15129_v45  ;;  %v5456_v53 = vld [vmem:[%s16229_s5 + $0x90] sm:$0xff] }
 0x55e   : > { %vm4734_vm9 = vcmp.ge.f32.partialorder %v4662_v17, 0.0  ;;  %v4806_v18 = vmul.f32 0.01, %v4662_v17  ;;  %v4589_v56 = vld [vmem:[#allocation2 + $0xc0] sm:$0xff]  ;;  %v4547_v11 = vadd.f32 %v4531_v59, %v4508_v28  ;;  %12120 = vmatmul.mubr.msk.f32.gmra.mrb[66].mxu0 %vm383_vm1, %v15137_v6  ;;  %v5457_v1 = vld [vmem:[%s16229_s5 + $0x98] sm:$0xff]  ;;  %v5459_v57 = vld [vmem:[%s16229_s5 + $0xa8] sm:$0xff] }
 0x55f   : > { %v4880_v24 = vsel %vm4736_vm8, %v4664_v48, %v4808_v40  ;;  %v4668_v61 = vadd.f32 %v15086_v8, %v4589_v56  ;;  %v4587_v14 = vld [vmem:[#allocation2 + $0xb0] sm:$0xff]  ;;  %4564 = vst.msk [vmem:[#allocation2 + $0x100] sm:$0xff] %vm383_vm1, %v4548_v7  ;;  %12571 = vmatpush3.bf16.msra.mxu0 %v12568_v2  ;;  %v5004_v30 = vld [vmem:[#allocation2] sm:$0xff]  ;;  %v12584_v10 = vpack.c.bf16 %v5457_v1, %v5456_v53  ;;  %v5688_v59 = vld [vmem:[%s16229_s5 + $0xc8] sm:$0xff] }
 0x560   : > { %4952 = vst.msk [vmem:[#allocation2 + $0xa0] sm:$0xff] %vm383_vm1, %v4880_v24  ;;  %v4878_v15 = vsel %vm4734_vm9, %v4662_v17, %v4806_v18  ;;  %v4666_v21 = vadd.f32 %v15086_v8, %v4587_v14  ;;  %4563 = vst.msk [vmem:[#allocation2 + $0xf0] sm:$0xff] %vm383_vm1, %v4547_v11  ;;  %v15146_v50 = vld [vmem:[#allocation2 + $0x41] sm:$0xff]  ;;  %12573 = vmatprep.subr.bf16.mxu0 %v12572_v9  ;;  %v15151_v47 = vld [vmem:[#allocation2 + $0x51] sm:$0xff] }
 0x561   : > { %4950 = vst.msk [vmem:[#allocation2 + $0x90] sm:$0xff] %vm383_vm1, %v4878_v15  ;;  %vm4740_vm10 = vcmp.ge.f32.partialorder %v4668_v61, 0.0  ;;  %v4812_v22 = vmul.f32 0.01, %v4668_v61  ;;  %12122 = vmatprep.mubr.msk.f32.mxu0 %vm383_vm1, %v15146_v50  ;;  %v5005_v48 = vld [vmem:[#allocation2 + $0x10] sm:$0xff]  ;;  %v5458_v13 = vld [vmem:[%s16229_s5 + $0xa0] sm:$0xff] }
 0x562   : > { %vm4738_vm11 = vcmp.ge.f32.partialorder %v4666_v21, 0.0  ;;  %v4810_v63 = vmul.f32 0.01, %v4666_v21  ;;  %v4593_v35 = vld [vmem:[#allocation2 + $0xe0] sm:$0xff]  ;;  %12123 = vmatmul.mubr.msk.f32.gmra.mrb[68].mxu0 %vm383_vm1, %v15151_v47  ;;  %v12588_v17 = vpack.c.bf16 %v5459_v57, %v5458_v13  ;;  %v5007_v54 = vld [vmem:[#allocation2 + $0x30] sm:$0xff] }
 0x563   : > { %v4884_v27 = vsel %vm4740_vm10, %v4668_v61, %v4812_v22  ;;  %v4672_v60 = vadd.f32 %v15086_v8, %v4593_v35  ;;  %v4591_v52 = vld [vmem:[#allocation2 + $0xd0] sm:$0xff]  ;;  %12575 = vmatpush3.bf16.msra.mxu0 %v12572_v9  ;;  %v5006_v4 = vld [vmem:[#allocation2 + $0x20] sm:$0xff]  ;;  %v5461_v9 = vld [vmem:[%s16229_s5 + $0xb8] sm:$0xff] }
 0x564   : > { %4956 = vst.msk [vmem:[#allocation2 + $0xc0] sm:$0xff] %vm383_vm1, %v4884_v27  ;;  %v4882_v31 = vsel %vm4738_vm11, %v4666_v21, %v4810_v63  ;;  %v4670_v41 = vadd.f32 %v15086_v8, %v4591_v52  ;;  %v15164_v38 = vld [vmem:[#allocation2 + $0x61] sm:$0xff]  ;;  %12577 = vmatprep.subr.bf16.mxu0 %v12576_v26  ;;  %v15169_v20 = vld [vmem:[#allocation2 + $0x71] sm:$0xff] }
 0x565   : > { %4954 = vst.msk [vmem:[#allocation2 + $0xb0] sm:$0xff] %vm383_vm1, %v4882_v31  ;;  %vm4744_vm12 = vcmp.ge.f32.partialorder %v4672_v60, 0.0  ;;  %v4816_v42 = vmul.f32 0.01, %v4672_v60  ;;  %12125 = vmatprep.mubr.msk.f32.mxu0 %vm383_vm1, %v15164_v38  ;;  %v5460_v36 = vld [vmem:[%s16229_s5 + $0xb0] sm:$0xff]  ;;  %v5008_v58 = vld [vmem:[#allocation2 + $0x40] sm:$0xff] }
 0x566   : > { %vm4742_vm13 = vcmp.ge.f32.partialorder %v4670_v41, 0.0  ;;  %v4814_v23 = vmul.f32 0.01, %v4670_v41  ;;  %v4597_v0 = vld [vmem:[#allocation2 + $0x100] sm:$0xff]  ;;  %12126 = vmatmul.mubr.msk.f32.gmra.mrb[70].mxu0 %vm383_vm1, %v15169_v20  ;;  %v12592_v40 = vpack.c.bf16 %v5461_v9, %v5460_v36  ;;  %v5009_v7 = vld [vmem:[#allocation2 + $0x50] sm:$0xff]  ;;  %v5690_v63 = vld [vmem:[%s16229_s5 + $0xd8] sm:$0xff] }
 0x567   : > { %v4888_v32 = vsel %vm4744_vm12, %v4672_v60, %v4816_v42  ;;  %v4676_v46 = vadd.f32 %v15086_v8, %v4597_v0  ;;  %v4595_v34 = vld [vmem:[#allocation2 + $0xf0] sm:$0xff]  ;;  %12579 = vmatpush3.bf16.msra.mxu0 %v12576_v26  ;;  %v15178_v51 = vld [vmem:[#allocation2 + $0xa1] sm:$0xff]  ;;  %v12600_v35 = vpack.c.bf16 %v5690_v63, %v5689_v37 }
 0x568   : > { %4960 = vst.msk [vmem:[#allocation2 + $0xe0] sm:$0xff] %vm383_vm1, %v4888_v32  ;;  %v4886_v62 = vsel %vm4742_vm13, %v4670_v41, %v4814_v23  ;;  %v4674_v29 = vadd.f32 %v15086_v8, %v4595_v34  ;;  %v5036_v43 = vld [vmem:[#allocation2 + $0x91] sm:$0xff]  ;;  %12581 = vmatprep.subr.bf16.mxu0 %v12580_v49  ;;  %v5687_v28 = vld [vmem:[%s16229_s5 + $0xc0] sm:$0xff]  ;;  %v5692_v60 = vld [vmem:[%s16229_s5 + $0xe8] sm:$0xff] }
 0x569   : > { %4958 = vst.msk [vmem:[#allocation2 + $0xd0] sm:$0xff] %vm383_vm1, %v4886_v62  ;;  %vm4748_vm14 = vcmp.ge.f32.partialorder %v4676_v46, 0.0  ;;  %v4820_v39 = vmul.f32 0.01, %v4676_v46  ;;  %12128 = vmatprep.mubr.msk.f32.mxu0 %vm383_vm1, %v5036_v43  ;;  %v5010_v18 = vld [vmem:[#allocation2 + $0x60] sm:$0xff]  ;;  %v12596_v56 = vpack.c.bf16 %v5688_v59, %v5687_v28  ;;  %v5011_v11 = vld [vmem:[#allocation2 + $0x70] sm:$0xff] }
 0x56a   : > { %vm4746_vm15 = vcmp.ge.f32.partialorder %v4674_v29, 0.0  ;;  %v4818_v33 = vmul.f32 0.01, %v4674_v29  ;;  %12129 = vmatmul.mubr.msk.f32.gmra.mrb[72].mxu0 %vm383_vm1, %v15178_v51  ;;  %v5012_v24 = vld [vmem:[#allocation2 + $0x90] sm:$0xff]  ;;  %v5013_v61 = vld [vmem:[#allocation2 + $0xa0] sm:$0xff]  ;;  %v5694_v41 = vld [vmem:[%s16229_s5 + $0xf8] sm:$0xff] }
 0x56b   : > { %v4892_v3 = vsel %vm4748_vm14, %v4676_v46, %v4820_v39  ;;  %v15188_v16 = vld [vmem:[#allocation2 + $0xc1] sm:$0xff]  ;;  %v5693_v31 = vld [vmem:[%s16229_s5 + $0xf0] sm:$0xff]  ;;  %v5923_v62 = vld [vmem:[%s16229_s5 + $0x118] sm:$0xff] }
 0x56c   : > { %4964 = vst.msk [vmem:[#allocation2 + $0x100] sm:$0xff] %vm383_vm1, %v4892_v3  ;;  %v4890_v2 = vsel %vm4746_vm15, %v4674_v29, %v4818_v33  ;;  %v15183_v8 = vld [vmem:[#allocation2 + $0xb1] sm:$0xff]  ;;  %v5015_v15 = vld [vmem:[#allocation2 + $0xc0] sm:$0xff]  ;;  %v5921_v23 = vld [vmem:[%s16229_s5 + $0x108] sm:$0xff] }
 0x56d   : > { %4962 = vst.msk [vmem:[#allocation2 + $0xf0] sm:$0xff] %vm383_vm1, %v4890_v2  ;;  %12131 = vmatprep.mubr.msk.f32.mxu0 %vm383_vm1, %v15183_v8  ;;  %v5014_v14 = vld [vmem:[#allocation2 + $0xb0] sm:$0xff]  ;;  %v5691_v27 = vld [vmem:[%s16229_s5 + $0xe0] sm:$0xff]  ;;  %v5925_v39 = vld [vmem:[%s16229_s5 + $0x128] sm:$0xff] }
 0x56e   : > { %12132 = vmatmul.mubr.msk.f32.gmra.mrb[74].mxu0 %vm383_vm1, %v15188_v16  ;;  %v12604_v52 = vpack.c.bf16 %v5692_v60, %v5691_v27  ;;  %v5920_v42 = vld [vmem:[%s16229_s5 + $0x100] sm:$0xff]  ;;  %v5453_v46 = vld [vmem:[#allocation2 + $0x110] sm:$0xff]  ;;  %v5927_v3 = vld [vmem:[%s16229_s5 + $0x138] sm:$0xff] }
 0x56f   : > { %v15196_v19 = vld [vmem:[#allocation2 + $0xe1] sm:$0xff]  ;;  %v12612_v0 = vpack.c.bf16 %v5921_v23, %v5920_v42  ;;  %v5922_v34 = vld [vmem:[%s16229_s5 + $0x110] sm:$0xff]  ;;  %v6393_v27 = vld [vmem:[%s16229_s5 + $0x1b8] sm:$0xff] }
 0x570   : > { %v15192_v25 = vld [vmem:[#allocation2 + $0xd1] sm:$0xff]  ;;  %v5017_v26 = vld [vmem:[#allocation2 + $0xe0] sm:$0xff]  ;;  %v12616_v29 = vpack.c.bf16 %v5923_v62, %v5922_v34  ;;  %v6154_v2 = vld [vmem:[%s16229_s5 + $0x148] sm:$0xff] }
 0x571   : > { %12134 = vmatprep.mubr.msk.f32.mxu0 %vm383_vm1, %v15192_v25  ;;  %v5016_v21 = vld [vmem:[#allocation2 + $0xd0] sm:$0xff]  ;;  %v5445_v32 = vld [vmem:[#allocation2 + $0x80] sm:$0xff] }
 0x572   : > { %12135 = vmatmul.mubr.msk.f32.gmra.mrb[76].mxu0 %vm383_vm1, %v15196_v19  ;;  %v5924_v43 = vld [vmem:[%s16229_s5 + $0x120] sm:$0xff]  ;;  %v15363_v1 = vld [vmem:[#allocation2 + $0x150] sm:$0xff] }
 0x573   : > { %v15204_v12 = vld [vmem:[#allocation2 + $0x101] sm:$0xff]  ;;  %v12620_v33 = vpack.c.bf16 %v5925_v39, %v5924_v43  ;;  %v15377_v57 = vld [vmem:[#allocation2 + $0x170] sm:$0xff] }
 0x574   : > { %v15200_v55 = vld [vmem:[#allocation2 + $0xf1] sm:$0xff]  ;;  %v5019_v44 = vld [vmem:[#allocation2 + $0x100] sm:$0xff] }
 0x575   : > { %12137 = vmatprep.mubr.msk.f32.mxu0 %vm383_vm1, %v15200_v55  ;;  %v5018_v22 = vld [vmem:[#allocation2 + $0xf0] sm:$0xff]  ;;  %v15404_v28 = vld [vmem:[#allocation2 + $0x1e0] sm:$0xff] }
 0x576   : > { %12138 = vmatmul.mubr.msk.f32.gmra.mrb[78].mxu0 %vm383_vm1, %v15204_v12  ;;  %v15391_v9 = vld [vmem:[#allocation2 + $0x190] sm:$0xff]  ;;  %v15455_v60 = vld [vmem:[#allocation2 + $0x161] sm:$0xff] }
 0x577   : > { %12156 = vmatprep.mubr.msk.f32.mxu0 %vm383_vm1, %v5004_v30  ;;  %v6159_v30 = vld [vmem:[%s16229_s5 + $0x170] sm:$0xff]  ;;  %v15469_v42 = vld [vmem:[#allocation2 + $0x181] sm:$0xff] }
 0x578   : > { %v15408_v59 = vld [vmem:[#allocation2 + $0x1f0] sm:$0xff]  ;;  %v6148_v62 = vld [vmem:[#allocation2 + $0x1e1] sm:$0xff] }
 0x579   : > { %v15445_v63 = vld [vmem:[#allocation2 + $0x151] sm:$0xff]  ;;  %v6150_v43 = vld [vmem:[#allocation2 + $0x201] sm:$0xff] }
 0x57a   : > { %12157 = vmatmul.mubr.msk.f32.vlgmr.msra.gmra.mrb[64].mxu0 %vm383_vm1, %v5005_v48  ;;  %v6147_v34 = vld [vmem:[#allocation2 + $0x1d1] sm:$0xff] }
 0x57b   : > { %12583 = vmatpush3.bf16.msra.mxu0 %v12580_v49  ;;  %12159 = vmatprep.mubr.msk.f32.mxu0 %vm383_vm1, %v5006_v4  ;;  %v12608_v49 = vpack.c.bf16 %v5694_v41, %v5693_v31  ;;  %v15459_v31 = vld [vmem:[#allocation2 + $0x171] sm:$0xff]  ;;  %v6619_v41 = vld [vmem:[%s16229_s5 + $0x1c0] sm:$0xff] }
 0x57c   : > { %12585 = vmatprep.subr.bf16.mxu0 %v12584_v10  ;;  %v6151_v39 = vld [vmem:[#allocation2 + $0x211] sm:$0xff] }
 0x57e   : > { %12160 = vmatmul.mubr.msk.f32.gmra.mrb[66].mxu0 %vm383_vm1, %v5007_v54 }
 0x57f   : > { %12162 = vmatprep.mubr.msk.f32.mxu0 %vm383_vm1, %v5008_v58  ;;  %12587 = vmatpush3.bf16.msra.mxu0 %v12584_v10  ;;  %v6160_v10 = vld [vmem:[%s16229_s5 + $0x178] sm:$0xff] }
 0x580   : > { %12589 = vmatprep.subr.bf16.mxu0 %v12588_v17  ;;  %v12640_v13 = vpack.c.bf16 %v6160_v10, %v6159_v30 }
 0x582   : > { %12163 = vmatmul.mubr.msk.f32.gmra.mrb[68].mxu0 %vm383_vm1, %v5009_v7 }
 0x583   : > { %12165 = vmatprep.mubr.msk.f32.mxu0 %vm383_vm1, %v5010_v18  ;;  %12591 = vmatpush3.bf16.msra.mxu0 %v12588_v17  ;;  %v6387_v17 = vld [vmem:[%s16229_s5 + $0x188] sm:$0xff] }
 0x584   : > { %12593 = vmatprep.subr.bf16.mxu0 %v12592_v40 }
 0x586   : > { %12166 = vmatmul.mubr.msk.f32.gmra.mrb[70].mxu0 %vm383_vm1, %v5011_v11 }
 0x587   : > { %12168 = vmatprep.mubr.msk.f32.mxu0 %vm383_vm1, %v5012_v24  ;;  %12595 = vmatpush3.bf16.msra.mxu0 %v12592_v40  ;;  %v15396_v40 = vld [vmem:[#allocation2 + $0x1c0] sm:$0xff]  ;;  %v6388_v24 = vld [vmem:[%s16229_s5 + $0x190] sm:$0xff] }
 0x588   : > { %12597 = vmatprep.subr.bf16.mxu0 %v12596_v56 }
 0x58a   : > { %12169 = vmatmul.mubr.msk.f32.gmra.mrb[72].mxu0 %vm383_vm1, %v5013_v61 }
 0x58b   : > { %12171 = vmatprep.mubr.msk.f32.mxu0 %vm383_vm1, %v5014_v14 }
 0x58e   : > { %12172 = vmatmul.mubr.msk.f32.gmra.mrb[74].mxu0 %vm383_vm1, %v5015_v15 }
 0x58f   : > { %12174 = vmatprep.mubr.msk.f32.mxu0 %vm383_vm1, %v5016_v21 }
 0x592   : > { %12175 = vmatmul.mubr.msk.f32.gmra.mrb[76].mxu0 %vm383_vm1, %v5017_v26 }
 0x593   : > { %12177 = vmatprep.mubr.msk.f32.mxu0 %vm383_vm1, %v5018_v22 }
 0x596   : > { %12178 = vmatmul.mubr.msk.f32.gmra.mrb[78].mxu0 %vm383_vm1, %v5019_v44 }
 0x597   : > { %12196 = vmatprep.mubr.msk.f32.mxu0 %vm383_vm1, %v5005_v48  ;;  %v15373_v48 = vld [vmem:[#allocation2 + $0x160] sm:$0xff] }
 0x59a   : > { %12197 = vmatmul.mubr.msk.f32.vlgmr.msra.gmra.mrb[64].mxu0 %vm383_vm1, %v5006_v4  ;;  %v6386_v4 = vld [vmem:[%s16229_s5 + $0x180] sm:$0xff] }
 0x59b   : > { %12599 = vmatpush3.bf16.msra.mxu0 %v12596_v56  ;;  %12199 = vmatprep.mubr.msk.f32.mxu0 %vm383_vm1, %v5007_v54  ;;  %v15387_v54 = vld [vmem:[#allocation2 + $0x180] sm:$0xff]  ;;  %v12644_v36 = vpack.c.bf16 %v6387_v17, %v6386_v4  ;;  %v15416_v56 = vld [vmem:[#allocation2 + $0x210] sm:$0xff] }
 0x59c   : > { %12601 = vmatprep.subr.bf16.mxu0 %v12600_v35 }
 0x59e   : > { %12200 = vmatmul.mubr.msk.f32.gmra.mrb[66].mxu0 %vm383_vm1, %v5008_v58  ;;  %v5912_v58 = vld [vmem:[#allocation2 + $0x1b0] sm:$0xff] }
 0x59f   : > { %12202 = vmatprep.mubr.msk.f32.mxu0 %vm383_vm1, %v5009_v7  ;;  %12603 = vmatpush3.bf16.msra.mxu0 %v12600_v35  ;;  %v15400_v7 = vld [vmem:[#allocation2 + $0x1d0] sm:$0xff] }
 0x5a0   : > { %12605 = vmatprep.subr.bf16.mxu0 %v12604_v52  ;;  %v6392_v35 = vld [vmem:[%s16229_s5 + $0x1b0] sm:$0xff] }
 0x5a2   : > { %12203 = vmatmul.mubr.msk.f32.gmra.mrb[68].mxu0 %vm383_vm1, %v5010_v18  ;;  %v15412_v18 = vld [vmem:[#allocation2 + $0x200] sm:$0xff] }
 0x5a3   : > { %12205 = vmatprep.mubr.msk.f32.mxu0 %vm383_vm1, %v5011_v11  ;;  %12607 = vmatpush3.bf16.msra.mxu0 %v12604_v52  ;;  %v15420_v11 = vld [vmem:[#allocation2 + $0x220] sm:$0xff]  ;;  %v12656_v52 = vpack.c.bf16 %v6393_v27, %v6392_v35 }
 0x5a4   : > { %12609 = vmatprep.subr.bf16.mxu0 %v12608_v49 }
 0x5a6   : > { %12206 = vmatmul.mubr.msk.f32.gmra.mrb[70].mxu0 %vm383_vm1, %v5445_v32  ;;  %v6145_v32 = vld [vmem:[#allocation2 + $0x1b1] sm:$0xff] }
 0x5a7   : > { %12208 = vmatprep.mubr.msk.f32.mxu0 %vm383_vm1, %v5013_v61  ;;  %12611 = vmatpush3.bf16.msra.mxu0 %v12608_v49  ;;  %v6389_v61 = vld [vmem:[%s16229_s5 + $0x198] sm:$0xff]  ;;  %v6620_v49 = vld [vmem:[%s16229_s5 + $0x1c8] sm:$0xff] }
 0x5a8   : > { %12613 = vmatprep.subr.bf16.mxu0 %v12612_v0  ;;  %v12660_v23 = vpack.c.bf16 %v6620_v49, %v6619_v41 }
 0x5aa   : > { %12209 = vmatmul.mubr.msk.f32.gmra.mrb[72].mxu0 %vm383_vm1, %v5014_v14  ;;  %v6137_v14 = vld [vmem:[#allocation2 + $0x121] sm:$0xff] }
 0x5ab   : > { %12211 = vmatprep.mubr.msk.f32.mxu0 %vm383_vm1, %v5015_v15  ;;  %v12648_v15 = vpack.c.bf16 %v6389_v61, %v6388_v24 }
 0x5ae   : > { %12212 = vmatmul.mubr.msk.f32.gmra.mrb[74].mxu0 %vm383_vm1, %v5016_v21  ;;  %v15431_v21 = vld [vmem:[#allocation2 + $0x131] sm:$0xff] }
 0x5af   : > { %12214 = vmatprep.mubr.msk.f32.mxu0 %vm383_vm1, %v5017_v26  ;;  %v6390_v26 = vld [vmem:[%s16229_s5 + $0x1a0] sm:$0xff] }
 0x5b2   : > { %12215 = vmatmul.mubr.msk.f32.gmra.mrb[76].mxu0 %vm383_vm1, %v5018_v22  ;;  %v6391_v22 = vld [vmem:[%s16229_s5 + $0x1a8] sm:$0xff] }
 0x5b3   : > { %12217 = vmatprep.mubr.msk.f32.mxu0 %vm383_vm1, %v5019_v44  ;;  %v15441_v44 = vld [vmem:[#allocation2 + $0x141] sm:$0xff]  ;;  %v12652_v37 = vpack.c.bf16 %v6391_v22, %v6390_v26 }
 0x5b6   : > { %12218 = vmatmul.mubr.msk.f32.gmra.mrb[78].mxu0 %vm383_vm1, %v5453_v46  ;;  %v6146_v46 = vld [vmem:[#allocation2 + $0x1c1] sm:$0xff] }
 0x5b7   : > { %12236 = vmatprep.mubr.msk.f32.mxu0 %vm383_vm1, %v15116_v5  ;;  %v5926_v5 = vld [vmem:[%s16229_s5 + $0x130] sm:$0xff] }
 0x5ba   : > { %12237 = vmatmul.mubr.msk.f32.vlgmr.msra.gmra.mrb[64].mxu0 %vm383_vm1, %v15129_v45  ;;  %v12624_v45 = vpack.c.bf16 %v5927_v3, %v5926_v5  ;;  %v6621_v5 = vld [vmem:[%s16229_s5 + $0x1d0] sm:$0xff]  ;;  %v6622_v3 = vld [vmem:[%s16229_s5 + $0x1d8] sm:$0xff] }
 0x5bb   : > { %12615 = vmatpush3.bf16.msra.mxu0 %v12612_v0  ;;  %12239 = vmatprep.mubr.msk.f32.mxu0 %vm383_vm1, %v15137_v6  ;;  %v6153_v6 = vld [vmem:[%s16229_s5 + $0x140] sm:$0xff]  ;;  %v6144_v0 = vld [vmem:[#allocation2 + $0x191] sm:$0xff] }
 0x5bc   : > { %12617 = vmatprep.subr.bf16.mxu0 %v12616_v29 }
 0x5be   : > { %12240 = vmatmul.mubr.msk.f32.gmra.mrb[66].mxu0 %vm383_vm1, %v15146_v50  ;;  %v12628_v50 = vpack.c.bf16 %v6154_v2, %v6153_v6  ;;  %v6623_v6 = vld [vmem:[%s16229_s5 + $0x1e0] sm:$0xff]  ;;  %v6624_v2 = vld [vmem:[%s16229_s5 + $0x1e8] sm:$0xff] }
 0x5bf   : > { %12242 = vmatprep.mubr.msk.f32.mxu0 %vm383_vm1, %v15151_v47  ;;  %12619 = vmatpush3.bf16.msra.mxu0 %v12616_v29  ;;  %v5678_v47 = vld [vmem:[#allocation2 + $0x81] sm:$0xff]  ;;  %v6149_v29 = vld [vmem:[#allocation2 + $0x1f1] sm:$0xff] }
 0x5c0   : > { %12621 = vmatprep.subr.bf16.mxu0 %v12620_v33 }
 0x5c2   : > { %12243 = vmatmul.mubr.msk.f32.gmra.mrb[68].mxu0 %vm383_vm1, %v15164_v38  ;;  %v5686_v38 = vld [vmem:[#allocation2 + $0x111] sm:$0xff] }
 0x5c3   : > { %12245 = vmatprep.mubr.msk.f32.mxu0 %vm383_vm1, %v15169_v20  ;;  %12623 = vmatpush3.bf16.msra.mxu0 %v12620_v33  ;;  %v6155_v20 = vld [vmem:[%s16229_s5 + $0x150] sm:$0xff]  ;;  %v6152_v33 = vld [vmem:[#allocation2 + $0x221] sm:$0xff] }
 0x5c4   : > { %12625 = vmatprep.subr.bf16.mxu0 %v12624_v45 }
 0x5c6   : > { %12246 = vmatmul.mubr.msk.f32.gmra.mrb[70].mxu0 %vm383_vm1, %v5678_v47  ;;  %v6625_v47 = vld [vmem:[%s16229_s5 + $0x1f0] sm:$0xff] }
 0x5c7   : > { %12248 = vmatprep.mubr.msk.f32.mxu0 %vm383_vm1, %v15178_v51  ;;  %12627 = vmatpush3.bf16.msra.mxu0 %v12624_v45  ;;  %v6156_v51 = vld [vmem:[%s16229_s5 + $0x158] sm:$0xff]  ;;  %v12664_v45 = vpack.c.bf16 %v6622_v3, %v6621_v5 }
 0x5c8   : > { %12629 = vmatprep.subr.bf16.mxu0 %v12628_v50 }
 0x5ca   : > { %12249 = vmatmul.mubr.msk.f32.gmra.mrb[72].mxu0 %vm383_vm1, %v15183_v8  ;;  %v5904_v8 = vld [vmem:[#allocation2 + $0x120] sm:$0xff] }
 0x5cb   : > { %12251 = vmatprep.mubr.msk.f32.mxu0 %vm383_vm1, %v15188_v16  ;;  %v12632_v16 = vpack.c.bf16 %v6156_v51, %v6155_v20  ;;  %v6377_v51 = vld [vmem:[#allocation2 + $0x1a0] sm:$0xff] }
 0x5ce   : > { %12252 = vmatmul.mubr.msk.f32.gmra.mrb[74].mxu0 %vm383_vm1, %v15192_v25  ;;  %v15349_v25 = vld [vmem:[#allocation2 + $0x130] sm:$0xff] }
 0x5cf   : > { %12254 = vmatprep.mubr.msk.f32.mxu0 %vm383_vm1, %v15196_v19  ;;  %v6157_v19 = vld [vmem:[%s16229_s5 + $0x160] sm:$0xff] }
 0x5d2   : > { %12255 = vmatmul.mubr.msk.f32.gmra.mrb[76].mxu0 %vm383_vm1, %v15200_v55  ;;  %v6158_v55 = vld [vmem:[%s16229_s5 + $0x168] sm:$0xff] }
 0x5d3   : > { %12257 = vmatprep.mubr.msk.f32.mxu0 %vm383_vm1, %v15204_v12  ;;  %v15359_v12 = vld [vmem:[#allocation2 + $0x140] sm:$0xff]  ;;  %v12636_v53 = vpack.c.bf16 %v6158_v55, %v6157_v19 }
 0x5d4   : > { %v15555_v19 = vld [vmem:[%s16230_s6] ss:$0 sm:$0xff] }
 0x5d6   : > { %12258 = vmatmul.mubr.msk.f32.gmra.mrb[78].mxu0 %vm383_vm1, %v5686_v38  ;;  %v6626_v38 = vld [vmem:[%s16229_s5 + $0x1f8] sm:$0xff] }
 0x5d7   : > { %12276 = vmatprep.mubr.msk.f32.mxu0 %vm383_vm1, %v5904_v8  ;;  %v12672_v20 = vpack.c.bf16 %v6626_v38, %v6625_v47  ;;  %v6385_v8 = vld [vmem:[#allocation2 + $0x230] sm:$0xff] }
 0x5da   : > { %12277 = vmatmul.mubr.msk.f32.vlgmr.msra.gmra.mrb[64].mxu0 %vm383_vm1, %v15349_v25 }
 0x5db   : > { %12631 = vmatpush3.bf16.msra.mxu0 %v12628_v50  ;;  %12279 = vmatprep.mubr.msk.f32.mxu0 %vm383_vm1, %v15359_v12  ;;  %v12668_v50 = vpack.c.bf16 %v6624_v2, %v6623_v6 }
 0x5dc   : > { %12633 = vmatprep.subr.bf16.mxu0 %v12632_v16 }
 0x5de   : > { %12280 = vmatmul.mubr.msk.f32.gmra.mrb[66].mxu0 %vm383_vm1, %v15363_v1 }
 0x5df   : > { %12282 = vmatprep.mubr.msk.f32.mxu0 %vm383_vm1, %v15373_v48  ;;  %12635 = vmatpush3.bf16.msra.mxu0 %v12632_v16  ;;  %v6610_v16 = vld [vmem:[#allocation2 + $0x1a1] sm:$0xff] }
 0x5e0   : > { %12637 = vmatprep.subr.bf16.mxu0 %v12636_v53 }
 0x5e2   : > { %12283 = vmatmul.mubr.msk.f32.gmra.mrb[68].mxu0 %vm383_vm1, %v15377_v57 }
 0x5e3   : > { %12285 = vmatprep.mubr.msk.f32.mxu0 %vm383_vm1, %v15387_v54  ;;  %12639 = vmatpush3.bf16.msra.mxu0 %v12636_v53 }
 0x5e4   : > { %12641 = vmatprep.subr.bf16.mxu0 %v12640_v13 }
 0x5e6   : > { %12286 = vmatmul.mubr.msk.f32.gmra.mrb[70].mxu0 %vm383_vm1, %v15391_v9 }
 0x5e7   : > { %12288 = vmatprep.mubr.msk.f32.mxu0 %vm383_vm1, %v5912_v58  ;;  %12643 = vmatpush3.bf16.msra.mxu0 %v12640_v13 }
 0x5e8   : > { %12645 = vmatprep.subr.bf16.mxu0 %v12644_v36 }
 0x5ea   : > { %12289 = vmatmul.mubr.msk.f32.gmra.mrb[72].mxu0 %vm383_vm1, %v15396_v40 }
 0x5eb   : > { %12291 = vmatprep.mubr.msk.f32.mxu0 %vm383_vm1, %v15400_v7 }
 0x5ee   : > { %12292 = vmatmul.mubr.msk.f32.gmra.mrb[74].mxu0 %vm383_vm1, %v15404_v28 }
 0x5ef   : > { %12294 = vmatprep.mubr.msk.f32.mxu0 %vm383_vm1, %v15408_v59 }
 0x5f2   : > { %12295 = vmatmul.mubr.msk.f32.gmra.mrb[76].mxu0 %vm383_vm1, %v15412_v18 }
 0x5f3   : > { %12297 = vmatprep.mubr.msk.f32.mxu0 %vm383_vm1, %v15416_v56 }
 0x5f6   : > { %12298 = vmatmul.mubr.msk.f32.gmra.mrb[78].mxu0 %vm383_vm1, %v15420_v11 }
 0x5f7   : > { %12316 = vmatprep.mubr.msk.f32.mxu0 %vm383_vm1, %v6137_v14 }
 0x5fa   : > { %12317 = vmatmul.mubr.msk.f32.vlgmr.msra.gmra.mrb[64].mxu0 %vm383_vm1, %v15431_v21 }
 0x5fb   : > { %12647 = vmatpush3.bf16.msra.mxu0 %v12644_v36  ;;  %12319 = vmatprep.mubr.msk.f32.mxu0 %vm383_vm1, %v15441_v44 }
 0x5fc   : > { %12649 = vmatprep.subr.bf16.mxu0 %v12648_v15 }
 0x5fe   : > { %12320 = vmatmul.mubr.msk.f32.gmra.mrb[66].mxu0 %vm383_vm1, %v15445_v63 }
 0x5ff   : > { %12322 = vmatprep.mubr.msk.f32.mxu0 %vm383_vm1, %v15455_v60  ;;  %12651 = vmatpush3.bf16.msra.mxu0 %v12648_v15 }
 0x600   : > { %12653 = vmatprep.subr.bf16.mxu0 %v12652_v37 }
 0x602   : > { %12323 = vmatmul.mubr.msk.f32.gmra.mrb[68].mxu0 %vm383_vm1, %v15459_v31 }
 0x603   : > { %12325 = vmatprep.mubr.msk.f32.mxu0 %vm383_vm1, %v15469_v42  ;;  %12655 = vmatpush3.bf16.msra.mxu0 %v12652_v37 }
 0x604   : > { %12657 = vmatprep.subr.bf16.mxu0 %v12656_v52 }
 0x606   : > { %12326 = vmatmul.mubr.msk.f32.gmra.mrb[70].mxu0 %vm383_vm1, %v6144_v0 }
 0x607   : > { %12328 = vmatprep.mubr.msk.f32.mxu0 %vm383_vm1, %v6145_v32  ;;  %12659 = vmatpush3.bf16.msra.mxu0 %v12656_v52 }
 0x608   : > { %12661 = vmatprep.subr.bf16.mxu0 %v12660_v23 }
 0x60a   : > { %12329 = vmatmul.mubr.msk.f32.gmra.mrb[72].mxu0 %vm383_vm1, %v6146_v46 }
 0x60b   : > { %12331 = vmatprep.mubr.msk.f32.mxu0 %vm383_vm1, %v6147_v34 }
 0x60e   : > { %12332 = vmatmul.mubr.msk.f32.gmra.mrb[74].mxu0 %vm383_vm1, %v6148_v62 }
 0x60f   : > { %12334 = vmatprep.mubr.msk.f32.mxu0 %vm383_vm1, %v6149_v29 }
 0x612   : > { %12335 = vmatmul.mubr.msk.f32.gmra.mrb[76].mxu0 %vm383_vm1, %v6150_v43 }
 0x613   : > { %12337 = vmatprep.mubr.msk.f32.mxu0 %vm383_vm1, %v6151_v39 }
 0x616   : > { %12338 = vmatmul.mubr.msk.f32.gmra.mrb[78].mxu0 %vm383_vm1, %v6152_v33 }
 0x617   : > { %12356 = vmatprep.mubr.msk.f32.mxu0 %vm383_vm1, %v15349_v25  ;;  %v6618_v25 = vld [vmem:[#allocation2 + $0x231] sm:$0xff] }
 0x61a   : > { %12357 = vmatmul.mubr.msk.f32.vlgmr.msra.gmra.mrb[64].mxu0 %vm383_vm1, %v15359_v12 }
 0x61b   : > { %12663 = vmatpush3.bf16.msra.mxu0 %v12660_v23  ;;  %12359 = vmatprep.mubr.msk.f32.mxu0 %vm383_vm1, %v15363_v1 }
 0x61c   : > { %12665 = vmatprep.subr.bf16.mxu0 %v12664_v45 }
 0x61e   : > { %12360 = vmatmul.mubr.msk.f32.gmra.mrb[66].mxu0 %vm383_vm1, %v15373_v48 }
 0x61f   : > { %12362 = vmatprep.mubr.msk.f32.mxu0 %vm383_vm1, %v15377_v57  ;;  %12667 = vmatpush3.bf16.msra.mxu0 %v12664_v45 }
 0x620   : > { %12669 = vmatprep.subr.bf16.mxu0 %v12668_v50 }
 0x622   : > { %12363 = vmatmul.mubr.msk.f32.gmra.mrb[68].mxu0 %vm383_vm1, %v15387_v54 }
 0x623   : > { %12365 = vmatprep.mubr.msk.f32.mxu0 %vm383_vm1, %v15391_v9  ;;  %12671 = vmatpush3.bf16.msra.mxu0 %v12668_v50 }
 0x624   : > { %12673 = vmatprep.subr.bf16.mxu0 %v12672_v20 }
 0x626   : > { %12366 = vmatmul.mubr.msk.f32.gmra.mrb[70].mxu0 %vm383_vm1, %v6377_v51 }
 0x627   : > { %12368 = vmatprep.mubr.msk.f32.mxu0 %vm383_vm1, %v15396_v40  ;;  %12675 = vmatpush3.bf16.msra.mxu0 %v12672_v20 }
 0x62a   : > { %12369 = vmatmul.mubr.msk.f32.gmra.mrb[72].mxu0 %vm383_vm1, %v15400_v7 }
 0x62b   : > { %12371 = vmatprep.mubr.msk.f32.mxu0 %vm383_vm1, %v15404_v28 }
 0x62e   : > { %12372 = vmatmul.mubr.msk.f32.gmra.mrb[74].mxu0 %vm383_vm1, %v15408_v59 }
 0x62f   : > { %12374 = vmatprep.mubr.msk.f32.mxu0 %vm383_vm1, %v15412_v18 }
 0x632   : > { %12375 = vmatmul.mubr.msk.f32.gmra.mrb[76].mxu0 %vm383_vm1, %v15416_v56 }
 0x633   : > { %12377 = vmatprep.mubr.msk.f32.mxu0 %vm383_vm1, %v15420_v11 }
 0x636   : > { %12378 = vmatmul.mubr.msk.f32.gmra.mrb[78].mxu0 %vm383_vm1, %v6385_v8 }
 0x637   : > { %12396 = vmatprep.mubr.msk.f32.mxu0 %vm383_vm1, %v15431_v21 }
 0x63a   : > { %12397 = vmatmul.mubr.msk.f32.vlgmr.msra.gmra.mrb[64].mxu0 %vm383_vm1, %v15441_v44 }
 0x63b   : > { %12399 = vmatprep.mubr.msk.f32.mxu0 %vm383_vm1, %v15445_v63 }
 0x63e   : > { %12400 = vmatmul.mubr.msk.f32.gmra.mrb[66].mxu0 %vm383_vm1, %v15455_v60 }
 0x63f   : > { %12402 = vmatprep.mubr.msk.f32.mxu0 %vm383_vm1, %v15459_v31 }
 0x642   : > { %12403 = vmatmul.mubr.msk.f32.gmra.mrb[68].mxu0 %vm383_vm1, %v15469_v42 }
 0x643   : > { %12405 = vmatprep.mubr.msk.f32.mxu0 %vm383_vm1, %v6144_v0 }
 0x646   : > { %12406 = vmatmul.mubr.msk.f32.gmra.mrb[70].mxu0 %vm383_vm1, %v6610_v16 }
 0x647   : > { %12408 = vmatprep.mubr.msk.f32.mxu0 %vm383_vm1, %v6146_v46 }
 0x64a   : > { %12409 = vmatmul.mubr.msk.f32.gmra.mrb[72].mxu0 %vm383_vm1, %v6147_v34 }
 0x64b   : > { %12411 = vmatprep.mubr.msk.f32.mxu0 %vm383_vm1, %v6148_v62 }
 0x64e   : > { %12412 = vmatmul.mubr.msk.f32.gmra.mrb[74].mxu0 %vm383_vm1, %v6149_v29 }
 0x64f   : > { %12414 = vmatprep.mubr.msk.f32.mxu0 %vm383_vm1, %v6150_v43 }
 0x652   : > { %12415 = vmatmul.mubr.msk.f32.gmra.mrb[76].mxu0 %vm383_vm1, %v6151_v39 }
 0x653   : > { %12417 = vmatprep.mubr.msk.f32.mxu0 %vm383_vm1, %v6152_v33 }
 0x656   : > { %12418 = vmatmul.mubr.msk.f32.gmra.mrb[78].mxu0 %vm383_vm1, %v6618_v25 }
 0x70d   : > { %v12398_v55 = vpop.f32.mrb[64].mxu0 }
 0x70e   : > { %v6844_v12 = vadd.f32 %v12398_v55, %v15555_v19  ;;  %v6741_v53 = vpop.f32.mrb[65].mxu0 }
 0x70f   : > { %v6843_v1 = vadd.f32 %v15555_v19, %v6741_v53 }
 0x710   : > { %vm6860_vm3 = vcmp.ge.f32.partialorder %v6844_v12, 0.0  ;;  %v6876_v30 = vmul.f32 0.01, %v6844_v12 }
 0x711   : > { %vm6859_vm2 = vcmp.ge.f32.partialorder %v6843_v1, 0.0  ;;  %v6875_v10 = vmul.f32 0.01, %v6843_v1  ;;  %v12401_v48 = vpop.f32.mrb[66].mxu0 }
 0x712   : > { %v6892_v13 = vsel %vm6860_vm3, %v6844_v12, %v6876_v30  ;;  %v6846_v57 = vadd.f32 %v12401_v48, %v15555_v19  ;;  %v6751_v4 = vpop.f32.mrb[67].mxu0 }
 0x713   : > { %6908 = vst.msk [vmem:[#allocation3 + $0x8] sm:$0xff] %vm383_vm1, %v6892_v13  ;;  %v6891_v17 = vsel %vm6859_vm2, %v6843_v1, %v6875_v10  ;;  %v6845_v54 = vadd.f32 %v15555_v19, %v6751_v4 }
 0x714   : > { %6907 = vst.msk [vmem:[#allocation3] sm:$0xff] %vm383_vm1, %v6891_v17  ;;  %vm6862_vm4 = vcmp.ge.f32.partialorder %v6846_v57, 0.0  ;;  %v6878_v36 = vmul.f32 0.01, %v6846_v57 }
 0x715   : > { %vm6861_vm5 = vcmp.ge.f32.partialorder %v6845_v54, 0.0  ;;  %v6877_v9 = vmul.f32 0.01, %v6845_v54  ;;  %v12404_v58 = vpop.f32.mrb[68].mxu0 }
 0x716   : > { %v6894_v40 = vsel %vm6862_vm4, %v6846_v57, %v6878_v36  ;;  %v6848_v7 = vadd.f32 %v12404_v58, %v15555_v19  ;;  %v6761_v28 = vpop.f32.mrb[69].mxu0 }
 0x717   : > { %6910 = vst.msk [vmem:[#allocation3 + $0x18] sm:$0xff] %vm383_vm1, %v6894_v40  ;;  %v6893_v59 = vsel %vm6861_vm5, %v6845_v54, %v6877_v9  ;;  %v6847_v18 = vadd.f32 %v15555_v19, %v6761_v28 }
 0x718   : > { %6909 = vst.msk [vmem:[#allocation3 + $0x10] sm:$0xff] %vm383_vm1, %v6893_v59  ;;  %vm6864_vm6 = vcmp.ge.f32.partialorder %v6848_v7, 0.0  ;;  %v6880_v56 = vmul.f32 0.01, %v6848_v7 }
 0x719   : > { %vm6863_vm7 = vcmp.ge.f32.partialorder %v6847_v18, 0.0  ;;  %v6879_v11 = vmul.f32 0.01, %v6847_v18  ;;  %v12407_v24 = vpop.f32.mrb[70].mxu0 }
 0x71a   : > { %v6896_v61 = vsel %vm6864_vm6, %v6848_v7, %v6880_v56  ;;  %v6850_v14 = vadd.f32 %v12407_v24, %v15555_v19  ;;  %v6771_v15 = vpop.f32.mrb[71].mxu0 }
 0x71b   : > { %6912 = vst.msk [vmem:[#allocation3 + $0x28] sm:$0xff] %vm383_vm1, %v6896_v61  ;;  %v6895_v21 = vsel %vm6863_vm7, %v6847_v18, %v6879_v11  ;;  %v6849_v26 = vadd.f32 %v15555_v19, %v6771_v15 }
 0x71c   : > { %6911 = vst.msk [vmem:[#allocation3 + $0x20] sm:$0xff] %vm383_vm1, %v6895_v21  ;;  %vm6866_vm0 = vcmp.ge.f32.partialorder %v6850_v14, 0.0  ;;  %v6882_v22 = vmul.f32 0.01, %v6850_v14 }
 0x71d   : > { %vm6865_vm8 = vcmp.ge.f32.partialorder %v6849_v26, 0.0  ;;  %v6881_v44 = vmul.f32 0.01, %v6849_v26  ;;  %v12410_v37 = vpop.f32.mrb[72].mxu0 }
 0x71e   : > { %v6898_v63 = vsel %vm6866_vm0, %v6850_v14, %v6882_v22  ;;  %v6852_v35 = vadd.f32 %v12410_v37, %v15555_v19  ;;  %v6781_v27 = vpop.f32.mrb[73].mxu0 }
 0x71f   : > { %6914 = vst.msk [vmem:[#allocation3 + $0x38] sm:$0xff] %vm383_vm1, %v6898_v63  ;;  %v6897_v60 = vsel %vm6865_vm8, %v6849_v26, %v6881_v44  ;;  %v6851_v52 = vadd.f32 %v15555_v19, %v6781_v27 }
 0x720   : > { %6913 = vst.msk [vmem:[#allocation3 + $0x30] sm:$0xff] %vm383_vm1, %v6897_v60  ;;  %vm6868_vm9 = vcmp.ge.f32.partialorder %v6852_v35, 0.0  ;;  %v6884_v31 = vmul.f32 0.01, %v6852_v35 }
 0x721   : > { %vm6867_vm10 = vcmp.ge.f32.partialorder %v6851_v52, 0.0  ;;  %v6883_v41 = vmul.f32 0.01, %v6851_v52  ;;  %v12413_v49 = vpop.f32.mrb[74].mxu0 }
 0x722   : > { %v6900_v42 = vsel %vm6868_vm9, %v6852_v35, %v6884_v31  ;;  %v6854_v23 = vadd.f32 %v12413_v49, %v15555_v19  ;;  %v6791_v0 = vpop.f32.mrb[75].mxu0 }
 0x723   : > { %6916 = vst.msk [vmem:[#allocation3 + $0x48] sm:$0xff] %vm383_vm1, %v6900_v42  ;;  %v6899_v32 = vsel %vm6867_vm10, %v6851_v52, %v6883_v41  ;;  %v6853_v46 = vadd.f32 %v15555_v19, %v6791_v0 }
 0x724   : > { %6915 = vst.msk [vmem:[#allocation3 + $0x40] sm:$0xff] %vm383_vm1, %v6899_v32  ;;  %vm6870_vm11 = vcmp.ge.f32.partialorder %v6854_v23, 0.0  ;;  %v6886_v34 = vmul.f32 0.01, %v6854_v23 }
 0x725   : > { %vm6869_vm12 = vcmp.ge.f32.partialorder %v6853_v46, 0.0  ;;  %v6885_v62 = vmul.f32 0.01, %v6853_v46  ;;  %v12416_v29 = vpop.f32.mrb[76].mxu0 }
 0x726   : > { %v6902_v43 = vsel %vm6870_vm11, %v6854_v23, %v6886_v34  ;;  %v6856_v39 = vadd.f32 %v12416_v29, %v15555_v19  ;;  %v6801_v33 = vpop.f32.mrb[77].mxu0 }
 0x727   : > { %6918 = vst.msk [vmem:[#allocation3 + $0x58] sm:$0xff] %vm383_vm1, %v6902_v43  ;;  %v6901_v5 = vsel %vm6869_vm12, %v6853_v46, %v6885_v62  ;;  %v6855_v3 = vadd.f32 %v15555_v19, %v6801_v33 }
 0x728   : > { %6917 = vst.msk [vmem:[#allocation3 + $0x50] sm:$0xff] %vm383_vm1, %v6901_v5  ;;  %vm6872_vm13 = vcmp.ge.f32.partialorder %v6856_v39, 0.0  ;;  %v6888_v45 = vmul.f32 0.01, %v6856_v39 }
 0x729   : > { %vm6871_vm14 = vcmp.ge.f32.partialorder %v6855_v3, 0.0  ;;  %v6887_v6 = vmul.f32 0.01, %v6855_v3  ;;  %v12419_v2 = vpop.f32.mrb[78].mxu0 }
 0x72a   : > { %v6904_v50 = vsel %vm6872_vm13, %v6856_v39, %v6888_v45  ;;  %v6858_v47 = vadd.f32 %v12419_v2, %v15555_v19  ;;  %v6811_v38 = vpop.f32.mrb[79].mxu0 }
 0x72b   : > { %6920 = vst.msk [vmem:[#allocation3 + $0x68] sm:$0xff] %vm383_vm1, %v6904_v50  ;;  %v6903_v20 = vsel %vm6871_vm14, %v6855_v3, %v6887_v6  ;;  %v6857_v51 = vadd.f32 %v15555_v19, %v6811_v38 }
 0x72c   : > { %6919 = vst.msk [vmem:[#allocation3 + $0x60] sm:$0xff] %vm383_vm1, %v6903_v20  ;;  %vm6874_vm15 = vcmp.ge.f32.partialorder %v6858_v47, 0.0  ;;  %v6890_v8 = vmul.f32 0.01, %v6858_v47 }
 0x72d   : > { %vm6873_vm3 = vcmp.ge.f32.partialorder %v6857_v51, 0.0  ;;  %v6889_v16 = vmul.f32 0.01, %v6857_v51 }
 0x72e   : > { %v6906_v25 = vsel %vm6874_vm15, %v6858_v47, %v6890_v8 }
 0x72f   : > { %6922 = vst.msk [vmem:[#allocation3 + $0x78] sm:$0xff] %vm383_vm1, %v6906_v25  ;;  %v6905_v55 = vsel %vm6873_vm3, %v6857_v51, %v6889_v16 }
 0x730   : > { %6921 = vst.msk [vmem:[#allocation3 + $0x70] sm:$0xff] %vm383_vm1, %v6905_v55 }
 0x731 PF: > { %v12994_v19 = vld [vmem:[%s13494_s23 + $0x84] ss:$16 sps:$4 sm:$0xff]   ;;  %v12996_v12 = vld [vmem:[%s13494_s23 + $0x8c] ss:$16 sps:$4 sm:$0xff]   ;;  %v13417_v53 = vmov 0   ;;  %s10710_s26 = sshll.u32 %s13486_s18, 4 }
 0x732   : > { %7088 = vmatprep.mubr.bf16.mxu0 %v13417_v53  ;;  %7129 = vmatprep.mubr.bf16.mxu1 %v13417_v53  ;;  %v12998_v1 = vld [vmem:[%s13494_s23 + $0x80] ss:$16 sps:$4 sm:$0xff]   ;;  %v12999_v30 = vld [vmem:[%s13494_s23 + $0x88] ss:$16 sps:$4 sm:$0xff]   ;;  %v13000_v10 = vld [vmem:[%s13494_s23 + $0xa4] ss:$16 sps:$4 sm:$0xff]  }
 0x733   : > { %7056 = vmatprep.subr.bf16.mxu0 %v12994_v19  ;;  %7097 = vmatprep.subr.bf16.mxu1 %v12996_v12  ;;  %v13002_v48 = vld [vmem:[%s13494_s23 + $0xac] ss:$16 sps:$4 sm:$0xff]   ;;  %v13004_v13 = vld [vmem:[%s13494_s23 + $0xa0] ss:$16 sps:$4 sm:$0xff]   ;;  %v13005_v57 = vld [vmem:[%s13494_s23 + $0xa8] ss:$16 sps:$4 sm:$0xff]  }
 0x734   : > { %7057 = vmatpush1.bf16.msra.mxu0 %v12998_v1  ;;  %7098 = vmatpush1.bf16.msra.mxu1 %v12999_v30  ;;  %v13006_v4 = vld [vmem:[%s13494_s23 + $0xc4] ss:$16 sps:$4 sm:$0xff]   ;;  %v13008_v17 = vld [vmem:[%s13494_s23 + $0xcc] ss:$16 sps:$4 sm:$0xff]   ;;  %v13010_v54 = vld [vmem:[%s13494_s23 + $0xc0] ss:$16 sps:$4 sm:$0xff]  }
 0x735   : > { %7058 = vmatprep.subr.bf16.mxu0 %v13000_v10  ;;  %7099 = vmatprep.subr.bf16.mxu1 %v13002_v48  ;;  %v13011_v36 = vld [vmem:[%s13494_s23 + $0xc8] ss:$16 sps:$4 sm:$0xff]   ;;  %v13012_v9 = vld [vmem:[%s13494_s23 + $0xe4] ss:$16 sps:$4 sm:$0xff]   ;;  %v13014_v58 = vld [vmem:[%s13494_s23 + $0xec] ss:$16 sps:$4 sm:$0xff]  }
 0x736   : > { %v13016_v40 = vld [vmem:[%s13494_s23 + $0xe0] ss:$16 sps:$4 sm:$0xff]   ;;  %v13017_v7 = vld [vmem:[%s13494_s23 + $0xe8] ss:$16 sps:$4 sm:$0xff]   ;;  %v13020_v28 = vld [vmem:[%s13494_s23 + $0x4] ss:$16 sps:$4 sm:$0xff]  }
 0x737   : > { %v13023_v59 = vld [vmem:[%s13494_s23 + $0xc] ss:$16 sps:$4 sm:$0xff]   ;;  %s15610_s27 = scalar_lea.vmem [#allocation3], %s10710_s26  ;;  %vm6969_vm1 = vcmask 1041409   ;;  %v13018_v21 = vld [vmem:[%s13494_s23] ss:$16 sps:$4 sm:$0xff]  }
 0x738   : > { %7059 = vmatpush1.bf16.msra.mxu0 %v13004_v13  ;;  %7100 = vmatpush1.bf16.msra.mxu1 %v13005_v57  ;;  %v6926_v18 = vld [vmem:[%s15610_s27] sm:$0xff]  ;;  %v13021_v26 = vld [vmem:[%s13494_s23 + $0x8] ss:$16 sps:$4 sm:$0xff]   ;;  %vm7052_vm2 = vcmask 523264   ;;  %v13029_v63 = vld [vmem:[%s13494_s23 + $0x2c] ss:$16 sps:$4 sm:$0xff]  }
 0x739   : > { %7060 = vmatprep.subr.bf16.mxu0 %v13006_v4  ;;  %7101 = vmatprep.subr.bf16.mxu1 %v13008_v17  ;;  %v6928_v56 = vld [vmem:[%s15610_s27 + $0x40] sm:$0xff]  ;;  %v6930_v11 = vpack.c.bf16 %v6926_v18, %v6926_v18  ;;  %v13027_v60 = vld [vmem:[%s13494_s23 + $0x28] ss:$16 sps:$4 sm:$0xff]   ;;  %v13035_v41 = vld [vmem:[%s13494_s23 + $0x4c] ss:$16 sps:$4 sm:$0xff]   ;;  %p10999_p5 = scmp.ne.s32.totalorder %s13486_s18, 3 }
 0x73a   : > { %v6931_v24 = vpack.c.bf16 %v6928_v56, %v6928_v56  ;;  %v13026_v44 = vld [vmem:[%s13494_s23 + $0x24] ss:$16 sps:$4 sm:$0xff]   ;;  %v13024_v35 = vld [vmem:[%s13494_s23 + $0x20] ss:$16 sps:$4 sm:$0xff]   ;;  %v13033_v62 = vld [vmem:[%s13494_s23 + $0x48] ss:$16 sps:$4 sm:$0xff]  }
 0x73b   : > { %v15614_v61 = vunpack.c.l.b16 %v6930_v11  ;;  %v13032_v52 = vld [vmem:[%s13494_s23 + $0x44] ss:$16 sps:$4 sm:$0xff]   ;;  %v13030_v46 = vld [vmem:[%s13494_s23 + $0x40] ss:$16 sps:$4 sm:$0xff]   ;;  %v13041_v33 = vld [vmem:[%s13494_s23 + $0x6c] ss:$16 sps:$4 sm:$0xff]  }
 0x73c   : > { %7061 = vmatpush1.bf16.msra.mxu0 %v13010_v54  ;;  %7102 = vmatpush1.bf16.msra.mxu1 %v13011_v36  ;;  %v15616_v14 = vunpack.c.l.b16 %v6931_v24  ;;  %v13038_v29 = vld [vmem:[%s13494_s23 + $0x64] ss:$16 sps:$4 sm:$0xff]   ;;  %v13036_v5 = vld [vmem:[%s13494_s23 + $0x60] ss:$16 sps:$4 sm:$0xff]   ;;  %v13039_v3 = vld [vmem:[%s13494_s23 + $0x68] ss:$16 sps:$4 sm:$0xff]  }
 0x73d   : > { %7062 = vmatprep.subr.bf16.mxu0 %v13012_v9  ;;  %7103 = vmatprep.subr.bf16.mxu1 %v13014_v58  ;;  %v6968_v15 = vrot.slane %v15614_v61, 1  ;;  %v7889_v27 = vrot.slane %v15614_v61, 5  ;;  %v8078_v49 = vrot.slane %v15614_v61, 6  ;;  %v8267_v0 = vrot.slane %v15614_v61, 7  ;;  %v13044_v45 = vld [vmem:[%s13494_s23 + $0x104] ss:$16 sps:$4 sm:$0xff]  }
 0x73e   : > { %v7890_v31 = vrot.slane %v15616_v14, 4  ;;  %v8079_v42 = vrot.slane %v15616_v14, 5  ;;  %v8268_v32 = vrot.slane %v15616_v14, 6  ;;  %v7138_v43 = vrot.slane %v15616_v14, 7  ;;  %v13047_v2 = vld [vmem:[%s13494_s23 + $0x10c] ss:$16 sps:$4 sm:$0xff]  }
 0x73f   : > { %v6970_v22 = vsel %vm6969_vm1, %v15616_v14, %v6968_v15  ;;  %v13042_v50 = vld [vmem:[%s13494_s23 + $0x100] ss:$16 sps:$4 sm:$0xff]   ;;  %v13045_v38 = vld [vmem:[%s13494_s23 + $0x108] ss:$16 sps:$4 sm:$0xff]   ;;  %v13050_v20 = vld [vmem:[%s13494_s23 + $0x124] ss:$16 sps:$4 sm:$0xff]  }
 0x740   : > { %7063 = vmatpush1.bf16.msra.mxu0 %v13016_v40  ;;  %7104 = vmatpush1.bf16.msra.mxu1 %v13017_v7  ;;  %v6971_v37 = vpack.c.b16 %v6970_v22, %v6970_v22  ;;  %v15638_v23 = vsel %vm6969_vm1, %v7890_v31, %v7889_v27  ;;  %v15644_v34 = vsel %vm6969_vm1, %v8079_v42, %v8078_v49  ;;  %v13053_v51 = vld [vmem:[%s13494_s23 + $0x12c] ss:$16 sps:$4 sm:$0xff]   ;;  %v13048_v8 = vld [vmem:[%s13494_s23 + $0x120] ss:$16 sps:$4 sm:$0xff]   ;;  %v13051_v16 = vld [vmem:[%s13494_s23 + $0x128] ss:$16 sps:$4 sm:$0xff]  }
 0x741   : > { %7224 = vmatprep.subr.bf16.mxu0 %v13020_v28  ;;  %7265 = vmatprep.subr.bf16.mxu1 %v13023_v59  ;;  %v15650_v39 = vsel %vm6969_vm1, %v8268_v32, %v8267_v0  ;;  %v7139_v6 = vsel %vm6969_vm1, %v7138_v43, %v15614_v61  ;;  %v13056_v25 = vld [vmem:[%s13494_s23 + $0x144] ss:$16 sps:$4 sm:$0xff]   ;;  %v13059_v55 = vld [vmem:[%s13494_s23 + $0x14c] ss:$16 sps:$4 sm:$0xff]   ;;  %v13054_v19 = vld [vmem:[%s13494_s23 + $0x140] ss:$16 sps:$4 sm:$0xff]  }
 0x742   : > { %v7140_v47 = vpack.c.b16 %v7139_v6, %v7139_v6  ;;  %v7322_v12 = vrot.slane %v15614_v61, 2  ;;  %v13057_v1 = vld [vmem:[%s13494_s23 + $0x148] ss:$16 sps:$4 sm:$0xff]   ;;  %v13062_v30 = vld [vmem:[%s13494_s23 + $0x164] ss:$16 sps:$4 sm:$0xff]   ;;  %v7323_v10 = vrot.slane %v15616_v14, 1 }
 0x743   : > { %10727 = vmatmul.mubr.msk.bf16.vlgmr.msra.gmra.mrb[0].mxu0 %vm7052_vm2, %v6971_v37  ;;  %10728 = vmatmul.mubr.msk.bf16.vlgmr.msra.gmra.mrb[0].mxu1 %vm7052_vm2, %v6971_v37  ;;  %v13065_v48 = vld [vmem:[%s13494_s23 + $0x16c] ss:$16 sps:$4 sm:$0xff]   ;;  %v13060_v13 = vld [vmem:[%s13494_s23 + $0x160] ss:$16 sps:$4 sm:$0xff]   ;;  %v13063_v57 = vld [vmem:[%s13494_s23 + $0x168] ss:$16 sps:$4 sm:$0xff]  }
 0x744   : > { %7225 = vmatpush1.bf16.msra.mxu0 %v13018_v21  ;;  %7266 = vmatpush1.bf16.msra.mxu1 %v13021_v26  ;;  %v13068_v4 = vld [vmem:[%s13494_s23 + $0x184] ss:$16 sps:$4 sm:$0xff]   ;;  %v7324_v17 = vsel %vm6969_vm1, %v7323_v10, %v7322_v12  ;;  %v13071_v54 = vld [vmem:[%s13494_s23 + $0x18c] ss:$16 sps:$4 sm:$0xff]   ;;  %v13066_v36 = vld [vmem:[%s13494_s23 + $0x180] ss:$16 sps:$4 sm:$0xff]  }
 0x745   : > { %7226 = vmatprep.subr.bf16.mxu0 %v13026_v44  ;;  %7267 = vmatprep.subr.bf16.mxu1 %v13029_v63  ;;  %v7325_v9 = vpack.c.b16 %v7324_v17, %v7324_v17  ;;  %v13069_v58 = vld [vmem:[%s13494_s23 + $0x188] ss:$16 sps:$4 sm:$0xff]   ;;  %v13074_v40 = vld [vmem:[%s13494_s23 + $0x1a4] ss:$16 sps:$4 sm:$0xff]   ;;  %v13077_v7 = vld [vmem:[%s13494_s23 + $0x1ac] ss:$16 sps:$4 sm:$0xff]  }
 0x746   : > { %7256 = vmatprep.mubr.bf16.mxu0 %v13417_v53  ;;  %7297 = vmatprep.mubr.bf16.mxu1 %v13417_v53  ;;  %v13072_v28 = vld [vmem:[%s13494_s23 + $0x1a0] ss:$16 sps:$4 sm:$0xff]   ;;  %v13075_v59 = vld [vmem:[%s13494_s23 + $0x1a8] ss:$16 sps:$4 sm:$0xff]   ;;  %v13080_v18 = vld [vmem:[%s13494_s23 + $0x1c4] ss:$16 sps:$4 sm:$0xff]  }
 0x747   : > { %v13083_v56 = vld [vmem:[%s13494_s23 + $0x1cc] ss:$16 sps:$4 sm:$0xff]   ;;  %v13078_v11 = vld [vmem:[%s13494_s23 + $0x1c0] ss:$16 sps:$4 sm:$0xff]   ;;  %v7511_v24 = vrot.slane %v15614_v61, 3  ;;  %v7512_v26 = vrot.slane %v15616_v14, 2 }
 0x748   : > { %7227 = vmatpush1.bf16.msra.mxu0 %v13024_v35  ;;  %7268 = vmatpush1.bf16.msra.mxu1 %v13027_v60  ;;  %v13081_v15 = vld [vmem:[%s13494_s23 + $0x1c8] ss:$16 sps:$4 sm:$0xff]   ;;  %v13086_v21 = vld [vmem:[%s13494_s23 + $0x1e4] ss:$16 sps:$4 sm:$0xff]   ;;  %v13089_v22 = vld [vmem:[%s13494_s23 + $0x1ec] ss:$16 sps:$4 sm:$0xff]  }
 0x749   : > { %7228 = vmatprep.subr.bf16.mxu0 %v13032_v52  ;;  %7269 = vmatprep.subr.bf16.mxu1 %v13035_v41  ;;  %v13084_v44 = vld [vmem:[%s13494_s23 + $0x1e0] ss:$16 sps:$4 sm:$0xff]   ;;  %v13087_v37 = vld [vmem:[%s13494_s23 + $0x1e8] ss:$16 sps:$4 sm:$0xff]   ;;  %v13092_v63 = vld [vmem:[%s13494_s23 + $0x204] ss:$16 sps:$4 sm:$0xff]   ;;  %v7513_v35 = vsel %vm6969_vm1, %v7512_v26, %v7511_v24 }
 0x74a   : > { %v13095_v27 = vld [vmem:[%s13494_s23 + $0x20c] ss:$16 sps:$4 sm:$0xff]   ;;  %v13090_v60 = vld [vmem:[%s13494_s23 + $0x200] ss:$16 sps:$4 sm:$0xff]   ;;  %v7514_v52 = vpack.c.b16 %v7513_v35, %v7513_v35  ;;  %v13093_v31 = vld [vmem:[%s13494_s23 + $0x208] ss:$16 sps:$4 sm:$0xff]  }
 0x74b   : > { %v13098_v41 = vld [vmem:[%s13494_s23 + $0x224] ss:$16 sps:$4 sm:$0xff]   ;;  %v13101_v49 = vld [vmem:[%s13494_s23 + $0x22c] ss:$16 sps:$4 sm:$0xff]   ;;  %v13096_v42 = vld [vmem:[%s13494_s23 + $0x220] ss:$16 sps:$4 sm:$0xff]  }
 0x74c   : > { %7229 = vmatpush1.bf16.msra.mxu0 %v13030_v46  ;;  %7270 = vmatpush1.bf16.msra.mxu1 %v13033_v62  ;;  %v13099_v0 = vld [vmem:[%s13494_s23 + $0x228] ss:$16 sps:$4 sm:$0xff]   ;;  %v13104_v32 = vld [vmem:[%s13494_s23 + $0x244] ss:$16 sps:$4 sm:$0xff]   ;;  %v13107_v46 = vld [vmem:[%s13494_s23 + $0x24c] ss:$16 sps:$4 sm:$0xff]  }
 0x74d   : > { %7230 = vmatprep.subr.bf16.mxu0 %v13038_v29  ;;  %7271 = vmatprep.subr.bf16.mxu1 %v13041_v33  ;;  %v13102_v62 = vld [vmem:[%s13494_s23 + $0x240] ss:$16 sps:$4 sm:$0xff]   ;;  %v7700_v29 = vrot.slane %v15614_v61, 4  ;;  %v13105_v43 = vld [vmem:[%s13494_s23 + $0x248] ss:$16 sps:$4 sm:$0xff]  }
 0x74e   : > { %v13110_v33 = vld [vmem:[%s13494_s23 + $0x264] ss:$16 sps:$4 sm:$0xff]   ;;  %v13111_v6 = vld [vmem:[%s13494_s23 + $0x268] ss:$16 sps:$4 sm:$0xff]   ;;  %v13132_v10 = vld [vmem:[%s13494_s23 + $0x2e0] ss:$16 sps:$4 sm:$0xff]  }
 0x74f   : > { %v13129_v12 = vld [vmem:[%s13494_s23 + $0x2c8] ss:$16 sps:$4 sm:$0xff]   ;;  %v13162_v26 = vld [vmem:[%s13494_s23 + $0x380] ss:$16 sps:$4 sm:$0xff]  }
 0x750   : > { %7231 = vmatpush1.bf16.msra.mxu0 %v13036_v5  ;;  %7272 = vmatpush1.bf16.msra.mxu1 %v13039_v3  ;;  %v7701_v5 = vrot.slane %v15616_v14, 3  ;;  %v13113_v3 = vld [vmem:[%s13494_s23 + $0x26c] ss:$16 sps:$4 sm:$0xff]   ;;  %v13114_v14 = vld [vmem:[%s13494_s23 + $0x280] ss:$16 sps:$4 sm:$0xff]  }
 0x751   : > { %7409 = vmatprep.subr.bf16.mxu0 %v13044_v45  ;;  %7450 = vmatprep.subr.bf16.mxu1 %v13047_v2  ;;  %v13108_v45 = vld [vmem:[%s13494_s23 + $0x260] ss:$16 sps:$4 sm:$0xff]   ;;  %v13116_v2 = vld [vmem:[%s13494_s23 + $0x284] ss:$16 sps:$4 sm:$0xff]   ;;  %v13141_v17 = vld [vmem:[%s13494_s23 + $0x308] ss:$16 sps:$4 sm:$0xff]  }
 0x752   : > { %v7702_v61 = vsel %vm6969_vm1, %v7701_v5, %v7700_v29  ;;  %v13159_v24 = vld [vmem:[%s13494_s23 + $0x368] ss:$16 sps:$4 sm:$0xff]   ;;  %v13168_v35 = vld [vmem:[%s13494_s23 + $0x3a0] ss:$16 sps:$4 sm:$0xff]   ;;  %v13194_v5 = vld [vmem:[%s13494_s23 + $0x424] ss:$16 sps:$4 sm:$0xff]  }
 0x753   : > { %10745 = vmatmul.mubr.msk.bf16.vlgmr.msra.gmra.mrb[0].mxu0 %vm7052_vm2, %v7140_v47  ;;  %10746 = vmatmul.mubr.msk.bf16.vlgmr.msra.gmra.mrb[0].mxu1 %vm7052_vm2, %v7140_v47  ;;  %v7703_v47 = vpack.c.b16 %v7702_v61, %v7702_v61  ;;  %v13186_v29 = vld [vmem:[%s13494_s23 + $0x400] ss:$16 sps:$4 sm:$0xff]   ;;  %v13195_v61 = vld [vmem:[%s13494_s23 + $0x428] ss:$16 sps:$4 sm:$0xff]  }
 0x754   : > { %7410 = vmatpush1.bf16.msra.mxu0 %v13042_v50  ;;  %7451 = vmatpush1.bf16.msra.mxu1 %v13045_v38  ;;  %v13119_v50 = vld [vmem:[%s13494_s23 + $0x28c] ss:$16 sps:$4 sm:$0xff]   ;;  %v13117_v38 = vld [vmem:[%s13494_s23 + $0x288] ss:$16 sps:$4 sm:$0xff]  }
 0x755   : > { %7411 = vmatprep.subr.bf16.mxu0 %v13050_v20  ;;  %7452 = vmatprep.subr.bf16.mxu1 %v13053_v51  ;;  %v13122_v20 = vld [vmem:[%s13494_s23 + $0x2a4] ss:$16 sps:$4 sm:$0xff]   ;;  %v13125_v51 = vld [vmem:[%s13494_s23 + $0x2ac] ss:$16 sps:$4 sm:$0xff]  }
 0x756   : > { %7441 = vmatprep.mubr.bf16.mxu0 %v13417_v53  ;;  %7482 = vmatprep.mubr.bf16.mxu1 %v13417_v53 }
 0x758   : > { %7412 = vmatpush1.bf16.msra.mxu0 %v13048_v8  ;;  %7453 = vmatpush1.bf16.msra.mxu1 %v13051_v16  ;;  %v13120_v8 = vld [vmem:[%s13494_s23 + $0x2a0] ss:$16 sps:$4 sm:$0xff]   ;;  %v13123_v16 = vld [vmem:[%s13494_s23 + $0x2a8] ss:$16 sps:$4 sm:$0xff]  }
 0x759   : > { %7413 = vmatprep.subr.bf16.mxu0 %v13056_v25  ;;  %7454 = vmatprep.subr.bf16.mxu1 %v13059_v55  ;;  %v13128_v25 = vld [vmem:[%s13494_s23 + $0x2c4] ss:$16 sps:$4 sm:$0xff]   ;;  %v13131_v55 = vld [vmem:[%s13494_s23 + $0x2cc] ss:$16 sps:$4 sm:$0xff]  }
 0x75c   : > { %7414 = vmatpush1.bf16.msra.mxu0 %v13054_v19  ;;  %7455 = vmatpush1.bf16.msra.mxu1 %v13057_v1  ;;  %v13126_v19 = vld [vmem:[%s13494_s23 + $0x2c0] ss:$16 sps:$4 sm:$0xff]   ;;  %v13134_v1 = vld [vmem:[%s13494_s23 + $0x2e4] ss:$16 sps:$4 sm:$0xff]  }
 0x75d   : > { %7415 = vmatprep.subr.bf16.mxu0 %v13062_v30  ;;  %7456 = vmatprep.subr.bf16.mxu1 %v13065_v48  ;;  %v13137_v30 = vld [vmem:[%s13494_s23 + $0x2ec] ss:$16 sps:$4 sm:$0xff]   ;;  %v13135_v48 = vld [vmem:[%s13494_s23 + $0x2e8] ss:$16 sps:$4 sm:$0xff]  }
 0x760   : > { %7416 = vmatpush1.bf16.msra.mxu0 %v13060_v13  ;;  %7457 = vmatpush1.bf16.msra.mxu1 %v13063_v57  ;;  %v13140_v13 = vld [vmem:[%s13494_s23 + $0x304] ss:$16 sps:$4 sm:$0xff]   ;;  %v13143_v57 = vld [vmem:[%s13494_s23 + $0x30c] ss:$16 sps:$4 sm:$0xff]  }
 0x761   : > { %7598 = vmatprep.subr.bf16.mxu0 %v13068_v4  ;;  %7639 = vmatprep.subr.bf16.mxu1 %v13071_v54  ;;  %v13138_v4 = vld [vmem:[%s13494_s23 + $0x300] ss:$16 sps:$4 sm:$0xff]   ;;  %v7892_v54 = vpack.c.b16 %v15638_v23, %v15638_v23  ;;  %v13152_v23 = vld [vmem:[%s13494_s23 + $0x344] ss:$16 sps:$4 sm:$0xff]  }
 0x763   : > { %10763 = vmatmul.mubr.msk.bf16.vlgmr.msra.gmra.mrb[0].mxu0 %vm7052_vm2, %v7325_v9  ;;  %10764 = vmatmul.mubr.msk.bf16.vlgmr.msra.gmra.mrb[0].mxu1 %vm7052_vm2, %v7325_v9  ;;  %v13149_v9 = vld [vmem:[%s13494_s23 + $0x32c] ss:$16 sps:$4 sm:$0xff]  }
 0x764   : > { %7599 = vmatpush1.bf16.msra.mxu0 %v13066_v36  ;;  %7640 = vmatpush1.bf16.msra.mxu1 %v13069_v58  ;;  %v13146_v36 = vld [vmem:[%s13494_s23 + $0x324] ss:$16 sps:$4 sm:$0xff]   ;;  %v13144_v58 = vld [vmem:[%s13494_s23 + $0x320] ss:$16 sps:$4 sm:$0xff]  }
 0x765   : > { %7600 = vmatprep.subr.bf16.mxu0 %v13074_v40  ;;  %7641 = vmatprep.subr.bf16.mxu1 %v13077_v7  ;;  %v13147_v40 = vld [vmem:[%s13494_s23 + $0x328] ss:$16 sps:$4 sm:$0xff]   ;;  %v13155_v7 = vld [vmem:[%s13494_s23 + $0x34c] ss:$16 sps:$4 sm:$0xff]  }
 0x766   : > { %7630 = vmatprep.mubr.bf16.mxu0 %v13417_v53  ;;  %7671 = vmatprep.mubr.bf16.mxu1 %v13417_v53 }
 0x768   : > { %7601 = vmatpush1.bf16.msra.mxu0 %v13072_v28  ;;  %7642 = vmatpush1.bf16.msra.mxu1 %v13075_v59  ;;  %v13150_v28 = vld [vmem:[%s13494_s23 + $0x340] ss:$16 sps:$4 sm:$0xff]   ;;  %v13153_v59 = vld [vmem:[%s13494_s23 + $0x348] ss:$16 sps:$4 sm:$0xff]  }
 0x769   : > { %7602 = vmatprep.subr.bf16.mxu0 %v13080_v18  ;;  %7643 = vmatprep.subr.bf16.mxu1 %v13083_v56  ;;  %v13158_v18 = vld [vmem:[%s13494_s23 + $0x364] ss:$16 sps:$4 sm:$0xff]   ;;  %v13161_v56 = vld [vmem:[%s13494_s23 + $0x36c] ss:$16 sps:$4 sm:$0xff]  }
 0x76c   : > { %7603 = vmatpush1.bf16.msra.mxu0 %v13078_v11  ;;  %7644 = vmatpush1.bf16.msra.mxu1 %v13081_v15  ;;  %v13156_v11 = vld [vmem:[%s13494_s23 + $0x360] ss:$16 sps:$4 sm:$0xff]   ;;  %v13164_v15 = vld [vmem:[%s13494_s23 + $0x384] ss:$16 sps:$4 sm:$0xff]  }
 0x76d   : > { %7604 = vmatprep.subr.bf16.mxu0 %v13086_v21  ;;  %7645 = vmatprep.subr.bf16.mxu1 %v13089_v22  ;;  %v13167_v21 = vld [vmem:[%s13494_s23 + $0x38c] ss:$16 sps:$4 sm:$0xff]   ;;  %v13165_v22 = vld [vmem:[%s13494_s23 + $0x388] ss:$16 sps:$4 sm:$0xff]  }
 0x770   : > { %7605 = vmatpush1.bf16.msra.mxu0 %v13084_v44  ;;  %7646 = vmatpush1.bf16.msra.mxu1 %v13087_v37  ;;  %v8081_v44 = vpack.c.b16 %v15644_v34, %v15644_v34  ;;  %v13170_v37 = vld [vmem:[%s13494_s23 + $0x3a4] ss:$16 sps:$4 sm:$0xff]  }
 0x771   : > { %7787 = vmatprep.subr.bf16.mxu0 %v13092_v63  ;;  %7828 = vmatprep.subr.bf16.mxu1 %v13095_v27  ;;  %v13173_v63 = vld [vmem:[%s13494_s23 + $0x3ac] ss:$16 sps:$4 sm:$0xff]   ;;  %v13171_v27 = vld [vmem:[%s13494_s23 + $0x3a8] ss:$16 sps:$4 sm:$0xff]   ;;  %v13176_v34 = vld [vmem:[%s13494_s23 + $0x3c4] ss:$16 sps:$4 sm:$0xff]  }
 0x773   : > { %10781 = vmatmul.mubr.msk.bf16.vlgmr.msra.gmra.mrb[0].mxu0 %vm7052_vm2, %v7514_v52  ;;  %10782 = vmatmul.mubr.msk.bf16.vlgmr.msra.gmra.mrb[0].mxu1 %vm7052_vm2, %v7514_v52  ;;  %v13174_v52 = vld [vmem:[%s13494_s23 + $0x3c0] ss:$16 sps:$4 sm:$0xff]  }
 0x774   : > { %7788 = vmatpush1.bf16.msra.mxu0 %v13090_v60  ;;  %7829 = vmatpush1.bf16.msra.mxu1 %v13093_v31  ;;  %v13179_v60 = vld [vmem:[%s13494_s23 + $0x3cc] ss:$16 sps:$4 sm:$0xff]   ;;  %v13177_v31 = vld [vmem:[%s13494_s23 + $0x3c8] ss:$16 sps:$4 sm:$0xff]  }
 0x775   : > { %7789 = vmatprep.subr.bf16.mxu0 %v13098_v41  ;;  %7830 = vmatprep.subr.bf16.mxu1 %v13101_v49  ;;  %v13182_v41 = vld [vmem:[%s13494_s23 + $0x3e4] ss:$16 sps:$4 sm:$0xff]   ;;  %v13185_v49 = vld [vmem:[%s13494_s23 + $0x3ec] ss:$16 sps:$4 sm:$0xff]  }
 0x776   : > { %7819 = vmatprep.mubr.bf16.mxu0 %v13417_v53  ;;  %7860 = vmatprep.mubr.bf16.mxu1 %v13417_v53 }
 0x778   : > { %7790 = vmatpush1.bf16.msra.mxu0 %v13096_v42  ;;  %7831 = vmatpush1.bf16.msra.mxu1 %v13099_v0  ;;  %v6929_v42 = vld [vmem:[%s15610_s27 + $0x48] sm:$0xff]  ;;  %v13180_v0 = vld [vmem:[%s13494_s23 + $0x3e0] ss:$16 sps:$4 sm:$0xff]  }
 0x779   : > { %7791 = vmatprep.subr.bf16.mxu0 %v13104_v32  ;;  %7832 = vmatprep.subr.bf16.mxu1 %v13107_v46  ;;  %v13183_v32 = vld [vmem:[%s13494_s23 + $0x3e8] ss:$16 sps:$4 sm:$0xff]   ;;  %v13188_v46 = vld [vmem:[%s13494_s23 + $0x404] ss:$16 sps:$4 sm:$0xff]  }
 0x77c   : > { %7792 = vmatpush1.bf16.msra.mxu0 %v13102_v62  ;;  %7833 = vmatpush1.bf16.msra.mxu1 %v13105_v43  ;;  %v13191_v62 = vld [vmem:[%s13494_s23 + $0x40c] ss:$16 sps:$4 sm:$0xff]   ;;  %v13189_v43 = vld [vmem:[%s13494_s23 + $0x408] ss:$16 sps:$4 sm:$0xff]  }
 0x77d   : > { %7793 = vmatprep.subr.bf16.mxu0 %v13110_v33  ;;  %7834 = vmatprep.subr.bf16.mxu1 %v13113_v3  ;;  %v8270_v33 = vpack.c.b16 %v15650_v39, %v15650_v39  ;;  %v8441_v3 = vpack.c.bf16 %v6929_v42, %v6929_v42  ;;  %v13200_v39 = vld [vmem:[%s13494_s23 + $0x444] ss:$16 sps:$4 sm:$0xff]   ;;  %v13252_v42 = vld [vmem:[%s13494_s23 + $0x560] ss:$16 sps:$4 sm:$0xff]  }
 0x780   : > { %7794 = vmatpush1.bf16.msra.mxu0 %v13108_v45  ;;  %7835 = vmatpush1.bf16.msra.mxu1 %v13111_v6  ;;  %v13197_v45 = vld [vmem:[%s13494_s23 + $0x42c] ss:$16 sps:$4 sm:$0xff]  }
 0x781   : > { %7976 = vmatprep.subr.bf16.mxu0 %v13116_v2  ;;  %8017 = vmatprep.subr.bf16.mxu1 %v13119_v50  ;;  %v6927_v6 = vld [vmem:[%s15610_s27 + $0x8] sm:$0xff]  ;;  %v13192_v2 = vld [vmem:[%s13494_s23 + $0x420] ss:$16 sps:$4 sm:$0xff]  }
 0x782   : > { %v8440_v50 = vpack.c.bf16 %v6927_v6, %v6927_v6  ;;  %v13267_v6 = vld [vmem:[%s13494_s23 + $0x5a8] ss:$16 sps:$4 sm:$0xff]  }
 0x783   : > { %10799 = vmatmul.mubr.msk.bf16.vlgmr.msra.gmra.mrb[0].mxu0 %vm7052_vm2, %v7703_v47  ;;  %10800 = vmatmul.mubr.msk.bf16.vlgmr.msra.gmra.mrb[0].mxu1 %vm7052_vm2, %v7703_v47  ;;  %v13203_v47 = vld [vmem:[%s13494_s23 + $0x44c] ss:$16 sps:$4 sm:$0xff]  }
 0x784   : > { %7977 = vmatpush1.bf16.msra.mxu0 %v13114_v14  ;;  %8018 = vmatpush1.bf16.msra.mxu1 %v13117_v38  ;;  %v15805_v14 = vunpack.c.l.b16 %v8441_v3  ;;  %v13198_v38 = vld [vmem:[%s13494_s23 + $0x440] ss:$16 sps:$4 sm:$0xff]   ;;  %v13269_v3 = vld [vmem:[%s13494_s23 + $0x5ac] ss:$16 sps:$4 sm:$0xff]  }
 0x785   : > { %7978 = vmatprep.subr.bf16.mxu0 %v13122_v20  ;;  %8019 = vmatprep.subr.bf16.mxu1 %v13125_v51  ;;  %v13201_v20 = vld [vmem:[%s13494_s23 + $0x448] ss:$16 sps:$4 sm:$0xff]   ;;  %v13206_v51 = vld [vmem:[%s13494_s23 + $0x464] ss:$16 sps:$4 sm:$0xff]  }
 0x786   : > { %8008 = vmatprep.mubr.bf16.mxu0 %v13417_v53  ;;  %8049 = vmatprep.mubr.bf16.mxu1 %v13417_v53 }
 0x788   : > { %7979 = vmatpush1.bf16.msra.mxu0 %v13120_v8  ;;  %8020 = vmatpush1.bf16.msra.mxu1 %v13123_v16  ;;  %v15813_v8 = vunpack.c.l.b16 %v8440_v50  ;;  %v8462_v16 = vrot.slane %v15805_v14, 7  ;;  %v13273_v50 = vld [vmem:[%s13494_s23 + $0x5c8] ss:$16 sps:$4 sm:$0xff]  }
 0x789   : > { %7980 = vmatprep.subr.bf16.mxu0 %v13128_v25  ;;  %8021 = vmatprep.subr.bf16.mxu1 %v13131_v55  ;;  %v13209_v25 = vld [vmem:[%s13494_s23 + $0x46c] ss:$16 sps:$4 sm:$0xff]   ;;  %v13204_v55 = vld [vmem:[%s13494_s23 + $0x460] ss:$16 sps:$4 sm:$0xff]  }
 0x78c   : > { %7981 = vmatpush1.bf16.msra.mxu0 %v13126_v19  ;;  %8022 = vmatpush1.bf16.msra.mxu1 %v13129_v12  ;;  %v13207_v19 = vld [vmem:[%s13494_s23 + $0x468] ss:$16 sps:$4 sm:$0xff]   ;;  %v13212_v12 = vld [vmem:[%s13494_s23 + $0x484] ss:$16 sps:$4 sm:$0xff]  }
 0x78d   : > { %7982 = vmatprep.subr.bf16.mxu0 %v13134_v1  ;;  %8023 = vmatprep.subr.bf16.mxu1 %v13137_v30  ;;  %v8463_v1 = vsel %vm6969_vm1, %v8462_v16, %v15813_v8  ;;  %v13215_v30 = vld [vmem:[%s13494_s23 + $0x48c] ss:$16 sps:$4 sm:$0xff]   ;;  %v13276_v16 = vld [vmem:[%s13494_s23 + $0x5e0] ss:$16 sps:$4 sm:$0xff]  }
 0x790   : > { %7983 = vmatpush1.bf16.msra.mxu0 %v13132_v10  ;;  %8024 = vmatpush1.bf16.msra.mxu1 %v13135_v48  ;;  %v13210_v10 = vld [vmem:[%s13494_s23 + $0x480] ss:$16 sps:$4 sm:$0xff]   ;;  %v13213_v48 = vld [vmem:[%s13494_s23 + $0x488] ss:$16 sps:$4 sm:$0xff]  }
 0x791   : > { %8165 = vmatprep.subr.bf16.mxu0 %v13140_v13  ;;  %8206 = vmatprep.subr.bf16.mxu1 %v13143_v57  ;;  %v8464_v13 = vpack.c.b16 %v8463_v1, %v8463_v1  ;;  %v13218_v57 = vld [vmem:[%s13494_s23 + $0x4a4] ss:$16 sps:$4 sm:$0xff]  }
 0x793   : > { %10817 = vmatmul.mubr.msk.bf16.vlgmr.msra.gmra.mrb[0].mxu0 %vm7052_vm2, %v7892_v54  ;;  %10818 = vmatmul.mubr.msk.bf16.vlgmr.msra.gmra.mrb[0].mxu1 %vm7052_vm2, %v7892_v54  ;;  %v13219_v54 = vld [vmem:[%s13494_s23 + $0x4a8] ss:$16 sps:$4 sm:$0xff]  }
 0x794   : > { %8166 = vmatpush1.bf16.msra.mxu0 %v13138_v4  ;;  %8207 = vmatpush1.bf16.msra.mxu1 %v13141_v17  ;;  %v13221_v4 = vld [vmem:[%s13494_s23 + $0x4ac] ss:$16 sps:$4 sm:$0xff]   ;;  %v13216_v17 = vld [vmem:[%s13494_s23 + $0x4a0] ss:$16 sps:$4 sm:$0xff]  }
 0x795   : > { %8167 = vmatprep.subr.bf16.mxu0 %v13146_v36  ;;  %8208 = vmatprep.subr.bf16.mxu1 %v13149_v9  ;;  %v13224_v36 = vld [vmem:[%s13494_s23 + $0x4c4] ss:$16 sps:$4 sm:$0xff]   ;;  %v13227_v9 = vld [vmem:[%s13494_s23 + $0x4cc] ss:$16 sps:$4 sm:$0xff]  }
 0x796   : > { %8197 = vmatprep.mubr.bf16.mxu0 %v13417_v53  ;;  %8238 = vmatprep.mubr.bf16.mxu1 %v13417_v53 }
 0x798   : > { %8168 = vmatpush1.bf16.msra.mxu0 %v13144_v58  ;;  %8209 = vmatpush1.bf16.msra.mxu1 %v13147_v40  ;;  %v13222_v58 = vld [vmem:[%s13494_s23 + $0x4c0] ss:$16 sps:$4 sm:$0xff]   ;;  %v13225_v40 = vld [vmem:[%s13494_s23 + $0x4c8] ss:$16 sps:$4 sm:$0xff]  }
 0x799   : > { %8169 = vmatprep.subr.bf16.mxu0 %v13152_v23  ;;  %8210 = vmatprep.subr.bf16.mxu1 %v13155_v7  ;;  %v13230_v23 = vld [vmem:[%s13494_s23 + $0x4e4] ss:$16 sps:$4 sm:$0xff]   ;;  %v8650_v7 = vrot.slane %v15813_v8, 1 }
 0x79c   : > { %8170 = vmatpush1.bf16.msra.mxu0 %v13150_v28  ;;  %8211 = vmatpush1.bf16.msra.mxu1 %v13153_v59  ;;  %v13233_v28 = vld [vmem:[%s13494_s23 + $0x4ec] ss:$16 sps:$4 sm:$0xff]   ;;  %v13228_v59 = vld [vmem:[%s13494_s23 + $0x4e0] ss:$16 sps:$4 sm:$0xff]  }
 0x79d   : > { %8171 = vmatprep.subr.bf16.mxu0 %v13158_v18  ;;  %8212 = vmatprep.subr.bf16.mxu1 %v13161_v56  ;;  %v13231_v18 = vld [vmem:[%s13494_s23 + $0x4e8] ss:$16 sps:$4 sm:$0xff]   ;;  %v13236_v56 = vld [vmem:[%s13494_s23 + $0x504] ss:$16 sps:$4 sm:$0xff]  }
 0x7a0   : > { %8172 = vmatpush1.bf16.msra.mxu0 %v13156_v11  ;;  %8213 = vmatpush1.bf16.msra.mxu1 %v13159_v24  ;;  %v8651_v11 = vsel %vm6969_vm1, %v15805_v14, %v8650_v7  ;;  %v13239_v24 = vld [vmem:[%s13494_s23 + $0x50c] ss:$16 sps:$4 sm:$0xff]  }
 0x7a1   : > { %8354 = vmatprep.subr.bf16.mxu0 %v13164_v15  ;;  %8395 = vmatprep.subr.bf16.mxu1 %v13167_v21  ;;  %v13234_v15 = vld [vmem:[%s13494_s23 + $0x500] ss:$16 sps:$4 sm:$0xff]   ;;  %v13237_v21 = vld [vmem:[%s13494_s23 + $0x508] ss:$16 sps:$4 sm:$0xff]   ;;  %v13305_v7 = vld [vmem:[%s13494_s23 + $0x66c] ss:$16 sps:$4 sm:$0xff]  }
 0x7a3   : > { %10835 = vmatmul.mubr.msk.bf16.vlgmr.msra.gmra.mrb[0].mxu0 %vm7052_vm2, %v8081_v44  ;;  %10836 = vmatmul.mubr.msk.bf16.vlgmr.msra.gmra.mrb[0].mxu1 %vm7052_vm2, %v8081_v44  ;;  %v13245_v44 = vld [vmem:[%s13494_s23 + $0x52c] ss:$16 sps:$4 sm:$0xff]  }
 0x7a4   : > { %8355 = vmatpush1.bf16.msra.mxu0 %v13162_v26  ;;  %8396 = vmatpush1.bf16.msra.mxu1 %v13165_v22  ;;  %v8652_v26 = vpack.c.b16 %v8651_v11, %v8651_v11  ;;  %v13242_v22 = vld [vmem:[%s13494_s23 + $0x524] ss:$16 sps:$4 sm:$0xff]   ;;  %v13311_v11 = vld [vmem:[%s13494_s23 + $0x68c] ss:$16 sps:$4 sm:$0xff]  }
 0x7a5   : > { %8356 = vmatprep.subr.bf16.mxu0 %v13170_v37  ;;  %8397 = vmatprep.subr.bf16.mxu1 %v13173_v63  ;;  %v13240_v37 = vld [vmem:[%s13494_s23 + $0x520] ss:$16 sps:$4 sm:$0xff]   ;;  %v13243_v63 = vld [vmem:[%s13494_s23 + $0x528] ss:$16 sps:$4 sm:$0xff]  }
 0x7a6   : > { %8386 = vmatprep.mubr.bf16.mxu0 %v13417_v53  ;;  %8427 = vmatprep.mubr.bf16.mxu1 %v13417_v53 }
 0x7a8   : > { %8357 = vmatpush1.bf16.msra.mxu0 %v13168_v35  ;;  %8398 = vmatpush1.bf16.msra.mxu1 %v13171_v27  ;;  %v13248_v35 = vld [vmem:[%s13494_s23 + $0x544] ss:$16 sps:$4 sm:$0xff]   ;;  %v13251_v27 = vld [vmem:[%s13494_s23 + $0x54c] ss:$16 sps:$4 sm:$0xff]  }
 0x7a9   : > { %8358 = vmatprep.subr.bf16.mxu0 %v13176_v34  ;;  %8399 = vmatprep.subr.bf16.mxu1 %v13179_v60  ;;  %v13246_v34 = vld [vmem:[%s13494_s23 + $0x540] ss:$16 sps:$4 sm:$0xff]   ;;  %v13249_v60 = vld [vmem:[%s13494_s23 + $0x548] ss:$16 sps:$4 sm:$0xff]  }
 0x7ac   : > { %8359 = vmatpush1.bf16.msra.mxu0 %v13174_v52  ;;  %8400 = vmatpush1.bf16.msra.mxu1 %v13177_v31  ;;  %v8838_v52 = vrot.slane %v15813_v8, 2  ;;  %v8839_v31 = vrot.slane %v15805_v14, 1 }
 0x7ad   : > { %8360 = vmatprep.subr.bf16.mxu0 %v13182_v41  ;;  %8401 = vmatprep.subr.bf16.mxu1 %v13185_v49  ;;  %v13254_v41 = vld [vmem:[%s13494_s23 + $0x564] ss:$16 sps:$4 sm:$0xff]   ;;  %v13257_v49 = vld [vmem:[%s13494_s23 + $0x56c] ss:$16 sps:$4 sm:$0xff]  }
 0x7b0   : > { %8361 = vmatpush1.bf16.msra.mxu0 %v13180_v0  ;;  %8402 = vmatpush1.bf16.msra.mxu1 %v13183_v32  ;;  %v13255_v0 = vld [vmem:[%s13494_s23 + $0x568] ss:$16 sps:$4 sm:$0xff]   ;;  %v8840_v32 = vsel %vm6969_vm1, %v8839_v31, %v8838_v52  ;;  %v9406_v52 = vrot.slane %v15805_v14, 4  ;;  %v13326_v31 = vld [vmem:[%s13494_s23 + $0x6e4] ss:$16 sps:$4 sm:$0xff]  }
 0x7b1   : > { %8548 = vmatprep.subr.bf16.mxu0 %v13188_v46  ;;  %8589 = vmatprep.subr.bf16.mxu1 %v13191_v62  ;;  %v13260_v46 = vld [vmem:[%s13494_s23 + $0x584] ss:$16 sps:$4 sm:$0xff]   ;;  %v13263_v62 = vld [vmem:[%s13494_s23 + $0x58c] ss:$16 sps:$4 sm:$0xff]  }
 0x7b3   : > { %10853 = vmatmul.mubr.msk.bf16.vlgmr.msra.gmra.mrb[0].mxu0 %vm7052_vm2, %v8270_v33  ;;  %10854 = vmatmul.mubr.msk.bf16.vlgmr.msra.gmra.mrb[0].mxu1 %vm7052_vm2, %v8270_v33  ;;  %v13261_v33 = vld [vmem:[%s13494_s23 + $0x588] ss:$16 sps:$4 sm:$0xff]  }
 0x7b4   : > { %8549 = vmatpush1.bf16.msra.mxu0 %v13186_v29  ;;  %8590 = vmatpush1.bf16.msra.mxu1 %v13189_v43  ;;  %v8841_v29 = vpack.c.b16 %v8840_v32, %v8840_v32  ;;  %v13258_v43 = vld [vmem:[%s13494_s23 + $0x580] ss:$16 sps:$4 sm:$0xff]   ;;  %v13332_v32 = vld [vmem:[%s13494_s23 + $0x704] ss:$16 sps:$4 sm:$0xff]  }
 0x7b5   : > { %8550 = vmatprep.subr.bf16.mxu0 %v13194_v5  ;;  %8591 = vmatprep.subr.bf16.mxu1 %v13197_v45  ;;  %v13266_v5 = vld [vmem:[%s13494_s23 + $0x5a4] ss:$16 sps:$4 sm:$0xff]   ;;  %v13264_v45 = vld [vmem:[%s13494_s23 + $0x5a0] ss:$16 sps:$4 sm:$0xff]  }
 0x7b6   : > { %8580 = vmatprep.mubr.bf16.mxu0 %v13417_v53  ;;  %8621 = vmatprep.mubr.bf16.mxu1 %v13417_v53 }
 0x7b8   : > { %8551 = vmatpush1.bf16.msra.mxu0 %v13192_v2  ;;  %8592 = vmatpush1.bf16.msra.mxu1 %v13195_v61  ;;  %v13272_v2 = vld [vmem:[%s13494_s23 + $0x5c4] ss:$16 sps:$4 sm:$0xff]   ;;  %v13275_v61 = vld [vmem:[%s13494_s23 + $0x5cc] ss:$16 sps:$4 sm:$0xff]  }
 0x7b9   : > { %8552 = vmatprep.subr.bf16.mxu0 %v13200_v39  ;;  %8593 = vmatprep.subr.bf16.mxu1 %v13203_v47  ;;  %v13270_v39 = vld [vmem:[%s13494_s23 + $0x5c0] ss:$16 sps:$4 sm:$0xff]   ;;  %v9027_v47 = vrot.slane %v15813_v8, 3 }
 0x7bc   : > { %8553 = vmatpush1.bf16.msra.mxu0 %v13198_v38  ;;  %8594 = vmatpush1.bf16.msra.mxu1 %v13201_v20  ;;  %v9028_v38 = vrot.slane %v15805_v14, 2  ;;  %v13278_v20 = vld [vmem:[%s13494_s23 + $0x5e4] ss:$16 sps:$4 sm:$0xff]  }
 0x7bd   : > { %8554 = vmatprep.subr.bf16.mxu0 %v13206_v51  ;;  %8595 = vmatprep.subr.bf16.mxu1 %v13209_v25  ;;  %v13281_v51 = vld [vmem:[%s13494_s23 + $0x5ec] ss:$16 sps:$4 sm:$0xff]   ;;  %v13279_v25 = vld [vmem:[%s13494_s23 + $0x5e8] ss:$16 sps:$4 sm:$0xff]  }
 0x7c0   : > { %8555 = vmatpush1.bf16.msra.mxu0 %v13204_v55  ;;  %8596 = vmatpush1.bf16.msra.mxu1 %v13207_v19  ;;  %v9029_v55 = vsel %vm6969_vm1, %v9028_v38, %v9027_v47  ;;  %v13284_v19 = vld [vmem:[%s13494_s23 + $0x604] ss:$16 sps:$4 sm:$0xff]   ;;  %v9595_v47 = vrot.slane %v15805_v14, 5 }
 0x7c1   : > { %8736 = vmatprep.subr.bf16.mxu0 %v13212_v12  ;;  %8777 = vmatprep.subr.bf16.mxu1 %v13215_v30  ;;  %v13287_v12 = vld [vmem:[%s13494_s23 + $0x60c] ss:$16 sps:$4 sm:$0xff]   ;;  %v9030_v1 = vpack.c.b16 %v9029_v55, %v9029_v55  ;;  %v13282_v30 = vld [vmem:[%s13494_s23 + $0x600] ss:$16 sps:$4 sm:$0xff]   ;;  %v13350_v38 = vld [vmem:[%s13494_s23 + $0x764] ss:$16 sps:$4 sm:$0xff]  }
 0x7c2   : > { %v13356_v55 = vld [vmem:[%s13494_s23 + $0x784] ss:$16 sps:$4 sm:$0xff]  }
 0x7c3   : > { %10871 = vmatmul.mubr.msk.bf16.vlgmr.msra.gmra.mrb[0].mxu0 %vm7052_vm2, %v8464_v13  ;;  %10872 = vmatmul.mubr.msk.bf16.vlgmr.msra.gmra.mrb[0].mxu1 %vm7052_vm2, %v8464_v13  ;;  %v13293_v13 = vld [vmem:[%s13494_s23 + $0x62c] ss:$16 sps:$4 sm:$0xff]  }
 0x7c4   : > { %8737 = vmatpush1.bf16.msra.mxu0 %v13210_v10  ;;  %8778 = vmatpush1.bf16.msra.mxu1 %v13213_v48  ;;  %v13285_v10 = vld [vmem:[%s13494_s23 + $0x608] ss:$16 sps:$4 sm:$0xff]   ;;  %v13290_v48 = vld [vmem:[%s13494_s23 + $0x624] ss:$16 sps:$4 sm:$0xff]  }
 0x7c5   : > { %8738 = vmatprep.subr.bf16.mxu0 %v13218_v57  ;;  %8779 = vmatprep.subr.bf16.mxu1 %v13221_v4  ;;  %v13288_v57 = vld [vmem:[%s13494_s23 + $0x620] ss:$16 sps:$4 sm:$0xff]   ;;  %v13291_v4 = vld [vmem:[%s13494_s23 + $0x628] ss:$16 sps:$4 sm:$0xff]  }
 0x7c6   : > { %8768 = vmatprep.mubr.bf16.mxu0 %v13417_v53  ;;  %8809 = vmatprep.mubr.bf16.mxu1 %v13417_v53 }
 0x7c8   : > { %8739 = vmatpush1.bf16.msra.mxu0 %v13216_v17  ;;  %8780 = vmatpush1.bf16.msra.mxu1 %v13219_v54  ;;  %v13296_v17 = vld [vmem:[%s13494_s23 + $0x644] ss:$16 sps:$4 sm:$0xff]   ;;  %v13299_v54 = vld [vmem:[%s13494_s23 + $0x64c] ss:$16 sps:$4 sm:$0xff]  }
 0x7c9   : > { %8740 = vmatprep.subr.bf16.mxu0 %v13224_v36  ;;  %8781 = vmatprep.subr.bf16.mxu1 %v13227_v9  ;;  %v13294_v36 = vld [vmem:[%s13494_s23 + $0x640] ss:$16 sps:$4 sm:$0xff]   ;;  %v13297_v9 = vld [vmem:[%s13494_s23 + $0x648] ss:$16 sps:$4 sm:$0xff]  }
 0x7cc   : > { %8741 = vmatpush1.bf16.msra.mxu0 %v13222_v58  ;;  %8782 = vmatpush1.bf16.msra.mxu1 %v13225_v40  ;;  %v9216_v58 = vrot.slane %v15813_v8, 4  ;;  %v9217_v40 = vrot.slane %v15805_v14, 3 }
 0x7cd   : > { %8742 = vmatprep.subr.bf16.mxu0 %v13230_v23  ;;  %8783 = vmatprep.subr.bf16.mxu1 %v13233_v28  ;;  %v13302_v23 = vld [vmem:[%s13494_s23 + $0x664] ss:$16 sps:$4 sm:$0xff]   ;;  %v13300_v28 = vld [vmem:[%s13494_s23 + $0x660] ss:$16 sps:$4 sm:$0xff]  }
 0x7d0   : > { %8743 = vmatpush1.bf16.msra.mxu0 %v13228_v59  ;;  %8784 = vmatpush1.bf16.msra.mxu1 %v13231_v18  ;;  %v13303_v59 = vld [vmem:[%s13494_s23 + $0x668] ss:$16 sps:$4 sm:$0xff]   ;;  %v9218_v18 = vsel %vm6969_vm1, %v9217_v40, %v9216_v58  ;;  %v9784_v58 = vrot.slane %v15805_v14, 6  ;;  %v13374_v40 = vld [vmem:[%s13494_s23 + $0x7e4] ss:$16 sps:$4 sm:$0xff]  }
 0x7d1   : > { %8925 = vmatprep.subr.bf16.mxu0 %v13236_v56  ;;  %8966 = vmatprep.subr.bf16.mxu1 %v13239_v24  ;;  %v13308_v56 = vld [vmem:[%s13494_s23 + $0x684] ss:$16 sps:$4 sm:$0xff]   ;;  %v9219_v24 = vpack.c.b16 %v9218_v18, %v9218_v18  ;;  %v13418_v14 = vmov 1983009808   ;;  %v9966_v18 = vlaneseq }
 0x7d3   : > { %10889 = vmatmul.mubr.msk.bf16.vlgmr.msra.gmra.mrb[0].mxu0 %vm7052_vm2, %v8652_v26  ;;  %10890 = vmatmul.mubr.msk.bf16.vlgmr.msra.gmra.mrb[0].mxu1 %vm7052_vm2, %v8652_v26  ;;  %v13314_v26 = vld [vmem:[%s13494_s23 + $0x6a4] ss:$16 sps:$4 sm:$0xff]  }
 0x7d4   : > { %8926 = vmatpush1.bf16.msra.mxu0 %v13234_v15  ;;  %8967 = vmatpush1.bf16.msra.mxu1 %v13237_v21  ;;  %v13306_v15 = vld [vmem:[%s13494_s23 + $0x680] ss:$16 sps:$4 sm:$0xff]   ;;  %v13309_v21 = vld [vmem:[%s13494_s23 + $0x688] ss:$16 sps:$4 sm:$0xff]  }
 0x7d5   : > { %8927 = vmatprep.subr.bf16.mxu0 %v13242_v22  ;;  %8968 = vmatprep.subr.bf16.mxu1 %v13245_v44  ;;  %v13317_v22 = vld [vmem:[%s13494_s23 + $0x6ac] ss:$16 sps:$4 sm:$0xff]   ;;  %v13312_v44 = vld [vmem:[%s13494_s23 + $0x6a0] ss:$16 sps:$4 sm:$0xff]  }
 0x7d6   : > { %8957 = vmatprep.mubr.bf16.mxu0 %v13417_v53  ;;  %8998 = vmatprep.mubr.bf16.mxu1 %v13417_v53 }
 0x7d8   : > { %8928 = vmatpush1.bf16.msra.mxu0 %v13240_v37  ;;  %8969 = vmatpush1.bf16.msra.mxu1 %v13243_v63  ;;  %v13315_v37 = vld [vmem:[%s13494_s23 + $0x6a8] ss:$16 sps:$4 sm:$0xff]   ;;  %v13320_v63 = vld [vmem:[%s13494_s23 + $0x6c4] ss:$16 sps:$4 sm:$0xff]  }
 0x7d9   : > { %8929 = vmatprep.subr.bf16.mxu0 %v13248_v35  ;;  %8970 = vmatprep.subr.bf16.mxu1 %v13251_v27  ;;  %v13323_v35 = vld [vmem:[%s13494_s23 + $0x6cc] ss:$16 sps:$4 sm:$0xff]   ;;  %v13318_v27 = vld [vmem:[%s13494_s23 + $0x6c0] ss:$16 sps:$4 sm:$0xff]  }
 0x7dc   : > { %8930 = vmatpush1.bf16.msra.mxu0 %v13246_v34  ;;  %8971 = vmatpush1.bf16.msra.mxu1 %v13249_v60  ;;  %v13321_v34 = vld [vmem:[%s13494_s23 + $0x6c8] ss:$16 sps:$4 sm:$0xff]   ;;  %v9405_v60 = vrot.slane %v15813_v8, 5 }
 0x7dd   : > { %8931 = vmatprep.subr.bf16.mxu0 %v13254_v41  ;;  %8972 = vmatprep.subr.bf16.mxu1 %v13257_v49  ;;  %v13329_v41 = vld [vmem:[%s13494_s23 + $0x6ec] ss:$16 sps:$4 sm:$0xff]   ;;  %v13324_v49 = vld [vmem:[%s13494_s23 + $0x6e0] ss:$16 sps:$4 sm:$0xff]  }
 0x7e0   : > { %8932 = vmatpush1.bf16.msra.mxu0 %v13252_v42  ;;  %8973 = vmatpush1.bf16.msra.mxu1 %v13255_v0  ;;  %v13327_v42 = vld [vmem:[%s13494_s23 + $0x6e8] ss:$16 sps:$4 sm:$0xff]   ;;  %v9407_v0 = vsel %vm6969_vm1, %v9406_v52, %v9405_v60 }
 0x7e1   : > { %9114 = vmatprep.subr.bf16.mxu0 %v13260_v46  ;;  %9155 = vmatprep.subr.bf16.mxu1 %v13263_v62  ;;  %v13335_v46 = vld [vmem:[%s13494_s23 + $0x70c] ss:$16 sps:$4 sm:$0xff]   ;;  %v9408_v62 = vpack.c.b16 %v9407_v0, %v9407_v0 }
 0x7e2   : > { %v10043_v0 = vld [vmem:[%s16233_s9 + $0x88] sm:$0xff] (!%p10999_p5) }
 0x7e3   : > { %10907 = vmatmul.mubr.msk.bf16.vlgmr.msra.gmra.mrb[0].mxu0 %vm7052_vm2, %v8841_v29  ;;  %10908 = vmatmul.mubr.msk.bf16.vlgmr.msra.gmra.mrb[0].mxu1 %vm7052_vm2, %v8841_v29  ;;  %v13330_v29 = vld [vmem:[%s13494_s23 + $0x700] ss:$16 sps:$4 sm:$0xff]  }
 0x7e4   : > { %9115 = vmatpush1.bf16.msra.mxu0 %v13258_v43  ;;  %9156 = vmatpush1.bf16.msra.mxu1 %v13261_v33  ;;  %v13333_v43 = vld [vmem:[%s13494_s23 + $0x708] ss:$16 sps:$4 sm:$0xff]   ;;  %v13338_v33 = vld [vmem:[%s13494_s23 + $0x724] ss:$16 sps:$4 sm:$0xff]  }
 0x7e5   : > { %9116 = vmatprep.subr.bf16.mxu0 %v13266_v5  ;;  %9157 = vmatprep.subr.bf16.mxu1 %v13269_v3  ;;  %v13341_v5 = vld [vmem:[%s13494_s23 + $0x72c] ss:$16 sps:$4 sm:$0xff]   ;;  %v13336_v3 = vld [vmem:[%s13494_s23 + $0x720] ss:$16 sps:$4 sm:$0xff]  }
 0x7e6   : > { %9146 = vmatprep.mubr.bf16.mxu0 %v13417_v53  ;;  %9187 = vmatprep.mubr.bf16.mxu1 %v13417_v53 }
 0x7e8   : > { %9117 = vmatpush1.bf16.msra.mxu0 %v13264_v45  ;;  %9158 = vmatpush1.bf16.msra.mxu1 %v13267_v6  ;;  %v13339_v45 = vld [vmem:[%s13494_s23 + $0x728] ss:$16 sps:$4 sm:$0xff]   ;;  %v13344_v6 = vld [vmem:[%s13494_s23 + $0x744] ss:$16 sps:$4 sm:$0xff]  }
 0x7e9   : > { %9118 = vmatprep.subr.bf16.mxu0 %v13272_v2  ;;  %9159 = vmatprep.subr.bf16.mxu1 %v13275_v61  ;;  %v13347_v2 = vld [vmem:[%s13494_s23 + $0x74c] ss:$16 sps:$4 sm:$0xff]   ;;  %v13342_v61 = vld [vmem:[%s13494_s23 + $0x740] ss:$16 sps:$4 sm:$0xff]  }
 0x7ec   : > { %9119 = vmatpush1.bf16.msra.mxu0 %v13270_v39  ;;  %9160 = vmatpush1.bf16.msra.mxu1 %v13273_v50  ;;  %v13345_v39 = vld [vmem:[%s13494_s23 + $0x748] ss:$16 sps:$4 sm:$0xff]   ;;  %v9594_v50 = vrot.slane %v15813_v8, 6 }
 0x7ed   : > { %9120 = vmatprep.subr.bf16.mxu0 %v13278_v20  ;;  %9161 = vmatprep.subr.bf16.mxu1 %v13281_v51  ;;  %v13353_v20 = vld [vmem:[%s13494_s23 + $0x76c] ss:$16 sps:$4 sm:$0xff]   ;;  %v13348_v51 = vld [vmem:[%s13494_s23 + $0x760] ss:$16 sps:$4 sm:$0xff]  }
 0x7f0   : > { %9121 = vmatpush1.bf16.msra.mxu0 %v13276_v16  ;;  %9162 = vmatpush1.bf16.msra.mxu1 %v13279_v25  ;;  %v13351_v16 = vld [vmem:[%s13494_s23 + $0x768] ss:$16 sps:$4 sm:$0xff]   ;;  %v9596_v25 = vsel %vm6969_vm1, %v9595_v47, %v9594_v50 }
 0x7f1   : > { %9303 = vmatprep.subr.bf16.mxu0 %v13284_v19  ;;  %9344 = vmatprep.subr.bf16.mxu1 %v13287_v12  ;;  %v13359_v19 = vld [vmem:[%s13494_s23 + $0x78c] ss:$16 sps:$4 sm:$0xff]   ;;  %v9597_v12 = vpack.c.b16 %v9596_v25, %v9596_v25 }
 0x7f2   : > { %v10029_v50 = vld [vmem:[%s16233_s9 + $0x18] sm:$0xff] (!%p10999_p5) }
 0x7f3   : > { %10925 = vmatmul.mubr.msk.bf16.vlgmr.msra.gmra.mrb[0].mxu0 %vm7052_vm2, %v9030_v1  ;;  %10926 = vmatmul.mubr.msk.bf16.vlgmr.msra.gmra.mrb[0].mxu1 %vm7052_vm2, %v9030_v1  ;;  %v13354_v1 = vld [vmem:[%s13494_s23 + $0x780] ss:$16 sps:$4 sm:$0xff]  }
 0x7f4   : > { %9304 = vmatpush1.bf16.msra.mxu0 %v13282_v30  ;;  %9345 = vmatpush1.bf16.msra.mxu1 %v13285_v10  ;;  %v13357_v30 = vld [vmem:[%s13494_s23 + $0x788] ss:$16 sps:$4 sm:$0xff]   ;;  %v13362_v10 = vld [vmem:[%s13494_s23 + $0x7a4] ss:$16 sps:$4 sm:$0xff]  }
 0x7f5   : > { %9305 = vmatprep.subr.bf16.mxu0 %v13290_v48  ;;  %9346 = vmatprep.subr.bf16.mxu1 %v13293_v13  ;;  %v13365_v48 = vld [vmem:[%s13494_s23 + $0x7ac] ss:$16 sps:$4 sm:$0xff]   ;;  %v13360_v13 = vld [vmem:[%s13494_s23 + $0x7a0] ss:$16 sps:$4 sm:$0xff]  }
 0x7f6   : > { %9335 = vmatprep.mubr.bf16.mxu0 %v13417_v53  ;;  %9376 = vmatprep.mubr.bf16.mxu1 %v13417_v53 }
 0x7f8   : > { %9306 = vmatpush1.bf16.msra.mxu0 %v13288_v57  ;;  %9347 = vmatpush1.bf16.msra.mxu1 %v13291_v4  ;;  %v13363_v57 = vld [vmem:[%s13494_s23 + $0x7a8] ss:$16 sps:$4 sm:$0xff]   ;;  %v13368_v4 = vld [vmem:[%s13494_s23 + $0x7c4] ss:$16 sps:$4 sm:$0xff]  }
 0x7f9   : > { %9307 = vmatprep.subr.bf16.mxu0 %v13296_v17  ;;  %9348 = vmatprep.subr.bf16.mxu1 %v13299_v54  ;;  %v13371_v17 = vld [vmem:[%s13494_s23 + $0x7cc] ss:$16 sps:$4 sm:$0xff]   ;;  %v13366_v54 = vld [vmem:[%s13494_s23 + $0x7c0] ss:$16 sps:$4 sm:$0xff]  }
 0x7fc   : > { %9308 = vmatpush1.bf16.msra.mxu0 %v13294_v36  ;;  %9349 = vmatpush1.bf16.msra.mxu1 %v13297_v9  ;;  %v13369_v36 = vld [vmem:[%s13494_s23 + $0x7c8] ss:$16 sps:$4 sm:$0xff]   ;;  %v9783_v9 = vrot.slane %v15813_v8, 7  ;;  %v9964_v8 = vunpack.c.l.s4 %v13418_v14 }
 0x7fd   : > { %9309 = vmatprep.subr.bf16.mxu0 %v13302_v23  ;;  %9350 = vmatprep.subr.bf16.mxu1 %v13305_v7  ;;  %v13377_v23 = vld [vmem:[%s13494_s23 + $0x7ec] ss:$16 sps:$4 sm:$0xff]   ;;  %v13372_v7 = vld [vmem:[%s13494_s23 + $0x7e0] ss:$16 sps:$4 sm:$0xff]  }
 0x800   : > { %9310 = vmatpush1.bf16.msra.mxu0 %v13300_v28  ;;  %9351 = vmatpush1.bf16.msra.mxu1 %v13303_v59  ;;  %v13375_v28 = vld [vmem:[%s13494_s23 + $0x7e8] ss:$16 sps:$4 sm:$0xff]   ;;  %v9785_v59 = vsel %vm6969_vm1, %v9784_v58, %v9783_v9  ;;  %v10048_v9 = vld [vmem:[%s16233_s9 + $0xb0] sm:$0xff] (!%p10999_p5) }
 0x801   : > { %9492 = vmatprep.subr.bf16.mxu0 %v13308_v56  ;;  %9533 = vmatprep.subr.bf16.mxu1 %v13311_v11  ;;  %v9965_v56 = vunpack.c.0.s8 %v9964_v8  ;;  %v15984_v11 = vshrl.u32 %v9966_v18, 7  ;;  %v10049_v58 = vld [vmem:[%s16233_s9 + $0xb8] sm:$0xff] (!%p10999_p5)  ;;  %v10064_v8 = vld [vmem:[%s16233_s9 + $0x130] sm:$0xff] (!%p10999_p5) }
 0x802   : > { %v10065_v18 = vld [vmem:[%s16233_s9 + $0x138] sm:$0xff] (!%p10999_p5) }
 0x803   : > { %10943 = vmatmul.mubr.msk.bf16.vlgmr.msra.gmra.mrb[0].mxu0 %vm7052_vm2, %v9219_v24  ;;  %10944 = vmatmul.mubr.msk.bf16.vlgmr.msra.gmra.mrb[0].mxu1 %vm7052_vm2, %v9219_v24 }
 0x804   : > { %9493 = vmatpush1.bf16.msra.mxu0 %v13306_v15  ;;  %9534 = vmatpush1.bf16.msra.mxu1 %v13309_v21  ;;  %v15987_v21 = vsub.s32 %v9965_v56, %v15984_v11  ;;  %v10050_v56 = vld [vmem:[%s16233_s9 + $0xc0] sm:$0xff] (!%p10999_p5) }
 0x805   : > { %9494 = vmatprep.subr.bf16.mxu0 %v13314_v26  ;;  %9535 = vmatprep.subr.bf16.mxu1 %v13317_v22 }
 0x806   : > { %9524 = vmatprep.mubr.bf16.mxu0 %v13417_v53  ;;  %9565 = vmatprep.mubr.bf16.mxu1 %v13417_v53 }
 0x808   : > { %9495 = vmatpush1.bf16.msra.mxu0 %v13312_v44  ;;  %9536 = vmatpush1.bf16.msra.mxu1 %v13315_v37 }
 0x809   : > { %9496 = vmatprep.subr.bf16.mxu0 %v13320_v63  ;;  %9537 = vmatprep.subr.bf16.mxu1 %v13323_v35 }
 0x80c   : > { %9497 = vmatpush1.bf16.msra.mxu0 %v13318_v27  ;;  %9538 = vmatpush1.bf16.msra.mxu1 %v13321_v34 }
 0x80d   : > { %9498 = vmatprep.subr.bf16.mxu0 %v13326_v31  ;;  %9539 = vmatprep.subr.bf16.mxu1 %v13329_v41  ;;  %v9956_v31 = vld [vmem:[#allocation4] sm:$0xff] }
 0x810   : > { %9499 = vmatpush1.bf16.msra.mxu0 %v13324_v49  ;;  %9540 = vmatpush1.bf16.msra.mxu1 %v13327_v42  ;;  %v10042_v42 = vld [vmem:[%s16233_s9 + $0x80] sm:$0xff] (!%p10999_p5) }
 0x811   : > { %9681 = vmatprep.subr.bf16.mxu0 %v13332_v32  ;;  %9722 = vmatprep.subr.bf16.mxu1 %v13335_v46  ;;  %v10026_v32 = vld [vmem:[%s16233_s9] sm:$0xff] (!%p10999_p5)  ;;  %v12676_v46 = vpack.c.bf16 (!%p10999_p5), %v10043_v0, %v10042_v42 }
 0x813   : > { %10961 = vmatmul.mubr.msk.bf16.vlgmr.msra.gmra.mrb[0].mxu0 %vm7052_vm2, %v9408_v62  ;;  %10962 = vmatmul.mubr.msk.bf16.vlgmr.msra.gmra.mrb[0].mxu1 %vm7052_vm2, %v9408_v62  ;;  %v10027_v62 = vld [vmem:[%s16233_s9 + $0x8] sm:$0xff] (!%p10999_p5) }
 0x814   : > { %9682 = vmatpush1.bf16.msra.mxu0 %v13330_v29  ;;  %9723 = vmatpush1.bf16.msra.mxu1 %v13333_v43  ;;  %v10074_v29 = vld [vmem:[%s16233_s9 + $0x180] sm:$0xff] (!%p10999_p5)  ;;  %v10075_v43 = vld [vmem:[%s16233_s9 + $0x188] sm:$0xff] (!%p10999_p5) }
 0x815   : > { %9683 = vmatprep.subr.bf16.mxu0 %v13338_v33  ;;  %9724 = vmatprep.subr.bf16.mxu1 %v13341_v5  ;;  %v12678_v33 = vpack.c.bf16 (!%p10999_p5), %v10027_v62, %v10026_v32  ;;  %v12708_v5 = vpack.c.bf16 (!%p10999_p5), %v10075_v43, %v10074_v29  ;;  %v10037_v62 = vld [vmem:[%s16233_s9 + $0x58] sm:$0xff] (!%p10999_p5)  ;;  %v10068_v29 = vld [vmem:[%s16233_s9 + $0x150] sm:$0xff] (!%p10999_p5) }
 0x816   : > { %9713 = vmatprep.mubr.bf16.mxu0 %v13417_v53  ;;  %9754 = vmatprep.mubr.bf16.mxu1 %v13417_v53 }
 0x818   : > { %9684 = vmatpush1.bf16.msra.mxu0 %v13336_v3  ;;  %9725 = vmatpush1.bf16.msra.mxu1 %v13339_v45  ;;  %v10058_v3 = vld [vmem:[%s16233_s9 + $0x100] sm:$0xff] (!%p10999_p5)  ;;  %v10059_v45 = vld [vmem:[%s16233_s9 + $0x108] sm:$0xff] (!%p10999_p5) }
 0x819   : > { %9685 = vmatprep.subr.bf16.mxu0 %v13344_v6  ;;  %9726 = vmatprep.subr.bf16.mxu1 %v13347_v2  ;;  %v10044_v6 = vld [vmem:[%s16233_s9 + $0x90] sm:$0xff] (!%p10999_p5)  ;;  %v12710_v2 = vpack.c.bf16 (!%p10999_p5), %v10059_v45, %v10058_v3  ;;  %v10055_v3 = vld [vmem:[%s16233_s9 + $0xe8] sm:$0xff] (!%p10999_p5)  ;;  %v9990_v45 = vsub.s32 (!%p10999_p5), 0, %v15984_v11 }
 0x81c   : > { %9686 = vmatpush1.bf16.msra.mxu0 %v13342_v61  ;;  %9727 = vmatpush1.bf16.msra.mxu1 %v13345_v39  ;;  %v10045_v61 = vld [vmem:[%s16233_s9 + $0x98] sm:$0xff] (!%p10999_p5)  ;;  %v10028_v39 = vld [vmem:[%s16233_s9 + $0x10] sm:$0xff] (!%p10999_p5) }
 0x81d   : > { %9687 = vmatprep.subr.bf16.mxu0 %v13350_v38  ;;  %9728 = vmatprep.subr.bf16.mxu1 %v13353_v20  ;;  %v12680_v47 = vpack.c.bf16 (!%p10999_p5), %v10045_v61, %v10044_v6  ;;  %v12682_v38 = vpack.c.bf16 (!%p10999_p5), %v10029_v50, %v10028_v39  ;;  %v10076_v20 = vld [vmem:[%s16233_s9 + $0x190] sm:$0xff] (!%p10999_p5)  ;;  %v9994_v6 = vsub.s32 (!%p10999_p5), 1, %v15984_v11  ;;  %v10086_v61 = vld [vmem:[%s16233_s9 + $0x1e0] sm:$0xff] (!%p10999_p5)  ;;  %v10087_v39 = vld [vmem:[%s16233_s9 + $0x1e8] sm:$0xff] (!%p10999_p5)  ;;  %v10002_v50 = vsub.s32 (!%p10999_p5), 3, %v15984_v11 }
 0x820   : > { %9688 = vmatpush1.bf16.msra.mxu0 %v13348_v51  ;;  %9729 = vmatpush1.bf16.msra.mxu1 %v13351_v16  ;;  %v10077_v51 = vld [vmem:[%s16233_s9 + $0x198] sm:$0xff] (!%p10999_p5)  ;;  %v10060_v16 = vld [vmem:[%s16233_s9 + $0x110] sm:$0xff] (!%p10999_p5) }
 0x821   : > { %9870 = vmatprep.subr.bf16.mxu0 %v13356_v55  ;;  %9911 = vmatprep.subr.bf16.mxu1 %v13359_v19  ;;  %v12712_v25 = vpack.c.bf16 (!%p10999_p5), %v10077_v51, %v10076_v20  ;;  %v10061_v55 = vld [vmem:[%s16233_s9 + $0x118] sm:$0xff] (!%p10999_p5)  ;;  %v10046_v19 = vld [vmem:[%s16233_s9 + $0xa0] sm:$0xff] (!%p10999_p5) }
 0x823   : > { %10979 = vmatmul.mubr.msk.bf16.vlgmr.msra.gmra.mrb[0].mxu0 %vm7052_vm2, %v9597_v12  ;;  %10980 = vmatmul.mubr.msk.bf16.vlgmr.msra.gmra.mrb[0].mxu1 %vm7052_vm2, %v9597_v12  ;;  %v10047_v12 = vld [vmem:[%s16233_s9 + $0xa8] sm:$0xff] (!%p10999_p5) }
 0x824   : > { %9871 = vmatpush1.bf16.msra.mxu0 %v13354_v1  ;;  %9912 = vmatpush1.bf16.msra.mxu1 %v13357_v30  ;;  %v12714_v1 = vpack.c.bf16 (!%p10999_p5), %v10061_v55, %v10060_v16  ;;  %v12684_v30 = vpack.c.bf16 (!%p10999_p5), %v10047_v12, %v10046_v19  ;;  %v10039_v16 = vld [vmem:[%s16233_s9 + $0x68] sm:$0xff] (!%p10999_p5)  ;;  %v12732_v55 = vpack.c.bf16 (!%p10999_p5), %v10087_v39, %v10086_v61  ;;  %v10056_v12 = vld [vmem:[%s16233_s9 + $0xf0] sm:$0xff] (!%p10999_p5) }
 0x825   : > { %9872 = vmatprep.subr.bf16.mxu0 %v13362_v10  ;;  %9913 = vmatprep.subr.bf16.mxu1 %v13365_v48  ;;  %v10030_v10 = vld [vmem:[%s16233_s9 + $0x20] sm:$0xff] (!%p10999_p5)  ;;  %v10031_v48 = vld [vmem:[%s16233_s9 + $0x28] sm:$0xff] (!%p10999_p5) }
 0x826   : > { %9902 = vmatprep.mubr.bf16.mxu0 %v13417_v53  ;;  %9943 = vmatprep.mubr.bf16.mxu1 %v13417_v53  ;;  %v9786_v53 = vpack.c.b16 %v9785_v59, %v9785_v59  ;;  %v10080_v59 = vld [vmem:[%s16233_s9 + $0x1b0] sm:$0xff] (!%p10999_p5)  ;;  %v10071_v19 = vld [vmem:[%s16233_s9 + $0x168] sm:$0xff] (!%p10999_p5) }
 0x828   : > { %9873 = vmatpush1.bf16.msra.mxu0 %v13360_v13  ;;  %9914 = vmatpush1.bf16.msra.mxu1 %v13363_v57  ;;  %v10078_v13 = vld [vmem:[%s16233_s9 + $0x1a0] sm:$0xff] (!%p10999_p5)  ;;  %v10079_v57 = vld [vmem:[%s16233_s9 + $0x1a8] sm:$0xff] (!%p10999_p5) }
 0x829   : > { %9874 = vmatprep.subr.bf16.mxu0 %v13368_v4  ;;  %9915 = vmatprep.subr.bf16.mxu1 %v13371_v17  ;;  %v10062_v4 = vld [vmem:[%s16233_s9 + $0x120] sm:$0xff] (!%p10999_p5)  ;;  %v10063_v17 = vld [vmem:[%s16233_s9 + $0x128] sm:$0xff] (!%p10999_p5) }
 0x82c   : > { %9875 = vmatpush1.bf16.msra.mxu0 %v13366_v54  ;;  %9916 = vmatpush1.bf16.msra.mxu1 %v13369_v36  ;;  %v12686_v54 = vpack.c.bf16 (!%p10999_p5), %v10031_v48, %v10030_v10  ;;  %v12716_v36 = vpack.c.bf16 (!%p10999_p5), %v10079_v57, %v10078_v13  ;;  %v10088_v13 = vld [vmem:[%s16233_s9 + $0x1f0] sm:$0xff] (!%p10999_p5)  ;;  %v10089_v57 = vld [vmem:[%s16233_s9 + $0x1f8] sm:$0xff] (!%p10999_p5) }
 0x82d   : > { %9876 = vmatprep.subr.bf16.mxu0 %v13374_v40  ;;  %9917 = vmatprep.subr.bf16.mxu1 %v13377_v23  ;;  %v10032_v40 = vld [vmem:[%s16233_s9 + $0x30] sm:$0xff] (!%p10999_p5)  ;;  %v12718_v23 = vpack.c.bf16 (!%p10999_p5), %v10063_v17, %v10062_v4 }
 0x830   : > { %9877 = vmatpush1.bf16.msra.mxu0 %v13372_v7  ;;  %9918 = vmatpush1.bf16.msra.mxu1 %v13375_v28  ;;  %v12688_v7 = vpack.c.bf16 (!%p10999_p5), %v10049_v58, %v10048_v9  ;;  %v10033_v28 = vld [vmem:[%s16233_s9 + $0x38] sm:$0xff] (!%p10999_p5)  ;;  %v10040_v58 = vld [vmem:[%s16233_s9 + $0x70] sm:$0xff] (!%p10999_p5) }
 0x831   : > { %12677 = vmatprep.subr.bf16.mxu0 (!%p10999_p5), %v12676_v46  ;;  %12709 = vmatprep.subr.bf16.mxu1 (!%p10999_p5), %v12708_v5  ;;  %v10036_v46 = vld [vmem:[%s16233_s9 + $0x50] sm:$0xff] (!%p10999_p5)  ;;  %v10054_v5 = vld [vmem:[%s16233_s9 + $0xe0] sm:$0xff] (!%p10999_p5) }
 0x832   : > { %v12700_v51 = vpack.c.bf16 (!%p10999_p5), %v10055_v3, %v10054_v5 }
 0x833   : > { %10997 = vmatmul.mubr.msk.bf16.vlgmr.msra.gmra.mrb[0].mxu0 %vm7052_vm2, %v9786_v53  ;;  %10998 = vmatmul.mubr.msk.bf16.vlgmr.msra.gmra.mrb[0].mxu1 %vm7052_vm2, %v9786_v53  ;;  %v10081_v53 = vld [vmem:[%s16233_s9 + $0x1b8] sm:$0xff] (!%p10999_p5) }
 0x834   : > { %12679 = vmatpush3.bf16.msra.mxu0 (!%p10999_p5), %v12678_v33  ;;  %12711 = vmatpush3.bf16.msra.mxu1 (!%p10999_p5), %v12710_v2  ;;  %v12720_v14 = vpack.c.bf16 (!%p10999_p5), %v10081_v53, %v10080_v59  ;;  %v10069_v33 = vld [vmem:[%s16233_s9 + $0x158] sm:$0xff] (!%p10999_p5)  ;;  %v9998_v2 = vsub.s32 (!%p10999_p5), 2, %v15984_v11  ;;  %v9986_v11 = vld [vmem:[%s16232_s8] sm:$0xf] (!%p10999_p5) }
 0x835   : > { %12681 = vmatprep.subr.bf16.mxu0 (!%p10999_p5), %v12680_v47  ;;  %12713 = vmatprep.subr.bf16.mxu1 (!%p10999_p5), %v12712_v25  ;;  %v12698_v47 = vpack.c.bf16 (!%p10999_p5), %v10037_v62, %v10036_v46  ;;  %v12730_v20 = vpack.c.bf16 (!%p10999_p5), %v10069_v33, %v10068_v29  ;;  %v10070_v25 = vld [vmem:[%s16233_s9 + $0x160] sm:$0xff] (!%p10999_p5)  ;;  %v9995_v10 = vrot.slane (!%p10999_p5), %v9986_v11, %v9994_v6  ;;  %v10073_v59 = vld [vmem:[%s16233_s9 + $0x178] sm:$0xff] (!%p10999_p5) }
 0x836   : > { %v9999_v48 = vrot.slane (!%p10999_p5), %v9986_v11, %v9998_v2  ;;  %v10003_v4 = vrot.slane (!%p10999_p5), %v9986_v11, %v10002_v50 }
 0x838   : > { %12683 = vmatpush3.bf16.msra.mxu0 (!%p10999_p5), %v12682_v38  ;;  %12715 = vmatpush3.bf16.msra.mxu1 (!%p10999_p5), %v12714_v1  ;;  %v10038_v38 = vld [vmem:[%s16233_s9 + $0x60] sm:$0xff] (!%p10999_p5)  ;;  %v10057_v1 = vld [vmem:[%s16233_s9 + $0xf8] sm:$0xff] (!%p10999_p5) }
 0x839   : > { %12685 = vmatprep.subr.bf16.mxu0 (!%p10999_p5), %v12684_v30  ;;  %12717 = vmatprep.subr.bf16.mxu1 (!%p10999_p5), %v12716_v36  ;;  %v9991_v30 = vrot.slane (!%p10999_p5), %v9986_v11, %v9990_v45  ;;  %v12702_v17 = vpack.c.bf16 (!%p10999_p5), %v10039_v16, %v10038_v38  ;;  %v12734_v36 = vpack.c.bf16 (!%p10999_p5), %v10071_v19, %v10070_v25 }
 0x83a   : > { %v12704_v9 = vpack.c.bf16 (!%p10999_p5), %v10057_v1, %v10056_v12 }
 0x83c   : > { %12687 = vmatpush3.bf16.msra.mxu0 (!%p10999_p5), %v12686_v54  ;;  %12719 = vmatpush3.bf16.msra.mxu1 (!%p10999_p5), %v12718_v23  ;;  %v10004_v54 = vcombine.low (!%p10999_p5), %v9991_v30, %v9995_v10  ;;  %v10005_v23 = vcombine.low (!%p10999_p5), %v9999_v48, %v10003_v4 }
 0x83d   : > { %12689 = vmatprep.subr.bf16.mxu0 (!%p10999_p5), %v12688_v7  ;;  %12721 = vmatprep.subr.bf16.mxu1 (!%p10999_p5), %v12720_v14  ;;  %v12736_v7 = vpack.c.bf16 (!%p10999_p5), %v10089_v57, %v10088_v13 }
 0x83e   : > { %v10012_v53 = vrot.slane (!%p10999_p5), %v10004_v54, %v15987_v21  ;;  %v10019_v14 = vrot.slane (!%p10999_p5), %v10005_v23, %v15987_v21 }
 0x906   : > { %v9904_v24 = vpop.f32.mrb[0].mxu0  ;;  %v9945_v15 = vpop.f32.mrb[0].mxu1 }
 0x907   : > { %v9906_v26 = vpop.f32.mrb[1].mxu0  ;;  %v9947_v22 = vpop.f32.mrb[1].mxu1 }
 0x908   : > { %v9961_v44 = vcombine.low %v9904_v24, %v9906_v26  ;;  %v9962_v37 = vcombine.low %v9945_v15, %v9947_v22  ;;  %v9908_v63 = vpop.f32.mrb[2].mxu0  ;;  %v9949_v35 = vpop.f32.mrb[2].mxu1  ;;  %v10051_v24 = vld [vmem:[%s16233_s9 + $0xc8] sm:$0xff] (!%p10999_p5)  ;;  %v12690_v15 = vpack.c.bf16 (!%p10999_p5), %v10033_v28, %v10032_v40  ;;  %v10082_v26 = vld [vmem:[%s16233_s9 + $0x1c0] sm:$0xff] (!%p10999_p5)  ;;  %v10041_v40 = vld [vmem:[%s16233_s9 + $0x78] sm:$0xff] (!%p10999_p5) }
 0x909   : > { %v9909_v27 = vpop.f32.mrb[3].mxu0  ;;  %v9950_v34 = vpop.f32.mrb[3].mxu1  ;;  %v10083_v22 = vld [vmem:[%s16233_s9 + $0x1c8] sm:$0xff] (!%p10999_p5)  ;;  %v10034_v63 = vld [vmem:[%s16233_s9 + $0x40] sm:$0xff] (!%p10999_p5)  ;;  %v10072_v28 = vld [vmem:[%s16233_s9 + $0x170] sm:$0xff] (!%p10999_p5) }
 0x90a   : > { %v9969_v60 = vrot.slane %v9961_v44, %v15987_v21  ;;  %v9976_v52 = vrot.slane %v9962_v37, %v15987_v21  ;;  %9984 = sbr.rel (%p10999_p5) target bundleno = 2558 (0x9fe), region = 72  ;;  %v12722_v44 = vpack.c.bf16 (!%p10999_p5), %v10065_v18, %v10064_v8  ;;  %v12692_v37 = vpack.c.bf16 (!%p10999_p5), %v10051_v24, %v10050_v56  ;;  %v10035_v35 = vld [vmem:[%s16233_s9 + $0x48] sm:$0xff] (!%p10999_p5)  ;;  %v10066_v27 = vld [vmem:[%s16233_s9 + $0x140] sm:$0xff] (!%p10999_p5)  ;;  %12691 = vmatpush3.bf16.msra.mxu0 (!%p10999_p5), %v12690_v15 }
 0x90b   : > { %v12724_v34 = vpack.c.bf16 (!%p10999_p5), %v10083_v22, %v10082_v26  ;;  %v12694_v42 = vpack.c.bf16 (!%p10999_p5), %v10035_v35, %v10034_v63  ;;  %v12706_v8 = vpack.c.bf16 (!%p10999_p5), %v10041_v40, %v10040_v58  ;;  %v12738_v56 = vpack.c.bf16 (!%p10999_p5), %v10073_v59, %v10072_v28 }
 0x90c   : > { %v9977_v41 = vcombine.low %v9969_v60, %v9976_v52  ;;  %v10067_v60 = vld [vmem:[%s16233_s9 + $0x148] sm:$0xff] (!%p10999_p5)  ;;  %v10052_v52 = vld [vmem:[%s16233_s9 + $0xd0] sm:$0xff] (!%p10999_p5)  ;;  %12723 = vmatpush3.bf16.msra.mxu1 (!%p10999_p5), %v12722_v44  ;;  %12693 = vmatprep.subr.bf16.mxu0 (!%p10999_p5), %v12692_v37  ;;  %v10020_v24 = vcombine.low (!%p10999_p5), %v10012_v53, %v10019_v14 }
 0x90d   : > { %v12726_v0 = vpack.c.bf16 (!%p10999_p5), %v10067_v60, %v10066_v27  ;;  %12725 = vmatprep.subr.bf16.mxu1 (!%p10999_p5), %v12724_v34  ;;  %v11000_v60 = vld [vmem:[%s16234_s10] ss:$0 sm:$0xff] (!%p10999_p5) }
 0x90e   : > { %v9979_v49 = vadd.f32 %v9977_v41, %v9956_v31  ;;  %v10053_v31 = vld [vmem:[%s16233_s9 + $0xd8] sm:$0xff] (!%p10999_p5)  ;;  %v10084_v41 = vld [vmem:[%s16233_s9 + $0x1d0] sm:$0xff] (!%p10999_p5)  ;;  %12695 = vmatpush3.bf16.msra.mxu0 (!%p10999_p5), %v12694_v42 }
 0x90f   : > { %v12696_v32 = vpack.c.bf16 (!%p10999_p5), %v10053_v31, %v10052_v52 }
 0x910   : > { %9980 = vst [vmem:[#allocation4] sm:$0xff] %v9979_v49  ;;  %v10085_v49 = vld [vmem:[%s16233_s9 + $0x1d8] sm:$0xff] (!%p10999_p5)  ;;  %12727 = vmatpush3.bf16.msra.mxu1 (!%p10999_p5), %v12726_v0 }
 0x911   : > { %v12728_v43 = vpack.c.bf16 %v10085_v49, %v10084_v41  ;;  %12697 = vmatprep.subr.bf16.mxu0 %v12696_v32 }
 0x912   : > { %12699 = vmatpush3.bf16.msra.mxu0 %v12698_v47 }
 0x913   : > { %12729 = vmatprep.subr.bf16.mxu1 %v12728_v43  ;;  %12701 = vmatprep.subr.bf16.mxu0 %v12700_v51 }
 0x914   : > { %12731 = vmatpush3.bf16.msra.mxu1 %v12730_v20 }
 0x915   : > { %12733 = vmatprep.subr.bf16.mxu1 %v12732_v55 }
 0x916   : > { %12703 = vmatpush3.bf16.msra.mxu0 %v12702_v17 }
 0x917   : > { %v9985_v18 = vld [vmem:[#allocation4] sm:$0xff]  ;;  %12705 = vmatprep.subr.bf16.mxu0 %v12704_v9 }
 0x918   : > { %12735 = vmatpush3.bf16.msra.mxu1 %v12734_v36  ;;  %v10022_v15 = vadd.f32 %v10020_v24, %v9985_v18 }
 0x919   : > { %12737 = vmatprep.subr.bf16.mxu1 %v12736_v7 }
 0x91a   : > { %12707 = vmatpush3.bf16.msra.mxu0 %v12706_v8  ;;  %vm10023_vm4 = vcmp.ge.f32.partialorder %v10022_v15, 0.0  ;;  %v10024_v26 = vmul.f32 0.01, %v10022_v15 }
 0x91c   : > { %12739 = vmatpush3.bf16.msra.mxu1 %v12738_v56  ;;  %v10025_v22 = vsel %vm10023_vm4, %v10022_v15, %v10024_v26 }
 0x91d   : > { %v10105_v44 = vrot.slane %v10025_v22, %v15987_v21  ;;  %v10098_v37 = vcombine.high %v10025_v22, %v10025_v22 }
 0x91f   : > { %v10113_v63 = vcombine.high %v10105_v44, %v10105_v44  ;;  %v10112_v35 = vrot.slane %v10098_v37, %v15987_v21 }
 0x921   : > { %10183 = vmatprep.mubr.f32.mxu0 %v10113_v63  ;;  %v10114_v27 = vcombine.high %v10112_v35, %v10112_v35 }
 0x922   : > { %10184 = vmatmul.mubr.f32.vlgmr.msra.gmra.mrb[0].mxu0 %v10105_v44 }
 0x923   : > { %10253 = vmatprep.mubr.f32.mxu1 %v10114_v27 }
 0x924   : > { %10254 = vmatmul.mubr.f32.vlgmr.msra.gmra.mrb[0].mxu1 %v10112_v35 }
 0x9f5   : > { %v11550_v34 = vpop.f32.mrb[0].mxu0 }
 0x9f6   : > { %v11551_v52 = vpop.f32.mrb[1].mxu0 }
 0x9f7   : > { %v11552_v31 = vadd.f32 %v11551_v52, %v11550_v34  ;;  %v11585_v41 = vpop.f32.mrb[0].mxu1 }
 0x9f8   : > { %v11586_v49 = vpop.f32.mrb[1].mxu1 }
 0x9f9   : > { %v10186_v42 = vadd.f32 %v11552_v31, %v11000_v60  ;;  %v11587_v0 = vadd.f32 %v11586_v49, %v11585_v41 }
 0x9fb   : > { %v10256_v32 = vadd.f32 %v11587_v0, %v10186_v42 }
 0x9fd   : > { %10259 = vst [vmem:[#allocation5] sm:$0x3] %v10256_v32 }
 0x9fe PF: > { %p12976_p6 = scmp.eq.s32.totalorder %s13486_s18, 3  ;;  %s13419_s24 = smov [#allocation5]  }
 0x9ff   : > { %s10267_s25 = sshll.u32 %s13419_s24, 4  ;;  %s10268_s25 = int_to_ptr.vmem [resolvable:$true] %s10267_s25 }
 0xa00   : > { %s13378_s26 = scalar_lea.vmem %s10268_s25, 32  ;;  %p13385_p10 = scmp.lt.s32.totalorder %s10268_s25, %s10268_s25 }
 0xa01   : > { %p13379_p7 = scmp.ne.s32.totalorder %s10268_s25, %s13378_s26  ;;  %p13386_p11 = scmp.lt.s32.totalorder %s13378_s26, %s13378_s26 }
 0xa03   : > { %p13380_p8 = pnand %p13379_p7, %p12976_p6  ;;  %p13387_p12 = por %p13386_p11, %p13385_p10 }
 0xa05   : > { %p13381_p9 = pneg %p13380_p8 }
 0xa07   : > { %p13388_p13 = pnand %p13387_p12, %p13381_p9 }
 0xa09   : > { %13391 = shalt.err (!%p13388_p13)
}
 0xa0a   : > { %s13392_s28 = scalar_lea.hbm %s16235_s11, 32 }
 0xa0b   : > { %p13393_p0 = scmp.ne.s32.totalorder %s16235_s11, %s13392_s28  ;;  %p13398_p3 = scmp.lt.u32.totalorder %s13392_s28, %s16235_s11 }
 0xa0d   : > { %p13394_p1 = pnand %p13393_p0, %p12976_p6 }
 0xa0f   : > { %p13395_p2 = pneg %p13394_p1 }
 0xa11   : > { %p13400_p4 = pnand %p13398_p3, %p13395_p2 }
 0xa13   : > { %13403 = shalt.err (!%p13400_p4)
}
 0xa14   : > { %12973 = dma.vmem_to_hbm [thread:$0]  (%p12976_p6), %s10268_s25, 32, %s16235_s11, [#allocation6]  }
 0xa15   : > { %13409 = dma.done.wait (%p12976_p6), [#allocation6], 32  }
 0xa16   : > { %13411 = vsyncadd (%p12976_p6), [#allocation6], 4294967264 }
 0xa17 PF: > { %s22_s17 = sadd.s32 1, %s13414_s17  }
 0xa18   : > { %p19_p5 = scmp.ge.s32.totalorder %s22_s17, 6  }
 0xa1a   :  { %21 = sbr.rel (!%p19_p5) target bundleno = 1 (0x1), region = 103 }
 0xa21   :  { %10280 = vsyncpa [#allocation6], 1 }
 0xa22   :  { %10282 = vsyncpa [#allocation6 + $0x1], 1 }

</bundles_post_ra>
